<compile_context>
chip_gen: v7x
topology: tpu7x:2x2x1
jax: 0.10.0
libtpu: 0.0.40
codegen_flags: <defaults>
</compile_context>

<pallas_src>
import functools

import jax
import jax.numpy as jnp
from jax.experimental import pallas as pl
from jax.experimental.pallas import tpu as pltpu

F32 = jnp.float32
BF16 = jnp.bfloat16
_VMEM_LIMIT = 32 * 1024 * 1024  # conservative; fits v7x's 64 MiB physical VMEM


# ----------------------------- Pallas kernels -----------------------------

def _mm_single_kernel(x_ref, w_ref, b_ref, *rest, relu, has_res):
    """nk==1 fast path: one dot, fused bias (+residual) (+ReLU), single store."""
    if has_res:
        r_ref, o_ref = rest
    else:
        (o_ref,) = rest
    y = jnp.dot(x_ref[...], w_ref[...],
                preferred_element_type=jnp.float32) + b_ref[...]
    if has_res:
        y = y + r_ref[...].astype(jnp.float32)
    if relu:
        y = jnp.maximum(y, 0.0)
    o_ref[...] = y.astype(o_ref.dtype)


def _mm_multi_kernel(x_ref, w_ref, b_ref, *rest, relu, has_res):
    """K-tiled matmul (grid = (M tiles, K tiles)); f32 VMEM accumulator,
    bias (+residual) (+ReLU) fused into the finalize of the last K step."""
    if has_res:
        r_ref, o_ref, acc_ref = rest
    else:
        o_ref, acc_ref = rest
    k = pl.program_id(1)

    @pl.when(k == 0)
    def _init():
        acc_ref[...] = jnp.zeros_like(acc_ref)

    acc_ref[...] += jnp.dot(x_ref[...], w_ref[...],
                            preferred_element_type=jnp.float32)

    @pl.when(k == pl.num_programs(1) - 1)
    def _finalize():
        y = acc_ref[...] + b_ref[...]
        if has_res:
            y = y + r_ref[...].astype(jnp.float32)
        if relu:
            y = jnp.maximum(y, 0.0)
        o_ref[...] = y.astype(o_ref.dtype)


def _gap_fc_kernel(x_ref, w_ref, b_ref, o_ref):
    # global average pool over the spatial axis + the folded (fc1 @ fc2) head
    feat = jnp.mean(x_ref[...].astype(jnp.float32), axis=1)      # [B, C]
    y = jnp.dot(feat, w_ref[...], preferred_element_type=jnp.float32)
    o_ref[...] = y + b_ref[...]


# ----------------------------- kernel wrappers -----------------------------

def _pick_tk(k_dim):
    """Largest multiple-of-128 divisor of K (<= 768) so the weight DMA pipelines
    behind the MXU; otherwise the full K (-> nk==1 fast path)."""
    best = None
    for tk in range(128, min(k_dim, 769), 128):
        if k_dim % tk == 0:
            best = tk
    return best if best is not None else k_dim


def _pick_tm(m_dim, nk):
    """M tile: multiple-of-8 divisor of M.

    nk == 1: cap at 256 so the M axis gives megacore / dual-TC parallelism and
             bounded VMEM (weight block is small, re-fetch per M tile is cheap).
    nk  > 1: cap at 1024 (VMEM bound) but keep the number of M tiles minimal so
             the K-tiled weight is not re-streamed from HBM many times.
    """
    cap = 256 if nk == 1 else 1024
    if m_dim <= cap:
        return m_dim
    best = None
    for tm in range(8, cap + 1, 8):
        if m_dim % tm == 0:
            best = tm
    return best if best is not None else m_dim


def matmul_bias(x, w, b, *, residual=None, relu=False, out_dtype=BF16):
    """[M,K] @ [K,N] + b (+ residual) (+ ReLU) as one Pallas call.

    Grid is (M tiles ["parallel"], K tiles ["arbitrary"]); the K axis (and the
    f32 accumulator) is dropped entirely when K fits in one tile.
    """
    M, K = x.shape
    K2, N = w.shape
    assert K == K2 and b.shape == (1, N)
    tk = _pick_tk(K)
    nk = K // tk
    tm = _pick_tm(M, nk)
    nm = M // tm
    has_res = residual is not None
    args = [x, w, b]

    if nk == 1:
        kernel = functools.partial(_mm_single_kernel, relu=relu, has_res=has_res)
        in_specs = [
            pl.BlockSpec((tm, K), lambda m: (m, 0)),
            pl.BlockSpec((K, N), lambda m: (0, 0)),
            pl.BlockSpec((1, N), lambda m: (0, 0)),
        ]
        if has_res:
            in_specs.append(pl.BlockSpec((tm, N), lambda m: (m, 0)))
            args.append(residual)
        return pl.pallas_call(
            kernel,
            out_shape=jax.ShapeDtypeStruct((M, N), out_dtype),
            grid=(nm,),
            in_specs=in_specs,
            out_specs=pl.BlockSpec((tm, N), lambda m: (m, 0)),
            compiler_params=pltpu.CompilerParams(
                dimension_semantics=("parallel",),
                vmem_limit_bytes=_VMEM_LIMIT),
        )(*args)

    kernel = functools.partial(_mm_multi_kernel, relu=relu, has_res=has_res)
    in_specs = [
        pl.BlockSpec((tm, tk), lambda m, k: (m, k)),
        pl.BlockSpec((tk, N), lambda m, k: (k, 0)),
        pl.BlockSpec((1, N), lambda m, k: (0, 0)),
    ]
    if has_res:
        in_specs.append(pl.BlockSpec((tm, N), lambda m, k: (m, 0)))
        args.append(residual)
    return pl.pallas_call(
        kernel,
        out_shape=jax.ShapeDtypeStruct((M, N), out_dtype),
        grid=(nm, nk),
        in_specs=in_specs,
        out_specs=pl.BlockSpec((tm, N), lambda m, k: (m, 0)),
        scratch_shapes=[pltpu.VMEM((tm, N), jnp.float32)],
        compiler_params=pltpu.CompilerParams(
            dimension_semantics=("parallel", "arbitrary"),
            vmem_limit_bytes=_VMEM_LIMIT),
    )(*args)


def maxpool_3x3_s2(x):
    """MaxPool2d(kernel=3, stride=2, padding=1) on NHWC.

    Separable col-max then row-max as a chain of jnp.maximum over strided
    slices: XLA fuses this into one pass over the padded input (no [9, M, C]
    HBM materialization as in the previous version).
    NOTE: padding uses -inf (NOT 0); with k=3, s=2, p=1 every window contains at
    least one real element, so -inf never reaches the output.
    TODO(synk): move the window max into a Pallas kernel (strided pl.ds loads)
                so it shares the VMEM pipeline with the surrounding convs.
    """
    xp = jnp.pad(x, ((0, 0), (1, 1), (1, 1), (0, 0)), constant_values=-jnp.inf)
    B, Hp, Wp, C = xp.shape
    Ho = (Hp - 3) // 2 + 1
    Wo = (Wp - 3) // 2 + 1
    cm = jnp.maximum(
        jnp.maximum(xp[:, :, 0:2 * Wo:2, :], xp[:, :, 1:2 * Wo + 1:2, :]),
        xp[:, :, 2:2 * Wo + 2:2, :])
    out = jnp.maximum(
        jnp.maximum(cm[:, 0:2 * Ho:2, :, :], cm[:, 1:2 * Ho + 1:2, :, :]),
        cm[:, 2:2 * Ho + 2:2, :, :])
    return out


def gap_head(x, w, b):
    """Global average pool + folded (res.fc @ 12x Linear(40,1)) head: -> [B,12]."""
    B, H, W, C = x.shape
    HW = H * W
    N = w.shape[1]
    xr = x.reshape(B, HW, C)
    return pl.pallas_call(
        _gap_fc_kernel,
        out_shape=jax.ShapeDtypeStruct((B, N), F32),
        grid=(1,),
        in_specs=[
            pl.BlockSpec((B, HW, C), lambda i: (0, 0, 0)),
            pl.BlockSpec((C, N), lambda i: (0, 0)),
            pl.BlockSpec((1, N), lambda i: (0, 0)),
        ],
        out_specs=pl.BlockSpec((B, N), lambda i: (0, 0)),
        compiler_params=pltpu.CompilerParams(vmem_limit_bytes=_VMEM_LIMIT),
    )(xr, w, b)


# ----------------------------- JAX glue (im2col) -----------------------------

def _im2col(x, kh, kw, stride, pad, k_pad=None):
    """x: [B,H,W,C] -> ([B*Ho*Wo, kh*kw*C (zero-padded to k_pad)], (B, Ho, Wo))."""
    if pad > 0:
        x = jnp.pad(x, ((0, 0), (pad, pad), (pad, pad), (0, 0)))
    B, H, W, C = x.shape
    Ho = (H - kh) // stride + 1
    Wo = (W - kw) // stride + 1
    cols = []
    for i in range(kh):
        for j in range(kw):
            cols.append(x[:, i:i + stride * Ho:stride, j:j + stride * Wo:stride, :])
    p = jnp.stack(cols, axis=3)  # [B, Ho, Wo, kh*kw, C]
    flat = p.reshape(B * Ho * Wo, kh * kw * C)
    if k_pad is not None and k_pad > kh * kw * C:
        flat = jnp.pad(flat, ((0, 0), (0, k_pad - kh * kw * C)))
    return flat, (B, Ho, Wo)


def conv_bn(x, p, kh, kw, *, stride, pad, relu, residual=None, k_pad=None):
    """Conv with eval-mode BN folded into the weights; bias/residual/ReLU fused."""
    cols, (B, Ho, Wo) = _im2col(x, kh, kw, stride, pad, k_pad=k_pad)
    res2d = None
    if residual is not None:
        res2d = residual.reshape(B * Ho * Wo, -1)
    y = matmul_bias(cols, p["w"], p["b"], residual=res2d, relu=relu)
    return y.reshape(B, Ho, Wo, -1)


# ----------------------------- parameters -----------------------------

def _make_conv_bn(key, cin, cout, kh, kw, k_pad=None):
    k_eff = kh * kw * cin
    w = jax.random.normal(key, (k_eff, cout), F32) * 0.05
    # torchvision BN defaults: gamma=1, beta=0, running_mean=0, running_var=1
    gamma = jnp.ones((cout,), F32)
    beta = jnp.zeros((cout,), F32)
    rmean = jnp.zeros((cout,), F32)
    rvar = jnp.ones((cout,), F32)
    eps = 1e-5
    s = gamma / jnp.sqrt(rvar + eps)
    wf = w * s[None, :]
    if k_pad is not None and k_pad > k_eff:
        wf = jnp.pad(wf, ((0, k_pad - k_eff), (0, 0)))   # lane-aligned K
    return {"w": wf.astype(BF16),
            "b": (beta - rmean * s).reshape(1, cout)}    # f32, ready for the kernel


def init_params(key):
    keys = iter(jax.random.split(key, 64))

    def nk():
        return next(keys)

    def make_block(cin, cout, downsample):
        blk = {
            "conv1": _make_conv_bn(nk(), cin, cout, 3, 3),
            "conv2": _make_conv_bn(nk(), cout, cout, 3, 3),
        }
        if downsample:
            blk["down"] = _make_conv_bn(nk(), cin, cout, 1, 1)
        return blk

    # Stem 7x7x3 conv: contraction dim 147 zero-padded to 256 (aligned DMA / MXU).
    p = {"conv1": _make_conv_bn(nk(), 3, 64, 7, 7, k_pad=256)}
    p["layer1"] = [make_block(64, 64, False), make_block(64, 64, False)]
    p["layer2"] = [make_block(64, 128, True), make_block(128, 128, False)]
    p["layer3"] = [make_block(128, 256, True), make_block(256, 256, False)]
    p["layer4"] = [make_block(256, 512, True), make_block(512, 512, False)]

    # res.fc = Linear(512, 40*12) and self.fc = Linear(40, 1) -- fold them (exact:
    # no nonlinearity in between).
    fc1_w = jax.random.normal(nk(), (512, 480), F32) * 0.03
    fc1_b = jax.random.normal(nk(), (480,), F32) * 0.01
    fc2_w = jax.random.normal(nk(), (40, 1), F32) * 0.1
    fc2_b = jax.random.normal(nk(), (1,), F32) * 0.01
    # out[:, j] = feat @ fc1_w[:, 40j:40j+40] @ fc2_w + (fc1_b[40j:40j+40] @ fc2_w + fc2_b)
    w_comb = jnp.einsum("kjc,c->kj", fc1_w.reshape(512, 12, 40), fc2_w[:, 0])
    b_comb = fc1_b.reshape(12, 40) @ fc2_w[:, 0] + fc2_b[0]
    p["head_w"] = w_comb                  # [512, 12] f32
    p["head_b"] = b_comb.reshape(1, 12)   # [1, 12]   f32
    return p


# ----------------------------- model forward -----------------------------

def basic_block(x, blk, stride):
    if "down" in blk:
        identity = conv_bn(x, blk["down"], 1, 1, stride=stride, pad=0, relu=False)
    else:
        identity = x
    out = conv_bn(x, blk["conv1"], 3, 3, stride=stride, pad=1, relu=True)
    # conv2 + BN + residual add + ReLU fused into one kernel epilogue
    out = conv_bn(out, blk["conv2"], 3, 3, stride=1, pad=1, relu=True,
                  residual=identity)
    return out


def res_model_forward(params, x_nchw):
    # PyTorch input is NCHW; convert to NHWC / bf16 for the kernels.
    x = jnp.transpose(x_nchw, (0, 2, 3, 1)).astype(BF16)

    # ResNet-18 stem (K padded 147 -> 256)
    x = conv_bn(x, params["conv1"], 7, 7, stride=2, pad=3, relu=True, k_pad=256)
    x = maxpool_3x3_s2(x)

    # 4 stages of 2 BasicBlocks
    for lname, stride in (("layer1", 1), ("layer2", 2), ("layer3", 2), ("layer4", 2)):
        x = basic_block(x, params[lname][0], stride)
        x = basic_block(x, params[lname][1], 1)

    # GAP + res.fc(512->480) + 12x Linear(40,1) head, folded into one kernel.
    # Matches torch.split(…, 40, dim=1) -> Linear(40,1) each -> cat -> [B, 12].
    return gap_head(x, params["head_w"], params["head_b"])


# ----------------------------- main -----------------------------

if __name__ == "__main__":
    key = jax.random.PRNGKey(0)
    pkey, xkey = jax.random.split(key)
    params = init_params(pkey)

    # Smallest spatial size that survives the 32x downsampling of ResNet-18.
    x = jax.random.normal(xkey, (2, 3, 32, 32), F32)  # NCHW, like the PyTorch module

    fwd = jax.jit(res_model_forward)
    out = fwd(params, x)
    out = jax.block_until_ready(out)

    assert out.shape == (2, 12), out.shape
    assert out.dtype == jnp.float32
    assert bool(jnp.all(jnp.isfinite(out)))
    print("KERNEL_OK")
</pallas_src>

<mosaic_0001>
module attributes {stable_mosaic.version = 11 : i64} {
  func.func @_mm_multi_kernel(%arg0: i32, %arg1: i32, %arg2: memref<512x128xbf16, #tpu.memory_space<vmem>>, %arg3: memref<128x64xbf16, #tpu.memory_space<vmem>>, %arg4: memref<1x64xf32, #tpu.memory_space<vmem>>, %arg5: memref<512x64xbf16, #tpu.memory_space<vmem>>, %arg6: memref<512x64xf32, #tpu.memory_space<vmem>>) attributes {dimension_semantics = [#tpu.dimension_semantics<parallel>, #tpu.dimension_semantics<arbitrary>], iteration_bounds = array<i64: 1, 2>, scalar_prefetch = 0 : i64, scratch_operands = 1 : i64, tpu.core_type = #tpu.core_type<tc>, window_params = [{transform_indices = @transform_0, window_bounds = array<i64: 512, 128>}, {transform_indices = @transform_1, window_bounds = array<i64: 128, 64>}, {pipeline_mode = #tpu.pipeline_mode<synchronous>, transform_indices = @transform_2, window_bounds = array<i64: 1, 64>}, {transform_indices = @transform_3, window_bounds = array<i64: 512, 64>}]} {
    %c0_i32 = arith.constant 0 : i32
    %0 = arith.cmpi eq, %arg1, %c0_i32 : i32
    %1 = arith.extui %0 : i1 to i32
    %c0_i32_0 = arith.constant 0 : i32
    %2 = arith.cmpi ne, %1, %c0_i32_0 : i32
    scf.if %2 {
      %cst_9 = arith.constant 0.000000e+00 : f32
      %12 = vector.broadcast %cst_9 : f32 to vector<512x64xf32>
      %c0_10 = arith.constant 0 : index
      %c0_11 = arith.constant 0 : index
      %13 = vector.load %arg6[%c0_10, %c0_11] : memref<512x64xf32, #tpu.memory_space<vmem>>, vector<512x64xf32>
      tpu.vector_store %arg6[%c0_10, %c0_11], %12 {strides = array<i32>} : memref<512x64xf32, #tpu.memory_space<vmem>>, vector<512x64xf32>,
    } else {
    }
    %c0 = arith.constant 0 : index
    %c0_1 = arith.constant 0 : index
    %3 = vector.load %arg6[%c0, %c0_1] : memref<512x64xf32, #tpu.memory_space<vmem>>, vector<512x64xf32>
    %c0_2 = arith.constant 0 : index
    %c0_3 = arith.constant 0 : index
    %4 = vector.load %arg2[%c0_2, %c0_3] : memref<512x128xbf16, #tpu.memory_space<vmem>>, vector<512x128xbf16>
    %c0_4 = arith.constant 0 : index
    %c0_5 = arith.constant 0 : index
    %5 = vector.load %arg3[%c0_4, %c0_5] : memref<128x64xbf16, #tpu.memory_space<vmem>>, vector<128x64xbf16>
    %cst = arith.constant dense<0.000000e+00> : vector<512x64xf32>
    %6 = tpu.matmul %4, %5, %cst {dimension_numbers = #tpu.dot_dimension_numbers<[1], [0], [0], [1], [0, 0, 1, 1], [], []>} : vector<512x128xbf16>, vector<128x64xbf16>, vector<512x64xf32> -> vector<512x64xf32>
    %7 = arith.addf %3, %6 : vector<512x64xf32>
    %c0_6 = arith.constant 0 : index
    %c0_7 = arith.constant 0 : index
    %8 = vector.load %arg6[%c0_6, %c0_7] : memref<512x64xf32, #tpu.memory_space<vmem>>, vector<512x64xf32>
    tpu.vector_store %arg6[%c0_6, %c0_7], %7 {strides = array<i32>} : memref<512x64xf32, #tpu.memory_space<vmem>>, vector<512x64xf32>,
    %c1_i32 = arith.constant 1 : i32
    %9 = arith.cmpi eq, %arg1, %c1_i32 : i32
    %10 = arith.extui %9 : i1 to i32
    %c0_i32_8 = arith.constant 0 : i32
    %11 = arith.cmpi ne, %10, %c0_i32_8 : i32
    scf.if %11 {
      %c0_9 = arith.constant 0 : index
      %c0_10 = arith.constant 0 : index
      %12 = vector.load %arg6[%c0_9, %c0_10] : memref<512x64xf32, #tpu.memory_space<vmem>>, vector<512x64xf32>
      %c0_11 = arith.constant 0 : index
      %c0_12 = arith.constant 0 : index
      %13 = vector.load %arg4[%c0_11, %c0_12] : memref<1x64xf32, #tpu.memory_space<vmem>>, vector<1x64xf32>
      %14 = vector.broadcast %13 : vector<1x64xf32> to vector<512x64xf32>
      %15 = arith.addf %12, %14 : vector<512x64xf32>
      %cst_13 = arith.constant 0.000000e+00 : f32
      %16 = vector.broadcast %cst_13 : f32 to vector<512x64xf32>
      %17 = arith.maximumf %15, %16 : vector<512x64xf32>
      %18 = arith.truncf %17 : vector<512x64xf32> to vector<512x64xbf16>
      %c0_14 = arith.constant 0 : index
      %c0_15 = arith.constant 0 : index
      %19 = vector.load %arg5[%c0_14, %c0_15] : memref<512x64xbf16, #tpu.memory_space<vmem>>, vector<512x64xbf16>
      tpu.vector_store %arg5[%c0_14, %c0_15], %18 {strides = array<i32>} : memref<512x64xbf16, #tpu.memory_space<vmem>>, vector<512x64xbf16>,
    } else {
    }
    return
  }
  func.func @transform_0(%arg0: i32, %arg1: i32) -> (i32, i32) {
    %c0_i32 = arith.constant 0 : i32
    return %arg0, %arg1 : i32, i32
  }
  func.func @transform_1(%arg0: i32, %arg1: i32) -> (i32, i32) {
    %c0_i32 = arith.constant 0 : i32
    %c0_i32_0 = arith.constant 0 : i32
    return %arg1, %c0_i32 : i32, i32
  }
  func.func @transform_2(%arg0: i32, %arg1: i32) -> (i32, i32) {
    %c0_i32 = arith.constant 0 : i32
    %c0_i32_0 = arith.constant 0 : i32
    %c0_i32_1 = arith.constant 0 : i32
    return %c0_i32, %c0_i32_0 : i32, i32
  }
  func.func @transform_3(%arg0: i32, %arg1: i32) -> (i32, i32) {
    %c0_i32 = arith.constant 0 : i32
    %c0_i32_0 = arith.constant 0 : i32
    return %arg0, %c0_i32 : i32, i32
  }
}

module attributes {stable_mosaic.version = 11 : i64} {
  func.func @_mm_single_kernel(%arg0: i32, %arg1: memref<128x576xbf16, #tpu.memory_space<vmem>>, %arg2: memref<576x64xbf16, #tpu.memory_space<vmem>>, %arg3: memref<1x64xf32, #tpu.memory_space<vmem>>, %arg4: memref<128x64xbf16, #tpu.memory_space<vmem>>) attributes {dimension_semantics = [#tpu.dimension_semantics<parallel>], iteration_bounds = array<i64: 1>, scalar_prefetch = 0 : i64, scratch_operands = 0 : i64, tpu.core_type = #tpu.core_type<tc>, window_params = [{transform_indices = @transform_0, window_bounds = array<i64: 128, 576>}, {pipeline_mode = #tpu.pipeline_mode<synchronous>, transform_indices = @transform_1, window_bounds = array<i64: 576, 64>}, {pipeline_mode = #tpu.pipeline_mode<synchronous>, transform_indices = @transform_2, window_bounds = array<i64: 1, 64>}, {transform_indices = @transform_3, window_bounds = array<i64: 128, 64>}]} {
    %c0 = arith.constant 0 : index
    %c0_0 = arith.constant 0 : index
    %0 = vector.load %arg1[%c0, %c0_0] : memref<128x576xbf16, #tpu.memory_space<vmem>>, vector<128x576xbf16>
    %c0_1 = arith.constant 0 : index
    %c0_2 = arith.constant 0 : index
    %1 = vector.load %arg2[%c0_1, %c0_2] : memref<576x64xbf16, #tpu.memory_space<vmem>>, vector<576x64xbf16>
    %cst = arith.constant dense<0.000000e+00> : vector<128x64xf32>
    %2 = tpu.matmul %0, %1, %cst {dimension_numbers = #tpu.dot_dimension_numbers<[1], [0], [0], [1], [0, 0, 1, 1], [], []>} : vector<128x576xbf16>, vector<576x64xbf16>, vector<128x64xf32> -> vector<128x64xf32>
    %c0_3 = arith.constant 0 : index
    %c0_4 = arith.constant 0 : index
    %3 = vector.load %arg3[%c0_3, %c0_4] : memref<1x64xf32, #tpu.memory_space<vmem>>, vector<1x64xf32>
    %4 = vector.broadcast %3 : vector<1x64xf32> to vector<128x64xf32>
    %5 = arith.addf %2, %4 : vector<128x64xf32>
    %cst_5 = arith.constant 0.000000e+00 : f32
    %6 = vector.broadcast %cst_5 : f32 to vector<128x64xf32>
    %7 = arith.maximumf %5, %6 : vector<128x64xf32>
    %8 = arith.truncf %7 : vector<128x64xf32> to vector<128x64xbf16>
    %c0_6 = arith.constant 0 : index
    %c0_7 = arith.constant 0 : index
    %9 = vector.load %arg4[%c0_6, %c0_7] : memref<128x64xbf16, #tpu.memory_space<vmem>>, vector<128x64xbf16>
    tpu.vector_store %arg4[%c0_6, %c0_7], %8 {strides = array<i32>} : memref<128x64xbf16, #tpu.memory_space<vmem>>, vector<128x64xbf16>,
    return
  }
  func.func @transform_0(%arg0: i32) -> (i32, i32) {
    %c0_i32 = arith.constant 0 : i32
    %c0_i32_0 = arith.constant 0 : i32
    return %arg0, %c0_i32 : i32, i32
  }
  func.func @transform_1(%arg0: i32) -> (i32, i32) {
    %c0_i32 = arith.constant 0 : i32
    %c0_i32_0 = arith.constant 0 : i32
    %c0_i32_1 = arith.constant 0 : i32
    return %c0_i32, %c0_i32_0 : i32, i32
  }
  func.func @transform_2(%arg0: i32) -> (i32, i32) {
    %c0_i32 = arith.constant 0 : i32
    %c0_i32_0 = arith.constant 0 : i32
    %c0_i32_1 = arith.constant 0 : i32
    return %c0_i32, %c0_i32_0 : i32, i32
  }
  func.func @transform_3(%arg0: i32) -> (i32, i32) {
    %c0_i32 = arith.constant 0 : i32
    %c0_i32_0 = arith.constant 0 : i32
    return %arg0, %c0_i32 : i32, i32
  }
}

module attributes {stable_mosaic.version = 11 : i64} {
  func.func @_mm_single_kernel(%arg0: i32, %arg1: memref<128x576xbf16, #tpu.memory_space<vmem>>, %arg2: memref<576x64xbf16, #tpu.memory_space<vmem>>, %arg3: memref<1x64xf32, #tpu.memory_space<vmem>>, %arg4: memref<128x64xbf16, #tpu.memory_space<vmem>>, %arg5: memref<128x64xbf16, #tpu.memory_space<vmem>>) attributes {dimension_semantics = [#tpu.dimension_semantics<parallel>], iteration_bounds = array<i64: 1>, scalar_prefetch = 0 : i64, scratch_operands = 0 : i64, tpu.core_type = #tpu.core_type<tc>, window_params = [{transform_indices = @transform_0, window_bounds = array<i64: 128, 576>}, {pipeline_mode = #tpu.pipeline_mode<synchronous>, transform_indices = @transform_1, window_bounds = array<i64: 576, 64>}, {pipeline_mode = #tpu.pipeline_mode<synchronous>, transform_indices = @transform_2, window_bounds = array<i64: 1, 64>}, {transform_indices = @transform_3, window_bounds = array<i64: 128, 64>}, {transform_indices = @transform_4, window_bounds = array<i64: 128, 64>}]} {
    %c0 = arith.constant 0 : index
    %c0_0 = arith.constant 0 : index
    %0 = vector.load %arg1[%c0, %c0_0] : memref<128x576xbf16, #tpu.memory_space<vmem>>, vector<128x576xbf16>
    %c0_1 = arith.constant 0 : index
    %c0_2 = arith.constant 0 : index
    %1 = vector.load %arg2[%c0_1, %c0_2] : memref<576x64xbf16, #tpu.memory_space<vmem>>, vector<576x64xbf16>
    %cst = arith.constant dense<0.000000e+00> : vector<128x64xf32>
    %2 = tpu.matmul %0, %1, %cst {dimension_numbers = #tpu.dot_dimension_numbers<[1], [0], [0], [1], [0, 0, 1, 1], [], []>} : vector<128x576xbf16>, vector<576x64xbf16>, vector<128x64xf32> -> vector<128x64xf32>
    %c0_3 = arith.constant 0 : index
    %c0_4 = arith.constant 0 : index
    %3 = vector.load %arg3[%c0_3, %c0_4] : memref<1x64xf32, #tpu.memory_space<vmem>>, vector<1x64xf32>
    %4 = vector.broadcast %3 : vector<1x64xf32> to vector<128x64xf32>
    %5 = arith.addf %2, %4 : vector<128x64xf32>
    %c0_5 = arith.constant 0 : index
    %c0_6 = arith.constant 0 : index
    %6 = vector.load %arg4[%c0_5, %c0_6] : memref<128x64xbf16, #tpu.memory_space<vmem>>, vector<128x64xbf16>
    %7 = arith.extf %6 : vector<128x64xbf16> to vector<128x64xf32>
    %8 = arith.addf %5, %7 : vector<128x64xf32>
    %cst_7 = arith.constant 0.000000e+00 : f32
    %9 = vector.broadcast %cst_7 : f32 to vector<128x64xf32>
    %10 = arith.maximumf %8, %9 : vector<128x64xf32>
    %11 = arith.truncf %10 : vector<128x64xf32> to vector<128x64xbf16>
    %c0_8 = arith.constant 0 : index
    %c0_9 = arith.constant 0 : index
    %12 = vector.load %arg5[%c0_8, %c0_9] : memref<128x64xbf16, #tpu.memory_space<vmem>>, vector<128x64xbf16>
    tpu.vector_store %arg5[%c0_8, %c0_9], %11 {strides = array<i32>} : memref<128x64xbf16, #tpu.memory_space<vmem>>, vector<128x64xbf16>,
    return
  }
  func.func @transform_0(%arg0: i32) -> (i32, i32) {
    %c0_i32 = arith.constant 0 : i32
    %c0_i32_0 = arith.constant 0 : i32
    return %arg0, %c0_i32 : i32, i32
  }
  func.func @transform_1(%arg0: i32) -> (i32, i32) {
    %c0_i32 = arith.constant 0 : i32
    %c0_i32_0 = arith.constant 0 : i32
    %c0_i32_1 = arith.constant 0 : i32
    return %c0_i32, %c0_i32_0 : i32, i32
  }
  func.func @transform_2(%arg0: i32) -> (i32, i32) {
    %c0_i32 = arith.constant 0 : i32
    %c0_i32_0 = arith.constant 0 : i32
    %c0_i32_1 = arith.constant 0 : i32
    return %c0_i32, %c0_i32_0 : i32, i32
  }
  func.func @transform_3(%arg0: i32) -> (i32, i32) {
    %c0_i32 = arith.constant 0 : i32
    %c0_i32_0 = arith.constant 0 : i32
    return %arg0, %c0_i32 : i32, i32
  }
  func.func @transform_4(%arg0: i32) -> (i32, i32) {
    %c0_i32 = arith.constant 0 : i32
    %c0_i32_0 = arith.constant 0 : i32
    return %arg0, %c0_i32 : i32, i32
  }
}

module attributes {stable_mosaic.version = 11 : i64} {
  func.func @_mm_single_kernel(%arg0: i32, %arg1: memref<32x576xbf16, #tpu.memory_space<vmem>>, %arg2: memref<576x128xbf16, #tpu.memory_space<vmem>>, %arg3: memref<1x128xf32, #tpu.memory_space<vmem>>, %arg4: memref<32x128xbf16, #tpu.memory_space<vmem>>) attributes {dimension_semantics = [#tpu.dimension_semantics<parallel>], iteration_bounds = array<i64: 1>, scalar_prefetch = 0 : i64, scratch_operands = 0 : i64, tpu.core_type = #tpu.core_type<tc>, window_params = [{transform_indices = @transform_0, window_bounds = array<i64: 32, 576>}, {pipeline_mode = #tpu.pipeline_mode<synchronous>, transform_indices = @transform_1, window_bounds = array<i64: 576, 128>}, {pipeline_mode = #tpu.pipeline_mode<synchronous>, transform_indices = @transform_2, window_bounds = array<i64: 1, 128>}, {transform_indices = @transform_3, window_bounds = array<i64: 32, 128>}]} {
    %c0 = arith.constant 0 : index
    %c0_0 = arith.constant 0 : index
    %0 = vector.load %arg1[%c0, %c0_0] : memref<32x576xbf16, #tpu.memory_space<vmem>>, vector<32x576xbf16>
    %c0_1 = arith.constant 0 : index
    %c0_2 = arith.constant 0 : index
    %1 = vector.load %arg2[%c0_1, %c0_2] : memref<576x128xbf16, #tpu.memory_space<vmem>>, vector<576x128xbf16>
    %cst = arith.constant dense<0.000000e+00> : vector<32x128xf32>
    %2 = tpu.matmul %0, %1, %cst {dimension_numbers = #tpu.dot_dimension_numbers<[1], [0], [0], [1], [0, 0, 1, 1], [], []>} : vector<32x576xbf16>, vector<576x128xbf16>, vector<32x128xf32> -> vector<32x128xf32>
    %c0_3 = arith.constant 0 : index
    %c0_4 = arith.constant 0 : index
    %3 = vector.load %arg3[%c0_3, %c0_4] : memref<1x128xf32, #tpu.memory_space<vmem>>, vector<1x128xf32>
    %4 = vector.broadcast %3 : vector<1x128xf32> to vector<32x128xf32>
    %5 = arith.addf %2, %4 : vector<32x128xf32>
    %cst_5 = arith.constant 0.000000e+00 : f32
    %6 = vector.broadcast %cst_5 : f32 to vector<32x128xf32>
    %7 = arith.maximumf %5, %6 : vector<32x128xf32>
    %8 = arith.truncf %7 : vector<32x128xf32> to vector<32x128xbf16>
    %c0_6 = arith.constant 0 : index
    %c0_7 = arith.constant 0 : index
    %9 = vector.load %arg4[%c0_6, %c0_7] : memref<32x128xbf16, #tpu.memory_space<vmem>>, vector<32x128xbf16>
    tpu.vector_store %arg4[%c0_6, %c0_7], %8 {strides = array<i32>} : memref<32x128xbf16, #tpu.memory_space<vmem>>, vector<32x128xbf16>,
    return
  }
  func.func @transform_0(%arg0: i32) -> (i32, i32) {
    %c0_i32 = arith.constant 0 : i32
    %c0_i32_0 = arith.constant 0 : i32
    return %arg0, %c0_i32 : i32, i32
  }
  func.func @transform_1(%arg0: i32) -> (i32, i32) {
    %c0_i32 = arith.constant 0 : i32
    %c0_i32_0 = arith.constant 0 : i32
    %c0_i32_1 = arith.constant 0 : i32
    return %c0_i32, %c0_i32_0 : i32, i32
  }
  func.func @transform_2(%arg0: i32) -> (i32, i32) {
    %c0_i32 = arith.constant 0 : i32
    %c0_i32_0 = arith.constant 0 : i32
    %c0_i32_1 = arith.constant 0 : i32
    return %c0_i32, %c0_i32_0 : i32, i32
  }
  func.func @transform_3(%arg0: i32) -> (i32, i32) {
    %c0_i32 = arith.constant 0 : i32
    %c0_i32_0 = arith.constant 0 : i32
    return %arg0, %c0_i32 : i32, i32
  }
}

module attributes {stable_mosaic.version = 11 : i64} {
  func.func @_mm_single_kernel(%arg0: i32, %arg1: memref<32x64xbf16, #tpu.memory_space<vmem>>, %arg2: memref<64x128xbf16, #tpu.memory_space<vmem>>, %arg3: memref<1x128xf32, #tpu.memory_space<vmem>>, %arg4: memref<32x128xbf16, #tpu.memory_space<vmem>>) attributes {dimension_semantics = [#tpu.dimension_semantics<parallel>], iteration_bounds = array<i64: 1>, scalar_prefetch = 0 : i64, scratch_operands = 0 : i64, tpu.core_type = #tpu.core_type<tc>, window_params = [{transform_indices = @transform_0, window_bounds = array<i64: 32, 64>}, {pipeline_mode = #tpu.pipeline_mode<synchronous>, transform_indices = @transform_1, window_bounds = array<i64: 64, 128>}, {pipeline_mode = #tpu.pipeline_mode<synchronous>, transform_indices = @transform_2, window_bounds = array<i64: 1, 128>}, {transform_indices = @transform_3, window_bounds = array<i64: 32, 128>}]} {
    %c0 = arith.constant 0 : index
    %c0_0 = arith.constant 0 : index
    %0 = vector.load %arg1[%c0, %c0_0] : memref<32x64xbf16, #tpu.memory_space<vmem>>, vector<32x64xbf16>
    %c0_1 = arith.constant 0 : index
    %c0_2 = arith.constant 0 : index
    %1 = vector.load %arg2[%c0_1, %c0_2] : memref<64x128xbf16, #tpu.memory_space<vmem>>, vector<64x128xbf16>
    %cst = arith.constant dense<0.000000e+00> : vector<32x128xf32>
    %2 = tpu.matmul %0, %1, %cst {dimension_numbers = #tpu.dot_dimension_numbers<[1], [0], [0], [1], [0, 0, 1, 1], [], []>} : vector<32x64xbf16>, vector<64x128xbf16>, vector<32x128xf32> -> vector<32x128xf32>
    %c0_3 = arith.constant 0 : index
    %c0_4 = arith.constant 0 : index
    %3 = vector.load %arg3[%c0_3, %c0_4] : memref<1x128xf32, #tpu.memory_space<vmem>>, vector<1x128xf32>
    %4 = vector.broadcast %3 : vector<1x128xf32> to vector<32x128xf32>
    %5 = arith.addf %2, %4 : vector<32x128xf32>
    %6 = arith.truncf %5 : vector<32x128xf32> to vector<32x128xbf16>
    %c0_5 = arith.constant 0 : index
    %c0_6 = arith.constant 0 : index
    %7 = vector.load %arg4[%c0_5, %c0_6] : memref<32x128xbf16, #tpu.memory_space<vmem>>, vector<32x128xbf16>
    tpu.vector_store %arg4[%c0_5, %c0_6], %6 {strides = array<i32>} : memref<32x128xbf16, #tpu.memory_space<vmem>>, vector<32x128xbf16>,
    return
  }
  func.func @transform_0(%arg0: i32) -> (i32, i32) {
    %c0_i32 = arith.constant 0 : i32
    %c0_i32_0 = arith.constant 0 : i32
    return %arg0, %c0_i32 : i32, i32
  }
  func.func @transform_1(%arg0: i32) -> (i32, i32) {
    %c0_i32 = arith.constant 0 : i32
    %c0_i32_0 = arith.constant 0 : i32
    %c0_i32_1 = arith.constant 0 : i32
    return %c0_i32, %c0_i32_0 : i32, i32
  }
  func.func @transform_2(%arg0: i32) -> (i32, i32) {
    %c0_i32 = arith.constant 0 : i32
    %c0_i32_0 = arith.constant 0 : i32
    %c0_i32_1 = arith.constant 0 : i32
    return %c0_i32, %c0_i32_0 : i32, i32
  }
  func.func @transform_3(%arg0: i32) -> (i32, i32) {
    %c0_i32 = arith.constant 0 : i32
    %c0_i32_0 = arith.constant 0 : i32
    return %arg0, %c0_i32 : i32, i32
  }
}

module attributes {stable_mosaic.version = 11 : i64} {
  func.func @_mm_multi_kernel(%arg0: i32, %arg1: i32, %arg2: memref<32x384xbf16, #tpu.memory_space<vmem>>, %arg3: memref<384x128xbf16, #tpu.memory_space<vmem>>, %arg4: memref<1x128xf32, #tpu.memory_space<vmem>>, %arg5: memref<32x128xbf16, #tpu.memory_space<vmem>>, %arg6: memref<32x128xbf16, #tpu.memory_space<vmem>>, %arg7: memref<32x128xf32, #tpu.memory_space<vmem>>) attributes {dimension_semantics = [#tpu.dimension_semantics<parallel>, #tpu.dimension_semantics<arbitrary>], iteration_bounds = array<i64: 1, 3>, scalar_prefetch = 0 : i64, scratch_operands = 1 : i64, tpu.core_type = #tpu.core_type<tc>, window_params = [{transform_indices = @transform_0, window_bounds = array<i64: 32, 384>}, {transform_indices = @transform_1, window_bounds = array<i64: 384, 128>}, {pipeline_mode = #tpu.pipeline_mode<synchronous>, transform_indices = @transform_2, window_bounds = array<i64: 1, 128>}, {transform_indices = @transform_3, window_bounds = array<i64: 32, 128>}, {transform_indices = @transform_4, window_bounds = array<i64: 32, 128>}]} {
    %c0_i32 = arith.constant 0 : i32
    %0 = arith.cmpi eq, %arg1, %c0_i32 : i32
    %1 = arith.extui %0 : i1 to i32
    %c0_i32_0 = arith.constant 0 : i32
    %2 = arith.cmpi ne, %1, %c0_i32_0 : i32
    scf.if %2 {
      %cst_9 = arith.constant 0.000000e+00 : f32
      %12 = vector.broadcast %cst_9 : f32 to vector<32x128xf32>
      %c0_10 = arith.constant 0 : index
      %c0_11 = arith.constant 0 : index
      %13 = vector.load %arg7[%c0_10, %c0_11] : memref<32x128xf32, #tpu.memory_space<vmem>>, vector<32x128xf32>
      tpu.vector_store %arg7[%c0_10, %c0_11], %12 {strides = array<i32>} : memref<32x128xf32, #tpu.memory_space<vmem>>, vector<32x128xf32>,
    } else {
    }
    %c0 = arith.constant 0 : index
    %c0_1 = arith.constant 0 : index
    %3 = vector.load %arg7[%c0, %c0_1] : memref<32x128xf32, #tpu.memory_space<vmem>>, vector<32x128xf32>
    %c0_2 = arith.constant 0 : index
    %c0_3 = arith.constant 0 : index
    %4 = vector.load %arg2[%c0_2, %c0_3] : memref<32x384xbf16, #tpu.memory_space<vmem>>, vector<32x384xbf16>
    %c0_4 = arith.constant 0 : index
    %c0_5 = arith.constant 0 : index
    %5 = vector.load %arg3[%c0_4, %c0_5] : memref<384x128xbf16, #tpu.memory_space<vmem>>, vector<384x128xbf16>
    %cst = arith.constant dense<0.000000e+00> : vector<32x128xf32>
    %6 = tpu.matmul %4, %5, %cst {dimension_numbers = #tpu.dot_dimension_numbers<[1], [0], [0], [1], [0, 0, 1, 1], [], []>} : vector<32x384xbf16>, vector<384x128xbf16>, vector<32x128xf32> -> vector<32x128xf32>
    %7 = arith.addf %3, %6 : vector<32x128xf32>
    %c0_6 = arith.constant 0 : index
    %c0_7 = arith.constant 0 : index
    %8 = vector.load %arg7[%c0_6, %c0_7] : memref<32x128xf32, #tpu.memory_space<vmem>>, vector<32x128xf32>
    tpu.vector_store %arg7[%c0_6, %c0_7], %7 {strides = array<i32>} : memref<32x128xf32, #tpu.memory_space<vmem>>, vector<32x128xf32>,
    %c2_i32 = arith.constant 2 : i32
    %9 = arith.cmpi eq, %arg1, %c2_i32 : i32
    %10 = arith.extui %9 : i1 to i32
    %c0_i32_8 = arith.constant 0 : i32
    %11 = arith.cmpi ne, %10, %c0_i32_8 : i32
    scf.if %11 {
      %c0_9 = arith.constant 0 : index
      %c0_10 = arith.constant 0 : index
      %12 = vector.load %arg7[%c0_9, %c0_10] : memref<32x128xf32, #tpu.memory_space<vmem>>, vector<32x128xf32>
      %c0_11 = arith.constant 0 : index
      %c0_12 = arith.constant 0 : index
      %13 = vector.load %arg4[%c0_11, %c0_12] : memref<1x128xf32, #tpu.memory_space<vmem>>, vector<1x128xf32>
      %14 = vector.broadcast %13 : vector<1x128xf32> to vector<32x128xf32>
      %15 = arith.addf %12, %14 : vector<32x128xf32>
      %c0_13 = arith.constant 0 : index
      %c0_14 = arith.constant 0 : index
      %16 = vector.load %arg5[%c0_13, %c0_14] : memref<32x128xbf16, #tpu.memory_space<vmem>>, vector<32x128xbf16>
      %17 = arith.extf %16 : vector<32x128xbf16> to vector<32x128xf32>
      %18 = arith.addf %15, %17 : vector<32x128xf32>
      %cst_15 = arith.constant 0.000000e+00 : f32
      %19 = vector.broadcast %cst_15 : f32 to vector<32x128xf32>
      %20 = arith.maximumf %18, %19 : vector<32x128xf32>
      %21 = arith.truncf %20 : vector<32x128xf32> to vector<32x128xbf16>
      %c0_16 = arith.constant 0 : index
      %c0_17 = arith.constant 0 : index
      %22 = vector.load %arg6[%c0_16, %c0_17] : memref<32x128xbf16, #tpu.memory_space<vmem>>, vector<32x128xbf16>
      tpu.vector_store %arg6[%c0_16, %c0_17], %21 {strides = array<i32>} : memref<32x128xbf16, #tpu.memory_space<vmem>>, vector<32x128xbf16>,
    } else {
    }
    return
  }
  func.func @transform_0(%arg0: i32, %arg1: i32) -> (i32, i32) {
    %c0_i32 = arith.constant 0 : i32
    return %arg0, %arg1 : i32, i32
  }
  func.func @transform_1(%arg0: i32, %arg1: i32) -> (i32, i32) {
    %c0_i32 = arith.constant 0 : i32
    %c0_i32_0 = arith.constant 0 : i32
    return %arg1, %c0_i32 : i32, i32
  }
  func.func @transform_2(%arg0: i32, %arg1: i32) -> (i32, i32) {
    %c0_i32 = arith.constant 0 : i32
    %c0_i32_0 = arith.constant 0 : i32
    %c0_i32_1 = arith.constant 0 : i32
    return %c0_i32, %c0_i32_0 : i32, i32
  }
  func.func @transform_3(%arg0: i32, %arg1: i32) -> (i32, i32) {
    %c0_i32 = arith.constant 0 : i32
    %c0_i32_0 = arith.constant 0 : i32
    return %arg0, %c0_i32 : i32, i32
  }
  func.func @transform_4(%arg0: i32, %arg1: i32) -> (i32, i32) {
    %c0_i32 = arith.constant 0 : i32
    %c0_i32_0 = arith.constant 0 : i32
    return %arg0, %c0_i32 : i32, i32
  }
}

module attributes {stable_mosaic.version = 11 : i64} {
  func.func @_mm_multi_kernel(%arg0: i32, %arg1: i32, %arg2: memref<32x384xbf16, #tpu.memory_space<vmem>>, %arg3: memref<384x128xbf16, #tpu.memory_space<vmem>>, %arg4: memref<1x128xf32, #tpu.memory_space<vmem>>, %arg5: memref<32x128xbf16, #tpu.memory_space<vmem>>, %arg6: memref<32x128xf32, #tpu.memory_space<vmem>>) attributes {dimension_semantics = [#tpu.dimension_semantics<parallel>, #tpu.dimension_semantics<arbitrary>], iteration_bounds = array<i64: 1, 3>, scalar_prefetch = 0 : i64, scratch_operands = 1 : i64, tpu.core_type = #tpu.core_type<tc>, window_params = [{transform_indices = @transform_0, window_bounds = array<i64: 32, 384>}, {transform_indices = @transform_1, window_bounds = array<i64: 384, 128>}, {pipeline_mode = #tpu.pipeline_mode<synchronous>, transform_indices = @transform_2, window_bounds = array<i64: 1, 128>}, {transform_indices = @transform_3, window_bounds = array<i64: 32, 128>}]} {
    %c0_i32 = arith.constant 0 : i32
    %0 = arith.cmpi eq, %arg1, %c0_i32 : i32
    %1 = arith.extui %0 : i1 to i32
    %c0_i32_0 = arith.constant 0 : i32
    %2 = arith.cmpi ne, %1, %c0_i32_0 : i32
    scf.if %2 {
      %cst_9 = arith.constant 0.000000e+00 : f32
      %12 = vector.broadcast %cst_9 : f32 to vector<32x128xf32>
      %c0_10 = arith.constant 0 : index
      %c0_11 = arith.constant 0 : index
      %13 = vector.load %arg6[%c0_10, %c0_11] : memref<32x128xf32, #tpu.memory_space<vmem>>, vector<32x128xf32>
      tpu.vector_store %arg6[%c0_10, %c0_11], %12 {strides = array<i32>} : memref<32x128xf32, #tpu.memory_space<vmem>>, vector<32x128xf32>,
    } else {
    }
    %c0 = arith.constant 0 : index
    %c0_1 = arith.constant 0 : index
    %3 = vector.load %arg6[%c0, %c0_1] : memref<32x128xf32, #tpu.memory_space<vmem>>, vector<32x128xf32>
    %c0_2 = arith.constant 0 : index
    %c0_3 = arith.constant 0 : index
    %4 = vector.load %arg2[%c0_2, %c0_3] : memref<32x384xbf16, #tpu.memory_space<vmem>>, vector<32x384xbf16>
    %c0_4 = arith.constant 0 : index
    %c0_5 = arith.constant 0 : index
    %5 = vector.load %arg3[%c0_4, %c0_5] : memref<384x128xbf16, #tpu.memory_space<vmem>>, vector<384x128xbf16>
    %cst = arith.constant dense<0.000000e+00> : vector<32x128xf32>
    %6 = tpu.matmul %4, %5, %cst {dimension_numbers = #tpu.dot_dimension_numbers<[1], [0], [0], [1], [0, 0, 1, 1], [], []>} : vector<32x384xbf16>, vector<384x128xbf16>, vector<32x128xf32> -> vector<32x128xf32>
    %7 = arith.addf %3, %6 : vector<32x128xf32>
    %c0_6 = arith.constant 0 : index
    %c0_7 = arith.constant 0 : index
    %8 = vector.load %arg6[%c0_6, %c0_7] : memref<32x128xf32, #tpu.memory_space<vmem>>, vector<32x128xf32>
    tpu.vector_store %arg6[%c0_6, %c0_7], %7 {strides = array<i32>} : memref<32x128xf32, #tpu.memory_space<vmem>>, vector<32x128xf32>,
    %c2_i32 = arith.constant 2 : i32
    %9 = arith.cmpi eq, %arg1, %c2_i32 : i32
    %10 = arith.extui %9 : i1 to i32
    %c0_i32_8 = arith.constant 0 : i32
    %11 = arith.cmpi ne, %10, %c0_i32_8 : i32
    scf.if %11 {
      %c0_9 = arith.constant 0 : index
      %c0_10 = arith.constant 0 : index
      %12 = vector.load %arg6[%c0_9, %c0_10] : memref<32x128xf32, #tpu.memory_space<vmem>>, vector<32x128xf32>
      %c0_11 = arith.constant 0 : index
      %c0_12 = arith.constant 0 : index
      %13 = vector.load %arg4[%c0_11, %c0_12] : memref<1x128xf32, #tpu.memory_space<vmem>>, vector<1x128xf32>
      %14 = vector.broadcast %13 : vector<1x128xf32> to vector<32x128xf32>
      %15 = arith.addf %12, %14 : vector<32x128xf32>
      %cst_13 = arith.constant 0.000000e+00 : f32
      %16 = vector.broadcast %cst_13 : f32 to vector<32x128xf32>
      %17 = arith.maximumf %15, %16 : vector<32x128xf32>
      %18 = arith.truncf %17 : vector<32x128xf32> to vector<32x128xbf16>
      %c0_14 = arith.constant 0 : index
      %c0_15 = arith.constant 0 : index
      %19 = vector.load %arg5[%c0_14, %c0_15] : memref<32x128xbf16, #tpu.memory_space<vmem>>, vector<32x128xbf16>
      tpu.vector_store %arg5[%c0_14, %c0_15], %18 {strides = array<i32>} : memref<32x128xbf16, #tpu.memory_space<vmem>>, vector<32x128xbf16>,
    } else {
    }
    return
  }
  func.func @transform_0(%arg0: i32, %arg1: i32) -> (i32, i32) {
    %c0_i32 = arith.constant 0 : i32
    return %arg0, %arg1 : i32, i32
  }
  func.func @transform_1(%arg0: i32, %arg1: i32) -> (i32, i32) {
    %c0_i32 = arith.constant 0 : i32
    %c0_i32_0 = arith.constant 0 : i32
    return %arg1, %c0_i32 : i32, i32
  }
  func.func @transform_2(%arg0: i32, %arg1: i32) -> (i32, i32) {
    %c0_i32 = arith.constant 0 : i32
    %c0_i32_0 = arith.constant 0 : i32
    %c0_i32_1 = arith.constant 0 : i32
    return %c0_i32, %c0_i32_0 : i32, i32
  }
  func.func @transform_3(%arg0: i32, %arg1: i32) -> (i32, i32) {
    %c0_i32 = arith.constant 0 : i32
    %c0_i32_0 = arith.constant 0 : i32
    return %arg0, %c0_i32 : i32, i32
  }
}

module attributes {stable_mosaic.version = 11 : i64} {
  func.func @_mm_multi_kernel(%arg0: i32, %arg1: i32, %arg2: memref<8x384xbf16, #tpu.memory_space<vmem>>, %arg3: memref<384x256xbf16, #tpu.memory_space<vmem>>, %arg4: memref<1x256xf32, #tpu.memory_space<vmem>>, %arg5: memref<8x256xbf16, #tpu.memory_space<vmem>>, %arg6: memref<8x256xf32, #tpu.memory_space<vmem>>) attributes {dimension_semantics = [#tpu.dimension_semantics<parallel>, #tpu.dimension_semantics<arbitrary>], iteration_bounds = array<i64: 1, 3>, scalar_prefetch = 0 : i64, scratch_operands = 1 : i64, tpu.core_type = #tpu.core_type<tc>, window_params = [{transform_indices = @transform_0, window_bounds = array<i64: 8, 384>}, {transform_indices = @transform_1, window_bounds = array<i64: 384, 256>}, {pipeline_mode = #tpu.pipeline_mode<synchronous>, transform_indices = @transform_2, window_bounds = array<i64: 1, 256>}, {transform_indices = @transform_3, window_bounds = array<i64: 8, 256>}]} {
    %c0_i32 = arith.constant 0 : i32
    %0 = arith.cmpi eq, %arg1, %c0_i32 : i32
    %1 = arith.extui %0 : i1 to i32
    %c0_i32_0 = arith.constant 0 : i32
    %2 = arith.cmpi ne, %1, %c0_i32_0 : i32
    scf.if %2 {
      %cst_9 = arith.constant 0.000000e+00 : f32
      %12 = vector.broadcast %cst_9 : f32 to vector<8x256xf32>
      %c0_10 = arith.constant 0 : index
      %c0_11 = arith.constant 0 : index
      %13 = vector.load %arg6[%c0_10, %c0_11] : memref<8x256xf32, #tpu.memory_space<vmem>>, vector<8x256xf32>
      tpu.vector_store %arg6[%c0_10, %c0_11], %12 {strides = array<i32>} : memref<8x256xf32, #tpu.memory_space<vmem>>, vector<8x256xf32>,
    } else {
    }
    %c0 = arith.constant 0 : index
    %c0_1 = arith.constant 0 : index
    %3 = vector.load %arg6[%c0, %c0_1] : memref<8x256xf32, #tpu.memory_space<vmem>>, vector<8x256xf32>
    %c0_2 = arith.constant 0 : index
    %c0_3 = arith.constant 0 : index
    %4 = vector.load %arg2[%c0_2, %c0_3] : memref<8x384xbf16, #tpu.memory_space<vmem>>, vector<8x384xbf16>
    %c0_4 = arith.constant 0 : index
    %c0_5 = arith.constant 0 : index
    %5 = vector.load %arg3[%c0_4, %c0_5] : memref<384x256xbf16, #tpu.memory_space<vmem>>, vector<384x256xbf16>
    %cst = arith.constant dense<0.000000e+00> : vector<8x256xf32>
    %6 = tpu.matmul %4, %5, %cst {dimension_numbers = #tpu.dot_dimension_numbers<[1], [0], [0], [1], [0, 0, 1, 1], [], []>} : vector<8x384xbf16>, vector<384x256xbf16>, vector<8x256xf32> -> vector<8x256xf32>
    %7 = arith.addf %3, %6 : vector<8x256xf32>
    %c0_6 = arith.constant 0 : index
    %c0_7 = arith.constant 0 : index
    %8 = vector.load %arg6[%c0_6, %c0_7] : memref<8x256xf32, #tpu.memory_space<vmem>>, vector<8x256xf32>
    tpu.vector_store %arg6[%c0_6, %c0_7], %7 {strides = array<i32>} : memref<8x256xf32, #tpu.memory_space<vmem>>, vector<8x256xf32>,
    %c2_i32 = arith.constant 2 : i32
    %9 = arith.cmpi eq, %arg1, %c2_i32 : i32
    %10 = arith.extui %9 : i1 to i32
    %c0_i32_8 = arith.constant 0 : i32
    %11 = arith.cmpi ne, %10, %c0_i32_8 : i32
    scf.if %11 {
      %c0_9 = arith.constant 0 : index
      %c0_10 = arith.constant 0 : index
      %12 = vector.load %arg6[%c0_9, %c0_10] : memref<8x256xf32, #tpu.memory_space<vmem>>, vector<8x256xf32>
      %c0_11 = arith.constant 0 : index
      %c0_12 = arith.constant 0 : index
      %13 = vector.load %arg4[%c0_11, %c0_12] : memref<1x256xf32, #tpu.memory_space<vmem>>, vector<1x256xf32>
      %14 = vector.broadcast %13 : vector<1x256xf32> to vector<8x256xf32>
      %15 = arith.addf %12, %14 : vector<8x256xf32>
      %cst_13 = arith.constant 0.000000e+00 : f32
      %16 = vector.broadcast %cst_13 : f32 to vector<8x256xf32>
      %17 = arith.maximumf %15, %16 : vector<8x256xf32>
      %18 = arith.truncf %17 : vector<8x256xf32> to vector<8x256xbf16>
      %c0_14 = arith.constant 0 : index
      %c0_15 = arith.constant 0 : index
      %19 = vector.load %arg5[%c0_14, %c0_15] : memref<8x256xbf16, #tpu.memory_space<vmem>>, vector<8x256xbf16>
      tpu.vector_store %arg5[%c0_14, %c0_15], %18 {strides = array<i32>} : memref<8x256xbf16, #tpu.memory_space<vmem>>, vector<8x256xbf16>,
    } else {
    }
    return
  }
  func.func @transform_0(%arg0: i32, %arg1: i32) -> (i32, i32) {
    %c0_i32 = arith.constant 0 : i32
    return %arg0, %arg1 : i32, i32
  }
  func.func @transform_1(%arg0: i32, %arg1: i32) -> (i32, i32) {
    %c0_i32 = arith.constant 0 : i32
    %c0_i32_0 = arith.constant 0 : i32
    return %arg1, %c0_i32 : i32, i32
  }
  func.func @transform_2(%arg0: i32, %arg1: i32) -> (i32, i32) {
    %c0_i32 = arith.constant 0 : i32
    %c0_i32_0 = arith.constant 0 : i32
    %c0_i32_1 = arith.constant 0 : i32
    return %c0_i32, %c0_i32_0 : i32, i32
  }
  func.func @transform_3(%arg0: i32, %arg1: i32) -> (i32, i32) {
    %c0_i32 = arith.constant 0 : i32
    %c0_i32_0 = arith.constant 0 : i32
    return %arg0, %c0_i32 : i32, i32
  }
}

module attributes {stable_mosaic.version = 11 : i64} {
  func.func @_mm_single_kernel(%arg0: i32, %arg1: memref<8x128xbf16, #tpu.memory_space<vmem>>, %arg2: memref<128x256xbf16, #tpu.memory_space<vmem>>, %arg3: memref<1x256xf32, #tpu.memory_space<vmem>>, %arg4: memref<8x256xbf16, #tpu.memory_space<vmem>>) attributes {dimension_semantics = [#tpu.dimension_semantics<parallel>], iteration_bounds = array<i64: 1>, scalar_prefetch = 0 : i64, scratch_operands = 0 : i64, tpu.core_type = #tpu.core_type<tc>, window_params = [{transform_indices = @transform_0, window_bounds = array<i64: 8, 128>}, {pipeline_mode = #tpu.pipeline_mode<synchronous>, transform_indices = @transform_1, window_bounds = array<i64: 128, 256>}, {pipeline_mode = #tpu.pipeline_mode<synchronous>, transform_indices = @transform_2, window_bounds = array<i64: 1, 256>}, {transform_indices = @transform_3, window_bounds = array<i64: 8, 256>}]} {
    %c0 = arith.constant 0 : index
    %c0_0 = arith.constant 0 : index
    %0 = vector.load %arg1[%c0, %c0_0] : memref<8x128xbf16, #tpu.memory_space<vmem>>, vector<8x128xbf16>
    %c0_1 = arith.constant 0 : index
    %c0_2 = arith.constant 0 : index
    %1 = vector.load %arg2[%c0_1, %c0_2] : memref<128x256xbf16, #tpu.memory_space<vmem>>, vector<128x256xbf16>
    %cst = arith.constant dense<0.000000e+00> : vector<8x256xf32>
    %2 = tpu.matmul %0, %1, %cst {dimension_numbers = #tpu.dot_dimension_numbers<[1], [0], [0], [1], [0, 0, 1, 1], [], []>} : vector<8x128xbf16>, vector<128x256xbf16>, vector<8x256xf32> -> vector<8x256xf32>
    %c0_3 = arith.constant 0 : index
    %c0_4 = arith.constant 0 : index
    %3 = vector.load %arg3[%c0_3, %c0_4] : memref<1x256xf32, #tpu.memory_space<vmem>>, vector<1x256xf32>
    %4 = vector.broadcast %3 : vector<1x256xf32> to vector<8x256xf32>
    %5 = arith.addf %2, %4 : vector<8x256xf32>
    %6 = arith.truncf %5 : vector<8x256xf32> to vector<8x256xbf16>
    %c0_5 = arith.constant 0 : index
    %c0_6 = arith.constant 0 : index
    %7 = vector.load %arg4[%c0_5, %c0_6] : memref<8x256xbf16, #tpu.memory_space<vmem>>, vector<8x256xbf16>
    tpu.vector_store %arg4[%c0_5, %c0_6], %6 {strides = array<i32>} : memref<8x256xbf16, #tpu.memory_space<vmem>>, vector<8x256xbf16>,
    return
  }
  func.func @transform_0(%arg0: i32) -> (i32, i32) {
    %c0_i32 = arith.constant 0 : i32
    %c0_i32_0 = arith.constant 0 : i32
    return %arg0, %c0_i32 : i32, i32
  }
  func.func @transform_1(%arg0: i32) -> (i32, i32) {
    %c0_i32 = arith.constant 0 : i32
    %c0_i32_0 = arith.constant 0 : i32
    %c0_i32_1 = arith.constant 0 : i32
    return %c0_i32, %c0_i32_0 : i32, i32
  }
  func.func @transform_2(%arg0: i32) -> (i32, i32) {
    %c0_i32 = arith.constant 0 : i32
    %c0_i32_0 = arith.constant 0 : i32
    %c0_i32_1 = arith.constant 0 : i32
    return %c0_i32, %c0_i32_0 : i32, i32
  }
  func.func @transform_3(%arg0: i32) -> (i32, i32) {
    %c0_i32 = arith.constant 0 : i32
    %c0_i32_0 = arith.constant 0 : i32
    return %arg0, %c0_i32 : i32, i32
  }
}

module attributes {stable_mosaic.version = 11 : i64} {
  func.func @_mm_multi_kernel(%arg0: i32, %arg1: i32, %arg2: memref<8x768xbf16, #tpu.memory_space<vmem>>, %arg3: memref<768x256xbf16, #tpu.memory_space<vmem>>, %arg4: memref<1x256xf32, #tpu.memory_space<vmem>>, %arg5: memref<8x256xbf16, #tpu.memory_space<vmem>>, %arg6: memref<8x256xbf16, #tpu.memory_space<vmem>>, %arg7: memref<8x256xf32, #tpu.memory_space<vmem>>) attributes {dimension_semantics = [#tpu.dimension_semantics<parallel>, #tpu.dimension_semantics<arbitrary>], iteration_bounds = array<i64: 1, 3>, scalar_prefetch = 0 : i64, scratch_operands = 1 : i64, tpu.core_type = #tpu.core_type<tc>, window_params = [{transform_indices = @transform_0, window_bounds = array<i64: 8, 768>}, {transform_indices = @transform_1, window_bounds = array<i64: 768, 256>}, {pipeline_mode = #tpu.pipeline_mode<synchronous>, transform_indices = @transform_2, window_bounds = array<i64: 1, 256>}, {transform_indices = @transform_3, window_bounds = array<i64: 8, 256>}, {transform_indices = @transform_4, window_bounds = array<i64: 8, 256>}]} {
    %c0_i32 = arith.constant 0 : i32
    %0 = arith.cmpi eq, %arg1, %c0_i32 : i32
    %1 = arith.extui %0 : i1 to i32
    %c0_i32_0 = arith.constant 0 : i32
    %2 = arith.cmpi ne, %1, %c0_i32_0 : i32
    scf.if %2 {
      %cst_9 = arith.constant 0.000000e+00 : f32
      %12 = vector.broadcast %cst_9 : f32 to vector<8x256xf32>
      %c0_10 = arith.constant 0 : index
      %c0_11 = arith.constant 0 : index
      %13 = vector.load %arg7[%c0_10, %c0_11] : memref<8x256xf32, #tpu.memory_space<vmem>>, vector<8x256xf32>
      tpu.vector_store %arg7[%c0_10, %c0_11], %12 {strides = array<i32>} : memref<8x256xf32, #tpu.memory_space<vmem>>, vector<8x256xf32>,
    } else {
    }
    %c0 = arith.constant 0 : index
    %c0_1 = arith.constant 0 : index
    %3 = vector.load %arg7[%c0, %c0_1] : memref<8x256xf32, #tpu.memory_space<vmem>>, vector<8x256xf32>
    %c0_2 = arith.constant 0 : index
    %c0_3 = arith.constant 0 : index
    %4 = vector.load %arg2[%c0_2, %c0_3] : memref<8x768xbf16, #tpu.memory_space<vmem>>, vector<8x768xbf16>
    %c0_4 = arith.constant 0 : index
    %c0_5 = arith.constant 0 : index
    %5 = vector.load %arg3[%c0_4, %c0_5] : memref<768x256xbf16, #tpu.memory_space<vmem>>, vector<768x256xbf16>
    %cst = arith.constant dense<0.000000e+00> : vector<8x256xf32>
    %6 = tpu.matmul %4, %5, %cst {dimension_numbers = #tpu.dot_dimension_numbers<[1], [0], [0], [1], [0, 0, 1, 1], [], []>} : vector<8x768xbf16>, vector<768x256xbf16>, vector<8x256xf32> -> vector<8x256xf32>
    %7 = arith.addf %3, %6 : vector<8x256xf32>
    %c0_6 = arith.constant 0 : index
    %c0_7 = arith.constant 0 : index
    %8 = vector.load %arg7[%c0_6, %c0_7] : memref<8x256xf32, #tpu.memory_space<vmem>>, vector<8x256xf32>
    tpu.vector_store %arg7[%c0_6, %c0_7], %7 {strides = array<i32>} : memref<8x256xf32, #tpu.memory_space<vmem>>, vector<8x256xf32>,
    %c2_i32 = arith.constant 2 : i32
    %9 = arith.cmpi eq, %arg1, %c2_i32 : i32
    %10 = arith.extui %9 : i1 to i32
    %c0_i32_8 = arith.constant 0 : i32
    %11 = arith.cmpi ne, %10, %c0_i32_8 : i32
    scf.if %11 {
      %c0_9 = arith.constant 0 : index
      %c0_10 = arith.constant 0 : index
      %12 = vector.load %arg7[%c0_9, %c0_10] : memref<8x256xf32, #tpu.memory_space<vmem>>, vector<8x256xf32>
      %c0_11 = arith.constant 0 : index
      %c0_12 = arith.constant 0 : index
      %13 = vector.load %arg4[%c0_11, %c0_12] : memref<1x256xf32, #tpu.memory_space<vmem>>, vector<1x256xf32>
      %14 = vector.broadcast %13 : vector<1x256xf32> to vector<8x256xf32>
      %15 = arith.addf %12, %14 : vector<8x256xf32>
      %c0_13 = arith.constant 0 : index
      %c0_14 = arith.constant 0 : index
      %16 = vector.load %arg5[%c0_13, %c0_14] : memref<8x256xbf16, #tpu.memory_space<vmem>>, vector<8x256xbf16>
      %17 = arith.extf %16 : vector<8x256xbf16> to vector<8x256xf32>
      %18 = arith.addf %15, %17 : vector<8x256xf32>
      %cst_15 = arith.constant 0.000000e+00 : f32
      %19 = vector.broadcast %cst_15 : f32 to vector<8x256xf32>
      %20 = arith.maximumf %18, %19 : vector<8x256xf32>
      %21 = arith.truncf %20 : vector<8x256xf32> to vector<8x256xbf16>
      %c0_16 = arith.constant 0 : index
      %c0_17 = arith.constant 0 : index
      %22 = vector.load %arg6[%c0_16, %c0_17] : memref<8x256xbf16, #tpu.memory_space<vmem>>, vector<8x256xbf16>
      tpu.vector_store %arg6[%c0_16, %c0_17], %21 {strides = array<i32>} : memref<8x256xbf16, #tpu.memory_space<vmem>>, vector<8x256xbf16>,
    } else {
    }
    return
  }
  func.func @transform_0(%arg0: i32, %arg1: i32) -> (i32, i32) {
    %c0_i32 = arith.constant 0 : i32
    return %arg0, %arg1 : i32, i32
  }
  func.func @transform_1(%arg0: i32, %arg1: i32) -> (i32, i32) {
    %c0_i32 = arith.constant 0 : i32
    %c0_i32_0 = arith.constant 0 : i32
    return %arg1, %c0_i32 : i32, i32
  }
  func.func @transform_2(%arg0: i32, %arg1: i32) -> (i32, i32) {
    %c0_i32 = arith.constant 0 : i32
    %c0_i32_0 = arith.constant 0 : i32
    %c0_i32_1 = arith.constant 0 : i32
    return %c0_i32, %c0_i32_0 : i32, i32
  }
  func.func @transform_3(%arg0: i32, %arg1: i32) -> (i32, i32) {
    %c0_i32 = arith.constant 0 : i32
    %c0_i32_0 = arith.constant 0 : i32
    return %arg0, %c0_i32 : i32, i32
  }
  func.func @transform_4(%arg0: i32, %arg1: i32) -> (i32, i32) {
    %c0_i32 = arith.constant 0 : i32
    %c0_i32_0 = arith.constant 0 : i32
    return %arg0, %c0_i32 : i32, i32
  }
}

module attributes {stable_mosaic.version = 11 : i64} {
  func.func @_mm_multi_kernel(%arg0: i32, %arg1: i32, %arg2: memref<8x768xbf16, #tpu.memory_space<vmem>>, %arg3: memref<768x256xbf16, #tpu.memory_space<vmem>>, %arg4: memref<1x256xf32, #tpu.memory_space<vmem>>, %arg5: memref<8x256xbf16, #tpu.memory_space<vmem>>, %arg6: memref<8x256xf32, #tpu.memory_space<vmem>>) attributes {dimension_semantics = [#tpu.dimension_semantics<parallel>, #tpu.dimension_semantics<arbitrary>], iteration_bounds = array<i64: 1, 3>, scalar_prefetch = 0 : i64, scratch_operands = 1 : i64, tpu.core_type = #tpu.core_type<tc>, window_params = [{transform_indices = @transform_0, window_bounds = array<i64: 8, 768>}, {transform_indices = @transform_1, window_bounds = array<i64: 768, 256>}, {pipeline_mode = #tpu.pipeline_mode<synchronous>, transform_indices = @transform_2, window_bounds = array<i64: 1, 256>}, {transform_indices = @transform_3, window_bounds = array<i64: 8, 256>}]} {
    %c0_i32 = arith.constant 0 : i32
    %0 = arith.cmpi eq, %arg1, %c0_i32 : i32
    %1 = arith.extui %0 : i1 to i32
    %c0_i32_0 = arith.constant 0 : i32
    %2 = arith.cmpi ne, %1, %c0_i32_0 : i32
    scf.if %2 {
      %cst_9 = arith.constant 0.000000e+00 : f32
      %12 = vector.broadcast %cst_9 : f32 to vector<8x256xf32>
      %c0_10 = arith.constant 0 : index
      %c0_11 = arith.constant 0 : index
      %13 = vector.load %arg6[%c0_10, %c0_11] : memref<8x256xf32, #tpu.memory_space<vmem>>, vector<8x256xf32>
      tpu.vector_store %arg6[%c0_10, %c0_11], %12 {strides = array<i32>} : memref<8x256xf32, #tpu.memory_space<vmem>>, vector<8x256xf32>,
    } else {
    }
    %c0 = arith.constant 0 : index
    %c0_1 = arith.constant 0 : index
    %3 = vector.load %arg6[%c0, %c0_1] : memref<8x256xf32, #tpu.memory_space<vmem>>, vector<8x256xf32>
    %c0_2 = arith.constant 0 : index
    %c0_3 = arith.constant 0 : index
    %4 = vector.load %arg2[%c0_2, %c0_3] : memref<8x768xbf16, #tpu.memory_space<vmem>>, vector<8x768xbf16>
    %c0_4 = arith.constant 0 : index
    %c0_5 = arith.constant 0 : index
    %5 = vector.load %arg3[%c0_4, %c0_5] : memref<768x256xbf16, #tpu.memory_space<vmem>>, vector<768x256xbf16>
    %cst = arith.constant dense<0.000000e+00> : vector<8x256xf32>
    %6 = tpu.matmul %4, %5, %cst {dimension_numbers = #tpu.dot_dimension_numbers<[1], [0], [0], [1], [0, 0, 1, 1], [], []>} : vector<8x768xbf16>, vector<768x256xbf16>, vector<8x256xf32> -> vector<8x256xf32>
    %7 = arith.addf %3, %6 : vector<8x256xf32>
    %c0_6 = arith.constant 0 : index
    %c0_7 = arith.constant 0 : index
    %8 = vector.load %arg6[%c0_6, %c0_7] : memref<8x256xf32, #tpu.memory_space<vmem>>, vector<8x256xf32>
    tpu.vector_store %arg6[%c0_6, %c0_7], %7 {strides = array<i32>} : memref<8x256xf32, #tpu.memory_space<vmem>>, vector<8x256xf32>,
    %c2_i32 = arith.constant 2 : i32
    %9 = arith.cmpi eq, %arg1, %c2_i32 : i32
    %10 = arith.extui %9 : i1 to i32
    %c0_i32_8 = arith.constant 0 : i32
    %11 = arith.cmpi ne, %10, %c0_i32_8 : i32
    scf.if %11 {
      %c0_9 = arith.constant 0 : index
      %c0_10 = arith.constant 0 : index
      %12 = vector.load %arg6[%c0_9, %c0_10] : memref<8x256xf32, #tpu.memory_space<vmem>>, vector<8x256xf32>
      %c0_11 = arith.constant 0 : index
      %c0_12 = arith.constant 0 : index
      %13 = vector.load %arg4[%c0_11, %c0_12] : memref<1x256xf32, #tpu.memory_space<vmem>>, vector<1x256xf32>
      %14 = vector.broadcast %13 : vector<1x256xf32> to vector<8x256xf32>
      %15 = arith.addf %12, %14 : vector<8x256xf32>
      %cst_13 = arith.constant 0.000000e+00 : f32
      %16 = vector.broadcast %cst_13 : f32 to vector<8x256xf32>
      %17 = arith.maximumf %15, %16 : vector<8x256xf32>
      %18 = arith.truncf %17 : vector<8x256xf32> to vector<8x256xbf16>
      %c0_14 = arith.constant 0 : index
      %c0_15 = arith.constant 0 : index
      %19 = vector.load %arg5[%c0_14, %c0_15] : memref<8x256xbf16, #tpu.memory_space<vmem>>, vector<8x256xbf16>
      tpu.vector_store %arg5[%c0_14, %c0_15], %18 {strides = array<i32>} : memref<8x256xbf16, #tpu.memory_space<vmem>>, vector<8x256xbf16>,
    } else {
    }
    return
  }
  func.func @transform_0(%arg0: i32, %arg1: i32) -> (i32, i32) {
    %c0_i32 = arith.constant 0 : i32
    return %arg0, %arg1 : i32, i32
  }
  func.func @transform_1(%arg0: i32, %arg1: i32) -> (i32, i32) {
    %c0_i32 = arith.constant 0 : i32
    %c0_i32_0 = arith.constant 0 : i32
    return %arg1, %c0_i32 : i32, i32
  }
  func.func @transform_2(%arg0: i32, %arg1: i32) -> (i32, i32) {
    %c0_i32 = arith.constant 0 : i32
    %c0_i32_0 = arith.constant 0 : i32
    %c0_i32_1 = arith.constant 0 : i32
    return %c0_i32, %c0_i32_0 : i32, i32
  }
  func.func @transform_3(%arg0: i32, %arg1: i32) -> (i32, i32) {
    %c0_i32 = arith.constant 0 : i32
    %c0_i32_0 = arith.constant 0 : i32
    return %arg0, %c0_i32 : i32, i32
  }
}

module attributes {stable_mosaic.version = 11 : i64} {
  func.func @_mm_multi_kernel(%arg0: i32, %arg1: i32, %arg2: memref<2x768xbf16, #tpu.memory_space<vmem>>, %arg3: memref<768x512xbf16, #tpu.memory_space<vmem>>, %arg4: memref<1x512xf32, #tpu.memory_space<vmem>>, %arg5: memref<2x512xbf16, #tpu.memory_space<vmem>>, %arg6: memref<2x512xf32, #tpu.memory_space<vmem>>) attributes {dimension_semantics = [#tpu.dimension_semantics<parallel>, #tpu.dimension_semantics<arbitrary>], iteration_bounds = array<i64: 1, 3>, scalar_prefetch = 0 : i64, scratch_operands = 1 : i64, tpu.core_type = #tpu.core_type<tc>, window_params = [{transform_indices = @transform_0, window_bounds = array<i64: 2, 768>}, {transform_indices = @transform_1, window_bounds = array<i64: 768, 512>}, {pipeline_mode = #tpu.pipeline_mode<synchronous>, transform_indices = @transform_2, window_bounds = array<i64: 1, 512>}, {transform_indices = @transform_3, window_bounds = array<i64: 2, 512>}]} {
    %c0_i32 = arith.constant 0 : i32
    %0 = arith.cmpi eq, %arg1, %c0_i32 : i32
    %1 = arith.extui %0 : i1 to i32
    %c0_i32_0 = arith.constant 0 : i32
    %2 = arith.cmpi ne, %1, %c0_i32_0 : i32
    scf.if %2 {
      %cst_9 = arith.constant 0.000000e+00 : f32
      %12 = vector.broadcast %cst_9 : f32 to vector<2x512xf32>
      %c0_10 = arith.constant 0 : index
      %c0_11 = arith.constant 0 : index
      %13 = vector.load %arg6[%c0_10, %c0_11] : memref<2x512xf32, #tpu.memory_space<vmem>>, vector<2x512xf32>
      tpu.vector_store %arg6[%c0_10, %c0_11], %12 {strides = array<i32>} : memref<2x512xf32, #tpu.memory_space<vmem>>, vector<2x512xf32>,
    } else {
    }
    %c0 = arith.constant 0 : index
    %c0_1 = arith.constant 0 : index
    %3 = vector.load %arg6[%c0, %c0_1] : memref<2x512xf32, #tpu.memory_space<vmem>>, vector<2x512xf32>
    %c0_2 = arith.constant 0 : index
    %c0_3 = arith.constant 0 : index
    %4 = vector.load %arg2[%c0_2, %c0_3] : memref<2x768xbf16, #tpu.memory_space<vmem>>, vector<2x768xbf16>
    %c0_4 = arith.constant 0 : index
    %c0_5 = arith.constant 0 : index
    %5 = vector.load %arg3[%c0_4, %c0_5] : memref<768x512xbf16, #tpu.memory_space<vmem>>, vector<768x512xbf16>
    %cst = arith.constant dense<0.000000e+00> : vector<2x512xf32>
    %6 = tpu.matmul %4, %5, %cst {dimension_numbers = #tpu.dot_dimension_numbers<[1], [0], [0], [1], [0, 0, 1, 1], [], []>} : vector<2x768xbf16>, vector<768x512xbf16>, vector<2x512xf32> -> vector<2x512xf32>
    %7 = arith.addf %3, %6 : vector<2x512xf32>
    %c0_6 = arith.constant 0 : index
    %c0_7 = arith.constant 0 : index
    %8 = vector.load %arg6[%c0_6, %c0_7] : memref<2x512xf32, #tpu.memory_space<vmem>>, vector<2x512xf32>
    tpu.vector_store %arg6[%c0_6, %c0_7], %7 {strides = array<i32>} : memref<2x512xf32, #tpu.memory_space<vmem>>, vector<2x512xf32>,
    %c2_i32 = arith.constant 2 : i32
    %9 = arith.cmpi eq, %arg1, %c2_i32 : i32
    %10 = arith.extui %9 : i1 to i32
    %c0_i32_8 = arith.constant 0 : i32
    %11 = arith.cmpi ne, %10, %c0_i32_8 : i32
    scf.if %11 {
      %c0_9 = arith.constant 0 : index
      %c0_10 = arith.constant 0 : index
      %12 = vector.load %arg6[%c0_9, %c0_10] : memref<2x512xf32, #tpu.memory_space<vmem>>, vector<2x512xf32>
      %c0_11 = arith.constant 0 : index
      %c0_12 = arith.constant 0 : index
      %13 = vector.load %arg4[%c0_11, %c0_12] : memref<1x512xf32, #tpu.memory_space<vmem>>, vector<1x512xf32>
      %14 = vector.broadcast %13 : vector<1x512xf32> to vector<2x512xf32>
      %15 = arith.addf %12, %14 : vector<2x512xf32>
      %cst_13 = arith.constant 0.000000e+00 : f32
      %16 = vector.broadcast %cst_13 : f32 to vector<2x512xf32>
      %17 = arith.maximumf %15, %16 : vector<2x512xf32>
      %18 = arith.truncf %17 : vector<2x512xf32> to vector<2x512xbf16>
      %c0_14 = arith.constant 0 : index
      %c0_15 = arith.constant 0 : index
      %19 = vector.load %arg5[%c0_14, %c0_15] : memref<2x512xbf16, #tpu.memory_space<vmem>>, vector<2x512xbf16>
      tpu.vector_store %arg5[%c0_14, %c0_15], %18 {strides = array<i32>} : memref<2x512xbf16, #tpu.memory_space<vmem>>, vector<2x512xbf16>,
    } else {
    }
    return
  }
  func.func @transform_0(%arg0: i32, %arg1: i32) -> (i32, i32) {
    %c0_i32 = arith.constant 0 : i32
    return %arg0, %arg1 : i32, i32
  }
  func.func @transform_1(%arg0: i32, %arg1: i32) -> (i32, i32) {
    %c0_i32 = arith.constant 0 : i32
    %c0_i32_0 = arith.constant 0 : i32
    return %arg1, %c0_i32 : i32, i32
  }
  func.func @transform_2(%arg0: i32, %arg1: i32) -> (i32, i32) {
    %c0_i32 = arith.constant 0 : i32
    %c0_i32_0 = arith.constant 0 : i32
    %c0_i32_1 = arith.constant 0 : i32
    return %c0_i32, %c0_i32_0 : i32, i32
  }
  func.func @transform_3(%arg0: i32, %arg1: i32) -> (i32, i32) {
    %c0_i32 = arith.constant 0 : i32
    %c0_i32_0 = arith.constant 0 : i32
    return %arg0, %c0_i32 : i32, i32
  }
}

module attributes {stable_mosaic.version = 11 : i64} {
  func.func @_mm_multi_kernel(%arg0: i32, %arg1: i32, %arg2: memref<2x128xbf16, #tpu.memory_space<vmem>>, %arg3: memref<128x512xbf16, #tpu.memory_space<vmem>>, %arg4: memref<1x512xf32, #tpu.memory_space<vmem>>, %arg5: memref<2x512xbf16, #tpu.memory_space<vmem>>, %arg6: memref<2x512xf32, #tpu.memory_space<vmem>>) attributes {dimension_semantics = [#tpu.dimension_semantics<parallel>, #tpu.dimension_semantics<arbitrary>], iteration_bounds = array<i64: 1, 2>, scalar_prefetch = 0 : i64, scratch_operands = 1 : i64, tpu.core_type = #tpu.core_type<tc>, window_params = [{transform_indices = @transform_0, window_bounds = array<i64: 2, 128>}, {transform_indices = @transform_1, window_bounds = array<i64: 128, 512>}, {pipeline_mode = #tpu.pipeline_mode<synchronous>, transform_indices = @transform_2, window_bounds = array<i64: 1, 512>}, {transform_indices = @transform_3, window_bounds = array<i64: 2, 512>}]} {
    %c0_i32 = arith.constant 0 : i32
    %0 = arith.cmpi eq, %arg1, %c0_i32 : i32
    %1 = arith.extui %0 : i1 to i32
    %c0_i32_0 = arith.constant 0 : i32
    %2 = arith.cmpi ne, %1, %c0_i32_0 : i32
    scf.if %2 {
      %cst_9 = arith.constant 0.000000e+00 : f32
      %12 = vector.broadcast %cst_9 : f32 to vector<2x512xf32>
      %c0_10 = arith.constant 0 : index
      %c0_11 = arith.constant 0 : index
      %13 = vector.load %arg6[%c0_10, %c0_11] : memref<2x512xf32, #tpu.memory_space<vmem>>, vector<2x512xf32>
      tpu.vector_store %arg6[%c0_10, %c0_11], %12 {strides = array<i32>} : memref<2x512xf32, #tpu.memory_space<vmem>>, vector<2x512xf32>,
    } else {
    }
    %c0 = arith.constant 0 : index
    %c0_1 = arith.constant 0 : index
    %3 = vector.load %arg6[%c0, %c0_1] : memref<2x512xf32, #tpu.memory_space<vmem>>, vector<2x512xf32>
    %c0_2 = arith.constant 0 : index
    %c0_3 = arith.constant 0 : index
    %4 = vector.load %arg2[%c0_2, %c0_3] : memref<2x128xbf16, #tpu.memory_space<vmem>>, vector<2x128xbf16>
    %c0_4 = arith.constant 0 : index
    %c0_5 = arith.constant 0 : index
    %5 = vector.load %arg3[%c0_4, %c0_5] : memref<128x512xbf16, #tpu.memory_space<vmem>>, vector<128x512xbf16>
    %cst = arith.constant dense<0.000000e+00> : vector<2x512xf32>
    %6 = tpu.matmul %4, %5, %cst {dimension_numbers = #tpu.dot_dimension_numbers<[1], [0], [0], [1], [0, 0, 1, 1], [], []>} : vector<2x128xbf16>, vector<128x512xbf16>, vector<2x512xf32> -> vector<2x512xf32>
    %7 = arith.addf %3, %6 : vector<2x512xf32>
    %c0_6 = arith.constant 0 : index
    %c0_7 = arith.constant 0 : index
    %8 = vector.load %arg6[%c0_6, %c0_7] : memref<2x512xf32, #tpu.memory_space<vmem>>, vector<2x512xf32>
    tpu.vector_store %arg6[%c0_6, %c0_7], %7 {strides = array<i32>} : memref<2x512xf32, #tpu.memory_space<vmem>>, vector<2x512xf32>,
    %c1_i32 = arith.constant 1 : i32
    %9 = arith.cmpi eq, %arg1, %c1_i32 : i32
    %10 = arith.extui %9 : i1 to i32
    %c0_i32_8 = arith.constant 0 : i32
    %11 = arith.cmpi ne, %10, %c0_i32_8 : i32
    scf.if %11 {
      %c0_9 = arith.constant 0 : index
      %c0_10 = arith.constant 0 : index
      %12 = vector.load %arg6[%c0_9, %c0_10] : memref<2x512xf32, #tpu.memory_space<vmem>>, vector<2x512xf32>
      %c0_11 = arith.constant 0 : index
      %c0_12 = arith.constant 0 : index
      %13 = vector.load %arg4[%c0_11, %c0_12] : memref<1x512xf32, #tpu.memory_space<vmem>>, vector<1x512xf32>
      %14 = vector.broadcast %13 : vector<1x512xf32> to vector<2x512xf32>
      %15 = arith.addf %12, %14 : vector<2x512xf32>
      %16 = arith.truncf %15 : vector<2x512xf32> to vector<2x512xbf16>
      %c0_13 = arith.constant 0 : index
      %c0_14 = arith.constant 0 : index
      %17 = vector.load %arg5[%c0_13, %c0_14] : memref<2x512xbf16, #tpu.memory_space<vmem>>, vector<2x512xbf16>
      tpu.vector_store %arg5[%c0_13, %c0_14], %16 {strides = array<i32>} : memref<2x512xbf16, #tpu.memory_space<vmem>>, vector<2x512xbf16>,
    } else {
    }
    return
  }
  func.func @transform_0(%arg0: i32, %arg1: i32) -> (i32, i32) {
    %c0_i32 = arith.constant 0 : i32
    return %arg0, %arg1 : i32, i32
  }
  func.func @transform_1(%arg0: i32, %arg1: i32) -> (i32, i32) {
    %c0_i32 = arith.constant 0 : i32
    %c0_i32_0 = arith.constant 0 : i32
    return %arg1, %c0_i32 : i32, i32
  }
  func.func @transform_2(%arg0: i32, %arg1: i32) -> (i32, i32) {
    %c0_i32 = arith.constant 0 : i32
    %c0_i32_0 = arith.constant 0 : i32
    %c0_i32_1 = arith.constant 0 : i32
    return %c0_i32, %c0_i32_0 : i32, i32
  }
  func.func @transform_3(%arg0: i32, %arg1: i32) -> (i32, i32) {
    %c0_i32 = arith.constant 0 : i32
    %c0_i32_0 = arith.constant 0 : i32
    return %arg0, %c0_i32 : i32, i32
  }
}

module attributes {stable_mosaic.version = 11 : i64} {
  func.func @_mm_multi_kernel(%arg0: i32, %arg1: i32, %arg2: memref<2x768xbf16, #tpu.memory_space<vmem>>, %arg3: memref<768x512xbf16, #tpu.memory_space<vmem>>, %arg4: memref<1x512xf32, #tpu.memory_space<vmem>>, %arg5: memref<2x512xbf16, #tpu.memory_space<vmem>>, %arg6: memref<2x512xbf16, #tpu.memory_space<vmem>>, %arg7: memref<2x512xf32, #tpu.memory_space<vmem>>) attributes {dimension_semantics = [#tpu.dimension_semantics<parallel>, #tpu.dimension_semantics<arbitrary>], iteration_bounds = array<i64: 1, 6>, scalar_prefetch = 0 : i64, scratch_operands = 1 : i64, tpu.core_type = #tpu.core_type<tc>, window_params = [{transform_indices = @transform_0, window_bounds = array<i64: 2, 768>}, {transform_indices = @transform_1, window_bounds = array<i64: 768, 512>}, {pipeline_mode = #tpu.pipeline_mode<synchronous>, transform_indices = @transform_2, window_bounds = array<i64: 1, 512>}, {transform_indices = @transform_3, window_bounds = array<i64: 2, 512>}, {transform_indices = @transform_4, window_bounds = array<i64: 2, 512>}]} {
    %c0_i32 = arith.constant 0 : i32
    %0 = arith.cmpi eq, %arg1, %c0_i32 : i32
    %1 = arith.extui %0 : i1 to i32
    %c0_i32_0 = arith.constant 0 : i32
    %2 = arith.cmpi ne, %1, %c0_i32_0 : i32
    scf.if %2 {
      %cst_9 = arith.constant 0.000000e+00 : f32
      %12 = vector.broadcast %cst_9 : f32 to vector<2x512xf32>
      %c0_10 = arith.constant 0 : index
      %c0_11 = arith.constant 0 : index
      %13 = vector.load %arg7[%c0_10, %c0_11] : memref<2x512xf32, #tpu.memory_space<vmem>>, vector<2x512xf32>
      tpu.vector_store %arg7[%c0_10, %c0_11], %12 {strides = array<i32>} : memref<2x512xf32, #tpu.memory_space<vmem>>, vector<2x512xf32>,
    } else {
    }
    %c0 = arith.constant 0 : index
    %c0_1 = arith.constant 0 : index
    %3 = vector.load %arg7[%c0, %c0_1] : memref<2x512xf32, #tpu.memory_space<vmem>>, vector<2x512xf32>
    %c0_2 = arith.constant 0 : index
    %c0_3 = arith.constant 0 : index
    %4 = vector.load %arg2[%c0_2, %c0_3] : memref<2x768xbf16, #tpu.memory_space<vmem>>, vector<2x768xbf16>
    %c0_4 = arith.constant 0 : index
    %c0_5 = arith.constant 0 : index
    %5 = vector.load %arg3[%c0_4, %c0_5] : memref<768x512xbf16, #tpu.memory_space<vmem>>, vector<768x512xbf16>
    %cst = arith.constant dense<0.000000e+00> : vector<2x512xf32>
    %6 = tpu.matmul %4, %5, %cst {dimension_numbers = #tpu.dot_dimension_numbers<[1], [0], [0], [1], [0, 0, 1, 1], [], []>} : vector<2x768xbf16>, vector<768x512xbf16>, vector<2x512xf32> -> vector<2x512xf32>
    %7 = arith.addf %3, %6 : vector<2x512xf32>
    %c0_6 = arith.constant 0 : index
    %c0_7 = arith.constant 0 : index
    %8 = vector.load %arg7[%c0_6, %c0_7] : memref<2x512xf32, #tpu.memory_space<vmem>>, vector<2x512xf32>
    tpu.vector_store %arg7[%c0_6, %c0_7], %7 {strides = array<i32>} : memref<2x512xf32, #tpu.memory_space<vmem>>, vector<2x512xf32>,
    %c5_i32 = arith.constant 5 : i32
    %9 = arith.cmpi eq, %arg1, %c5_i32 : i32
    %10 = arith.extui %9 : i1 to i32
    %c0_i32_8 = arith.constant 0 : i32
    %11 = arith.cmpi ne, %10, %c0_i32_8 : i32
    scf.if %11 {
      %c0_9 = arith.constant 0 : index
      %c0_10 = arith.constant 0 : index
      %12 = vector.load %arg7[%c0_9, %c0_10] : memref<2x512xf32, #tpu.memory_space<vmem>>, vector<2x512xf32>
      %c0_11 = arith.constant 0 : index
      %c0_12 = arith.constant 0 : index
      %13 = vector.load %arg4[%c0_11, %c0_12] : memref<1x512xf32, #tpu.memory_space<vmem>>, vector<1x512xf32>
      %14 = vector.broadcast %13 : vector<1x512xf32> to vector<2x512xf32>
      %15 = arith.addf %12, %14 : vector<2x512xf32>
      %c0_13 = arith.constant 0 : index
      %c0_14 = arith.constant 0 : index
      %16 = vector.load %arg5[%c0_13, %c0_14] : memref<2x512xbf16, #tpu.memory_space<vmem>>, vector<2x512xbf16>
      %17 = arith.extf %16 : vector<2x512xbf16> to vector<2x512xf32>
      %18 = arith.addf %15, %17 : vector<2x512xf32>
      %cst_15 = arith.constant 0.000000e+00 : f32
      %19 = vector.broadcast %cst_15 : f32 to vector<2x512xf32>
      %20 = arith.maximumf %18, %19 : vector<2x512xf32>
      %21 = arith.truncf %20 : vector<2x512xf32> to vector<2x512xbf16>
      %c0_16 = arith.constant 0 : index
      %c0_17 = arith.constant 0 : index
      %22 = vector.load %arg6[%c0_16, %c0_17] : memref<2x512xbf16, #tpu.memory_space<vmem>>, vector<2x512xbf16>
      tpu.vector_store %arg6[%c0_16, %c0_17], %21 {strides = array<i32>} : memref<2x512xbf16, #tpu.memory_space<vmem>>, vector<2x512xbf16>,
    } else {
    }
    return
  }
  func.func @transform_0(%arg0: i32, %arg1: i32) -> (i32, i32) {
    %c0_i32 = arith.constant 0 : i32
    return %arg0, %arg1 : i32, i32
  }
  func.func @transform_1(%arg0: i32, %arg1: i32) -> (i32, i32) {
    %c0_i32 = arith.constant 0 : i32
    %c0_i32_0 = arith.constant 0 : i32
    return %arg1, %c0_i32 : i32, i32
  }
  func.func @transform_2(%arg0: i32, %arg1: i32) -> (i32, i32) {
    %c0_i32 = arith.constant 0 : i32
    %c0_i32_0 = arith.constant 0 : i32
    %c0_i32_1 = arith.constant 0 : i32
    return %c0_i32, %c0_i32_0 : i32, i32
  }
  func.func @transform_3(%arg0: i32, %arg1: i32) -> (i32, i32) {
    %c0_i32 = arith.constant 0 : i32
    %c0_i32_0 = arith.constant 0 : i32
    return %arg0, %c0_i32 : i32, i32
  }
  func.func @transform_4(%arg0: i32, %arg1: i32) -> (i32, i32) {
    %c0_i32 = arith.constant 0 : i32
    %c0_i32_0 = arith.constant 0 : i32
    return %arg0, %c0_i32 : i32, i32
  }
}

module attributes {stable_mosaic.version = 11 : i64} {
  func.func @_mm_multi_kernel(%arg0: i32, %arg1: i32, %arg2: memref<2x768xbf16, #tpu.memory_space<vmem>>, %arg3: memref<768x512xbf16, #tpu.memory_space<vmem>>, %arg4: memref<1x512xf32, #tpu.memory_space<vmem>>, %arg5: memref<2x512xbf16, #tpu.memory_space<vmem>>, %arg6: memref<2x512xf32, #tpu.memory_space<vmem>>) attributes {dimension_semantics = [#tpu.dimension_semantics<parallel>, #tpu.dimension_semantics<arbitrary>], iteration_bounds = array<i64: 1, 6>, scalar_prefetch = 0 : i64, scratch_operands = 1 : i64, tpu.core_type = #tpu.core_type<tc>, window_params = [{transform_indices = @transform_0, window_bounds = array<i64: 2, 768>}, {transform_indices = @transform_1, window_bounds = array<i64: 768, 512>}, {pipeline_mode = #tpu.pipeline_mode<synchronous>, transform_indices = @transform_2, window_bounds = array<i64: 1, 512>}, {transform_indices = @transform_3, window_bounds = array<i64: 2, 512>}]} {
    %c0_i32 = arith.constant 0 : i32
    %0 = arith.cmpi eq, %arg1, %c0_i32 : i32
    %1 = arith.extui %0 : i1 to i32
    %c0_i32_0 = arith.constant 0 : i32
    %2 = arith.cmpi ne, %1, %c0_i32_0 : i32
    scf.if %2 {
      %cst_9 = arith.constant 0.000000e+00 : f32
      %12 = vector.broadcast %cst_9 : f32 to vector<2x512xf32>
      %c0_10 = arith.constant 0 : index
      %c0_11 = arith.constant 0 : index
      %13 = vector.load %arg6[%c0_10, %c0_11] : memref<2x512xf32, #tpu.memory_space<vmem>>, vector<2x512xf32>
      tpu.vector_store %arg6[%c0_10, %c0_11], %12 {strides = array<i32>} : memref<2x512xf32, #tpu.memory_space<vmem>>, vector<2x512xf32>,
    } else {
    }
    %c0 = arith.constant 0 : index
    %c0_1 = arith.constant 0 : index
    %3 = vector.load %arg6[%c0, %c0_1] : memref<2x512xf32, #tpu.memory_space<vmem>>, vector<2x512xf32>
    %c0_2 = arith.constant 0 : index
    %c0_3 = arith.constant 0 : index
    %4 = vector.load %arg2[%c0_2, %c0_3] : memref<2x768xbf16, #tpu.memory_space<vmem>>, vector<2x768xbf16>
    %c0_4 = arith.constant 0 : index
    %c0_5 = arith.constant 0 : index
    %5 = vector.load %arg3[%c0_4, %c0_5] : memref<768x512xbf16, #tpu.memory_space<vmem>>, vector<768x512xbf16>
    %cst = arith.constant dense<0.000000e+00> : vector<2x512xf32>
    %6 = tpu.matmul %4, %5, %cst {dimension_numbers = #tpu.dot_dimension_numbers<[1], [0], [0], [1], [0, 0, 1, 1], [], []>} : vector<2x768xbf16>, vector<768x512xbf16>, vector<2x512xf32> -> vector<2x512xf32>
    %7 = arith.addf %3, %6 : vector<2x512xf32>
    %c0_6 = arith.constant 0 : index
    %c0_7 = arith.constant 0 : index
    %8 = vector.load %arg6[%c0_6, %c0_7] : memref<2x512xf32, #tpu.memory_space<vmem>>, vector<2x512xf32>
    tpu.vector_store %arg6[%c0_6, %c0_7], %7 {strides = array<i32>} : memref<2x512xf32, #tpu.memory_space<vmem>>, vector<2x512xf32>,
    %c5_i32 = arith.constant 5 : i32
    %9 = arith.cmpi eq, %arg1, %c5_i32 : i32
    %10 = arith.extui %9 : i1 to i32
    %c0_i32_8 = arith.constant 0 : i32
    %11 = arith.cmpi ne, %10, %c0_i32_8 : i32
    scf.if %11 {
      %c0_9 = arith.constant 0 : index
      %c0_10 = arith.constant 0 : index
      %12 = vector.load %arg6[%c0_9, %c0_10] : memref<2x512xf32, #tpu.memory_space<vmem>>, vector<2x512xf32>
      %c0_11 = arith.constant 0 : index
      %c0_12 = arith.constant 0 : index
      %13 = vector.load %arg4[%c0_11, %c0_12] : memref<1x512xf32, #tpu.memory_space<vmem>>, vector<1x512xf32>
      %14 = vector.broadcast %13 : vector<1x512xf32> to vector<2x512xf32>
      %15 = arith.addf %12, %14 : vector<2x512xf32>
      %cst_13 = arith.constant 0.000000e+00 : f32
      %16 = vector.broadcast %cst_13 : f32 to vector<2x512xf32>
      %17 = arith.maximumf %15, %16 : vector<2x512xf32>
      %18 = arith.truncf %17 : vector<2x512xf32> to vector<2x512xbf16>
      %c0_14 = arith.constant 0 : index
      %c0_15 = arith.constant 0 : index
      %19 = vector.load %arg5[%c0_14, %c0_15] : memref<2x512xbf16, #tpu.memory_space<vmem>>, vector<2x512xbf16>
      tpu.vector_store %arg5[%c0_14, %c0_15], %18 {strides = array<i32>} : memref<2x512xbf16, #tpu.memory_space<vmem>>, vector<2x512xbf16>,
    } else {
    }
    return
  }
  func.func @transform_0(%arg0: i32, %arg1: i32) -> (i32, i32) {
    %c0_i32 = arith.constant 0 : i32
    return %arg0, %arg1 : i32, i32
  }
  func.func @transform_1(%arg0: i32, %arg1: i32) -> (i32, i32) {
    %c0_i32 = arith.constant 0 : i32
    %c0_i32_0 = arith.constant 0 : i32
    return %arg1, %c0_i32 : i32, i32
  }
  func.func @transform_2(%arg0: i32, %arg1: i32) -> (i32, i32) {
    %c0_i32 = arith.constant 0 : i32
    %c0_i32_0 = arith.constant 0 : i32
    %c0_i32_1 = arith.constant 0 : i32
    return %c0_i32, %c0_i32_0 : i32, i32
  }
  func.func @transform_3(%arg0: i32, %arg1: i32) -> (i32, i32) {
    %c0_i32 = arith.constant 0 : i32
    %c0_i32_0 = arith.constant 0 : i32
    return %arg0, %c0_i32 : i32, i32
  }
}

module attributes {stable_mosaic.version = 11 : i64} {
  func.func @_gap_fc_kernel(%arg0: i32, %arg1: memref<2x1x512xbf16, #tpu.memory_space<vmem>>, %arg2: memref<512x12xf32, #tpu.memory_space<vmem>>, %arg3: memref<1x12xf32, #tpu.memory_space<vmem>>, %arg4: memref<2x12xf32, #tpu.memory_space<vmem>>) attributes {dimension_semantics = [#tpu.dimension_semantics<arbitrary>], iteration_bounds = array<i64: 1>, scalar_prefetch = 0 : i64, scratch_operands = 0 : i64, tpu.core_type = #tpu.core_type<tc>, window_params = [{pipeline_mode = #tpu.pipeline_mode<synchronous>, transform_indices = @transform_0, window_bounds = array<i64: 2, 1, 512>}, {pipeline_mode = #tpu.pipeline_mode<synchronous>, transform_indices = @transform_1, window_bounds = array<i64: 512, 12>}, {pipeline_mode = #tpu.pipeline_mode<synchronous>, transform_indices = @transform_2, window_bounds = array<i64: 1, 12>}, {pipeline_mode = #tpu.pipeline_mode<synchronous>, transform_indices = @transform_3, window_bounds = array<i64: 2, 12>}]} {
    %c0 = arith.constant 0 : index
    %c0_0 = arith.constant 0 : index
    %c0_1 = arith.constant 0 : index
    %0 = vector.load %arg1[%c0, %c0_0, %c0_1] : memref<2x1x512xbf16, #tpu.memory_space<vmem>>, vector<2x1x512xbf16>
    %1 = arith.extf %0 : vector<2x1x512xbf16> to vector<2x1x512xf32>
    %cst = arith.constant dense<0.000000e+00> : vector<2x512xf32>
    %2 = vector.multi_reduction <add>, %1, %cst [1] : vector<2x1x512xf32> to vector<2x512xf32>
    %cst_2 = arith.constant 1.000000e+00 : f32
    %3 = vector.broadcast %cst_2 : f32 to vector<2x512xf32>
    %4 = arith.divf %2, %3 : vector<2x512xf32>
    %c0_3 = arith.constant 0 : index
    %c0_4 = arith.constant 0 : index
    %5 = vector.load %arg2[%c0_3, %c0_4] : memref<512x12xf32, #tpu.memory_space<vmem>>, vector<512x12xf32>
    %cst_5 = arith.constant dense<0.000000e+00> : vector<2x12xf32>
    %6 = tpu.matmul %4, %5, %cst_5 {dimension_numbers = #tpu.dot_dimension_numbers<[1], [0], [0], [1], [0, 0, 1, 1], [], []>} : vector<2x512xf32>, vector<512x12xf32>, vector<2x12xf32> -> vector<2x12xf32>
    %c0_6 = arith.constant 0 : index
    %c0_7 = arith.constant 0 : index
    %7 = vector.load %arg3[%c0_6, %c0_7] : memref<1x12xf32, #tpu.memory_space<vmem>>, vector<1x12xf32>
    %8 = vector.broadcast %7 : vector<1x12xf32> to vector<2x12xf32>
    %9 = arith.addf %6, %8 : vector<2x12xf32>
    %c0_8 = arith.constant 0 : index
    %c0_9 = arith.constant 0 : index
    %10 = vector.load %arg4[%c0_8, %c0_9] : memref<2x12xf32, #tpu.memory_space<vmem>>, vector<2x12xf32>
    tpu.vector_store %arg4[%c0_8, %c0_9], %9 {strides = array<i32>} : memref<2x12xf32, #tpu.memory_space<vmem>>, vector<2x12xf32>,
    return
  }
  func.func @transform_0(%arg0: i32) -> (i32, i32, i32) {
    %c0_i32 = arith.constant 0 : i32
    %c0_i32_0 = arith.constant 0 : i32
    %c0_i32_1 = arith.constant 0 : i32
    %c0_i32_2 = arith.constant 0 : i32
    return %c0_i32, %c0_i32_0, %c0_i32_1 : i32, i32, i32
  }
  func.func @transform_1(%arg0: i32) -> (i32, i32) {
    %c0_i32 = arith.constant 0 : i32
    %c0_i32_0 = arith.constant 0 : i32
    %c0_i32_1 = arith.constant 0 : i32
    return %c0_i32, %c0_i32_0 : i32, i32
  }
  func.func @transform_2(%arg0: i32) -> (i32, i32) {
    %c0_i32 = arith.constant 0 : i32
    %c0_i32_0 = arith.constant 0 : i32
    %c0_i32_1 = arith.constant 0 : i32
    return %c0_i32, %c0_i32_0 : i32, i32
  }
  func.func @transform_3(%arg0: i32) -> (i32, i32) {
    %c0_i32 = arith.constant 0 : i32
    %c0_i32_0 = arith.constant 0 : i32
    %c0_i32_1 = arith.constant 0 : i32
    return %c0_i32, %c0_i32_0 : i32, i32
  }
}

</mosaic_0001>

<bundles_post_ra>
// kernel: res_model_forward.23
= control target key start
LH: loop header
LB: loop body
LE: loop exit
PB: predicated region body
PF: predicated region fallthrough
CT: control target
= control target key end

     0   :  { %s2445_s12 = smov 0   ;;  %s2447_s13 = smov 0   ;;  %s3205_s0 = inlined_call_operand.vmem [shape: bf16[512,256], index: 0, kind: input, shape index: {}]   ;;  %s3206_s1 = inlined_call_operand.vmem [shape: bf16[256,64], index: 1, kind: input, shape index: {}]   ;;  %s3207_s2 = inlined_call_operand.vmem [shape: f32[1,64], index: 2, kind: input, shape index: {}]   ;;  %s3208_s3 = inlined_call_operand.vmem [shape: bf16[512,64], index: 3, kind: output, shape index: {}]  }
   0x1   :  { %s2449_s14 = smov 0   ;;  %s2451_s15 = smov 0  }
   0x2   :  { %s2453_s16 = smov 0  }
   0x3 LB: > { %s22_s17 = sadd.s32 1, %s2418_s15  ;;  %p41_p1 = scmp.ne.s32.totalorder %s2410_s13, %s2406_s12  ;;  %s2422_s16 = sphi %s2453_s16, %s13_s16   ;;  %s2418_s15 = sphi %s2451_s15, %s3212_s15   ;;  %s2414_s14 = sphi %s2449_s14, %s3211_s14   ;;  %s2410_s13 = sphi %s2447_s13, %s3210_s13   ;;  %s2406_s12 = sphi %s2445_s12, %s3209_s12  }
   0x4   : > { %p23_p0 = scmp.ge.s32.totalorder %s22_s17, 2  ;;  %p42_p2 = scmp.eq.s32.totalorder %s2422_s16, 0 }
   0x5   : > { %s34_s19 = sadd.s32 1, %s2410_s13  ;;  %p1985_p5 = scmp.ge.s32.totalorder %s2422_s16, 2 }
   0x6   : > { %s3214_s17 = smov (%p23_p0, %s22_s17), 0  ;;  %p43_p3 = por %p42_p2, %p41_p1 }
   0x7   : > { %s30_s18 = ssub.s32 %s2418_s15, %s3214_s17  ;;  %143 = sbr.rel (%p1985_p5) target bundleno = 60 (0x3c), region = 20 }
   0x8   : > { %p32_p4 = scmp.eq.s32.totalorder %s30_s18, 0 }
   0xa   : > { %s2480_s20 = scalar_select %p32_p4, %s2410_s13, %s34_s19  }
   0xe   : > { %146 = sbr.rel (!%p43_p3) target bundleno = 60 (0x3c), region = 24  ;;  %s148_s21 = sand.u32 (%p43_p3), 1, %s2410_s13  }
   0xf   : > { %s1987_s22 = sshll.u32 (%p43_p3), %s2418_s15, 2  ;;  %s1986_s23 = sshll.u32 (%p43_p3), %s148_s21, 8 }
  0x10   : > { %s2488_s26 = scalar_lea.vmem (%p43_p3), %s3205_s0, %s1987_s22  ;;  %s2492_s27 = scalar_lea.vmem (%p43_p3), [#allocation3], %s1986_s23 }
  0x11   : > { %v171_v0 = vld [vmem:[%s2488_s26] sm:$0xf] (%p43_p3)  ;;  %v173_v1 = vld [vmem:[%s2488_s26 + $0x8] sm:$0xf] (%p43_p3)  ;;  %v175_v2 = vld [vmem:[%s2488_s26 + $0x10] sm:$0xf] (%p43_p3) }
  0x12   : > { %172 = vst [vmem:[%s2492_s27] sm:$0xf] (%p43_p3), %v171_v0  ;;  %174 = vst [vmem:[%s2492_s27 + $0x4] sm:$0xf] (%p43_p3), %v173_v1  ;;  %v177_v3 = vld [vmem:[%s2488_s26 + $0x18] sm:$0xf] (%p43_p3) }
  0x13   : > { %v179_v4 = vld [vmem:[%s2488_s26 + $0x20] sm:$0xf] (%p43_p3)  ;;  %176 = vst [vmem:[%s2492_s27 + $0x8] sm:$0xf] (%p43_p3), %v175_v2  ;;  %178 = vst [vmem:[%s2492_s27 + $0xc] sm:$0xf] (%p43_p3), %v177_v3 }
  0x14   : > { %180 = vst [vmem:[%s2492_s27 + $0x10] sm:$0xf] (%p43_p3), %v179_v4  ;;  %v181_v5 = vld [vmem:[%s2488_s26 + $0x28] sm:$0xf] (%p43_p3)  ;;  %v183_v6 = vld [vmem:[%s2488_s26 + $0x30] sm:$0xf] (%p43_p3) }
  0x15   : > { %v185_v7 = vld [vmem:[%s2488_s26 + $0x38] sm:$0xf]  ;;  %182 = vst [vmem:[%s2492_s27 + $0x14] sm:$0xf] %v181_v5  ;;  %184 = vst [vmem:[%s2492_s27 + $0x18] sm:$0xf] %v183_v6 }
  0x16   : > { %186 = vst [vmem:[%s2492_s27 + $0x1c] sm:$0xf] %v185_v7  ;;  %v187_v8 = vld [vmem:[%s2488_s26 + $0x40] sm:$0xf]  ;;  %v189_v9 = vld [vmem:[%s2488_s26 + $0x48] sm:$0xf] }
  0x17   : > { %v191_v10 = vld [vmem:[%s2488_s26 + $0x50] sm:$0xf]  ;;  %188 = vst [vmem:[%s2492_s27 + $0x20] sm:$0xf] %v187_v8  ;;  %190 = vst [vmem:[%s2492_s27 + $0x24] sm:$0xf] %v189_v9 }
  0x18   : > { %192 = vst [vmem:[%s2492_s27 + $0x28] sm:$0xf] %v191_v10  ;;  %v193_v11 = vld [vmem:[%s2488_s26 + $0x58] sm:$0xf]  ;;  %v195_v12 = vld [vmem:[%s2488_s26 + $0x60] sm:$0xf] }
  0x19   : > { %v197_v13 = vld [vmem:[%s2488_s26 + $0x68] sm:$0xf]  ;;  %194 = vst [vmem:[%s2492_s27 + $0x2c] sm:$0xf] %v193_v11  ;;  %196 = vst [vmem:[%s2492_s27 + $0x30] sm:$0xf] %v195_v12 }
  0x1a   : > { %198 = vst [vmem:[%s2492_s27 + $0x34] sm:$0xf] %v197_v13  ;;  %v199_v14 = vld [vmem:[%s2488_s26 + $0x70] sm:$0xf]  ;;  %v201_v15 = vld [vmem:[%s2488_s26 + $0x78] sm:$0xf] }
  0x1b   : > { %v203_v16 = vld [vmem:[%s2488_s26 + $0x80] sm:$0xf]  ;;  %200 = vst [vmem:[%s2492_s27 + $0x38] sm:$0xf] %v199_v14  ;;  %202 = vst [vmem:[%s2492_s27 + $0x3c] sm:$0xf] %v201_v15 }
  0x1c   : > { %204 = vst [vmem:[%s2492_s27 + $0x40] sm:$0xf] %v203_v16  ;;  %v205_v17 = vld [vmem:[%s2488_s26 + $0x88] sm:$0xf]  ;;  %v207_v18 = vld [vmem:[%s2488_s26 + $0x90] sm:$0xf] }
  0x1d   : > { %v209_v19 = vld [vmem:[%s2488_s26 + $0x98] sm:$0xf]  ;;  %206 = vst [vmem:[%s2492_s27 + $0x44] sm:$0xf] %v205_v17  ;;  %208 = vst [vmem:[%s2492_s27 + $0x48] sm:$0xf] %v207_v18 }
  0x1e   : > { %210 = vst [vmem:[%s2492_s27 + $0x4c] sm:$0xf] %v209_v19  ;;  %v211_v20 = vld [vmem:[%s2488_s26 + $0xa0] sm:$0xf]  ;;  %v213_v21 = vld [vmem:[%s2488_s26 + $0xa8] sm:$0xf] }
  0x1f   : > { %v215_v22 = vld [vmem:[%s2488_s26 + $0xb0] sm:$0xf]  ;;  %212 = vst [vmem:[%s2492_s27 + $0x50] sm:$0xf] %v211_v20  ;;  %214 = vst [vmem:[%s2492_s27 + $0x54] sm:$0xf] %v213_v21 }
  0x20   : > { %216 = vst [vmem:[%s2492_s27 + $0x58] sm:$0xf] %v215_v22  ;;  %v217_v23 = vld [vmem:[%s2488_s26 + $0xb8] sm:$0xf]  ;;  %v219_v24 = vld [vmem:[%s2488_s26 + $0xc0] sm:$0xf] }
  0x21   : > { %v221_v25 = vld [vmem:[%s2488_s26 + $0xc8] sm:$0xf]  ;;  %218 = vst [vmem:[%s2492_s27 + $0x5c] sm:$0xf] %v217_v23  ;;  %220 = vst [vmem:[%s2492_s27 + $0x60] sm:$0xf] %v219_v24 }
  0x22   : > { %222 = vst [vmem:[%s2492_s27 + $0x64] sm:$0xf] %v221_v25  ;;  %v223_v26 = vld [vmem:[%s2488_s26 + $0xd0] sm:$0xf]  ;;  %v225_v27 = vld [vmem:[%s2488_s26 + $0xd8] sm:$0xf] }
  0x23   : > { %v227_v28 = vld [vmem:[%s2488_s26 + $0xe0] sm:$0xf]  ;;  %224 = vst [vmem:[%s2492_s27 + $0x68] sm:$0xf] %v223_v26  ;;  %226 = vst [vmem:[%s2492_s27 + $0x6c] sm:$0xf] %v225_v27 }
  0x24   : > { %228 = vst [vmem:[%s2492_s27 + $0x70] sm:$0xf] %v227_v28  ;;  %v229_v29 = vld [vmem:[%s2488_s26 + $0xe8] sm:$0xf]  ;;  %v231_v30 = vld [vmem:[%s2488_s26 + $0xf0] sm:$0xf] }
  0x25   : > { %v233_v31 = vld [vmem:[%s2488_s26 + $0xf8] sm:$0xf]  ;;  %230 = vst [vmem:[%s2492_s27 + $0x74] sm:$0xf] %v229_v29  ;;  %232 = vst [vmem:[%s2492_s27 + $0x78] sm:$0xf] %v231_v30 }
  0x26   : > { %234 = vst [vmem:[%s2492_s27 + $0x7c] sm:$0xf] %v233_v31  ;;  %v235_v32 = vld [vmem:[%s2488_s26 + $0x100] sm:$0xf]  ;;  %v237_v33 = vld [vmem:[%s2488_s26 + $0x108] sm:$0xf] }
  0x27   : > { %v239_v34 = vld [vmem:[%s2488_s26 + $0x110] sm:$0xf]  ;;  %236 = vst [vmem:[%s2492_s27 + $0x80] sm:$0xf] %v235_v32  ;;  %238 = vst [vmem:[%s2492_s27 + $0x84] sm:$0xf] %v237_v33 }
  0x28   : > { %240 = vst [vmem:[%s2492_s27 + $0x88] sm:$0xf] %v239_v34  ;;  %v241_v35 = vld [vmem:[%s2488_s26 + $0x118] sm:$0xf]  ;;  %v243_v36 = vld [vmem:[%s2488_s26 + $0x120] sm:$0xf] }
  0x29   : > { %v245_v37 = vld [vmem:[%s2488_s26 + $0x128] sm:$0xf]  ;;  %242 = vst [vmem:[%s2492_s27 + $0x8c] sm:$0xf] %v241_v35  ;;  %244 = vst [vmem:[%s2492_s27 + $0x90] sm:$0xf] %v243_v36 }
  0x2a   : > { %246 = vst [vmem:[%s2492_s27 + $0x94] sm:$0xf] %v245_v37  ;;  %v247_v38 = vld [vmem:[%s2488_s26 + $0x130] sm:$0xf]  ;;  %v249_v39 = vld [vmem:[%s2488_s26 + $0x138] sm:$0xf] }
  0x2b   : > { %v251_v40 = vld [vmem:[%s2488_s26 + $0x140] sm:$0xf]  ;;  %248 = vst [vmem:[%s2492_s27 + $0x98] sm:$0xf] %v247_v38  ;;  %250 = vst [vmem:[%s2492_s27 + $0x9c] sm:$0xf] %v249_v39 }
  0x2c   : > { %252 = vst [vmem:[%s2492_s27 + $0xa0] sm:$0xf] %v251_v40  ;;  %v253_v41 = vld [vmem:[%s2488_s26 + $0x148] sm:$0xf]  ;;  %v255_v42 = vld [vmem:[%s2488_s26 + $0x150] sm:$0xf] }
  0x2d   : > { %v257_v43 = vld [vmem:[%s2488_s26 + $0x158] sm:$0xf]  ;;  %254 = vst [vmem:[%s2492_s27 + $0xa4] sm:$0xf] %v253_v41  ;;  %256 = vst [vmem:[%s2492_s27 + $0xa8] sm:$0xf] %v255_v42 }
  0x2e   : > { %258 = vst [vmem:[%s2492_s27 + $0xac] sm:$0xf] %v257_v43  ;;  %v259_v44 = vld [vmem:[%s2488_s26 + $0x160] sm:$0xf]  ;;  %v261_v45 = vld [vmem:[%s2488_s26 + $0x168] sm:$0xf] }
  0x2f   : > { %v263_v46 = vld [vmem:[%s2488_s26 + $0x170] sm:$0xf]  ;;  %260 = vst [vmem:[%s2492_s27 + $0xb0] sm:$0xf] %v259_v44  ;;  %262 = vst [vmem:[%s2492_s27 + $0xb4] sm:$0xf] %v261_v45 }
  0x30   : > { %264 = vst [vmem:[%s2492_s27 + $0xb8] sm:$0xf] %v263_v46  ;;  %v265_v47 = vld [vmem:[%s2488_s26 + $0x178] sm:$0xf]  ;;  %v267_v48 = vld [vmem:[%s2488_s26 + $0x180] sm:$0xf] }
  0x31   : > { %v269_v49 = vld [vmem:[%s2488_s26 + $0x188] sm:$0xf]  ;;  %266 = vst [vmem:[%s2492_s27 + $0xbc] sm:$0xf] %v265_v47  ;;  %268 = vst [vmem:[%s2492_s27 + $0xc0] sm:$0xf] %v267_v48 }
  0x32   : > { %270 = vst [vmem:[%s2492_s27 + $0xc4] sm:$0xf] %v269_v49  ;;  %v271_v50 = vld [vmem:[%s2488_s26 + $0x190] sm:$0xf]  ;;  %v273_v51 = vld [vmem:[%s2488_s26 + $0x198] sm:$0xf] }
  0x33   : > { %v275_v52 = vld [vmem:[%s2488_s26 + $0x1a0] sm:$0xf]  ;;  %272 = vst [vmem:[%s2492_s27 + $0xc8] sm:$0xf] %v271_v50  ;;  %274 = vst [vmem:[%s2492_s27 + $0xcc] sm:$0xf] %v273_v51 }
  0x34   : > { %276 = vst [vmem:[%s2492_s27 + $0xd0] sm:$0xf] %v275_v52  ;;  %v277_v53 = vld [vmem:[%s2488_s26 + $0x1a8] sm:$0xf]  ;;  %v279_v54 = vld [vmem:[%s2488_s26 + $0x1b0] sm:$0xf] }
  0x35   : > { %v281_v55 = vld [vmem:[%s2488_s26 + $0x1b8] sm:$0xf]  ;;  %278 = vst [vmem:[%s2492_s27 + $0xd4] sm:$0xf] %v277_v53  ;;  %280 = vst [vmem:[%s2492_s27 + $0xd8] sm:$0xf] %v279_v54 }
  0x36   : > { %282 = vst [vmem:[%s2492_s27 + $0xdc] sm:$0xf] %v281_v55  ;;  %v283_v56 = vld [vmem:[%s2488_s26 + $0x1c0] sm:$0xf]  ;;  %v285_v57 = vld [vmem:[%s2488_s26 + $0x1c8] sm:$0xf] }
  0x37   : > { %v287_v58 = vld [vmem:[%s2488_s26 + $0x1d0] sm:$0xf]  ;;  %284 = vst [vmem:[%s2492_s27 + $0xe0] sm:$0xf] %v283_v56  ;;  %286 = vst [vmem:[%s2492_s27 + $0xe4] sm:$0xf] %v285_v57 }
  0x38   : > { %288 = vst [vmem:[%s2492_s27 + $0xe8] sm:$0xf] %v287_v58  ;;  %v289_v59 = vld [vmem:[%s2488_s26 + $0x1d8] sm:$0xf]  ;;  %v291_v60 = vld [vmem:[%s2488_s26 + $0x1e0] sm:$0xf] }
  0x39   : > { %v293_v61 = vld [vmem:[%s2488_s26 + $0x1e8] sm:$0xf]  ;;  %290 = vst [vmem:[%s2492_s27 + $0xec] sm:$0xf] %v289_v59  ;;  %292 = vst [vmem:[%s2492_s27 + $0xf0] sm:$0xf] %v291_v60 }
  0x3a   : > { %294 = vst [vmem:[%s2492_s27 + $0xf4] sm:$0xf] %v293_v61  ;;  %v295_v62 = vld [vmem:[%s2488_s26 + $0x1f0] sm:$0xf]  ;;  %v297_v63 = vld [vmem:[%s2488_s26 + $0x1f8] sm:$0xf] }
  0x3b   : > { %296 = vst [vmem:[%s2492_s27 + $0xf8] sm:$0xf] %v295_v62  ;;  %298 = vst [vmem:[%s2492_s27 + $0xfc] sm:$0xf] %v297_v63 }
  0x3c PF: > { %p1988_p6 = scmp.ge.s32.totalorder %s2422_s16, 1  ;;  %p457_p7 = scmp.lt.s32.totalorder %s2422_s16, 3 }
  0x3e   : > { %p458_p8 = pnand %p1988_p6, %p457_p7 }
  0x3f   : > { %s464_s28 = sand.u32 (!%p458_p8), 1, %s2406_s12   ;;  %s1990_s29 = sshll.u32 (!%p458_p8), %s2414_s14, 4 }
  0x40   : > { %461 = sbr.rel (%p458_p8) target bundleno = 453 (0x1c5), region = 69  ;;  %s1989_s30 = sshll.u32 (!%p458_p8), %s464_s28, 8 }
  0x41   : > { %p494_p9 = scmp.lt.s32.totalorder (!%p458_p8), %s1990_s29, 31  ;;  %s2629_s8 = scalar_lea.vmem (!%p458_p8), [#allocation3], %s1989_s30 }
  0x42   : > { %p1992_p10 = scmp.ne.s32.totalorder (!%p458_p8), %s2414_s14, 0 }
  0x47   : > { %s3216_s29 = smov (!%p494_p9, %s1990_s29), 31  ;;  %509 = sbr.rel (%p1992_p10) target bundleno = 105 (0x69), region = 77 }
  0x48   : > { %s1991_s4 = sshll.u32 %s3216_s29, 2  ;;  %vm510_vm0 = vcmask (!%p1992_p10), 523264   ;;  %v2424_v0 = vmov (!%p1992_p10), 0.0  }
  0x49   : > { %s2627_s7 = scalar_lea.vmem %s3206_s1, %s1991_s4  ;;  %511 = vst.msk [vmem:[#allocation2] sm:$0xff] (!%p1992_p10), %vm510_vm0, %v2424_v0  ;;  %512 = vst.msk [vmem:[#allocation2 + $0x8] sm:$0xff] (!%p1992_p10), %vm510_vm0, %v2424_v0 }
  0x4a   : > { %513 = vst.msk [vmem:[#allocation2 + $0x10] sm:$0xff] (!%p1992_p10), %vm510_vm0, %v2424_v0  ;;  %514 = vst.msk [vmem:[#allocation2 + $0x18] sm:$0xff] (!%p1992_p10), %vm510_vm0, %v2424_v0 }
  0x4b   : > { %515 = vst.msk [vmem:[#allocation2 + $0x20] sm:$0xff] (!%p1992_p10), %vm510_vm0, %v2424_v0  ;;  %516 = vst.msk [vmem:[#allocation2 + $0x28] sm:$0xff] (!%p1992_p10), %vm510_vm0, %v2424_v0 }
  0x4c   : > { %517 = vst.msk [vmem:[#allocation2 + $0x30] sm:$0xff] (!%p1992_p10), %vm510_vm0, %v2424_v0  ;;  %518 = vst.msk [vmem:[#allocation2 + $0x38] sm:$0xff] (!%p1992_p10), %vm510_vm0, %v2424_v0 }
  0x4d   : > { %519 = vst.msk [vmem:[#allocation2 + $0x40] sm:$0xff] (!%p1992_p10), %vm510_vm0, %v2424_v0  ;;  %520 = vst.msk [vmem:[#allocation2 + $0x48] sm:$0xff] (!%p1992_p10), %vm510_vm0, %v2424_v0 }
  0x4e   : > { %521 = vst.msk [vmem:[#allocation2 + $0x50] sm:$0xff] %vm510_vm0, %v2424_v0  ;;  %522 = vst.msk [vmem:[#allocation2 + $0x58] sm:$0xff] %vm510_vm0, %v2424_v0 }
  0x4f   : > { %523 = vst.msk [vmem:[#allocation2 + $0x60] sm:$0xff] %vm510_vm0, %v2424_v0  ;;  %524 = vst.msk [vmem:[#allocation2 + $0x68] sm:$0xff] %vm510_vm0, %v2424_v0 }
  0x50   : > { %525 = vst.msk [vmem:[#allocation2 + $0x70] sm:$0xff] %vm510_vm0, %v2424_v0  ;;  %526 = vst.msk [vmem:[#allocation2 + $0x78] sm:$0xff] %vm510_vm0, %v2424_v0 }
  0x51   : > { %527 = vst.msk [vmem:[#allocation2 + $0x80] sm:$0xff] %vm510_vm0, %v2424_v0  ;;  %528 = vst.msk [vmem:[#allocation2 + $0x88] sm:$0xff] %vm510_vm0, %v2424_v0 }
  0x52   : > { %529 = vst.msk [vmem:[#allocation2 + $0x90] sm:$0xff] %vm510_vm0, %v2424_v0  ;;  %530 = vst.msk [vmem:[#allocation2 + $0x98] sm:$0xff] %vm510_vm0, %v2424_v0 }
  0x53   : > { %531 = vst.msk [vmem:[#allocation2 + $0xa0] sm:$0xff] %vm510_vm0, %v2424_v0  ;;  %532 = vst.msk [vmem:[#allocation2 + $0xa8] sm:$0xff] %vm510_vm0, %v2424_v0 }
  0x54   : > { %533 = vst.msk [vmem:[#allocation2 + $0xb0] sm:$0xff] %vm510_vm0, %v2424_v0  ;;  %534 = vst.msk [vmem:[#allocation2 + $0xb8] sm:$0xff] %vm510_vm0, %v2424_v0 }
  0x55   : > { %535 = vst.msk [vmem:[#allocation2 + $0xc0] sm:$0xff] %vm510_vm0, %v2424_v0  ;;  %536 = vst.msk [vmem:[#allocation2 + $0xc8] sm:$0xff] %vm510_vm0, %v2424_v0 }
  0x56   : > { %537 = vst.msk [vmem:[#allocation2 + $0xd0] sm:$0xff] %vm510_vm0, %v2424_v0  ;;  %538 = vst.msk [vmem:[#allocation2 + $0xd8] sm:$0xff] %vm510_vm0, %v2424_v0 }
  0x57   : > { %539 = vst.msk [vmem:[#allocation2 + $0xe0] sm:$0xff] %vm510_vm0, %v2424_v0  ;;  %540 = vst.msk [vmem:[#allocation2 + $0xe8] sm:$0xff] %vm510_vm0, %v2424_v0 }
  0x58   : > { %541 = vst.msk [vmem:[#allocation2 + $0xf0] sm:$0xff] %vm510_vm0, %v2424_v0  ;;  %542 = vst.msk [vmem:[#allocation2 + $0xf8] sm:$0xff] %vm510_vm0, %v2424_v0 }
  0x59   : > { %543 = vst.msk [vmem:[#allocation2 + $0x100] sm:$0xff] %vm510_vm0, %v2424_v0  ;;  %544 = vst.msk [vmem:[#allocation2 + $0x108] sm:$0xff] %vm510_vm0, %v2424_v0 }
  0x5a   : > { %545 = vst.msk [vmem:[#allocation2 + $0x110] sm:$0xff] %vm510_vm0, %v2424_v0  ;;  %546 = vst.msk [vmem:[#allocation2 + $0x118] sm:$0xff] %vm510_vm0, %v2424_v0 }
  0x5b   : > { %547 = vst.msk [vmem:[#allocation2 + $0x120] sm:$0xff] %vm510_vm0, %v2424_v0  ;;  %548 = vst.msk [vmem:[#allocation2 + $0x128] sm:$0xff] %vm510_vm0, %v2424_v0 }
  0x5c   : > { %549 = vst.msk [vmem:[#allocation2 + $0x130] sm:$0xff] %vm510_vm0, %v2424_v0  ;;  %550 = vst.msk [vmem:[#allocation2 + $0x138] sm:$0xff] %vm510_vm0, %v2424_v0 }
  0x5d   : > { %551 = vst.msk [vmem:[#allocation2 + $0x140] sm:$0xff] %vm510_vm0, %v2424_v0  ;;  %552 = vst.msk [vmem:[#allocation2 + $0x148] sm:$0xff] %vm510_vm0, %v2424_v0 }
  0x5e   : > { %553 = vst.msk [vmem:[#allocation2 + $0x150] sm:$0xff] %vm510_vm0, %v2424_v0  ;;  %554 = vst.msk [vmem:[#allocation2 + $0x158] sm:$0xff] %vm510_vm0, %v2424_v0 }
  0x5f   : > { %555 = vst.msk [vmem:[#allocation2 + $0x160] sm:$0xff] %vm510_vm0, %v2424_v0  ;;  %556 = vst.msk [vmem:[#allocation2 + $0x168] sm:$0xff] %vm510_vm0, %v2424_v0 }
  0x60   : > { %557 = vst.msk [vmem:[#allocation2 + $0x170] sm:$0xff] %vm510_vm0, %v2424_v0  ;;  %558 = vst.msk [vmem:[#allocation2 + $0x178] sm:$0xff] %vm510_vm0, %v2424_v0 }
  0x61   : > { %559 = vst.msk [vmem:[#allocation2 + $0x180] sm:$0xff] %vm510_vm0, %v2424_v0  ;;  %560 = vst.msk [vmem:[#allocation2 + $0x188] sm:$0xff] %vm510_vm0, %v2424_v0 }
  0x62   : > { %561 = vst.msk [vmem:[#allocation2 + $0x190] sm:$0xff] %vm510_vm0, %v2424_v0  ;;  %562 = vst.msk [vmem:[#allocation2 + $0x198] sm:$0xff] %vm510_vm0, %v2424_v0 }
  0x63   : > { %563 = vst.msk [vmem:[#allocation2 + $0x1a0] sm:$0xff] %vm510_vm0, %v2424_v0  ;;  %564 = vst.msk [vmem:[#allocation2 + $0x1a8] sm:$0xff] %vm510_vm0, %v2424_v0 }
  0x64   : > { %565 = vst.msk [vmem:[#allocation2 + $0x1b0] sm:$0xff] %vm510_vm0, %v2424_v0  ;;  %566 = vst.msk [vmem:[#allocation2 + $0x1b8] sm:$0xff] %vm510_vm0, %v2424_v0 }
  0x65   : > { %567 = vst.msk [vmem:[#allocation2 + $0x1c0] sm:$0xff] %vm510_vm0, %v2424_v0  ;;  %568 = vst.msk [vmem:[#allocation2 + $0x1c8] sm:$0xff] %vm510_vm0, %v2424_v0 }
  0x66   : > { %569 = vst.msk [vmem:[#allocation2 + $0x1d0] sm:$0xff] %vm510_vm0, %v2424_v0  ;;  %570 = vst.msk [vmem:[#allocation2 + $0x1d8] sm:$0xff] %vm510_vm0, %v2424_v0 }
  0x67   : > { %571 = vst.msk [vmem:[#allocation2 + $0x1e0] sm:$0xff] %vm510_vm0, %v2424_v0  ;;  %572 = vst.msk [vmem:[#allocation2 + $0x1e8] sm:$0xff] %vm510_vm0, %v2424_v0 }
  0x68   : > { %573 = vst.msk [vmem:[#allocation2 + $0x1f0] sm:$0xff] %vm510_vm0, %v2424_v0  ;;  %574 = vst.msk [vmem:[#allocation2 + $0x1f8] sm:$0xff] %vm510_vm0, %v2424_v0 }
  0x69 PF: > { %v2344_v1 = vld [vmem:[%s2627_s7] sm:$0xff]   ;;  %v2345_v2 = vld [vmem:[%s2627_s7 + $0x8] sm:$0xff]   ;;  %v2346_v3 = vld [vmem:[%s2627_s7 + $0x10] sm:$0xff]   ;;  %vm1312_vm1 = vcmask 523264   ;;  %p2033_p11 = scmp.ne.s32.totalorder %s2414_s14, 1 }
  0x6a   : > { %2207 = vmatprep.subr.bf16.mxu0 %v2344_v1  ;;  %2287 = vmatprep.subr.bf16.mxu1 %v2344_v1  ;;  %v2347_v4 = vld [vmem:[%s2627_s7 + $0x18] sm:$0xff]   ;;  %v2352_v5 = vld [vmem:[%s2629_s8] sm:$0xff]   ;;  %v2349_v8 = vld [vmem:[%s2627_s7 + $0x28] sm:$0xff]   ;;  %vm1836_vm2 = vcmask (!%p2033_p11), 519168  }
  0x6b   : > { %2208 = vmatpush3.bf16.msra.mxu0 %v2344_v1  ;;  %2295 = vmatpush3.bf16.msra.mxu1 %v2344_v1  ;;  %v2353_v6 = vld [vmem:[%s2629_s8 + $0x80] sm:$0xff]   ;;  %v2350_v9 = vld [vmem:[%s2627_s7 + $0x30] sm:$0xff]   ;;  %v2351_v10 = vld [vmem:[%s2627_s7 + $0x38] sm:$0xff]  }
  0x6c   : > { %2209 = vmatprep.subr.bf16.mxu0 %v2345_v2  ;;  %2288 = vmatprep.subr.bf16.mxu1 %v2345_v2  ;;  %v2348_v7 = vld [vmem:[%s2627_s7 + $0x20] sm:$0xff]   ;;  %v2354_v11 = vld [vmem:[%s2629_s8 + $0x8] sm:$0xff]   ;;  %v2356_v13 = vld [vmem:[%s2629_s8 + $0x10] sm:$0xff]  }
  0x6d   : > { %2223 = vmatprep.mubr.bf16.mxu0 %v2352_v5  ;;  %2255 = vmatprep.mubr.bf16.mxu1 %v2353_v6  ;;  %v2355_v12 = vld [vmem:[%s2629_s8 + $0x88] sm:$0xff]   ;;  %v2357_v14 = vld [vmem:[%s2629_s8 + $0x90] sm:$0xff]   ;;  %v2358_v15 = vld [vmem:[%s2629_s8 + $0x18] sm:$0xff]  }
  0x6e   : > { %v2359_v16 = vld [vmem:[%s2629_s8 + $0x98] sm:$0xff]   ;;  %v2360_v17 = vld [vmem:[%s2629_s8 + $0x20] sm:$0xff]   ;;  %v2362_v19 = vld [vmem:[%s2629_s8 + $0x28] sm:$0xff]  }
  0x6f   : > { %2210 = vmatpush3.bf16.msra.mxu0 %v2345_v2  ;;  %2296 = vmatpush3.bf16.msra.mxu1 %v2345_v2  ;;  %v2361_v18 = vld [vmem:[%s2629_s8 + $0xa0] sm:$0xff]   ;;  %v2363_v20 = vld [vmem:[%s2629_s8 + $0xa8] sm:$0xff]   ;;  %v2364_v21 = vld [vmem:[%s2629_s8 + $0x30] sm:$0xff]  }
  0x70   : > { %2211 = vmatprep.subr.bf16.mxu0 %v2346_v3  ;;  %2289 = vmatprep.subr.bf16.mxu1 %v2346_v3  ;;  %v2365_v22 = vld [vmem:[%s2629_s8 + $0xb0] sm:$0xff]   ;;  %v2366_v23 = vld [vmem:[%s2629_s8 + $0x38] sm:$0xff]   ;;  %v2368_v25 = vld [vmem:[%s2629_s8 + $0x40] sm:$0xff]  }
  0x71   : > { %v2367_v24 = vld [vmem:[%s2629_s8 + $0xb8] sm:$0xff]   ;;  %v2369_v26 = vld [vmem:[%s2629_s8 + $0xc0] sm:$0xff]   ;;  %v2370_v27 = vld [vmem:[%s2629_s8 + $0x48] sm:$0xff]  }
  0x72   : > { %v2371_v28 = vld [vmem:[%s2629_s8 + $0xc8] sm:$0xff]   ;;  %v2372_v29 = vld [vmem:[%s2629_s8 + $0x50] sm:$0xff]   ;;  %v2374_v31 = vld [vmem:[%s2629_s8 + $0x58] sm:$0xff]  }
  0x73   : > { %2212 = vmatpush3.bf16.msra.mxu0 %v2346_v3  ;;  %2297 = vmatpush3.bf16.msra.mxu1 %v2346_v3  ;;  %v2373_v30 = vld [vmem:[%s2629_s8 + $0xd0] sm:$0xff]   ;;  %v2375_v32 = vld [vmem:[%s2629_s8 + $0xd8] sm:$0xff]   ;;  %v2376_v33 = vld [vmem:[%s2629_s8 + $0x60] sm:$0xff]  }
  0x74   : > { %2213 = vmatprep.subr.bf16.mxu0 %v2347_v4  ;;  %2290 = vmatprep.subr.bf16.mxu1 %v2347_v4  ;;  %v2377_v34 = vld [vmem:[%s2629_s8 + $0xe0] sm:$0xff]   ;;  %v2378_v35 = vld [vmem:[%s2629_s8 + $0x68] sm:$0xff]   ;;  %v2380_v37 = vld [vmem:[%s2629_s8 + $0x70] sm:$0xff]  }
  0x75   : > { %v2379_v36 = vld [vmem:[%s2629_s8 + $0xe8] sm:$0xff]   ;;  %v2381_v38 = vld [vmem:[%s2629_s8 + $0xf0] sm:$0xff]   ;;  %v2382_v39 = vld [vmem:[%s2629_s8 + $0x78] sm:$0xff]  }
  0x76   : > { %v2383_v40 = vld [vmem:[%s2629_s8 + $0xf8] sm:$0xff]   ;;  %v577_v41 = vld [vmem:[#allocation2 + $0x10] sm:$0xff]  ;;  %v575_v43 = vld [vmem:[#allocation2] sm:$0xff] }
  0x77   : > { %2214 = vmatpush3.bf16.msra.mxu0 %v2347_v4  ;;  %2298 = vmatpush3.bf16.msra.mxu1 %v2347_v4  ;;  %v609_v42 = vld [vmem:[#allocation2 + $0x110] sm:$0xff]  ;;  %v607_v44 = vld [vmem:[#allocation2 + $0x100] sm:$0xff]  ;;  %v578_v47 = vld [vmem:[#allocation2 + $0x18] sm:$0xff] }
  0x78   : > { %2215 = vmatprep.subr.bf16.mxu0 %v2348_v7  ;;  %2291 = vmatprep.subr.bf16.mxu1 %v2348_v7  ;;  %v610_v48 = vld [vmem:[#allocation2 + $0x118] sm:$0xff]  ;;  %v576_v53 = vld [vmem:[#allocation2 + $0x8] sm:$0xff]  ;;  %v581_v1 = vld [vmem:[#allocation2 + $0x30] sm:$0xff] }
  0x79   : > { %v608_v54 = vld [vmem:[#allocation2 + $0x108] sm:$0xff]  ;;  %v613_v2 = vld [vmem:[#allocation2 + $0x130] sm:$0xff]  ;;  %v579_v3 = vld [vmem:[#allocation2 + $0x20] sm:$0xff] }
  0x7a   : > { %v611_v4 = vld [vmem:[#allocation2 + $0x120] sm:$0xff] }
  0x7b   : > { %2216 = vmatpush3.bf16.msra.mxu0 %v2348_v7  ;;  %2299 = vmatpush3.bf16.msra.mxu1 %v2348_v7  ;;  %v582_v7 = vld [vmem:[#allocation2 + $0x38] sm:$0xff] }
  0x7c   : > { %2217 = vmatprep.subr.bf16.mxu0 %v2349_v8  ;;  %2292 = vmatprep.subr.bf16.mxu1 %v2349_v8 }
  0x7f   : > { %2218 = vmatpush3.bf16.msra.mxu0 %v2349_v8  ;;  %2300 = vmatpush3.bf16.msra.mxu1 %v2349_v8  ;;  %v614_v8 = vld [vmem:[#allocation2 + $0x138] sm:$0xff] }
  0x80   : > { %2219 = vmatprep.subr.bf16.mxu0 %v2350_v9  ;;  %2293 = vmatprep.subr.bf16.mxu1 %v2350_v9 }
  0x83   : > { %2220 = vmatpush3.bf16.msra.mxu0 %v2350_v9  ;;  %2301 = vmatpush3.bf16.msra.mxu1 %v2350_v9 }
  0x84   : > { %2221 = vmatprep.subr.bf16.mxu0 %v2351_v10  ;;  %2294 = vmatprep.subr.bf16.mxu1 %v2351_v10 }
  0x87   : > { %2222 = vmatpush3.bf16.msra.mxu0 %v2351_v10  ;;  %2302 = vmatpush3.bf16.msra.mxu1 %v2351_v10 }
  0x8a   : > { %2224 = vmatmul.mubr.bf16.vlgmr.msra.gmra.mrb[0].mxu0 %v2354_v11  ;;  %2256 = vmatmul.mubr.bf16.vlgmr.msra.gmra.mrb[0].mxu1 %v2355_v12 }
  0x8b   : > { %2227 = vmatprep.mubr.bf16.mxu0 %v2356_v13  ;;  %2259 = vmatprep.mubr.bf16.mxu1 %v2357_v14  ;;  %v580_v13 = vld [vmem:[#allocation2 + $0x28] sm:$0xff] }
  0x8c   : > { %v612_v14 = vld [vmem:[#allocation2 + $0x128] sm:$0xff] }
  0x92   : > { %2228 = vmatmul.mubr.bf16.gmra.mrb[4].mxu0 %v2358_v15  ;;  %2260 = vmatmul.mubr.bf16.gmra.mrb[4].mxu1 %v2359_v16 }
  0x93   : > { %2231 = vmatprep.mubr.bf16.mxu0 %v2360_v17  ;;  %2263 = vmatprep.mubr.bf16.mxu1 %v2361_v18 }
  0x9a   : > { %2232 = vmatmul.mubr.bf16.gmra.mrb[8].mxu0 %v2362_v19  ;;  %2264 = vmatmul.mubr.bf16.gmra.mrb[8].mxu1 %v2363_v20 }
  0x9b   : > { %2235 = vmatprep.mubr.bf16.mxu0 %v2364_v21  ;;  %2267 = vmatprep.mubr.bf16.mxu1 %v2365_v22 }
  0xa2   : > { %2236 = vmatmul.mubr.bf16.gmra.mrb[12].mxu0 %v2366_v23  ;;  %2268 = vmatmul.mubr.bf16.gmra.mrb[12].mxu1 %v2367_v24 }
  0xa3   : > { %2239 = vmatprep.mubr.bf16.mxu0 %v2368_v25  ;;  %2271 = vmatprep.mubr.bf16.mxu1 %v2369_v26  ;;  %v585_v25 = vld [vmem:[#allocation2 + $0x50] sm:$0xff] }
  0xa4   : > { %v617_v26 = vld [vmem:[#allocation2 + $0x150] sm:$0xff] }
  0xaa   : > { %2240 = vmatmul.mubr.bf16.gmra.mrb[16].mxu0 %v2370_v27  ;;  %2272 = vmatmul.mubr.bf16.gmra.mrb[16].mxu1 %v2371_v28  ;;  %v583_v27 = vld [vmem:[#allocation2 + $0x40] sm:$0xff] }
  0xab   : > { %2243 = vmatprep.mubr.bf16.mxu0 %v2372_v29  ;;  %2275 = vmatprep.mubr.bf16.mxu1 %v2373_v30  ;;  %v615_v28 = vld [vmem:[#allocation2 + $0x140] sm:$0xff] }
  0xb2   : > { %2244 = vmatmul.mubr.bf16.gmra.mrb[20].mxu0 %v2374_v31  ;;  %2276 = vmatmul.mubr.bf16.gmra.mrb[20].mxu1 %v2375_v32  ;;  %v586_v31 = vld [vmem:[#allocation2 + $0x58] sm:$0xff] }
  0xb3   : > { %2247 = vmatprep.mubr.bf16.mxu0 %v2376_v33  ;;  %2279 = vmatprep.mubr.bf16.mxu1 %v2377_v34  ;;  %v618_v32 = vld [vmem:[#allocation2 + $0x158] sm:$0xff] }
  0xba   : > { %2248 = vmatmul.mubr.bf16.gmra.mrb[24].mxu0 %v2378_v35  ;;  %2280 = vmatmul.mubr.bf16.gmra.mrb[24].mxu1 %v2379_v36 }
  0xbb   : > { %2251 = vmatprep.mubr.bf16.mxu0 %v2380_v37  ;;  %2283 = vmatprep.mubr.bf16.mxu1 %v2381_v38  ;;  %v584_v37 = vld [vmem:[#allocation2 + $0x48] sm:$0xff] }
  0xbc   : > { %v616_v38 = vld [vmem:[#allocation2 + $0x148] sm:$0xff] }
  0xc2   : > { %2252 = vmatmul.mubr.bf16.gmra.mrb[28].mxu0 %v2382_v39  ;;  %2284 = vmatmul.mubr.bf16.gmra.mrb[28].mxu1 %v2383_v40 }
 0x15d   : > { %v2225_v45 = vpop.f32.mrb[0].mxu0  ;;  %v2257_v46 = vpop.f32.mrb[0].mxu1 }
 0x15e   : > { %v1250_v49 = vadd.f32 %v2225_v45, %v577_v41  ;;  %v1282_v50 = vadd.f32 %v2257_v46, %v609_v42  ;;  %v993_v51 = vpop.f32.mrb[1].mxu0  ;;  %v1121_v52 = vpop.f32.mrb[1].mxu1 }
 0x15f   : > { %v1248_v55 = vadd.f32 %v993_v51, %v575_v43  ;;  %v1280_v56 = vadd.f32 %v1121_v52, %v607_v44  ;;  %v2226_v57 = vpop.f32.mrb[2].mxu0  ;;  %v2258_v58 = vpop.f32.mrb[2].mxu1  ;;  %v587_v51 = vld [vmem:[#allocation2 + $0x60] sm:$0xff] }
 0x160   : > { %1315 = vst.msk [vmem:[#allocation2 + $0x10] sm:$0xff] %vm1312_vm1, %v1250_v49  ;;  %1347 = vst.msk [vmem:[#allocation2 + $0x110] sm:$0xff] %vm1312_vm1, %v1282_v50  ;;  %v1251_v59 = vadd.f32 %v2226_v57, %v578_v47  ;;  %v1283_v60 = vadd.f32 %v2258_v58, %v610_v48  ;;  %v996_v61 = vpop.f32.mrb[3].mxu0  ;;  %v1124_v62 = vpop.f32.mrb[3].mxu1  ;;  %v589_v49 = vld [vmem:[#allocation2 + $0x70] sm:$0xff]  ;;  %v619_v52 = vld [vmem:[#allocation2 + $0x160] sm:$0xff] }
 0x161   : > { %1313 = vst.msk [vmem:[#allocation2] sm:$0xff] %vm1312_vm1, %v1248_v55  ;;  %1345 = vst.msk [vmem:[#allocation2 + $0x100] sm:$0xff] %vm1312_vm1, %v1280_v56  ;;  %v1249_v63 = vadd.f32 %v996_v61, %v576_v53  ;;  %v1281_v0 = vadd.f32 %v1124_v62, %v608_v54  ;;  %v621_v50 = vld [vmem:[#allocation2 + $0x170] sm:$0xff]  ;;  %v590_v55 = vld [vmem:[#allocation2 + $0x78] sm:$0xff] }
 0x162   : > { %1316 = vst.msk [vmem:[#allocation2 + $0x18] sm:$0xff] %vm1312_vm1, %v1251_v59  ;;  %1348 = vst.msk [vmem:[#allocation2 + $0x118] sm:$0xff] %vm1312_vm1, %v1283_v60  ;;  %v622_v56 = vld [vmem:[#allocation2 + $0x178] sm:$0xff]  ;;  %v588_v61 = vld [vmem:[#allocation2 + $0x68] sm:$0xff] }
 0x163   : > { %1314 = vst.msk [vmem:[#allocation2 + $0x8] sm:$0xff] %vm1312_vm1, %v1249_v63  ;;  %1346 = vst.msk [vmem:[#allocation2 + $0x108] sm:$0xff] %vm1312_vm1, %v1281_v0  ;;  %v620_v62 = vld [vmem:[#allocation2 + $0x168] sm:$0xff] }
 0x165   : > { %v2229_v5 = vpop.f32.mrb[4].mxu0  ;;  %v2261_v6 = vpop.f32.mrb[4].mxu1 }
 0x166   : > { %v1254_v9 = vadd.f32 %v2229_v5, %v581_v1  ;;  %v1286_v10 = vadd.f32 %v2261_v6, %v613_v2  ;;  %v1009_v11 = vpop.f32.mrb[5].mxu0  ;;  %v1137_v12 = vpop.f32.mrb[5].mxu1 }
 0x167   : > { %v1252_v15 = vadd.f32 %v1009_v11, %v579_v3  ;;  %v1284_v16 = vadd.f32 %v1137_v12, %v611_v4  ;;  %v2230_v17 = vpop.f32.mrb[6].mxu0  ;;  %v2262_v18 = vpop.f32.mrb[6].mxu1  ;;  %v591_v11 = vld [vmem:[#allocation2 + $0x80] sm:$0xff] }
 0x168   : > { %1319 = vst.msk [vmem:[#allocation2 + $0x30] sm:$0xff] %vm1312_vm1, %v1254_v9  ;;  %1351 = vst.msk [vmem:[#allocation2 + $0x130] sm:$0xff] %vm1312_vm1, %v1286_v10  ;;  %v1255_v19 = vadd.f32 %v2230_v17, %v582_v7  ;;  %v1287_v20 = vadd.f32 %v2262_v18, %v614_v8  ;;  %v1012_v21 = vpop.f32.mrb[7].mxu0  ;;  %v1140_v22 = vpop.f32.mrb[7].mxu1  ;;  %v593_v9 = vld [vmem:[#allocation2 + $0x90] sm:$0xff]  ;;  %v623_v12 = vld [vmem:[#allocation2 + $0x180] sm:$0xff] }
 0x169   : > { %1317 = vst.msk [vmem:[#allocation2 + $0x20] sm:$0xff] %vm1312_vm1, %v1252_v15  ;;  %1349 = vst.msk [vmem:[#allocation2 + $0x120] sm:$0xff] %vm1312_vm1, %v1284_v16  ;;  %v1253_v23 = vadd.f32 %v1012_v21, %v580_v13  ;;  %v1285_v24 = vadd.f32 %v1140_v22, %v612_v14  ;;  %v625_v10 = vld [vmem:[#allocation2 + $0x190] sm:$0xff]  ;;  %v594_v15 = vld [vmem:[#allocation2 + $0x98] sm:$0xff] }
 0x16a   : > { %1320 = vst.msk [vmem:[#allocation2 + $0x38] sm:$0xff] %vm1312_vm1, %v1255_v19  ;;  %1352 = vst.msk [vmem:[#allocation2 + $0x138] sm:$0xff] %vm1312_vm1, %v1287_v20  ;;  %v626_v16 = vld [vmem:[#allocation2 + $0x198] sm:$0xff]  ;;  %v592_v21 = vld [vmem:[#allocation2 + $0x88] sm:$0xff] }
 0x16b   : > { %1318 = vst.msk [vmem:[#allocation2 + $0x28] sm:$0xff] %vm1312_vm1, %v1253_v23  ;;  %1350 = vst.msk [vmem:[#allocation2 + $0x128] sm:$0xff] %vm1312_vm1, %v1285_v24  ;;  %v624_v22 = vld [vmem:[#allocation2 + $0x188] sm:$0xff] }
 0x16d   : > { %v2233_v29 = vpop.f32.mrb[8].mxu0  ;;  %v2265_v30 = vpop.f32.mrb[8].mxu1 }
 0x16e   : > { %v1258_v33 = vadd.f32 %v2233_v29, %v585_v25  ;;  %v1290_v34 = vadd.f32 %v2265_v30, %v617_v26  ;;  %v1025_v35 = vpop.f32.mrb[9].mxu0  ;;  %v1153_v36 = vpop.f32.mrb[9].mxu1 }
 0x16f   : > { %v1256_v39 = vadd.f32 %v1025_v35, %v583_v27  ;;  %v1288_v40 = vadd.f32 %v1153_v36, %v615_v28  ;;  %v2234_v41 = vpop.f32.mrb[10].mxu0  ;;  %v2266_v42 = vpop.f32.mrb[10].mxu1  ;;  %v595_v35 = vld [vmem:[#allocation2 + $0xa0] sm:$0xff] }
 0x170   : > { %1323 = vst.msk [vmem:[#allocation2 + $0x50] sm:$0xff] %vm1312_vm1, %v1258_v33  ;;  %1355 = vst.msk [vmem:[#allocation2 + $0x150] sm:$0xff] %vm1312_vm1, %v1290_v34  ;;  %v1259_v43 = vadd.f32 %v2234_v41, %v586_v31  ;;  %v1291_v44 = vadd.f32 %v2266_v42, %v618_v32  ;;  %v1028_v45 = vpop.f32.mrb[11].mxu0  ;;  %v1156_v46 = vpop.f32.mrb[11].mxu1  ;;  %v597_v33 = vld [vmem:[#allocation2 + $0xb0] sm:$0xff]  ;;  %v627_v36 = vld [vmem:[#allocation2 + $0x1a0] sm:$0xff] }
 0x171   : > { %1321 = vst.msk [vmem:[#allocation2 + $0x40] sm:$0xff] %vm1312_vm1, %v1256_v39  ;;  %1353 = vst.msk [vmem:[#allocation2 + $0x140] sm:$0xff] %vm1312_vm1, %v1288_v40  ;;  %v1257_v47 = vadd.f32 %v1028_v45, %v584_v37  ;;  %v1289_v48 = vadd.f32 %v1156_v46, %v616_v38  ;;  %v629_v34 = vld [vmem:[#allocation2 + $0x1b0] sm:$0xff]  ;;  %v598_v39 = vld [vmem:[#allocation2 + $0xb8] sm:$0xff] }
 0x172   : > { %1324 = vst.msk [vmem:[#allocation2 + $0x58] sm:$0xff] %vm1312_vm1, %v1259_v43  ;;  %1356 = vst.msk [vmem:[#allocation2 + $0x158] sm:$0xff] %vm1312_vm1, %v1291_v44  ;;  %v630_v40 = vld [vmem:[#allocation2 + $0x1b8] sm:$0xff]  ;;  %v596_v45 = vld [vmem:[#allocation2 + $0xa8] sm:$0xff] }
 0x173   : > { %1322 = vst.msk [vmem:[#allocation2 + $0x48] sm:$0xff] %vm1312_vm1, %v1257_v47  ;;  %1354 = vst.msk [vmem:[#allocation2 + $0x148] sm:$0xff] %vm1312_vm1, %v1289_v48  ;;  %v628_v46 = vld [vmem:[#allocation2 + $0x1a8] sm:$0xff] }
 0x175   : > { %v2237_v53 = vpop.f32.mrb[12].mxu0  ;;  %v2269_v54 = vpop.f32.mrb[12].mxu1 }
 0x176   : > { %v1262_v57 = vadd.f32 %v2237_v53, %v589_v49  ;;  %v1294_v58 = vadd.f32 %v2269_v54, %v621_v50  ;;  %v1041_v59 = vpop.f32.mrb[13].mxu0  ;;  %v1169_v60 = vpop.f32.mrb[13].mxu1 }
 0x177   : > { %v1260_v63 = vadd.f32 %v1041_v59, %v587_v51  ;;  %v1292_v0 = vadd.f32 %v1169_v60, %v619_v52  ;;  %v2238_v1 = vpop.f32.mrb[14].mxu0  ;;  %v2270_v2 = vpop.f32.mrb[14].mxu1  ;;  %v599_v59 = vld [vmem:[#allocation2 + $0xc0] sm:$0xff] }
 0x178   : > { %1327 = vst.msk [vmem:[#allocation2 + $0x70] sm:$0xff] %vm1312_vm1, %v1262_v57  ;;  %1359 = vst.msk [vmem:[#allocation2 + $0x170] sm:$0xff] %vm1312_vm1, %v1294_v58  ;;  %v1263_v3 = vadd.f32 %v2238_v1, %v590_v55  ;;  %v1295_v4 = vadd.f32 %v2270_v2, %v622_v56  ;;  %v1044_v5 = vpop.f32.mrb[15].mxu0  ;;  %v1172_v6 = vpop.f32.mrb[15].mxu1  ;;  %v601_v57 = vld [vmem:[#allocation2 + $0xd0] sm:$0xff]  ;;  %v631_v60 = vld [vmem:[#allocation2 + $0x1c0] sm:$0xff] }
 0x179   : > { %1325 = vst.msk [vmem:[#allocation2 + $0x60] sm:$0xff] %vm1312_vm1, %v1260_v63  ;;  %1357 = vst.msk [vmem:[#allocation2 + $0x160] sm:$0xff] %vm1312_vm1, %v1292_v0  ;;  %v1261_v7 = vadd.f32 %v1044_v5, %v588_v61  ;;  %v1293_v8 = vadd.f32 %v1172_v6, %v620_v62  ;;  %v633_v58 = vld [vmem:[#allocation2 + $0x1d0] sm:$0xff]  ;;  %v602_v63 = vld [vmem:[#allocation2 + $0xd8] sm:$0xff] }
 0x17a   : > { %1328 = vst.msk [vmem:[#allocation2 + $0x78] sm:$0xff] %vm1312_vm1, %v1263_v3  ;;  %1360 = vst.msk [vmem:[#allocation2 + $0x178] sm:$0xff] %vm1312_vm1, %v1295_v4  ;;  %v634_v0 = vld [vmem:[#allocation2 + $0x1d8] sm:$0xff]  ;;  %v600_v5 = vld [vmem:[#allocation2 + $0xc8] sm:$0xff] }
 0x17b   : > { %1326 = vst.msk [vmem:[#allocation2 + $0x68] sm:$0xff] %vm1312_vm1, %v1261_v7  ;;  %1358 = vst.msk [vmem:[#allocation2 + $0x168] sm:$0xff] %vm1312_vm1, %v1293_v8  ;;  %v632_v6 = vld [vmem:[#allocation2 + $0x1c8] sm:$0xff] }
 0x17d   : > { %v2241_v13 = vpop.f32.mrb[16].mxu0  ;;  %v2273_v14 = vpop.f32.mrb[16].mxu1 }
 0x17e   : > { %v1266_v17 = vadd.f32 %v2241_v13, %v593_v9  ;;  %v1298_v18 = vadd.f32 %v2273_v14, %v625_v10  ;;  %v1057_v19 = vpop.f32.mrb[17].mxu0  ;;  %v1185_v20 = vpop.f32.mrb[17].mxu1 }
 0x17f   : > { %v1264_v23 = vadd.f32 %v1057_v19, %v591_v11  ;;  %v1296_v24 = vadd.f32 %v1185_v20, %v623_v12  ;;  %v2242_v25 = vpop.f32.mrb[18].mxu0  ;;  %v2274_v26 = vpop.f32.mrb[18].mxu1  ;;  %v603_v19 = vld [vmem:[#allocation2 + $0xe0] sm:$0xff] }
 0x180   : > { %1331 = vst.msk [vmem:[#allocation2 + $0x90] sm:$0xff] %vm1312_vm1, %v1266_v17  ;;  %1363 = vst.msk [vmem:[#allocation2 + $0x190] sm:$0xff] %vm1312_vm1, %v1298_v18  ;;  %v1267_v27 = vadd.f32 %v2242_v25, %v594_v15  ;;  %v1299_v28 = vadd.f32 %v2274_v26, %v626_v16  ;;  %v1060_v29 = vpop.f32.mrb[19].mxu0  ;;  %v1188_v30 = vpop.f32.mrb[19].mxu1  ;;  %v605_v17 = vld [vmem:[#allocation2 + $0xf0] sm:$0xff]  ;;  %v635_v20 = vld [vmem:[#allocation2 + $0x1e0] sm:$0xff] }
 0x181   : > { %1329 = vst.msk [vmem:[#allocation2 + $0x80] sm:$0xff] %vm1312_vm1, %v1264_v23  ;;  %1361 = vst.msk [vmem:[#allocation2 + $0x180] sm:$0xff] %vm1312_vm1, %v1296_v24  ;;  %v1265_v31 = vadd.f32 %v1060_v29, %v592_v21  ;;  %v1297_v32 = vadd.f32 %v1188_v30, %v624_v22  ;;  %v637_v18 = vld [vmem:[#allocation2 + $0x1f0] sm:$0xff]  ;;  %v606_v23 = vld [vmem:[#allocation2 + $0xf8] sm:$0xff] }
 0x182   : > { %1332 = vst.msk [vmem:[#allocation2 + $0x98] sm:$0xff] %vm1312_vm1, %v1267_v27  ;;  %1364 = vst.msk [vmem:[#allocation2 + $0x198] sm:$0xff] %vm1312_vm1, %v1299_v28  ;;  %v638_v24 = vld [vmem:[#allocation2 + $0x1f8] sm:$0xff]  ;;  %v604_v29 = vld [vmem:[#allocation2 + $0xe8] sm:$0xff] }
 0x183   : > { %1330 = vst.msk [vmem:[#allocation2 + $0x88] sm:$0xff] %vm1312_vm1, %v1265_v31  ;;  %1362 = vst.msk [vmem:[#allocation2 + $0x188] sm:$0xff] %vm1312_vm1, %v1297_v32  ;;  %v636_v30 = vld [vmem:[#allocation2 + $0x1e8] sm:$0xff] }
 0x185   : > { %v2245_v37 = vpop.f32.mrb[20].mxu0  ;;  %v2277_v38 = vpop.f32.mrb[20].mxu1 }
 0x186   : > { %v1270_v41 = vadd.f32 %v2245_v37, %v597_v33  ;;  %v1302_v42 = vadd.f32 %v2277_v38, %v629_v34  ;;  %v1073_v43 = vpop.f32.mrb[21].mxu0  ;;  %v1201_v44 = vpop.f32.mrb[21].mxu1 }
 0x187   : > { %v1268_v47 = vadd.f32 %v1073_v43, %v595_v35  ;;  %v1300_v48 = vadd.f32 %v1201_v44, %v627_v36  ;;  %v2246_v49 = vpop.f32.mrb[22].mxu0  ;;  %v2278_v50 = vpop.f32.mrb[22].mxu1  ;;  %v1382_v43 = vld [vmem:[#allocation2 + $0x8] sm:$0xff] (!%p2033_p11) }
 0x188   : > { %1335 = vst.msk [vmem:[#allocation2 + $0xb0] sm:$0xff] %vm1312_vm1, %v1270_v41  ;;  %1367 = vst.msk [vmem:[#allocation2 + $0x1b0] sm:$0xff] %vm1312_vm1, %v1302_v42  ;;  %v1271_v51 = vadd.f32 %v2246_v49, %v598_v39  ;;  %v1303_v52 = vadd.f32 %v2278_v50, %v630_v40  ;;  %v1076_v53 = vpop.f32.mrb[23].mxu0  ;;  %v1204_v54 = vpop.f32.mrb[23].mxu1  ;;  %v1381_v41 = vld [vmem:[#allocation2] sm:$0xff] (!%p2033_p11) }
 0x189   : > { %1333 = vst.msk [vmem:[#allocation2 + $0xa0] sm:$0xff] %vm1312_vm1, %v1268_v47  ;;  %1365 = vst.msk [vmem:[#allocation2 + $0x1a0] sm:$0xff] %vm1312_vm1, %v1300_v48  ;;  %v1269_v55 = vadd.f32 %v1076_v53, %v596_v45  ;;  %v1301_v56 = vadd.f32 %v1204_v54, %v628_v46  ;;  %v2868_v42 = vld [vmem:[%s3207_s2] ss:$0 sm:$0xff] (!%p2033_p11)  ;;  %v1383_v46 = vld [vmem:[#allocation2 + $0x10] sm:$0xff] (!%p2033_p11) }
 0x18a   : > { %1336 = vst.msk [vmem:[#allocation2 + $0xb8] sm:$0xff] %vm1312_vm1, %v1271_v51  ;;  %1368 = vst.msk [vmem:[#allocation2 + $0x1b8] sm:$0xff] %vm1312_vm1, %v1303_v52  ;;  %v1452_v44 = vadd.f32 (!%p2033_p11), %v2868_v42, %v1381_v41  ;;  %v1453_v45 = vadd.f32 (!%p2033_p11), %v2868_v42, %v1382_v43  ;;  %v1384_v47 = vld [vmem:[#allocation2 + $0x18] sm:$0xff] (!%p2033_p11)  ;;  %v1385_v48 = vld [vmem:[#allocation2 + $0x20] sm:$0xff] (!%p2033_p11)  ;;  %v1454_v49 = vadd.f32 (!%p2033_p11), %v2868_v42, %v1383_v46 }
 0x18b   : > { %1334 = vst.msk [vmem:[#allocation2 + $0xa8] sm:$0xff] %vm1312_vm1, %v1269_v55  ;;  %1366 = vst.msk [vmem:[#allocation2 + $0x1a8] sm:$0xff] %vm1312_vm1, %v1301_v56  ;;  %v1455_v50 = vadd.f32 (!%p2033_p11), %v2868_v42, %v1384_v47  ;;  %v1456_v51 = vadd.f32 (!%p2033_p11), %v2868_v42, %v1385_v48  ;;  %v1386_v52 = vld [vmem:[#allocation2 + $0x28] sm:$0xff] (!%p2033_p11)  ;;  %v1387_v53 = vld [vmem:[#allocation2 + $0x30] sm:$0xff] (!%p2033_p11) }
 0x18c   : > { %v1388_v54 = vld [vmem:[#allocation2 + $0x38] sm:$0xff] (!%p2033_p11)  ;;  %v1516_v55 = vmax.f32 (!%p2033_p11), %v1452_v44, 0.0  ;;  %v1517_v56 = vmax.f32 (!%p2033_p11), %v1453_v45, 0.0 }
 0x18d   : > { %v2249_v61 = vpop.f32.mrb[24].mxu0  ;;  %v2281_v62 = vpop.f32.mrb[24].mxu1 }
 0x18e   : > { %v1274_v1 = vadd.f32 %v2249_v61, %v601_v57  ;;  %v1306_v2 = vadd.f32 %v2281_v62, %v633_v58  ;;  %v1089_v3 = vpop.f32.mrb[25].mxu0  ;;  %v1217_v4 = vpop.f32.mrb[25].mxu1  ;;  %v1457_v57 = vadd.f32 (!%p2033_p11), %v2868_v42, %v1386_v52  ;;  %v1458_v58 = vadd.f32 (!%p2033_p11), %v2868_v42, %v1387_v53 }
 0x18f   : > { %v1272_v7 = vadd.f32 %v1089_v3, %v599_v59  ;;  %v1304_v8 = vadd.f32 %v1217_v4, %v631_v60  ;;  %v2250_v9 = vpop.f32.mrb[26].mxu0  ;;  %v2282_v10 = vpop.f32.mrb[26].mxu1  ;;  %v1518_v59 = vmax.f32 (!%p2033_p11), %v1454_v49, 0.0  ;;  %v1519_v60 = vmax.f32 (!%p2033_p11), %v1455_v50, 0.0  ;;  %v1403_v46 = vld [vmem:[#allocation2 + $0xb0] sm:$0xff] (!%p2033_p11) }
 0x190   : > { %1339 = vst.msk [vmem:[#allocation2 + $0xd0] sm:$0xff] %vm1312_vm1, %v1274_v1  ;;  %1371 = vst.msk [vmem:[#allocation2 + $0x1d0] sm:$0xff] %vm1312_vm1, %v1306_v2  ;;  %v1275_v11 = vadd.f32 %v2250_v9, %v602_v63  ;;  %v1307_v12 = vadd.f32 %v2282_v10, %v634_v0  ;;  %v1092_v13 = vpop.f32.mrb[27].mxu0  ;;  %v1220_v14 = vpop.f32.mrb[27].mxu1  ;;  %v1520_v61 = vmax.f32 (!%p2033_p11), %v1456_v51, 0.0  ;;  %v1459_v62 = vadd.f32 (!%p2033_p11), %v2868_v42, %v1388_v54  ;;  %v1389_v63 = vld [vmem:[#allocation2 + $0x40] sm:$0xff] (!%p2033_p11) }
 0x191   : > { %1337 = vst.msk [vmem:[#allocation2 + $0xc0] sm:$0xff] %vm1312_vm1, %v1272_v7  ;;  %1369 = vst.msk [vmem:[#allocation2 + $0x1c0] sm:$0xff] %vm1312_vm1, %v1304_v8  ;;  %v1273_v15 = vadd.f32 %v1092_v13, %v600_v5  ;;  %v1305_v16 = vadd.f32 %v1220_v14, %v632_v6  ;;  %v1390_v0 = vld [vmem:[#allocation2 + $0x48] sm:$0xff] (!%p2033_p11)  ;;  %v2103_v1 = vpack.c.bf16 (!%p2033_p11), %v1516_v55, %v1516_v55  ;;  %v1521_v3 = vmax.f32 (!%p2033_p11), %v1457_v57, 0.0  ;;  %v1391_v5 = vld [vmem:[#allocation2 + $0x50] sm:$0xff] (!%p2033_p11) }
 0x192   : > { %1340 = vst.msk [vmem:[#allocation2 + $0xd8] sm:$0xff] %vm1312_vm1, %v1275_v11  ;;  %1372 = vst.msk [vmem:[#allocation2 + $0x1d8] sm:$0xff] %vm1312_vm1, %v1307_v12  ;;  %v2104_v2 = vpack.c.bf16 (!%p2033_p11), %v1517_v56, %v1517_v56  ;;  %v1522_v4 = vmax.f32 (!%p2033_p11), %v1458_v58, 0.0  ;;  %v1392_v6 = vld [vmem:[#allocation2 + $0x58] sm:$0xff] (!%p2033_p11)  ;;  %v1393_v7 = vld [vmem:[#allocation2 + $0x60] sm:$0xff] (!%p2033_p11)  ;;  %v2105_v8 = vpack.c.bf16 (!%p2033_p11), %v1518_v59, %v1518_v59  ;;  %v2106_v9 = vpack.c.bf16 (!%p2033_p11), %v1519_v60, %v1519_v60 }
 0x193   : > { %1338 = vst.msk [vmem:[#allocation2 + $0xc8] sm:$0xff] %vm1312_vm1, %v1273_v15  ;;  %1370 = vst.msk [vmem:[#allocation2 + $0x1c8] sm:$0xff] %vm1312_vm1, %v1305_v16  ;;  %v2107_v10 = vpack.c.bf16 (!%p2033_p11), %v1520_v61, %v1520_v61  ;;  %v1523_v11 = vmax.f32 (!%p2033_p11), %v1459_v62, 0.0  ;;  %v1394_v12 = vld [vmem:[#allocation2 + $0x68] sm:$0xff] (!%p2033_p11)  ;;  %v1395_v13 = vld [vmem:[#allocation2 + $0x70] sm:$0xff] (!%p2033_p11)  ;;  %v2108_v14 = vpack.c.bf16 (!%p2033_p11), %v1521_v3, %v1521_v3  ;;  %v1460_v16 = vadd.f32 (!%p2033_p11), %v2868_v42, %v1389_v63 }
 0x194   : > { %1837 = vst.msk [vmem:[%s3208_s3] sm:$0xf] (!%p2033_p11), %vm1836_vm2, %v2103_v1  ;;  %1838 = vst.msk [vmem:[%s3208_s3 + $0x4] sm:$0xf] (!%p2033_p11), %vm1836_vm2, %v2104_v2  ;;  %v2109_v15 = vpack.c.bf16 (!%p2033_p11), %v1522_v4, %v1522_v4  ;;  %v1402_v45 = vld [vmem:[#allocation2 + $0xa8] sm:$0xff] (!%p2033_p11)  ;;  %v1404_v51 = vld [vmem:[#allocation2 + $0xb8] sm:$0xff] (!%p2033_p11)  ;;  %v1474_v59 = vadd.f32 (!%p2033_p11), %v2868_v42, %v1403_v46 }
 0x195   : > { %v2253_v21 = vpop.f32.mrb[28].mxu0  ;;  %v2285_v22 = vpop.f32.mrb[28].mxu1  ;;  %1380 = sbr.rel (%p2033_p11) target bundleno = 453 (0x1c5), region = 81  ;;  %1839 = vst.msk [vmem:[%s3208_s3 + $0x8] sm:$0xf] (!%p2033_p11), %vm1836_vm2, %v2105_v8  ;;  %v1473_v58 = vadd.f32 (!%p2033_p11), %v2868_v42, %v1402_v45  ;;  %v1475_v63 = vadd.f32 (!%p2033_p11), %v2868_v42, %v1404_v51  ;;  %v1418_v46 = vld [vmem:[#allocation2 + $0x128] sm:$0xff] (!%p2033_p11) }
 0x196   : > { %v1278_v25 = vadd.f32 %v2253_v21, %v605_v17  ;;  %v1310_v26 = vadd.f32 %v2285_v22, %v637_v18  ;;  %v1105_v27 = vpop.f32.mrb[29].mxu0  ;;  %v1233_v28 = vpop.f32.mrb[29].mxu1  ;;  %v1461_v17 = vadd.f32 (!%p2033_p11), %v2868_v42, %v1390_v0  ;;  %v1396_v18 = vld [vmem:[#allocation2 + $0x78] sm:$0xff] (!%p2033_p11)  ;;  %1840 = vst.msk [vmem:[%s3208_s3 + $0xc] sm:$0xf] (!%p2033_p11), %vm1836_vm2, %v2106_v9  ;;  %v1463_v21 = vadd.f32 (!%p2033_p11), %v2868_v42, %v1392_v6 }
 0x197   : > { %v1276_v31 = vadd.f32 %v1105_v27, %v603_v19  ;;  %v1308_v32 = vadd.f32 %v1233_v28, %v635_v20  ;;  %v2254_v33 = vpop.f32.mrb[30].mxu0  ;;  %v2286_v34 = vpop.f32.mrb[30].mxu1  ;;  %1841 = vst.msk [vmem:[%s3208_s3 + $0x10] sm:$0xf] (!%p2033_p11), %vm1836_vm2, %v2107_v10  ;;  %v2110_v19 = vpack.c.bf16 (!%p2033_p11), %v1523_v11, %v1523_v11  ;;  %v1462_v20 = vadd.f32 (!%p2033_p11), %v2868_v42, %v1391_v5  ;;  %v1407_v6 = vld [vmem:[#allocation2 + $0xd0] sm:$0xff] (!%p2033_p11) }
 0x198   : > { %1343 = vst.msk [vmem:[#allocation2 + $0xf0] sm:$0xff] %vm1312_vm1, %v1278_v25  ;;  %1375 = vst.msk [vmem:[#allocation2 + $0x1f0] sm:$0xff] %vm1312_vm1, %v1310_v26  ;;  %v1279_v35 = vadd.f32 %v2254_v33, %v606_v23  ;;  %v1311_v36 = vadd.f32 %v2286_v34, %v638_v24  ;;  %v1108_v37 = vpop.f32.mrb[31].mxu0  ;;  %v1236_v38 = vpop.f32.mrb[31].mxu1  ;;  %v1464_v22 = vadd.f32 (!%p2033_p11), %v2868_v42, %v1393_v7  ;;  %v1524_v23 = vmax.f32 (!%p2033_p11), %v1460_v16, 0.0  ;;  %v1405_v0 = vld [vmem:[#allocation2 + $0xc0] sm:$0xff] (!%p2033_p11) }
 0x199   : > { %1341 = vst.msk [vmem:[#allocation2 + $0xe0] sm:$0xff] %vm1312_vm1, %v1276_v31  ;;  %1373 = vst.msk [vmem:[#allocation2 + $0x1e0] sm:$0xff] %vm1312_vm1, %v1308_v32  ;;  %v1277_v39 = vadd.f32 %v1108_v37, %v604_v29  ;;  %v1309_v40 = vadd.f32 %v1236_v38, %v636_v30  ;;  %v1525_v24 = vmax.f32 (!%p2033_p11), %v1461_v17, 0.0  ;;  %v1465_v25 = vadd.f32 (!%p2033_p11), %v2868_v42, %v1394_v12  ;;  %v1397_v31 = vld [vmem:[#allocation2 + $0x80] sm:$0xff] (!%p2033_p11)  ;;  %v1398_v32 = vld [vmem:[#allocation2 + $0x88] sm:$0xff] (!%p2033_p11) }
 0x19a   : > { %1344 = vst.msk [vmem:[#allocation2 + $0xf8] sm:$0xff] %vm1312_vm1, %v1279_v35  ;;  %1376 = vst.msk [vmem:[#allocation2 + $0x1f8] sm:$0xff] %vm1312_vm1, %v1311_v36  ;;  %v1466_v26 = vadd.f32 (!%p2033_p11), %v2868_v42, %v1395_v13  ;;  %v1526_v27 = vmax.f32 (!%p2033_p11), %v1462_v20, 0.0  ;;  %v1527_v28 = vmax.f32 (!%p2033_p11), %v1463_v21, 0.0  ;;  %v1528_v29 = vmax.f32 (!%p2033_p11), %v1464_v22, 0.0  ;;  %v1399_v37 = vld [vmem:[#allocation2 + $0x90] sm:$0xff] (!%p2033_p11) }
 0x19b   : > { %1342 = vst.msk [vmem:[#allocation2 + $0xe8] sm:$0xff] %vm1312_vm1, %v1277_v39  ;;  %1374 = vst.msk [vmem:[#allocation2 + $0x1e8] sm:$0xff] %vm1312_vm1, %v1309_v40  ;;  %v1467_v30 = vadd.f32 (!%p2033_p11), %v2868_v42, %v1396_v18  ;;  %v2111_v33 = vpack.c.bf16 (!%p2033_p11), %v1524_v23, %v1524_v23  ;;  %v2112_v34 = vpack.c.bf16 (!%p2033_p11), %v1525_v24, %v1525_v24  ;;  %v1529_v35 = vmax.f32 (!%p2033_p11), %v1465_v25, 0.0  ;;  %v1400_v38 = vld [vmem:[#allocation2 + $0x98] sm:$0xff] (!%p2033_p11)  ;;  %v1401_v39 = vld [vmem:[#allocation2 + $0xa0] sm:$0xff] (!%p2033_p11) }
 0x19c   : > { %1842 = vst.msk [vmem:[%s3208_s3 + $0x14] sm:$0xf] %vm1836_vm2, %v2108_v14  ;;  %1843 = vst.msk [vmem:[%s3208_s3 + $0x18] sm:$0xf] %vm1836_vm2, %v2109_v15  ;;  %v1530_v36 = vmax.f32 %v1466_v26, 0.0  ;;  %v2113_v40 = vpack.c.bf16 %v1526_v27, %v1526_v27  ;;  %v2114_v41 = vpack.c.bf16 %v1527_v28, %v1527_v28  ;;  %v2115_v43 = vpack.c.bf16 %v1528_v29, %v1528_v29  ;;  %v1406_v1 = vld [vmem:[#allocation2 + $0xc8] sm:$0xff] }
 0x19d   : > { %1844 = vst.msk [vmem:[%s3208_s3 + $0x1c] sm:$0xf] %vm1836_vm2, %v2110_v19  ;;  %v1531_v44 = vmax.f32 %v1467_v30, 0.0  ;;  %1845 = vst.msk [vmem:[%s3208_s3 + $0x20] sm:$0xf] %vm1836_vm2, %v2111_v33  ;;  %v2116_v47 = vpack.c.bf16 %v1529_v35, %v1529_v35  ;;  %v1468_v49 = vadd.f32 %v2868_v42, %v1397_v31  ;;  %v1469_v50 = vadd.f32 %v2868_v42, %v1398_v32  ;;  %v1408_v7 = vld [vmem:[#allocation2 + $0xd8] sm:$0xff] }
 0x19e   : > { %1846 = vst.msk [vmem:[%s3208_s3 + $0x24] sm:$0xf] %vm1836_vm2, %v2112_v34  ;;  %v2117_v48 = vpack.c.bf16 %v1530_v36, %v1530_v36  ;;  %1847 = vst.msk [vmem:[%s3208_s3 + $0x28] sm:$0xf] %vm1836_vm2, %v2113_v40  ;;  %v1470_v53 = vadd.f32 %v2868_v42, %v1399_v37  ;;  %v1471_v54 = vadd.f32 %v2868_v42, %v1400_v38  ;;  %v1537_v4 = vmax.f32 %v1473_v58, 0.0  ;;  %v1413_v32 = vld [vmem:[#allocation2 + $0x100] sm:$0xff] }
 0x19f   : > { %1848 = vst.msk [vmem:[%s3208_s3 + $0x2c] sm:$0xf] %vm1836_vm2, %v2114_v41  ;;  %1849 = vst.msk [vmem:[%s3208_s3 + $0x30] sm:$0xf] %vm1836_vm2, %v2115_v43  ;;  %v2118_v52 = vpack.c.bf16 %v1531_v44, %v1531_v44  ;;  %v1472_v55 = vadd.f32 %v2868_v42, %v1401_v39  ;;  %v1532_v56 = vmax.f32 %v1468_v49, 0.0  ;;  %v1533_v57 = vmax.f32 %v1469_v50, 0.0 }
 0x1a0   : > { %1850 = vst.msk [vmem:[%s3208_s3 + $0x34] sm:$0xf] %vm1836_vm2, %v2116_v47  ;;  %1851 = vst.msk [vmem:[%s3208_s3 + $0x38] sm:$0xf] %vm1836_vm2, %v2117_v48  ;;  %v1534_v60 = vmax.f32 %v1470_v53, 0.0  ;;  %v1535_v61 = vmax.f32 %v1471_v54, 0.0  ;;  %v2124_v15 = vpack.c.bf16 %v1537_v4, %v1537_v4  ;;  %v1476_v17 = vadd.f32 %v2868_v42, %v1405_v0 }
 0x1a1   : > { %1852 = vst.msk [vmem:[%s3208_s3 + $0x3c] sm:$0xf] %vm1836_vm2, %v2118_v52  ;;  %v1536_v62 = vmax.f32 %v1472_v55, 0.0  ;;  %v2119_v2 = vpack.c.bf16 %v1532_v56, %v1532_v56  ;;  %v2120_v3 = vpack.c.bf16 %v1533_v57, %v1533_v57  ;;  %v1538_v5 = vmax.f32 %v1474_v59, 0.0  ;;  %v1409_v8 = vld [vmem:[#allocation2 + $0xe0] sm:$0xff]  ;;  %v1411_v14 = vld [vmem:[#allocation2 + $0xf0] sm:$0xff] }
 0x1a2   : > { %v2121_v9 = vpack.c.bf16 %v1534_v60, %v1534_v60  ;;  %v2122_v10 = vpack.c.bf16 %v1535_v61, %v1535_v61  ;;  %v1539_v12 = vmax.f32 %v1475_v63, 0.0  ;;  %v1410_v13 = vld [vmem:[#allocation2 + $0xe8] sm:$0xff]  ;;  %v1477_v18 = vadd.f32 %v2868_v42, %v1406_v1  ;;  %v1412_v19 = vld [vmem:[#allocation2 + $0xf8] sm:$0xff]  ;;  %1858 = vst.msk [vmem:[%s3208_s3 + $0x54] sm:$0xf] %vm1836_vm2, %v2124_v15  ;;  %v1415_v38 = vld [vmem:[#allocation2 + $0x110] sm:$0xff] }
 0x1a3   : > { %v2123_v11 = vpack.c.bf16 %v1536_v62, %v1536_v62  ;;  %1853 = vst.msk [vmem:[%s3208_s3 + $0x40] sm:$0xf] %vm1836_vm2, %v2119_v2  ;;  %1854 = vst.msk [vmem:[%s3208_s3 + $0x44] sm:$0xf] %vm1836_vm2, %v2120_v3  ;;  %v2125_v16 = vpack.c.bf16 %v1538_v5, %v1538_v5  ;;  %v1478_v21 = vadd.f32 %v2868_v42, %v1407_v6  ;;  %v1540_v24 = vmax.f32 %v1476_v17, 0.0  ;;  %v1414_v33 = vld [vmem:[#allocation2 + $0x108] sm:$0xff] }
 0x1a4   : > { %1855 = vst.msk [vmem:[%s3208_s3 + $0x48] sm:$0xf] %vm1836_vm2, %v2121_v9  ;;  %1856 = vst.msk [vmem:[%s3208_s3 + $0x4c] sm:$0xf] %vm1836_vm2, %v2122_v10  ;;  %v2126_v20 = vpack.c.bf16 %v1539_v12, %v1539_v12  ;;  %v1479_v22 = vadd.f32 %v2868_v42, %v1408_v7  ;;  %v1480_v23 = vadd.f32 %v2868_v42, %v1409_v8  ;;  %v1541_v25 = vmax.f32 %v1477_v18, 0.0  ;;  %v1416_v39 = vld [vmem:[#allocation2 + $0x118] sm:$0xff] }
 0x1a5   : > { %1857 = vst.msk [vmem:[%s3208_s3 + $0x50] sm:$0xf] %vm1836_vm2, %v2123_v11  ;;  %1859 = vst.msk [vmem:[%s3208_s3 + $0x58] sm:$0xf] %vm1836_vm2, %v2125_v16  ;;  %v1481_v26 = vadd.f32 %v2868_v42, %v1410_v13  ;;  %v1482_v27 = vadd.f32 %v2868_v42, %v1411_v14  ;;  %v1542_v28 = vmax.f32 %v1478_v21, 0.0  ;;  %v1483_v31 = vadd.f32 %v2868_v42, %v1412_v19  ;;  %v1417_v40 = vld [vmem:[#allocation2 + $0x120] sm:$0xff] }
 0x1a6   : > { %1860 = vst.msk [vmem:[%s3208_s3 + $0x5c] sm:$0xf] %vm1836_vm2, %v2126_v20  ;;  %v1543_v29 = vmax.f32 %v1479_v22, 0.0  ;;  %v1544_v30 = vmax.f32 %v1480_v23, 0.0  ;;  %v2127_v34 = vpack.c.bf16 %v1540_v24, %v1540_v24  ;;  %v2128_v35 = vpack.c.bf16 %v1541_v25, %v1541_v25  ;;  %v1419_v47 = vld [vmem:[#allocation2 + $0x130] sm:$0xff]  ;;  %v1420_v52 = vld [vmem:[#allocation2 + $0x138] sm:$0xff] }
 0x1a7   : > { %v1545_v36 = vmax.f32 %v1481_v26, 0.0  ;;  %v1546_v37 = vmax.f32 %v1482_v27, 0.0  ;;  %v2129_v41 = vpack.c.bf16 %v1542_v28, %v1542_v28  ;;  %v1547_v45 = vmax.f32 %v1483_v31, 0.0  ;;  %v1421_v1 = vld [vmem:[#allocation2 + $0x140] sm:$0xff]  ;;  %v1422_v2 = vld [vmem:[#allocation2 + $0x148] sm:$0xff]  ;;  %v1423_v7 = vld [vmem:[#allocation2 + $0x150] sm:$0xff] }
 0x1a8   : > { %v2130_v43 = vpack.c.bf16 %v1543_v29, %v1543_v29  ;;  %v2131_v44 = vpack.c.bf16 %v1544_v30, %v1544_v30  ;;  %1861 = vst.msk [vmem:[%s3208_s3 + $0x60] sm:$0xf] %vm1836_vm2, %v2127_v34  ;;  %1862 = vst.msk [vmem:[%s3208_s3 + $0x64] sm:$0xf] %vm1836_vm2, %v2128_v35  ;;  %v1484_v50 = vadd.f32 %v2868_v42, %v1413_v32  ;;  %v1424_v8 = vld [vmem:[#allocation2 + $0x158] sm:$0xff]  ;;  %v1425_v9 = vld [vmem:[#allocation2 + $0x160] sm:$0xff] }
 0x1a9   : > { %v2132_v48 = vpack.c.bf16 %v1545_v36, %v1545_v36  ;;  %v2133_v49 = vpack.c.bf16 %v1546_v37, %v1546_v37  ;;  %v1485_v51 = vadd.f32 %v2868_v42, %v1414_v33  ;;  %1863 = vst.msk [vmem:[%s3208_s3 + $0x68] sm:$0xf] %vm1836_vm2, %v2129_v41  ;;  %v2134_v53 = vpack.c.bf16 %v1547_v45, %v1547_v45  ;;  %v1426_v14 = vld [vmem:[#allocation2 + $0x168] sm:$0xff]  ;;  %v1427_v15 = vld [vmem:[#allocation2 + $0x170] sm:$0xff]  ;;  %v1428_v20 = vld [vmem:[#allocation2 + $0x178] sm:$0xff] }
 0x1aa   : > { %1864 = vst.msk [vmem:[%s3208_s3 + $0x6c] sm:$0xf] %vm1836_vm2, %v2130_v43  ;;  %1865 = vst.msk [vmem:[%s3208_s3 + $0x70] sm:$0xf] %vm1836_vm2, %v2131_v44  ;;  %v1486_v54 = vadd.f32 %v2868_v42, %v1415_v38  ;;  %v1487_v55 = vadd.f32 %v2868_v42, %v1416_v39  ;;  %v1488_v56 = vadd.f32 %v2868_v42, %v1417_v40  ;;  %v1548_v57 = vmax.f32 %v1484_v50, 0.0  ;;  %v1429_v33 = vld [vmem:[#allocation2 + $0x180] sm:$0xff] }
 0x1ab   : > { %1866 = vst.msk [vmem:[%s3208_s3 + $0x74] sm:$0xf] %vm1836_vm2, %v2132_v48  ;;  %1867 = vst.msk [vmem:[%s3208_s3 + $0x78] sm:$0xf] %vm1836_vm2, %v2133_v49  ;;  %v1549_v58 = vmax.f32 %v1485_v51, 0.0  ;;  %v1489_v59 = vadd.f32 %v2868_v42, %v1418_v46  ;;  %v1490_v60 = vadd.f32 %v2868_v42, %v1419_v47  ;;  %v1491_v0 = vadd.f32 %v2868_v42, %v1420_v52  ;;  %v1430_v34 = vld [vmem:[#allocation2 + $0x188] sm:$0xff] }
 0x1ac   : > { %1868 = vst.msk [vmem:[%s3208_s3 + $0x7c] sm:$0xf] %vm1836_vm2, %v2134_v53  ;;  %v1550_v61 = vmax.f32 %v1486_v54, 0.0  ;;  %v1551_v62 = vmax.f32 %v1487_v55, 0.0  ;;  %v1552_v63 = vmax.f32 %v1488_v56, 0.0  ;;  %v2135_v3 = vpack.c.bf16 %v1548_v57, %v1548_v57  ;;  %v1431_v39 = vld [vmem:[#allocation2 + $0x190] sm:$0xff] }
 0x1ad   : > { %v2136_v4 = vpack.c.bf16 %v1549_v58, %v1549_v58  ;;  %v1553_v5 = vmax.f32 %v1489_v59, 0.0  ;;  %v1554_v6 = vmax.f32 %v1490_v60, 0.0  ;;  %v1555_v13 = vmax.f32 %v1491_v0, 0.0  ;;  %v1432_v40 = vld [vmem:[#allocation2 + $0x198] sm:$0xff]  ;;  %v1433_v41 = vld [vmem:[#allocation2 + $0x1a0] sm:$0xff]  ;;  %v1434_v47 = vld [vmem:[#allocation2 + $0x1a8] sm:$0xff] }
 0x1ae   : > { %v2137_v10 = vpack.c.bf16 %v1550_v61, %v1550_v61  ;;  %v2138_v11 = vpack.c.bf16 %v1551_v62, %v1551_v62  ;;  %v2139_v12 = vpack.c.bf16 %v1552_v63, %v1552_v63  ;;  %1869 = vst.msk [vmem:[%s3208_s3 + $0x80] sm:$0xf] %vm1836_vm2, %v2135_v3  ;;  %v1492_v18 = vadd.f32 %v2868_v42, %v1421_v1  ;;  %v1435_v48 = vld [vmem:[#allocation2 + $0x1b0] sm:$0xff]  ;;  %v1436_v53 = vld [vmem:[#allocation2 + $0x1b8] sm:$0xff]  ;;  %v1438_v3 = vld [vmem:[#allocation2 + $0x1c8] sm:$0xff] }
 0x1af   : > { %1870 = vst.msk [vmem:[%s3208_s3 + $0x84] sm:$0xf] %vm1836_vm2, %v2136_v4  ;;  %v2140_v16 = vpack.c.bf16 %v1553_v5, %v1553_v5  ;;  %v2141_v17 = vpack.c.bf16 %v1554_v6, %v1554_v6  ;;  %v1493_v19 = vadd.f32 %v2868_v42, %v1422_v2  ;;  %v2142_v21 = vpack.c.bf16 %v1555_v13, %v1555_v13  ;;  %v1437_v2 = vld [vmem:[#allocation2 + $0x1c0] sm:$0xff] }
 0x1b0   : > { %1871 = vst.msk [vmem:[%s3208_s3 + $0x88] sm:$0xf] %vm1836_vm2, %v2137_v10  ;;  %1872 = vst.msk [vmem:[%s3208_s3 + $0x8c] sm:$0xf] %vm1836_vm2, %v2138_v11  ;;  %v1494_v22 = vadd.f32 %v2868_v42, %v1423_v7  ;;  %v1495_v23 = vadd.f32 %v2868_v42, %v1424_v8  ;;  %v1496_v24 = vadd.f32 %v2868_v42, %v1425_v9  ;;  %v1556_v25 = vmax.f32 %v1492_v18, 0.0  ;;  %v1439_v8 = vld [vmem:[#allocation2 + $0x1d0] sm:$0xff] }
 0x1b1   : > { %1873 = vst.msk [vmem:[%s3208_s3 + $0x90] sm:$0xf] %vm1836_vm2, %v2139_v12  ;;  %1874 = vst.msk [vmem:[%s3208_s3 + $0x94] sm:$0xf] %vm1836_vm2, %v2140_v16  ;;  %v1557_v26 = vmax.f32 %v1493_v19, 0.0  ;;  %v1497_v27 = vadd.f32 %v2868_v42, %v1426_v14  ;;  %v1498_v28 = vadd.f32 %v2868_v42, %v1427_v15  ;;  %v1499_v32 = vadd.f32 %v2868_v42, %v1428_v20  ;;  %v1440_v9 = vld [vmem:[#allocation2 + $0x1d8] sm:$0xff] }
 0x1b2   : > { %1875 = vst.msk [vmem:[%s3208_s3 + $0x98] sm:$0xf] %vm1836_vm2, %v2141_v17  ;;  %1876 = vst.msk [vmem:[%s3208_s3 + $0x9c] sm:$0xf] %vm1836_vm2, %v2142_v21  ;;  %v1558_v29 = vmax.f32 %v1494_v22, 0.0  ;;  %v1559_v30 = vmax.f32 %v1495_v23, 0.0  ;;  %v2143_v35 = vpack.c.bf16 %v1556_v25, %v1556_v25  ;;  %v1500_v51 = vadd.f32 %v2868_v42, %v1429_v33 }
 0x1b3   : > { %v1560_v31 = vmax.f32 %v1496_v24, 0.0  ;;  %v2144_v36 = vpack.c.bf16 %v1557_v26, %v1557_v26  ;;  %v1561_v37 = vmax.f32 %v1497_v27, 0.0  ;;  %v1562_v38 = vmax.f32 %v1498_v28, 0.0  ;;  %v1441_v10 = vld [vmem:[#allocation2 + $0x1e0] sm:$0xff]  ;;  %v1442_v15 = vld [vmem:[#allocation2 + $0x1e8] sm:$0xff]  ;;  %v1443_v16 = vld [vmem:[#allocation2 + $0x1f0] sm:$0xff] }
 0x1b4   : > { %v2145_v43 = vpack.c.bf16 %v1558_v29, %v1558_v29  ;;  %v2146_v44 = vpack.c.bf16 %v1559_v30, %v1559_v30  ;;  %v1563_v46 = vmax.f32 %v1499_v32, 0.0  ;;  %1877 = vst.msk [vmem:[%s3208_s3 + $0xa0] sm:$0xf] %vm1836_vm2, %v2143_v35  ;;  %v1501_v52 = vadd.f32 %v2868_v42, %v1430_v34  ;;  %v1444_v21 = vld [vmem:[#allocation2 + $0x1f8] sm:$0xff] }
 0x1b5   : > { %v2147_v45 = vpack.c.bf16 %v1560_v31, %v1560_v31  ;;  %1878 = vst.msk [vmem:[%s3208_s3 + $0xa4] sm:$0xf] %vm1836_vm2, %v2144_v36  ;;  %v2148_v49 = vpack.c.bf16 %v1561_v37, %v1561_v37  ;;  %v2149_v50 = vpack.c.bf16 %v1562_v38, %v1562_v38  ;;  %v1502_v55 = vadd.f32 %v2868_v42, %v1431_v39 }
 0x1b6   : > { %1879 = vst.msk [vmem:[%s3208_s3 + $0xa8] sm:$0xf] %vm1836_vm2, %v2145_v43  ;;  %1880 = vst.msk [vmem:[%s3208_s3 + $0xac] sm:$0xf] %vm1836_vm2, %v2146_v44  ;;  %v2150_v54 = vpack.c.bf16 %v1563_v46, %v1563_v46  ;;  %v1503_v56 = vadd.f32 %v2868_v42, %v1432_v40  ;;  %v1504_v57 = vadd.f32 %v2868_v42, %v1433_v41  ;;  %v1564_v58 = vmax.f32 %v1500_v51, 0.0 }
 0x1b7   : > { %1881 = vst.msk [vmem:[%s3208_s3 + $0xb0] sm:$0xf] %vm1836_vm2, %v2147_v45  ;;  %1882 = vst.msk [vmem:[%s3208_s3 + $0xb4] sm:$0xf] %vm1836_vm2, %v2148_v49  ;;  %v1565_v59 = vmax.f32 %v1501_v52, 0.0  ;;  %v1505_v60 = vadd.f32 %v2868_v42, %v1434_v47  ;;  %v1506_v61 = vadd.f32 %v2868_v42, %v1435_v48  ;;  %v1566_v62 = vmax.f32 %v1502_v55, 0.0 }
 0x1b8   : > { %1883 = vst.msk [vmem:[%s3208_s3 + $0xb8] sm:$0xf] %vm1836_vm2, %v2149_v50  ;;  %1884 = vst.msk [vmem:[%s3208_s3 + $0xbc] sm:$0xf] %vm1836_vm2, %v2150_v54  ;;  %v1567_v63 = vmax.f32 %v1503_v56, 0.0  ;;  %v1568_v0 = vmax.f32 %v1504_v57, 0.0  ;;  %v1507_v1 = vadd.f32 %v2868_v42, %v1436_v53  ;;  %v2151_v4 = vpack.c.bf16 %v1564_v58, %v1564_v58 }
 0x1b9   : > { %v2152_v5 = vpack.c.bf16 %v1565_v59, %v1565_v59  ;;  %v1569_v6 = vmax.f32 %v1505_v60, 0.0  ;;  %v1570_v7 = vmax.f32 %v1506_v61, 0.0  ;;  %v2153_v11 = vpack.c.bf16 %v1566_v62, %v1566_v62 }
 0x1ba   : > { %v2154_v12 = vpack.c.bf16 %v1567_v63, %v1567_v63  ;;  %v2155_v13 = vpack.c.bf16 %v1568_v0, %v1568_v0  ;;  %v1571_v14 = vmax.f32 %v1507_v1, 0.0  ;;  %1885 = vst.msk [vmem:[%s3208_s3 + $0xc0] sm:$0xf] %vm1836_vm2, %v2151_v4  ;;  %v1508_v19 = vadd.f32 %v2868_v42, %v1437_v2 }
 0x1bb   : > { %1886 = vst.msk [vmem:[%s3208_s3 + $0xc4] sm:$0xf] %vm1836_vm2, %v2152_v5  ;;  %v2156_v17 = vpack.c.bf16 %v1569_v6, %v1569_v6  ;;  %v2157_v18 = vpack.c.bf16 %v1570_v7, %v1570_v7  ;;  %v1509_v20 = vadd.f32 %v2868_v42, %v1438_v3  ;;  %1887 = vst.msk [vmem:[%s3208_s3 + $0xc8] sm:$0xf] %vm1836_vm2, %v2153_v11 }
 0x1bc   : > { %1888 = vst.msk [vmem:[%s3208_s3 + $0xcc] sm:$0xf] %vm1836_vm2, %v2154_v12  ;;  %1889 = vst.msk [vmem:[%s3208_s3 + $0xd0] sm:$0xf] %vm1836_vm2, %v2155_v13  ;;  %v2158_v22 = vpack.c.bf16 %v1571_v14, %v1571_v14  ;;  %v1510_v23 = vadd.f32 %v2868_v42, %v1439_v8  ;;  %v1511_v24 = vadd.f32 %v2868_v42, %v1440_v9  ;;  %v1572_v26 = vmax.f32 %v1508_v19, 0.0 }
 0x1bd   : > { %v1512_v25 = vadd.f32 %v2868_v42, %v1441_v10  ;;  %1890 = vst.msk [vmem:[%s3208_s3 + $0xd4] sm:$0xf] %vm1836_vm2, %v2156_v17  ;;  %1891 = vst.msk [vmem:[%s3208_s3 + $0xd8] sm:$0xf] %vm1836_vm2, %v2157_v18  ;;  %v1573_v27 = vmax.f32 %v1509_v20, 0.0  ;;  %v1513_v28 = vadd.f32 %v2868_v42, %v1442_v15  ;;  %v1514_v29 = vadd.f32 %v2868_v42, %v1443_v16 }
 0x1be   : > { %1892 = vst.msk [vmem:[%s3208_s3 + $0xdc] sm:$0xf] %vm1836_vm2, %v2158_v22  ;;  %v1574_v30 = vmax.f32 %v1510_v23, 0.0  ;;  %v1575_v31 = vmax.f32 %v1511_v24, 0.0  ;;  %v1515_v33 = vadd.f32 %v2868_v42, %v1444_v21  ;;  %v2159_v34 = vpack.c.bf16 %v1572_v26, %v1572_v26 }
 0x1bf   : > { %v1576_v32 = vmax.f32 %v1512_v25, 0.0  ;;  %v2160_v35 = vpack.c.bf16 %v1573_v27, %v1573_v27  ;;  %v1577_v36 = vmax.f32 %v1513_v28, 0.0  ;;  %v1578_v37 = vmax.f32 %v1514_v29, 0.0 }
 0x1c0   : > { %v2161_v38 = vpack.c.bf16 %v1574_v30, %v1574_v30  ;;  %v2162_v39 = vpack.c.bf16 %v1575_v31, %v1575_v31  ;;  %v1579_v41 = vmax.f32 %v1515_v33, 0.0  ;;  %1893 = vst.msk [vmem:[%s3208_s3 + $0xe0] sm:$0xf] %vm1836_vm2, %v2159_v34 }
 0x1c1   : > { %v2163_v40 = vpack.c.bf16 %v1576_v32, %v1576_v32  ;;  %1894 = vst.msk [vmem:[%s3208_s3 + $0xe4] sm:$0xf] %vm1836_vm2, %v2160_v35  ;;  %v2164_v43 = vpack.c.bf16 %v1577_v36, %v1577_v36  ;;  %v2165_v42 = vpack.c.bf16 %v1578_v37, %v1578_v37 }
 0x1c2   : > { %1895 = vst.msk [vmem:[%s3208_s3 + $0xe8] sm:$0xf] %vm1836_vm2, %v2161_v38  ;;  %1896 = vst.msk [vmem:[%s3208_s3 + $0xec] sm:$0xf] %vm1836_vm2, %v2162_v39  ;;  %v2166_v44 = vpack.c.bf16 %v1579_v41, %v1579_v41 }
 0x1c3   : > { %1897 = vst.msk [vmem:[%s3208_s3 + $0xf0] sm:$0xf] %vm1836_vm2, %v2163_v40  ;;  %1898 = vst.msk [vmem:[%s3208_s3 + $0xf4] sm:$0xf] %vm1836_vm2, %v2164_v43 }
 0x1c4   : > { %1899 = vst.msk [vmem:[%s3208_s3 + $0xf8] sm:$0xf] %vm1836_vm2, %v2165_v42  ;;  %1900 = vst.msk [vmem:[%s3208_s3 + $0xfc] sm:$0xf] %vm1836_vm2, %v2166_v44 }
 0x1c5 PF: > { %s13_s16 = sadd.s32 1, %s2422_s16   ;;  %s3209_s12 = smov %s2410_s13 }
 0x1c6   : > { %p10_p12 = scmp.ge.s32.totalorder %s13_s16, 4   ;;  %s3210_s13 = smov %s2480_s20 }
 0x1c7   : > { %s3211_s14 = smov %s2418_s15  ;;  %s3212_s15 = smov %s3214_s17 }
 0x1c8   :  { %12 = sbr.rel (!%p10_p12) target bundleno = 3 (0x3), region = 119 }

// kernel: res_model_forward.24
= control target key start
LH: loop header
LB: loop body
LE: loop exit
PB: predicated region body
PF: predicated region fallthrough
CT: control target
= control target key end

     0   :  { %vm558_vm0 = vcmask 523264   ;;  %vm954_vm1 = vcmask 519168   ;;  %s1730_s1 = inlined_call_operand.vmem [shape: bf16[576,64], index: 1, kind: input, shape index: {}]   ;;  %s1731_s0 = inlined_call_operand.vmem [shape: bf16[128,576], index: 0, kind: input, shape index: {}]   ;;  %s1732_s2 = inlined_call_operand.vmem [shape: f32[1,64], index: 2, kind: input, shape index: {}]   ;;  %s1733_s3 = inlined_call_operand.vmem [shape: bf16[128,64], index: 3, kind: output, shape index: {}]  }
   0x1   :  { %v1264_v0 = vld [vmem:[%s1730_s1 + $0x40] sm:$0xff]   ;;  %v1268_v4 = vld [vmem:[%s1730_s1 + $0x48] sm:$0xff]   ;;  %v1272_v8 = vld [vmem:[%s1730_s1 + $0x50] sm:$0xff]  }
   0x2   :  { %v1265_v1 = vld [vmem:[%s1730_s1 + $0xc0] sm:$0xff]   ;;  %1092 = vmatprep.subr.bf16.mxu0 %v1264_v0  ;;  %v1269_v5 = vld [vmem:[%s1730_s1 + $0xc8] sm:$0xff]   ;;  %v1273_v9 = vld [vmem:[%s1730_s1 + $0xd0] sm:$0xff]  }
   0x3   :  { %v1266_v2 = vld [vmem:[%s1730_s1] sm:$0xff]   ;;  %1156 = vmatprep.subr.bf16.mxu1 %v1265_v1  ;;  %v1270_v6 = vld [vmem:[%s1730_s1 + $0x8] sm:$0xff]   ;;  %v1274_v10 = vld [vmem:[%s1730_s1 + $0x10] sm:$0xff]  }
   0x4   :  { %v1267_v3 = vld [vmem:[%s1730_s1 + $0x80] sm:$0xff]   ;;  %1093 = vmatpush3.bf16.msra.mxu0 %v1266_v2  ;;  %v1271_v7 = vld [vmem:[%s1730_s1 + $0x88] sm:$0xff]   ;;  %v1275_v11 = vld [vmem:[%s1730_s1 + $0x90] sm:$0xff]  }
   0x5   :  { %1157 = vmatpush3.bf16.msra.mxu1 %v1267_v3  ;;  %1094 = vmatprep.subr.bf16.mxu0 %v1268_v4  ;;  %v1276_v12 = vld [vmem:[%s1730_s1 + $0x58] sm:$0xff]   ;;  %v1280_v16 = vld [vmem:[%s1730_s1 + $0x60] sm:$0xff]   ;;  %v1284_v20 = vld [vmem:[%s1730_s1 + $0x68] sm:$0xff]  }
   0x6   :  { %1158 = vmatprep.subr.bf16.mxu1 %v1269_v5  ;;  %v1277_v13 = vld [vmem:[%s1730_s1 + $0xd8] sm:$0xff]   ;;  %v1281_v17 = vld [vmem:[%s1730_s1 + $0xe0] sm:$0xff]   ;;  %v1285_v21 = vld [vmem:[%s1730_s1 + $0xe8] sm:$0xff]  }
   0x7   :  { %v1278_v14 = vld [vmem:[%s1730_s1 + $0x18] sm:$0xff]   ;;  %v1282_v18 = vld [vmem:[%s1730_s1 + $0x20] sm:$0xff]   ;;  %v1286_v22 = vld [vmem:[%s1730_s1 + $0x28] sm:$0xff]  }
   0x8   :  { %1095 = vmatpush3.bf16.msra.mxu0 %v1270_v6  ;;  %v1279_v15 = vld [vmem:[%s1730_s1 + $0x98] sm:$0xff]   ;;  %v1283_v19 = vld [vmem:[%s1730_s1 + $0xa0] sm:$0xff]   ;;  %v1287_v23 = vld [vmem:[%s1730_s1 + $0xa8] sm:$0xff]  }
   0x9   :  { %1159 = vmatpush3.bf16.msra.mxu1 %v1271_v7  ;;  %1096 = vmatprep.subr.bf16.mxu0 %v1272_v8  ;;  %v1288_v24 = vld [vmem:[%s1730_s1 + $0x70] sm:$0xff]   ;;  %v1292_v28 = vld [vmem:[%s1730_s1 + $0x78] sm:$0xff]   ;;  %v1301_v35 = vld [vmem:[%s1731_s0 + $0xc] ss:$20 sps:$4 sm:$0xff]  }
   0xa   :  { %1160 = vmatprep.subr.bf16.mxu1 %v1273_v9  ;;  %v1289_v25 = vld [vmem:[%s1730_s1 + $0xf0] sm:$0xff]   ;;  %v1293_v29 = vld [vmem:[%s1730_s1 + $0xf8] sm:$0xff]   ;;  %v1302_v36 = vld [vmem:[%s1730_s1 + $0x100] sm:$0xff]   ;;  %712 = vmatprep.mubr.bf16.mxu1 %v1301_v35 }
   0xb   :  { %v1290_v26 = vld [vmem:[%s1730_s1 + $0x30] sm:$0xff]   ;;  %v1294_v30 = vld [vmem:[%s1730_s1 + $0x38] sm:$0xff]   ;;  %v1303_v37 = vld [vmem:[%s1731_s0 + $0x2c] ss:$20 sps:$4 sm:$0xff]  }
   0xc   :  { %1097 = vmatpush3.bf16.msra.mxu0 %v1274_v10  ;;  %v1291_v27 = vld [vmem:[%s1730_s1 + $0xb0] sm:$0xff]   ;;  %v1295_v31 = vld [vmem:[%s1730_s1 + $0xb8] sm:$0xff]   ;;  %v1315_v42 = vld [vmem:[%s1730_s1 + $0x108] sm:$0xff]  }
   0xd   :  { %1161 = vmatpush3.bf16.msra.mxu1 %v1275_v11  ;;  %1098 = vmatprep.subr.bf16.mxu0 %v1276_v12  ;;  %v1296_v32 = vld [vmem:[%s1731_s0] ss:$20 sps:$4 sm:$0xff]   ;;  %v1298_v33 = vld [vmem:[%s1731_s0 + $0x4] ss:$20 sps:$4 sm:$0xff]   ;;  %v1299_v34 = vld [vmem:[%s1731_s0 + $0x8] ss:$20 sps:$4 sm:$0xff]  }
   0xe   :  { %1162 = vmatprep.subr.bf16.mxu1 %v1277_v13  ;;  %615 = vmatprep.mubr.bf16.mxu0 %v1298_v33  ;;  %v1305_v38 = vld [vmem:[%s1731_s0 + $0x34] ss:$20 sps:$4 sm:$0xff]   ;;  %v1308_v40 = vld [vmem:[%s1731_s0 + $0x30] ss:$20 sps:$4 sm:$0xff]   ;;  %v1314_v45 = vld [vmem:[%s1731_s0 + $0x58] ss:$20 sps:$4 sm:$0xff]  }
   0xf   :  { %v1307_v39 = vld [vmem:[%s1731_s0 + $0x28] ss:$20 sps:$4 sm:$0xff]   ;;  %v1313_v44 = vld [vmem:[%s1731_s0 + $0x50] ss:$20 sps:$4 sm:$0xff]   ;;  %v1320_v50 = vld [vmem:[%s1731_s0 + $0x78] ss:$20 sps:$4 sm:$0xff]  }
  0x10   :  { %1099 = vmatpush3.bf16.msra.mxu0 %v1278_v14  ;;  %v1309_v41 = vld [vmem:[%s1731_s0 + $0x54] ss:$20 sps:$4 sm:$0xff]   ;;  %v1311_v43 = vld [vmem:[%s1731_s0 + $0x5c] ss:$20 sps:$4 sm:$0xff]   ;;  %v1318_v48 = vld [vmem:[%s1731_s0 + $0x84] ss:$20 sps:$4 sm:$0xff]  }
  0x11   :  { %1163 = vmatpush3.bf16.msra.mxu1 %v1279_v15  ;;  %1100 = vmatprep.subr.bf16.mxu0 %v1280_v16  ;;  %v1328_v46 = vld [vmem:[%s1730_s1 + $0x110] sm:$0xff]   ;;  %v1341_v49 = vld [vmem:[%s1730_s1 + $0x118] sm:$0xff]   ;;  %v1324_v53 = vld [vmem:[%s1731_s0 + $0xac] ss:$20 sps:$4 sm:$0xff]  }
  0x12   :  { %1164 = vmatprep.subr.bf16.mxu1 %v1281_v17  ;;  %v1316_v47 = vld [vmem:[%s1731_s0 + $0x7c] ss:$20 sps:$4 sm:$0xff]   ;;  %v1321_v51 = vld [vmem:[%s1731_s0 + $0x80] ss:$20 sps:$4 sm:$0xff]   ;;  %v1322_v52 = vld [vmem:[%s1731_s0 + $0xa4] ss:$20 sps:$4 sm:$0xff]  }
  0x13   :  { %v1326_v54 = vld [vmem:[%s1731_s0 + $0xa0] ss:$20 sps:$4 sm:$0xff]   ;;  %v1327_v55 = vld [vmem:[%s1731_s0 + $0xa8] ss:$20 sps:$4 sm:$0xff]   ;;  %v1334_v59 = vld [vmem:[%s1731_s0 + $0xd0] ss:$20 sps:$4 sm:$0xff]  }
  0x14   :  { %1101 = vmatpush3.bf16.msra.mxu0 %v1282_v18  ;;  %v1329_v56 = vld [vmem:[%s1731_s0 + $0xcc] ss:$20 sps:$4 sm:$0xff]   ;;  %v1331_v57 = vld [vmem:[%s1731_s0 + $0xd4] ss:$20 sps:$4 sm:$0xff]   ;;  %v1337_v61 = vld [vmem:[%s1731_s0 + $0xfc] ss:$20 sps:$4 sm:$0xff]  }
  0x15   :  { %1165 = vmatpush3.bf16.msra.mxu1 %v1283_v19  ;;  %1102 = vmatprep.subr.bf16.mxu0 %v1284_v20  ;;  %v1333_v58 = vld [vmem:[%s1731_s0 + $0xc8] ss:$20 sps:$4 sm:$0xff]   ;;  %v1339_v62 = vld [vmem:[%s1731_s0 + $0xf0] ss:$20 sps:$4 sm:$0xff]   ;;  %v1340_v63 = vld [vmem:[%s1731_s0 + $0xf8] ss:$20 sps:$4 sm:$0xff]  }
  0x16   :  { %1166 = vmatprep.subr.bf16.mxu1 %v1285_v21  ;;  %v1335_v60 = vld [vmem:[%s1731_s0 + $0xf4] ss:$20 sps:$4 sm:$0xff]   ;;  %v1342_v0 = vld [vmem:[%s1731_s0 + $0x11c] ss:$20 sps:$4 sm:$0xff]   ;;  %v1344_v1 = vld [vmem:[%s1731_s0 + $0x124] ss:$20 sps:$4 sm:$0xff]  }
  0x17   :  { %v1346_v2 = vld [vmem:[%s1731_s0 + $0x118] ss:$20 sps:$4 sm:$0xff]   ;;  %v1347_v3 = vld [vmem:[%s1731_s0 + $0x120] ss:$20 sps:$4 sm:$0xff]   ;;  %v1348_v4 = vld [vmem:[%s1731_s0 + $0x10] ss:$20 sps:$4 sm:$0xff]  }
  0x18   :  { %1103 = vmatpush3.bf16.msra.mxu0 %v1286_v22  ;;  %v1349_v5 = vld [vmem:[%s1731_s0 + $0xb0] ss:$20 sps:$4 sm:$0xff]   ;;  %v1350_v6 = vld [vmem:[%s1731_s0 + $0x38] ss:$20 sps:$4 sm:$0xff]   ;;  %v1352_v8 = vld [vmem:[%s1731_s0 + $0x60] ss:$20 sps:$4 sm:$0xff]  }
  0x19   :  { %1167 = vmatpush3.bf16.msra.mxu1 %v1287_v23  ;;  %1104 = vmatprep.subr.bf16.mxu0 %v1288_v24  ;;  %v1351_v7 = vld [vmem:[%s1731_s0 + $0xd8] ss:$20 sps:$4 sm:$0xff]   ;;  %v1353_v9 = vld [vmem:[%s1731_s0 + $0x100] ss:$20 sps:$4 sm:$0xff]   ;;  %v1354_v10 = vld [vmem:[%s1731_s0 + $0x88] ss:$20 sps:$4 sm:$0xff]  }
  0x1a   :  { %1168 = vmatprep.subr.bf16.mxu1 %v1289_v25  ;;  %v1355_v11 = vld [vmem:[%s1731_s0 + $0x128] ss:$20 sps:$4 sm:$0xff]   ;;  %v1615_v14 = vld [vmem:[%s1732_s2] ss:$0 sm:$0xff] }
  0x1c   :  { %1105 = vmatpush3.bf16.msra.mxu0 %v1290_v26 }
  0x1d   :  { %1169 = vmatpush3.bf16.msra.mxu1 %v1291_v27  ;;  %1106 = vmatprep.subr.bf16.mxu0 %v1292_v28 }
  0x1e   :  { %1170 = vmatprep.subr.bf16.mxu1 %v1293_v29 }
  0x20   :  { %1107 = vmatpush3.bf16.msra.mxu0 %v1294_v30 }
  0x21   :  { %1171 = vmatpush3.bf16.msra.mxu1 %v1295_v31  ;;  %1232 = vmatprep.subr.bf16.mxu0 %v1302_v36 }
  0x22   :  { %1256 = vmatprep.subr.bf16.mxu1 %v1302_v36 }
  0x23   :  { %616 = vmatmul.mubr.bf16.vlgmr.msra.gmra.mrb[0].mxu0 %v1296_v32 }
  0x24   :  { %713 = vmatmul.mubr.bf16.vlgmr.msra.gmra.mrb[0].mxu1 %v1299_v34  ;;  %1233 = vmatpush3.bf16.msra.mxu0 %v1302_v36 }
  0x25   :  { %1260 = vmatpush3.bf16.msra.mxu1 %v1302_v36  ;;  %623 = vmatprep.mubr.bf16.mxu0 %v1303_v37 }
  0x26   :  { %720 = vmatprep.mubr.bf16.mxu1 %v1305_v38  ;;  %1234 = vmatprep.subr.bf16.mxu0 %v1315_v42 }
  0x27   :  { %1257 = vmatprep.subr.bf16.mxu1 %v1315_v42 }
  0x28   :  { %1235 = vmatpush3.bf16.msra.mxu0 %v1315_v42 }
  0x29   :  { %1261 = vmatpush3.bf16.msra.mxu1 %v1315_v42  ;;  %1236 = vmatprep.subr.bf16.mxu0 %v1328_v46 }
  0x2a   :  { %1258 = vmatprep.subr.bf16.mxu1 %v1328_v46 }
  0x2b   :  { %624 = vmatmul.mubr.bf16.gmra.mrb[4].mxu0 %v1307_v39 }
  0x2c   :  { %721 = vmatmul.mubr.bf16.gmra.mrb[4].mxu1 %v1308_v40  ;;  %631 = vmatprep.mubr.bf16.mxu0 %v1309_v41 }
  0x2d   :  { %728 = vmatprep.mubr.bf16.mxu1 %v1311_v43  ;;  %1237 = vmatpush3.bf16.msra.mxu0 %v1328_v46 }
  0x2e   :  { %1262 = vmatpush3.bf16.msra.mxu1 %v1328_v46  ;;  %1238 = vmatprep.subr.bf16.mxu0 %v1341_v49 }
  0x2f   :  { %1259 = vmatprep.subr.bf16.mxu1 %v1341_v49 }
  0x31   :  { %1239 = vmatpush3.bf16.msra.mxu0 %v1341_v49 }
  0x32   :  { %1263 = vmatpush3.bf16.msra.mxu1 %v1341_v49 }
  0x33   :  { %632 = vmatmul.mubr.bf16.gmra.mrb[8].mxu0 %v1313_v44 }
  0x34   :  { %729 = vmatmul.mubr.bf16.gmra.mrb[8].mxu1 %v1314_v45  ;;  %639 = vmatprep.mubr.bf16.mxu0 %v1316_v47 }
  0x35   :  { %736 = vmatprep.mubr.bf16.mxu1 %v1318_v48 }
  0x3b   :  { %640 = vmatmul.mubr.bf16.gmra.mrb[12].mxu0 %v1320_v50 }
  0x3c   :  { %737 = vmatmul.mubr.bf16.gmra.mrb[12].mxu1 %v1321_v51  ;;  %647 = vmatprep.mubr.bf16.mxu0 %v1322_v52 }
  0x3d   :  { %744 = vmatprep.mubr.bf16.mxu1 %v1324_v53 }
  0x43   :  { %648 = vmatmul.mubr.bf16.gmra.mrb[16].mxu0 %v1326_v54 }
  0x44   :  { %745 = vmatmul.mubr.bf16.gmra.mrb[16].mxu1 %v1327_v55  ;;  %655 = vmatprep.mubr.bf16.mxu0 %v1329_v56 }
  0x45   :  { %752 = vmatprep.mubr.bf16.mxu1 %v1331_v57 }
  0x4b   :  { %656 = vmatmul.mubr.bf16.gmra.mrb[20].mxu0 %v1333_v58 }
  0x4c   :  { %753 = vmatmul.mubr.bf16.gmra.mrb[20].mxu1 %v1334_v59  ;;  %663 = vmatprep.mubr.bf16.mxu0 %v1335_v60 }
  0x4d   :  { %760 = vmatprep.mubr.bf16.mxu1 %v1337_v61 }
  0x53   :  { %664 = vmatmul.mubr.bf16.gmra.mrb[24].mxu0 %v1339_v62 }
  0x54   :  { %761 = vmatmul.mubr.bf16.gmra.mrb[24].mxu1 %v1340_v63  ;;  %671 = vmatprep.mubr.bf16.mxu0 %v1342_v0 }
  0x55   :  { %768 = vmatprep.mubr.bf16.mxu1 %v1344_v1 }
  0x5b   :  { %672 = vmatmul.mubr.bf16.gmra.mrb[28].mxu0 %v1346_v2 }
  0x5c   :  { %769 = vmatmul.mubr.bf16.gmra.mrb[28].mxu1 %v1347_v3  ;;  %1240 = vmatprep.mubr.msk.bf16.mxu0 %vm558_vm0, %v1348_v4 }
  0x5d   :  { %1248 = vmatprep.mubr.msk.bf16.mxu1 %vm558_vm0, %v1349_v5 }
  0x63   :  { %1241 = vmatmul.mubr.msk.bf16.vlgmr.msra.gmra.mrb[32].mxu0 %vm558_vm0, %v1350_v6 }
  0x64   :  { %1249 = vmatmul.mubr.msk.bf16.vlgmr.msra.gmra.mrb[32].mxu1 %vm558_vm0, %v1351_v7  ;;  %1244 = vmatprep.mubr.msk.bf16.mxu0 %vm558_vm0, %v1352_v8 }
  0x65   :  { %1252 = vmatprep.mubr.msk.bf16.mxu1 %vm558_vm0, %v1353_v9 }
  0x6b   :  { %1245 = vmatmul.mubr.msk.bf16.gmra.mrb[36].mxu0 %vm558_vm0, %v1354_v10 }
  0x6c   :  { %1253 = vmatmul.mubr.msk.bf16.gmra.mrb[36].mxu1 %vm558_vm0, %v1355_v11 }
  0xf6   :  { %v1108_v12 = vpop.f32.mrb[0].mxu0 }
  0xf7   :  { %v1172_v13 = vpop.f32.mrb[0].mxu1  ;;  %v1109_v15 = vpop.f32.mrb[1].mxu0 }
  0xf8   :  { %v1110_v16 = vadd.f32 %v1109_v15, %v1108_v12  ;;  %v1173_v17 = vpop.f32.mrb[1].mxu1  ;;  %v1111_v18 = vpop.f32.mrb[2].mxu0 }
  0xf9   :  { %v1174_v19 = vadd.f32 %v1173_v17, %v1172_v13  ;;  %v1175_v20 = vpop.f32.mrb[2].mxu1  ;;  %v1112_v21 = vpop.f32.mrb[3].mxu0 }
  0xfa   :  { %v618_v22 = vadd.f32 %v1110_v16, %v1615_v14  ;;  %v1113_v23 = vadd.f32 %v1112_v21, %v1111_v18  ;;  %v1176_v24 = vpop.f32.mrb[3].mxu1 }
  0xfb   :  { %v1177_v25 = vadd.f32 %v1176_v24, %v1175_v20 }
  0xfc   :  { %v621_v26 = vadd.f32 %v1113_v23, %v1615_v14  ;;  %v1619_v27 = vadd.f32 %v1174_v19, %v618_v22 }
  0xfe   :  { %v1114_v28 = vpop.f32.mrb[4].mxu0  ;;  %v1621_v29 = vadd.f32 %v1177_v25, %v621_v26 }
  0xff   :  { %v1178_v30 = vpop.f32.mrb[4].mxu1  ;;  %v1115_v31 = vpop.f32.mrb[5].mxu0 }
 0x100   :  { %v1116_v32 = vadd.f32 %v1115_v31, %v1114_v28  ;;  %v1179_v33 = vpop.f32.mrb[5].mxu1  ;;  %v1117_v34 = vpop.f32.mrb[6].mxu0 }
 0x101   :  { %v1180_v35 = vadd.f32 %v1179_v33, %v1178_v30  ;;  %v1181_v36 = vpop.f32.mrb[6].mxu1  ;;  %v1118_v37 = vpop.f32.mrb[7].mxu0 }
 0x102   :  { %v626_v38 = vadd.f32 %v1116_v32, %v1615_v14  ;;  %v1119_v39 = vadd.f32 %v1118_v37, %v1117_v34  ;;  %v1182_v40 = vpop.f32.mrb[7].mxu1 }
 0x103   :  { %v1183_v41 = vadd.f32 %v1182_v40, %v1181_v36 }
 0x104   :  { %v629_v42 = vadd.f32 %v1119_v39, %v1615_v14  ;;  %v1625_v43 = vadd.f32 %v1180_v35, %v626_v38 }
 0x106   :  { %v1120_v44 = vpop.f32.mrb[8].mxu0  ;;  %v1627_v45 = vadd.f32 %v1183_v41, %v629_v42 }
 0x107   :  { %v1184_v46 = vpop.f32.mrb[8].mxu1  ;;  %v1121_v47 = vpop.f32.mrb[9].mxu0 }
 0x108   :  { %v1122_v48 = vadd.f32 %v1121_v47, %v1120_v44  ;;  %v1185_v49 = vpop.f32.mrb[9].mxu1  ;;  %v1123_v50 = vpop.f32.mrb[10].mxu0 }
 0x109   :  { %v1186_v51 = vadd.f32 %v1185_v49, %v1184_v46  ;;  %v1187_v52 = vpop.f32.mrb[10].mxu1  ;;  %v1124_v53 = vpop.f32.mrb[11].mxu0 }
 0x10a   :  { %v634_v54 = vadd.f32 %v1122_v48, %v1615_v14  ;;  %v1125_v55 = vadd.f32 %v1124_v53, %v1123_v50  ;;  %v1188_v56 = vpop.f32.mrb[11].mxu1 }
 0x10b   :  { %v1189_v57 = vadd.f32 %v1188_v56, %v1187_v52 }
 0x10c   :  { %v637_v58 = vadd.f32 %v1125_v55, %v1615_v14  ;;  %v1631_v59 = vadd.f32 %v1186_v51, %v634_v54 }
 0x10e   :  { %v1126_v60 = vpop.f32.mrb[12].mxu0  ;;  %v1633_v61 = vadd.f32 %v1189_v57, %v637_v58 }
 0x10f   :  { %v1190_v62 = vpop.f32.mrb[12].mxu1  ;;  %v1127_v63 = vpop.f32.mrb[13].mxu0 }
 0x110   :  { %v1128_v0 = vadd.f32 %v1127_v63, %v1126_v60  ;;  %v1191_v1 = vpop.f32.mrb[13].mxu1  ;;  %v1129_v2 = vpop.f32.mrb[14].mxu0 }
 0x111   :  { %v1192_v3 = vadd.f32 %v1191_v1, %v1190_v62  ;;  %v1193_v4 = vpop.f32.mrb[14].mxu1  ;;  %v1130_v5 = vpop.f32.mrb[15].mxu0 }
 0x112   :  { %v642_v6 = vadd.f32 %v1128_v0, %v1615_v14  ;;  %v1131_v7 = vadd.f32 %v1130_v5, %v1129_v2  ;;  %v1194_v8 = vpop.f32.mrb[15].mxu1 }
 0x113   :  { %v1195_v9 = vadd.f32 %v1194_v8, %v1193_v4 }
 0x114   :  { %v645_v10 = vadd.f32 %v1131_v7, %v1615_v14  ;;  %v1637_v11 = vadd.f32 %v1192_v3, %v642_v6 }
 0x116   :  { %v1132_v12 = vpop.f32.mrb[16].mxu0  ;;  %v1639_v13 = vadd.f32 %v1195_v9, %v645_v10 }
 0x117   :  { %v1196_v15 = vpop.f32.mrb[16].mxu1  ;;  %v1133_v16 = vpop.f32.mrb[17].mxu0 }
 0x118   :  { %v1134_v17 = vadd.f32 %v1133_v16, %v1132_v12  ;;  %v1197_v18 = vpop.f32.mrb[17].mxu1  ;;  %v1135_v19 = vpop.f32.mrb[18].mxu0 }
 0x119   :  { %v1198_v20 = vadd.f32 %v1197_v18, %v1196_v15  ;;  %v1199_v21 = vpop.f32.mrb[18].mxu1  ;;  %v1136_v22 = vpop.f32.mrb[19].mxu0 }
 0x11a   :  { %v650_v23 = vadd.f32 %v1134_v17, %v1615_v14  ;;  %v1137_v24 = vadd.f32 %v1136_v22, %v1135_v19  ;;  %v1200_v25 = vpop.f32.mrb[19].mxu1 }
 0x11b   :  { %v1201_v26 = vadd.f32 %v1200_v25, %v1199_v21 }
 0x11c   :  { %v653_v28 = vadd.f32 %v1137_v24, %v1615_v14  ;;  %v747_v30 = vadd.f32 %v1198_v20, %v650_v23 }
 0x11e   :  { %v1138_v31 = vpop.f32.mrb[20].mxu0  ;;  %v1643_v32 = vadd.f32 %v1201_v26, %v653_v28 }
 0x11f   :  { %v1202_v33 = vpop.f32.mrb[20].mxu1  ;;  %v1139_v34 = vpop.f32.mrb[21].mxu0 }
 0x120   :  { %v1140_v35 = vadd.f32 %v1139_v34, %v1138_v31  ;;  %v1203_v36 = vpop.f32.mrb[21].mxu1  ;;  %v1141_v37 = vpop.f32.mrb[22].mxu0 }
 0x121   :  { %v1204_v38 = vadd.f32 %v1203_v36, %v1202_v33  ;;  %v1205_v39 = vpop.f32.mrb[22].mxu1  ;;  %v1142_v40 = vpop.f32.mrb[23].mxu0 }
 0x122   :  { %v658_v41 = vadd.f32 %v1140_v35, %v1615_v14  ;;  %v1143_v42 = vadd.f32 %v1142_v40, %v1141_v37  ;;  %v1206_v44 = vpop.f32.mrb[23].mxu1 }
 0x123   :  { %v1207_v46 = vadd.f32 %v1206_v44, %v1205_v39 }
 0x124   :  { %v661_v47 = vadd.f32 %v1143_v42, %v1615_v14  ;;  %v755_v48 = vadd.f32 %v1204_v38, %v658_v41 }
 0x126   :  { %v1144_v49 = vpop.f32.mrb[24].mxu0  ;;  %v758_v50 = vadd.f32 %v1207_v46, %v661_v47 }
 0x127   :  { %v1208_v51 = vpop.f32.mrb[24].mxu1  ;;  %v1145_v52 = vpop.f32.mrb[25].mxu0 }
 0x128   :  { %v1146_v53 = vadd.f32 %v1145_v52, %v1144_v49  ;;  %v1209_v54 = vpop.f32.mrb[25].mxu1  ;;  %v1147_v55 = vpop.f32.mrb[26].mxu0 }
 0x129   :  { %v1210_v56 = vadd.f32 %v1209_v54, %v1208_v51  ;;  %v1211_v57 = vpop.f32.mrb[26].mxu1  ;;  %v1148_v58 = vpop.f32.mrb[27].mxu0 }
 0x12a   :  { %v666_v60 = vadd.f32 %v1146_v53, %v1615_v14  ;;  %v1149_v62 = vadd.f32 %v1148_v58, %v1147_v55  ;;  %v1212_v63 = vpop.f32.mrb[27].mxu1 }
 0x12b   :  { %v1213_v0 = vadd.f32 %v1212_v63, %v1211_v57 }
 0x12c   :  { %v669_v1 = vadd.f32 %v1149_v62, %v1615_v14  ;;  %v1649_v2 = vadd.f32 %v1210_v56, %v666_v60 }
 0x12e   :  { %v1150_v3 = vpop.f32.mrb[28].mxu0  ;;  %v1651_v4 = vadd.f32 %v1213_v0, %v669_v1 }
 0x12f   :  { %v1214_v5 = vpop.f32.mrb[28].mxu1  ;;  %v1151_v6 = vpop.f32.mrb[29].mxu0 }
 0x130   :  { %v1152_v7 = vadd.f32 %v1151_v6, %v1150_v3  ;;  %v1215_v8 = vpop.f32.mrb[29].mxu1  ;;  %v1153_v9 = vpop.f32.mrb[30].mxu0 }
 0x131   :  { %v1216_v10 = vadd.f32 %v1215_v8, %v1214_v5  ;;  %v1217_v12 = vpop.f32.mrb[30].mxu1  ;;  %v1154_v15 = vpop.f32.mrb[31].mxu0 }
 0x132   :  { %v674_v16 = vadd.f32 %v1152_v7, %v1615_v14  ;;  %v1155_v17 = vadd.f32 %v1154_v15, %v1153_v9  ;;  %v1218_v18 = vpop.f32.mrb[31].mxu1 }
 0x133   :  { %v1219_v19 = vadd.f32 %v1218_v18, %v1217_v12 }
 0x134   :  { %v677_v20 = vadd.f32 %v1155_v17, %v1615_v14  ;;  %v771_v21 = vadd.f32 %v1216_v10, %v674_v16 }
 0x136   :  { %v1242_v22 = vpop.f32.mrb[32].mxu0  ;;  %v774_v23 = vadd.f32 %v1219_v19, %v677_v20 }
 0x137   :  { %v820_v24 = vadd.f32 %v1242_v22, %v1625_v43  ;;  %v1250_v25 = vpop.f32.mrb[32].mxu1  ;;  %v811_v26 = vpop.f32.mrb[33].mxu0 }
 0x138   :  { %v852_v28 = vadd.f32 %v1250_v25, %v755_v48  ;;  %v812_v31 = vadd.f32 %v811_v26, %v1619_v27  ;;  %v843_v33 = vpop.f32.mrb[33].mxu1  ;;  %v1243_v34 = vpop.f32.mrb[34].mxu0 }
 0x139   :  { %v876_v35 = vmax.f32 %v820_v24, 0.0  ;;  %v844_v36 = vadd.f32 %v843_v33, %v747_v30  ;;  %v823_v37 = vadd.f32 %v1243_v34, %v1627_v45  ;;  %v1251_v38 = vpop.f32.mrb[34].mxu1  ;;  %v814_v39 = vpop.f32.mrb[35].mxu0 }
 0x13a   :  { %v884_v14 = vmax.f32 %v852_v28, 0.0  ;;  %v874_v40 = vmax.f32 %v812_v31, 0.0  ;;  %v855_v41 = vadd.f32 %v1251_v38, %v758_v50  ;;  %v815_v42 = vadd.f32 %v814_v39, %v1621_v29  ;;  %v846_v43 = vpop.f32.mrb[35].mxu1 }
 0x13b   :  { %v1078_v44 = vpack.c.bf16 %v876_v35, %v876_v35  ;;  %v882_v46 = vmax.f32 %v844_v36, 0.0  ;;  %v877_v47 = vmax.f32 %v823_v37, 0.0  ;;  %v847_v27 = vadd.f32 %v846_v43, %v1643_v32 }
 0x13c   :  { %v1086_v48 = vpack.c.bf16 %v884_v14, %v884_v14  ;;  %v1076_v49 = vpack.c.bf16 %v874_v40, %v874_v40  ;;  %v885_v51 = vmax.f32 %v855_v41, 0.0  ;;  %v875_v52 = vmax.f32 %v815_v42, 0.0 }
 0x13d   :  { %957 = vst.msk [vmem:[%s1733_s3 + $0x8] sm:$0xf] %vm954_vm1, %v1078_v44  ;;  %v1084_v45 = vpack.c.bf16 %v882_v46, %v882_v46  ;;  %v1079_v30 = vpack.c.bf16 %v877_v47, %v877_v47  ;;  %v883_v50 = vmax.f32 %v847_v27, 0.0 }
 0x13e   :  { %965 = vst.msk [vmem:[%s1733_s3 + $0x28] sm:$0xf] %vm954_vm1, %v1086_v48  ;;  %955 = vst.msk [vmem:[%s1733_s3] sm:$0xf] %vm954_vm1, %v1076_v49  ;;  %v1087_v29 = vpack.c.bf16 %v885_v51, %v885_v51  ;;  %v1077_v32 = vpack.c.bf16 %v875_v52, %v875_v52  ;;  %v1246_v53 = vpop.f32.mrb[36].mxu0 }
 0x13f   :  { %963 = vst.msk [vmem:[%s1733_s3 + $0x20] sm:$0xf] %vm954_vm1, %v1084_v45  ;;  %958 = vst.msk [vmem:[%s1733_s3 + $0xc] sm:$0xf] %vm954_vm1, %v1079_v30  ;;  %v1085_v54 = vpack.c.bf16 %v883_v50, %v883_v50  ;;  %v836_v55 = vadd.f32 %v1246_v53, %v1637_v11  ;;  %v1254_v56 = vpop.f32.mrb[36].mxu1  ;;  %v827_v57 = vpop.f32.mrb[37].mxu0 }
 0x140   :  { %966 = vst.msk [vmem:[%s1733_s3 + $0x2c] sm:$0xf] %vm954_vm1, %v1087_v29  ;;  %956 = vst.msk [vmem:[%s1733_s3 + $0x4] sm:$0xf] %vm954_vm1, %v1077_v32  ;;  %v868_v58 = vadd.f32 %v1254_v56, %v771_v21  ;;  %v828_v60 = vadd.f32 %v827_v57, %v1631_v59  ;;  %v859_v62 = vpop.f32.mrb[37].mxu1  ;;  %v1247_v63 = vpop.f32.mrb[38].mxu0 }
 0x141   :  { %964 = vst.msk [vmem:[%s1733_s3 + $0x24] sm:$0xf] %vm954_vm1, %v1085_v54  ;;  %v880_v11 = vmax.f32 %v836_v55, 0.0  ;;  %v860_v0 = vadd.f32 %v859_v62, %v1649_v2  ;;  %v839_v1 = vadd.f32 %v1247_v63, %v1639_v13  ;;  %v1255_v3 = vpop.f32.mrb[38].mxu1  ;;  %v830_v5 = vpop.f32.mrb[39].mxu0 }
 0x142   :  { %v888_v6 = vmax.f32 %v868_v58, 0.0  ;;  %v878_v7 = vmax.f32 %v828_v60, 0.0  ;;  %v871_v8 = vadd.f32 %v1255_v3, %v774_v23  ;;  %v831_v9 = vadd.f32 %v830_v5, %v1633_v61  ;;  %v862_v59 = vpop.f32.mrb[39].mxu1 }
 0x143   :  { %v1082_v10 = vpack.c.bf16 %v880_v11, %v880_v11  ;;  %v886_v12 = vmax.f32 %v860_v0, 0.0  ;;  %v881_v15 = vmax.f32 %v839_v1, 0.0  ;;  %v863_v16 = vadd.f32 %v862_v59, %v1651_v4 }
 0x144   :  { %v1090_v17 = vpack.c.bf16 %v888_v6, %v888_v6  ;;  %v1080_v18 = vpack.c.bf16 %v878_v7, %v878_v7  ;;  %v889_v19 = vmax.f32 %v871_v8, 0.0  ;;  %v879_v20 = vmax.f32 %v831_v9, 0.0 }
 0x145   :  { %961 = vst.msk [vmem:[%s1733_s3 + $0x18] sm:$0xf] %vm954_vm1, %v1082_v10  ;;  %v1088_v13 = vpack.c.bf16 %v886_v12, %v886_v12  ;;  %v1083_v2 = vpack.c.bf16 %v881_v15, %v881_v15  ;;  %v887_v21 = vmax.f32 %v863_v16, 0.0 }
 0x146   :  { %969 = vst.msk [vmem:[%s1733_s3 + $0x38] sm:$0xf] %vm954_vm1, %v1090_v17  ;;  %959 = vst.msk [vmem:[%s1733_s3 + $0x10] sm:$0xf] %vm954_vm1, %v1080_v18  ;;  %v1091_v61 = vpack.c.bf16 %v889_v19, %v889_v19  ;;  %v1081_v4 = vpack.c.bf16 %v879_v20, %v879_v20 }
 0x147   :  { %967 = vst.msk [vmem:[%s1733_s3 + $0x30] sm:$0xf] %vm954_vm1, %v1088_v13  ;;  %962 = vst.msk [vmem:[%s1733_s3 + $0x1c] sm:$0xf] %vm954_vm1, %v1083_v2  ;;  %v1089_v22 = vpack.c.bf16 %v887_v21, %v887_v21 }
 0x148   :  { %970 = vst.msk [vmem:[%s1733_s3 + $0x3c] sm:$0xf] %vm954_vm1, %v1091_v61  ;;  %960 = vst.msk [vmem:[%s1733_s3 + $0x14] sm:$0xf] %vm954_vm1, %v1081_v4 }
 0x149   :  { %968 = vst.msk [vmem:[%s1733_s3 + $0x34] sm:$0xf] %vm954_vm1, %v1089_v22 }

// kernel: res_model_forward.25
= control target key start
LH: loop header
LB: loop body
LE: loop exit
PB: predicated region body
PF: predicated region fallthrough
CT: control target
= control target key end

     0   :  { %vm561_vm0 = vcmask 523264   ;;  %vm1005_vm1 = vcmask 519168   ;;  %s1891_s1 = inlined_call_operand.vmem [shape: bf16[576,64], index: 1, kind: input, shape index: {}]   ;;  %s1892_s0 = inlined_call_operand.vmem [shape: bf16[128,576], index: 0, kind: input, shape index: {}]   ;;  %s1893_s2 = inlined_call_operand.vmem [shape: f32[1,64], index: 2, kind: input, shape index: {}]   ;;  %s1894_s3 = inlined_call_operand.vmem [shape: bf16[128,64], index: 3, kind: input, shape index: {}]   ;;  %s1895_s4 = inlined_call_operand.vmem [shape: bf16[128,64], index: 4, kind: output, shape index: {}]  }
   0x1   :  { %v1354_v0 = vld [vmem:[%s1891_s1 + $0x40] sm:$0xff]   ;;  %v1358_v4 = vld [vmem:[%s1891_s1 + $0x48] sm:$0xff]   ;;  %v1362_v8 = vld [vmem:[%s1891_s1 + $0x50] sm:$0xff]  }
   0x2   :  { %v1355_v1 = vld [vmem:[%s1891_s1 + $0xc0] sm:$0xff]   ;;  %1182 = vmatprep.subr.bf16.mxu0 %v1354_v0  ;;  %v1359_v5 = vld [vmem:[%s1891_s1 + $0xc8] sm:$0xff]   ;;  %v1363_v9 = vld [vmem:[%s1891_s1 + $0xd0] sm:$0xff]  }
   0x3   :  { %v1356_v2 = vld [vmem:[%s1891_s1] sm:$0xff]   ;;  %1246 = vmatprep.subr.bf16.mxu1 %v1355_v1  ;;  %v1360_v6 = vld [vmem:[%s1891_s1 + $0x8] sm:$0xff]   ;;  %v1364_v10 = vld [vmem:[%s1891_s1 + $0x10] sm:$0xff]  }
   0x4   :  { %v1357_v3 = vld [vmem:[%s1891_s1 + $0x80] sm:$0xff]   ;;  %1183 = vmatpush3.bf16.msra.mxu0 %v1356_v2  ;;  %v1361_v7 = vld [vmem:[%s1891_s1 + $0x88] sm:$0xff]   ;;  %v1365_v11 = vld [vmem:[%s1891_s1 + $0x90] sm:$0xff]  }
   0x5   :  { %1247 = vmatpush3.bf16.msra.mxu1 %v1357_v3  ;;  %1184 = vmatprep.subr.bf16.mxu0 %v1358_v4  ;;  %v1366_v12 = vld [vmem:[%s1891_s1 + $0x58] sm:$0xff]   ;;  %v1370_v16 = vld [vmem:[%s1891_s1 + $0x60] sm:$0xff]   ;;  %v1374_v20 = vld [vmem:[%s1891_s1 + $0x68] sm:$0xff]  }
   0x6   :  { %1248 = vmatprep.subr.bf16.mxu1 %v1359_v5  ;;  %v1367_v13 = vld [vmem:[%s1891_s1 + $0xd8] sm:$0xff]   ;;  %v1371_v17 = vld [vmem:[%s1891_s1 + $0xe0] sm:$0xff]   ;;  %v1375_v21 = vld [vmem:[%s1891_s1 + $0xe8] sm:$0xff]  }
   0x7   :  { %v1368_v14 = vld [vmem:[%s1891_s1 + $0x18] sm:$0xff]   ;;  %v1372_v18 = vld [vmem:[%s1891_s1 + $0x20] sm:$0xff]   ;;  %v1376_v22 = vld [vmem:[%s1891_s1 + $0x28] sm:$0xff]  }
   0x8   :  { %1185 = vmatpush3.bf16.msra.mxu0 %v1360_v6  ;;  %v1369_v15 = vld [vmem:[%s1891_s1 + $0x98] sm:$0xff]   ;;  %v1373_v19 = vld [vmem:[%s1891_s1 + $0xa0] sm:$0xff]   ;;  %v1377_v23 = vld [vmem:[%s1891_s1 + $0xa8] sm:$0xff]  }
   0x9   :  { %1249 = vmatpush3.bf16.msra.mxu1 %v1361_v7  ;;  %1186 = vmatprep.subr.bf16.mxu0 %v1362_v8  ;;  %v1378_v24 = vld [vmem:[%s1891_s1 + $0x70] sm:$0xff]   ;;  %v1382_v28 = vld [vmem:[%s1891_s1 + $0x78] sm:$0xff]   ;;  %v1391_v35 = vld [vmem:[%s1892_s0 + $0xc] ss:$20 sps:$4 sm:$0xff]  }
   0xa   :  { %1250 = vmatprep.subr.bf16.mxu1 %v1363_v9  ;;  %v1379_v25 = vld [vmem:[%s1891_s1 + $0xf0] sm:$0xff]   ;;  %v1383_v29 = vld [vmem:[%s1891_s1 + $0xf8] sm:$0xff]   ;;  %v1392_v36 = vld [vmem:[%s1891_s1 + $0x100] sm:$0xff]   ;;  %715 = vmatprep.mubr.bf16.mxu1 %v1391_v35 }
   0xb   :  { %v1380_v26 = vld [vmem:[%s1891_s1 + $0x30] sm:$0xff]   ;;  %v1384_v30 = vld [vmem:[%s1891_s1 + $0x38] sm:$0xff]   ;;  %v1393_v37 = vld [vmem:[%s1892_s0 + $0x2c] ss:$20 sps:$4 sm:$0xff]  }
   0xc   :  { %1187 = vmatpush3.bf16.msra.mxu0 %v1364_v10  ;;  %v1381_v27 = vld [vmem:[%s1891_s1 + $0xb0] sm:$0xff]   ;;  %v1385_v31 = vld [vmem:[%s1891_s1 + $0xb8] sm:$0xff]   ;;  %v1405_v42 = vld [vmem:[%s1891_s1 + $0x108] sm:$0xff]  }
   0xd   :  { %1251 = vmatpush3.bf16.msra.mxu1 %v1365_v11  ;;  %1188 = vmatprep.subr.bf16.mxu0 %v1366_v12  ;;  %v1386_v32 = vld [vmem:[%s1892_s0] ss:$20 sps:$4 sm:$0xff]   ;;  %v1388_v33 = vld [vmem:[%s1892_s0 + $0x4] ss:$20 sps:$4 sm:$0xff]   ;;  %v1389_v34 = vld [vmem:[%s1892_s0 + $0x8] ss:$20 sps:$4 sm:$0xff]  }
   0xe   :  { %1252 = vmatprep.subr.bf16.mxu1 %v1367_v13  ;;  %618 = vmatprep.mubr.bf16.mxu0 %v1388_v33  ;;  %v1395_v38 = vld [vmem:[%s1892_s0 + $0x34] ss:$20 sps:$4 sm:$0xff]   ;;  %v1398_v40 = vld [vmem:[%s1892_s0 + $0x30] ss:$20 sps:$4 sm:$0xff]   ;;  %v1404_v45 = vld [vmem:[%s1892_s0 + $0x58] ss:$20 sps:$4 sm:$0xff]  }
   0xf   :  { %v1397_v39 = vld [vmem:[%s1892_s0 + $0x28] ss:$20 sps:$4 sm:$0xff]   ;;  %v1403_v44 = vld [vmem:[%s1892_s0 + $0x50] ss:$20 sps:$4 sm:$0xff]   ;;  %v1410_v50 = vld [vmem:[%s1892_s0 + $0x78] ss:$20 sps:$4 sm:$0xff]  }
  0x10   :  { %1189 = vmatpush3.bf16.msra.mxu0 %v1368_v14  ;;  %v1399_v41 = vld [vmem:[%s1892_s0 + $0x54] ss:$20 sps:$4 sm:$0xff]   ;;  %v1401_v43 = vld [vmem:[%s1892_s0 + $0x5c] ss:$20 sps:$4 sm:$0xff]   ;;  %v1408_v48 = vld [vmem:[%s1892_s0 + $0x84] ss:$20 sps:$4 sm:$0xff]  }
  0x11   :  { %1253 = vmatpush3.bf16.msra.mxu1 %v1369_v15  ;;  %1190 = vmatprep.subr.bf16.mxu0 %v1370_v16  ;;  %v1418_v46 = vld [vmem:[%s1891_s1 + $0x110] sm:$0xff]   ;;  %v1431_v49 = vld [vmem:[%s1891_s1 + $0x118] sm:$0xff]   ;;  %v1414_v53 = vld [vmem:[%s1892_s0 + $0xac] ss:$20 sps:$4 sm:$0xff]  }
  0x12   :  { %1254 = vmatprep.subr.bf16.mxu1 %v1371_v17  ;;  %v1406_v47 = vld [vmem:[%s1892_s0 + $0x7c] ss:$20 sps:$4 sm:$0xff]   ;;  %v1411_v51 = vld [vmem:[%s1892_s0 + $0x80] ss:$20 sps:$4 sm:$0xff]   ;;  %v1412_v52 = vld [vmem:[%s1892_s0 + $0xa4] ss:$20 sps:$4 sm:$0xff]  }
  0x13   :  { %v1416_v54 = vld [vmem:[%s1892_s0 + $0xa0] ss:$20 sps:$4 sm:$0xff]   ;;  %v1417_v55 = vld [vmem:[%s1892_s0 + $0xa8] ss:$20 sps:$4 sm:$0xff]   ;;  %v1424_v59 = vld [vmem:[%s1892_s0 + $0xd0] ss:$20 sps:$4 sm:$0xff]  }
  0x14   :  { %1191 = vmatpush3.bf16.msra.mxu0 %v1372_v18  ;;  %v1419_v56 = vld [vmem:[%s1892_s0 + $0xcc] ss:$20 sps:$4 sm:$0xff]   ;;  %v1421_v57 = vld [vmem:[%s1892_s0 + $0xd4] ss:$20 sps:$4 sm:$0xff]   ;;  %v1427_v61 = vld [vmem:[%s1892_s0 + $0xfc] ss:$20 sps:$4 sm:$0xff]  }
  0x15   :  { %1255 = vmatpush3.bf16.msra.mxu1 %v1373_v19  ;;  %1192 = vmatprep.subr.bf16.mxu0 %v1374_v20  ;;  %v1423_v58 = vld [vmem:[%s1892_s0 + $0xc8] ss:$20 sps:$4 sm:$0xff]   ;;  %v1429_v62 = vld [vmem:[%s1892_s0 + $0xf0] ss:$20 sps:$4 sm:$0xff]   ;;  %v1430_v63 = vld [vmem:[%s1892_s0 + $0xf8] ss:$20 sps:$4 sm:$0xff]  }
  0x16   :  { %1256 = vmatprep.subr.bf16.mxu1 %v1375_v21  ;;  %v1425_v60 = vld [vmem:[%s1892_s0 + $0xf4] ss:$20 sps:$4 sm:$0xff]   ;;  %v1432_v0 = vld [vmem:[%s1892_s0 + $0x11c] ss:$20 sps:$4 sm:$0xff]   ;;  %v1434_v1 = vld [vmem:[%s1892_s0 + $0x124] ss:$20 sps:$4 sm:$0xff]  }
  0x17   :  { %v1436_v2 = vld [vmem:[%s1892_s0 + $0x118] ss:$20 sps:$4 sm:$0xff]   ;;  %v1437_v3 = vld [vmem:[%s1892_s0 + $0x120] ss:$20 sps:$4 sm:$0xff]   ;;  %v1438_v4 = vld [vmem:[%s1892_s0 + $0x10] ss:$20 sps:$4 sm:$0xff]  }
  0x18   :  { %1193 = vmatpush3.bf16.msra.mxu0 %v1376_v22  ;;  %v1439_v5 = vld [vmem:[%s1892_s0 + $0xb0] ss:$20 sps:$4 sm:$0xff]   ;;  %v1440_v6 = vld [vmem:[%s1892_s0 + $0x38] ss:$20 sps:$4 sm:$0xff]   ;;  %v1442_v8 = vld [vmem:[%s1892_s0 + $0x60] ss:$20 sps:$4 sm:$0xff]  }
  0x19   :  { %1257 = vmatpush3.bf16.msra.mxu1 %v1377_v23  ;;  %1194 = vmatprep.subr.bf16.mxu0 %v1378_v24  ;;  %v1441_v7 = vld [vmem:[%s1892_s0 + $0xd8] ss:$20 sps:$4 sm:$0xff]   ;;  %v1443_v9 = vld [vmem:[%s1892_s0 + $0x100] ss:$20 sps:$4 sm:$0xff]   ;;  %v1444_v10 = vld [vmem:[%s1892_s0 + $0x88] ss:$20 sps:$4 sm:$0xff]  }
  0x1a   :  { %1258 = vmatprep.subr.bf16.mxu1 %v1379_v25  ;;  %v1445_v11 = vld [vmem:[%s1892_s0 + $0x128] ss:$20 sps:$4 sm:$0xff]   ;;  %v1710_v14 = vld [vmem:[%s1893_s2] ss:$0 sm:$0xff] }
  0x1c   :  { %1195 = vmatpush3.bf16.msra.mxu0 %v1380_v26 }
  0x1d   :  { %1259 = vmatpush3.bf16.msra.mxu1 %v1381_v27  ;;  %1196 = vmatprep.subr.bf16.mxu0 %v1382_v28 }
  0x1e   :  { %1260 = vmatprep.subr.bf16.mxu1 %v1383_v29 }
  0x20   :  { %1197 = vmatpush3.bf16.msra.mxu0 %v1384_v30 }
  0x21   :  { %1261 = vmatpush3.bf16.msra.mxu1 %v1385_v31  ;;  %1322 = vmatprep.subr.bf16.mxu0 %v1392_v36 }
  0x22   :  { %1346 = vmatprep.subr.bf16.mxu1 %v1392_v36 }
  0x23   :  { %619 = vmatmul.mubr.bf16.vlgmr.msra.gmra.mrb[0].mxu0 %v1386_v32 }
  0x24   :  { %716 = vmatmul.mubr.bf16.vlgmr.msra.gmra.mrb[0].mxu1 %v1389_v34  ;;  %1323 = vmatpush3.bf16.msra.mxu0 %v1392_v36 }
  0x25   :  { %1350 = vmatpush3.bf16.msra.mxu1 %v1392_v36  ;;  %626 = vmatprep.mubr.bf16.mxu0 %v1393_v37 }
  0x26   :  { %723 = vmatprep.mubr.bf16.mxu1 %v1395_v38  ;;  %1324 = vmatprep.subr.bf16.mxu0 %v1405_v42 }
  0x27   :  { %1347 = vmatprep.subr.bf16.mxu1 %v1405_v42 }
  0x28   :  { %1325 = vmatpush3.bf16.msra.mxu0 %v1405_v42 }
  0x29   :  { %1351 = vmatpush3.bf16.msra.mxu1 %v1405_v42  ;;  %1326 = vmatprep.subr.bf16.mxu0 %v1418_v46 }
  0x2a   :  { %1348 = vmatprep.subr.bf16.mxu1 %v1418_v46 }
  0x2b   :  { %627 = vmatmul.mubr.bf16.gmra.mrb[4].mxu0 %v1397_v39 }
  0x2c   :  { %724 = vmatmul.mubr.bf16.gmra.mrb[4].mxu1 %v1398_v40  ;;  %634 = vmatprep.mubr.bf16.mxu0 %v1399_v41 }
  0x2d   :  { %731 = vmatprep.mubr.bf16.mxu1 %v1401_v43  ;;  %1327 = vmatpush3.bf16.msra.mxu0 %v1418_v46 }
  0x2e   :  { %1352 = vmatpush3.bf16.msra.mxu1 %v1418_v46  ;;  %1328 = vmatprep.subr.bf16.mxu0 %v1431_v49 }
  0x2f   :  { %1349 = vmatprep.subr.bf16.mxu1 %v1431_v49 }
  0x31   :  { %1329 = vmatpush3.bf16.msra.mxu0 %v1431_v49 }
  0x32   :  { %1353 = vmatpush3.bf16.msra.mxu1 %v1431_v49 }
  0x33   :  { %635 = vmatmul.mubr.bf16.gmra.mrb[8].mxu0 %v1403_v44 }
  0x34   :  { %732 = vmatmul.mubr.bf16.gmra.mrb[8].mxu1 %v1404_v45  ;;  %642 = vmatprep.mubr.bf16.mxu0 %v1406_v47 }
  0x35   :  { %739 = vmatprep.mubr.bf16.mxu1 %v1408_v48 }
  0x3b   :  { %643 = vmatmul.mubr.bf16.gmra.mrb[12].mxu0 %v1410_v50 }
  0x3c   :  { %740 = vmatmul.mubr.bf16.gmra.mrb[12].mxu1 %v1411_v51  ;;  %650 = vmatprep.mubr.bf16.mxu0 %v1412_v52 }
  0x3d   :  { %747 = vmatprep.mubr.bf16.mxu1 %v1414_v53 }
  0x43   :  { %651 = vmatmul.mubr.bf16.gmra.mrb[16].mxu0 %v1416_v54 }
  0x44   :  { %748 = vmatmul.mubr.bf16.gmra.mrb[16].mxu1 %v1417_v55  ;;  %658 = vmatprep.mubr.bf16.mxu0 %v1419_v56 }
  0x45   :  { %755 = vmatprep.mubr.bf16.mxu1 %v1421_v57 }
  0x4b   :  { %659 = vmatmul.mubr.bf16.gmra.mrb[20].mxu0 %v1423_v58 }
  0x4c   :  { %756 = vmatmul.mubr.bf16.gmra.mrb[20].mxu1 %v1424_v59  ;;  %666 = vmatprep.mubr.bf16.mxu0 %v1425_v60 }
  0x4d   :  { %763 = vmatprep.mubr.bf16.mxu1 %v1427_v61 }
  0x53   :  { %667 = vmatmul.mubr.bf16.gmra.mrb[24].mxu0 %v1429_v62 }
  0x54   :  { %764 = vmatmul.mubr.bf16.gmra.mrb[24].mxu1 %v1430_v63  ;;  %674 = vmatprep.mubr.bf16.mxu0 %v1432_v0 }
  0x55   :  { %771 = vmatprep.mubr.bf16.mxu1 %v1434_v1 }
  0x5b   :  { %675 = vmatmul.mubr.bf16.gmra.mrb[28].mxu0 %v1436_v2 }
  0x5c   :  { %772 = vmatmul.mubr.bf16.gmra.mrb[28].mxu1 %v1437_v3  ;;  %1330 = vmatprep.mubr.msk.bf16.mxu0 %vm561_vm0, %v1438_v4 }
  0x5d   :  { %1338 = vmatprep.mubr.msk.bf16.mxu1 %vm561_vm0, %v1439_v5 }
  0x63   :  { %1331 = vmatmul.mubr.msk.bf16.vlgmr.msra.gmra.mrb[32].mxu0 %vm561_vm0, %v1440_v6 }
  0x64   :  { %1339 = vmatmul.mubr.msk.bf16.vlgmr.msra.gmra.mrb[32].mxu1 %vm561_vm0, %v1441_v7  ;;  %1334 = vmatprep.mubr.msk.bf16.mxu0 %vm561_vm0, %v1442_v8 }
  0x65   :  { %1342 = vmatprep.mubr.msk.bf16.mxu1 %vm561_vm0, %v1443_v9 }
  0x6b   :  { %1335 = vmatmul.mubr.msk.bf16.gmra.mrb[36].mxu0 %vm561_vm0, %v1444_v10 }
  0x6c   :  { %1343 = vmatmul.mubr.msk.bf16.gmra.mrb[36].mxu1 %vm561_vm0, %v1445_v11 }
  0xf6   :  { %v1198_v12 = vpop.f32.mrb[0].mxu0 }
  0xf7   :  { %v1262_v13 = vpop.f32.mrb[0].mxu1  ;;  %v1199_v15 = vpop.f32.mrb[1].mxu0 }
  0xf8   :  { %v1200_v16 = vadd.f32 %v1199_v15, %v1198_v12  ;;  %v1263_v17 = vpop.f32.mrb[1].mxu1  ;;  %v1201_v18 = vpop.f32.mrb[2].mxu0 }
  0xf9   :  { %v1264_v19 = vadd.f32 %v1263_v17, %v1262_v13  ;;  %v1265_v20 = vpop.f32.mrb[2].mxu1  ;;  %v1202_v21 = vpop.f32.mrb[3].mxu0 }
  0xfa   :  { %v621_v22 = vadd.f32 %v1200_v16, %v1710_v14  ;;  %v1203_v23 = vadd.f32 %v1202_v21, %v1201_v18  ;;  %v1266_v24 = vpop.f32.mrb[3].mxu1 }
  0xfb   :  { %v1267_v25 = vadd.f32 %v1266_v24, %v1265_v20 }
  0xfc   :  { %v624_v26 = vadd.f32 %v1203_v23, %v1710_v14  ;;  %v1714_v27 = vadd.f32 %v1264_v19, %v621_v22 }
  0xfe   :  { %v1204_v28 = vpop.f32.mrb[4].mxu0  ;;  %v1716_v29 = vadd.f32 %v1267_v25, %v624_v26 }
  0xff   :  { %v1268_v30 = vpop.f32.mrb[4].mxu1  ;;  %v1205_v31 = vpop.f32.mrb[5].mxu0 }
 0x100   :  { %v1206_v32 = vadd.f32 %v1205_v31, %v1204_v28  ;;  %v1269_v33 = vpop.f32.mrb[5].mxu1  ;;  %v1207_v34 = vpop.f32.mrb[6].mxu0 }
 0x101   :  { %v1270_v35 = vadd.f32 %v1269_v33, %v1268_v30  ;;  %v1271_v36 = vpop.f32.mrb[6].mxu1  ;;  %v1208_v37 = vpop.f32.mrb[7].mxu0 }
 0x102   :  { %v629_v38 = vadd.f32 %v1206_v32, %v1710_v14  ;;  %v1209_v39 = vadd.f32 %v1208_v37, %v1207_v34  ;;  %v1272_v40 = vpop.f32.mrb[7].mxu1 }
 0x103   :  { %v1273_v41 = vadd.f32 %v1272_v40, %v1271_v36 }
 0x104   :  { %v632_v42 = vadd.f32 %v1209_v39, %v1710_v14  ;;  %v1720_v43 = vadd.f32 %v1270_v35, %v629_v38 }
 0x106   :  { %v1210_v44 = vpop.f32.mrb[8].mxu0  ;;  %v1722_v45 = vadd.f32 %v1273_v41, %v632_v42 }
 0x107   :  { %v1274_v46 = vpop.f32.mrb[8].mxu1  ;;  %v1211_v47 = vpop.f32.mrb[9].mxu0 }
 0x108   :  { %v1212_v48 = vadd.f32 %v1211_v47, %v1210_v44  ;;  %v1275_v49 = vpop.f32.mrb[9].mxu1  ;;  %v1213_v50 = vpop.f32.mrb[10].mxu0 }
 0x109   :  { %v1276_v51 = vadd.f32 %v1275_v49, %v1274_v46  ;;  %v1277_v52 = vpop.f32.mrb[10].mxu1  ;;  %v1214_v53 = vpop.f32.mrb[11].mxu0 }
 0x10a   :  { %v637_v54 = vadd.f32 %v1212_v48, %v1710_v14  ;;  %v1215_v55 = vadd.f32 %v1214_v53, %v1213_v50  ;;  %v1278_v56 = vpop.f32.mrb[11].mxu1 }
 0x10b   :  { %v1279_v57 = vadd.f32 %v1278_v56, %v1277_v52 }
 0x10c   :  { %v640_v58 = vadd.f32 %v1215_v55, %v1710_v14  ;;  %v1726_v59 = vadd.f32 %v1276_v51, %v637_v54 }
 0x10e   :  { %v1216_v60 = vpop.f32.mrb[12].mxu0  ;;  %v1728_v61 = vadd.f32 %v1279_v57, %v640_v58 }
 0x10f   :  { %v1280_v62 = vpop.f32.mrb[12].mxu1  ;;  %v1217_v63 = vpop.f32.mrb[13].mxu0 }
 0x110   :  { %v1218_v0 = vadd.f32 %v1217_v63, %v1216_v60  ;;  %v1281_v1 = vpop.f32.mrb[13].mxu1  ;;  %v1219_v2 = vpop.f32.mrb[14].mxu0 }
 0x111   :  { %v1282_v3 = vadd.f32 %v1281_v1, %v1280_v62  ;;  %v1283_v4 = vpop.f32.mrb[14].mxu1  ;;  %v1220_v5 = vpop.f32.mrb[15].mxu0 }
 0x112   :  { %v645_v6 = vadd.f32 %v1218_v0, %v1710_v14  ;;  %v1221_v7 = vadd.f32 %v1220_v5, %v1219_v2  ;;  %v1284_v8 = vpop.f32.mrb[15].mxu1 }
 0x113   :  { %v1285_v9 = vadd.f32 %v1284_v8, %v1283_v4 }
 0x114   :  { %v648_v10 = vadd.f32 %v1221_v7, %v1710_v14  ;;  %v1732_v11 = vadd.f32 %v1282_v3, %v645_v6 }
 0x116   :  { %v1222_v12 = vpop.f32.mrb[16].mxu0  ;;  %v1734_v13 = vadd.f32 %v1285_v9, %v648_v10  ;;  %v1175_v10 = vld [vmem:[%s1894_s3 + $0x8] sm:$0xff]  }
 0x117   :  { %v1286_v15 = vpop.f32.mrb[16].mxu1  ;;  %v1223_v16 = vpop.f32.mrb[17].mxu0 }
 0x118   :  { %v1224_v17 = vadd.f32 %v1223_v16, %v1222_v12  ;;  %v1287_v18 = vpop.f32.mrb[17].mxu1  ;;  %v1225_v19 = vpop.f32.mrb[18].mxu0  ;;  %v1179_v12 = vld [vmem:[%s1894_s3 + $0x28] sm:$0xff]  }
 0x119   :  { %v1288_v20 = vadd.f32 %v1287_v18, %v1286_v15  ;;  %v1289_v21 = vpop.f32.mrb[18].mxu1  ;;  %v1226_v22 = vpop.f32.mrb[19].mxu0  ;;  %v1144_v18 = vld [vmem:[%s1894_s3] sm:$0xff]  }
 0x11a   :  { %v653_v23 = vadd.f32 %v1224_v17, %v1710_v14  ;;  %v1227_v24 = vadd.f32 %v1226_v22, %v1225_v19  ;;  %v1290_v25 = vpop.f32.mrb[19].mxu1  ;;  %v1178_v19 = vld [vmem:[%s1894_s3 + $0x20] sm:$0xff]  }
 0x11b   :  { %v1291_v26 = vadd.f32 %v1290_v25, %v1289_v21  ;;  %v1165_v25 = vunpack.c.l.bf16 %v1179_v12 }
 0x11c   :  { %v656_v28 = vadd.f32 %v1227_v24, %v1710_v14  ;;  %v1738_v30 = vadd.f32 %v1288_v20, %v653_v23  ;;  %v1149_v24 = vunpack.c.l.bf16 %v1175_v10 }
 0x11e   :  { %v1228_v31 = vpop.f32.mrb[20].mxu0  ;;  %v1740_v32 = vadd.f32 %v1291_v26, %v656_v28  ;;  %v1768_v26 = vld [vmem:[%s1894_s3 + $0x18] sm:$0xff]  }
 0x11f   :  { %v1292_v33 = vpop.f32.mrb[20].mxu1  ;;  %v1229_v34 = vpop.f32.mrb[21].mxu0  ;;  %v1773_v28 = vld [vmem:[%s1894_s3 + $0x38] sm:$0xff]  }
 0x120   :  { %v1230_v35 = vadd.f32 %v1229_v34, %v1228_v31  ;;  %v1293_v36 = vpop.f32.mrb[21].mxu1  ;;  %v1231_v37 = vpop.f32.mrb[22].mxu0  ;;  %v1161_v34 = vunpack.c.l.bf16 %v1178_v19 }
 0x121   :  { %v1294_v38 = vadd.f32 %v1293_v36, %v1292_v33  ;;  %v1295_v39 = vpop.f32.mrb[22].mxu1  ;;  %v1232_v40 = vpop.f32.mrb[23].mxu0  ;;  %v1145_v33 = vunpack.c.l.bf16 %v1144_v18  ;;  %v1781_v36 = vld [vmem:[%s1894_s3 + $0x10] sm:$0xff]  }
 0x122   :  { %v661_v41 = vadd.f32 %v1230_v35, %v1710_v14  ;;  %v1233_v42 = vadd.f32 %v1232_v40, %v1231_v37  ;;  %v1296_v44 = vpop.f32.mrb[23].mxu1  ;;  %v1786_v37 = vld [vmem:[%s1894_s3 + $0x30] sm:$0xff]   ;;  %v1146_v40 = vunpack.c.h.bf16 %v1144_v18 }
 0x123   :  { %v1297_v46 = vadd.f32 %v1296_v44, %v1295_v39  ;;  %v1166_v39 = vunpack.c.h.bf16 %v1179_v12  ;;  %v1173_v44 = vunpack.c.l.bf16 %v1773_v28 }
 0x124   :  { %v664_v47 = vadd.f32 %v1233_v42, %v1710_v14  ;;  %v758_v48 = vadd.f32 %v1294_v38, %v661_v41  ;;  %v1150_v38 = vunpack.c.h.bf16 %v1175_v10  ;;  %v1162_v41 = vunpack.c.h.bf16 %v1178_v19 }
 0x126   :  { %v1234_v49 = vpop.f32.mrb[24].mxu0  ;;  %v1744_v50 = vadd.f32 %v1297_v46, %v664_v47 }
 0x127   :  { %v1298_v51 = vpop.f32.mrb[24].mxu1  ;;  %v1235_v52 = vpop.f32.mrb[25].mxu0 }
 0x128   :  { %v1236_v53 = vadd.f32 %v1235_v52, %v1234_v49  ;;  %v1299_v54 = vpop.f32.mrb[25].mxu1  ;;  %v1237_v55 = vpop.f32.mrb[26].mxu0  ;;  %v1153_v52 = vunpack.c.l.bf16 %v1781_v36 }
 0x129   :  { %v1300_v56 = vadd.f32 %v1299_v54, %v1298_v51  ;;  %v1301_v57 = vpop.f32.mrb[26].mxu1  ;;  %v1238_v58 = vpop.f32.mrb[27].mxu0  ;;  %v1158_v54 = vunpack.c.h.bf16 %v1768_v26 }
 0x12a   :  { %v669_v60 = vadd.f32 %v1236_v53, %v1710_v14  ;;  %v1239_v62 = vadd.f32 %v1238_v58, %v1237_v55  ;;  %v1302_v63 = vpop.f32.mrb[27].mxu1  ;;  %v1169_v53 = vunpack.c.l.bf16 %v1786_v37 }
 0x12b   :  { %v1303_v0 = vadd.f32 %v1302_v63, %v1301_v57 }
 0x12c   :  { %v672_v1 = vadd.f32 %v1239_v62, %v1710_v14  ;;  %v1748_v2 = vadd.f32 %v1300_v56, %v669_v60  ;;  %v1174_v60 = vunpack.c.h.bf16 %v1773_v28  ;;  %v1154_v62 = vunpack.c.h.bf16 %v1781_v36 }
 0x12e   :  { %v1240_v3 = vpop.f32.mrb[28].mxu0  ;;  %v1750_v4 = vadd.f32 %v1303_v0, %v672_v1 }
 0x12f   :  { %v1304_v5 = vpop.f32.mrb[28].mxu1  ;;  %v1241_v6 = vpop.f32.mrb[29].mxu0 }
 0x130   :  { %v1242_v7 = vadd.f32 %v1241_v6, %v1240_v3  ;;  %v1305_v8 = vpop.f32.mrb[29].mxu1  ;;  %v1243_v9 = vpop.f32.mrb[30].mxu0 }
 0x131   :  { %v1306_v15 = vadd.f32 %v1305_v8, %v1304_v5  ;;  %v1307_v16 = vpop.f32.mrb[30].mxu1  ;;  %v1244_v17 = vpop.f32.mrb[31].mxu0  ;;  %v1170_v5 = vunpack.c.h.bf16 %v1786_v37 }
 0x132   :  { %v677_v20 = vadd.f32 %v1242_v7, %v1710_v14  ;;  %v1245_v21 = vadd.f32 %v1244_v17, %v1243_v9  ;;  %v1308_v22 = vpop.f32.mrb[31].mxu1 }
 0x133   :  { %v1309_v23 = vadd.f32 %v1308_v22, %v1307_v16 }
 0x134   :  { %v680_v31 = vadd.f32 %v1245_v21, %v1710_v14  ;;  %v1776_v35 = vadd.f32 %v1306_v15, %v677_v20  ;;  %v1157_v14 = vunpack.c.l.bf16 %v1768_v26 }
 0x136   :  { %v1332_v42 = vpop.f32.mrb[32].mxu0  ;;  %v1790_v46 = vadd.f32 %v1309_v23, %v680_v31 }
 0x137   :  { %v823_v47 = vadd.f32 %v1332_v42, %v1720_v43  ;;  %v1340_v49 = vpop.f32.mrb[32].mxu1  ;;  %v814_v51 = vpop.f32.mrb[33].mxu0 }
 0x138   :  { %v855_v55 = vadd.f32 %v1340_v49, %v758_v48  ;;  %v815_v56 = vadd.f32 %v814_v51, %v1714_v27  ;;  %v846_v57 = vpop.f32.mrb[33].mxu1  ;;  %v1333_v58 = vpop.f32.mrb[34].mxu0 }
 0x139   :  { %v911_v63 = vadd.f32 %v1149_v24, %v823_v47  ;;  %v847_v43 = vadd.f32 %v846_v57, %v1738_v30  ;;  %v826_v0 = vadd.f32 %v1333_v58, %v1722_v45  ;;  %v1341_v1 = vpop.f32.mrb[34].mxu1  ;;  %v817_v3 = vpop.f32.mrb[35].mxu0 }
 0x13a   :  { %v919_v6 = vadd.f32 %v1165_v25, %v855_v55  ;;  %v909_v7 = vadd.f32 %v1145_v33, %v815_v56  ;;  %v858_v48 = vadd.f32 %v1341_v1, %v1744_v50  ;;  %v818_v27 = vadd.f32 %v817_v3, %v1716_v29  ;;  %v849_v8 = vpop.f32.mrb[35].mxu1 }
 0x13b   :  { %v927_v9 = vmax.f32 %v911_v63, 0.0  ;;  %v917_v10 = vadd.f32 %v1161_v34, %v847_v43  ;;  %v912_v12 = vadd.f32 %v1150_v38, %v826_v0  ;;  %v850_v15 = vadd.f32 %v849_v8, %v1740_v32 }
 0x13c   :  { %v935_v16 = vmax.f32 %v919_v6, 0.0  ;;  %v925_v30 = vmax.f32 %v909_v7, 0.0  ;;  %v920_v17 = vadd.f32 %v1166_v39, %v858_v48  ;;  %v910_v45 = vadd.f32 %v1146_v40, %v818_v27 }
 0x13d   :  { %v1129_v18 = vpack.c.bf16 %v927_v9, %v927_v9  ;;  %v933_v19 = vmax.f32 %v917_v10, 0.0  ;;  %v928_v20 = vmax.f32 %v912_v12, 0.0  ;;  %v918_v21 = vadd.f32 %v1162_v41, %v850_v15 }
 0x13e   :  { %v1137_v22 = vpack.c.bf16 %v935_v16, %v935_v16  ;;  %v1127_v23 = vpack.c.bf16 %v925_v30, %v925_v30  ;;  %v936_v24 = vmax.f32 %v920_v17, 0.0  ;;  %v926_v50 = vmax.f32 %v910_v45, 0.0  ;;  %v1336_v25 = vpop.f32.mrb[36].mxu0 }
 0x13f   :  { %1008 = vst.msk [vmem:[%s1895_s4 + $0x8] sm:$0xf] %vm1005_vm1, %v1129_v18  ;;  %v1135_v29 = vpack.c.bf16 %v933_v19, %v933_v19  ;;  %v1130_v32 = vpack.c.bf16 %v928_v20, %v928_v20  ;;  %v934_v31 = vmax.f32 %v918_v21, 0.0  ;;  %v839_v33 = vadd.f32 %v1336_v25, %v1732_v11  ;;  %v1344_v34 = vpop.f32.mrb[36].mxu1  ;;  %v830_v38 = vpop.f32.mrb[37].mxu0 }
 0x140   :  { %1016 = vst.msk [vmem:[%s1895_s4 + $0x28] sm:$0xf] %vm1005_vm1, %v1137_v22  ;;  %1006 = vst.msk [vmem:[%s1895_s4] sm:$0xf] %vm1005_vm1, %v1127_v23  ;;  %v1138_v39 = vpack.c.bf16 %v936_v24, %v936_v24  ;;  %v1128_v40 = vpack.c.bf16 %v926_v50, %v926_v50  ;;  %v871_v41 = vadd.f32 %v1344_v34, %v1776_v35  ;;  %v862_v47 = vpop.f32.mrb[37].mxu1  ;;  %v1337_v11 = vpop.f32.mrb[38].mxu0 }
 0x141   :  { %v831_v42 = vadd.f32 %v830_v38, %v1726_v59  ;;  %1014 = vst.msk [vmem:[%s1895_s4 + $0x20] sm:$0xf] %vm1005_vm1, %v1135_v29  ;;  %1009 = vst.msk [vmem:[%s1895_s4 + $0xc] sm:$0xf] %vm1005_vm1, %v1130_v32  ;;  %v1136_v49 = vpack.c.bf16 %v934_v31, %v934_v31  ;;  %v915_v51 = vadd.f32 %v1157_v14, %v839_v33  ;;  %v1345_v56 = vpop.f32.mrb[38].mxu1  ;;  %v833_v59 = vpop.f32.mrb[39].mxu0 }
 0x142   :  { %v863_v55 = vadd.f32 %v862_v47, %v1748_v2  ;;  %v842_v35 = vadd.f32 %v1337_v11, %v1734_v13  ;;  %1017 = vst.msk [vmem:[%s1895_s4 + $0x2c] sm:$0xf] %vm1005_vm1, %v1138_v39  ;;  %1007 = vst.msk [vmem:[%s1895_s4 + $0x4] sm:$0xf] %vm1005_vm1, %v1128_v40  ;;  %v923_v57 = vadd.f32 %v1173_v44, %v871_v41  ;;  %v865_v58 = vpop.f32.mrb[39].mxu1 }
 0x143   :  { %v913_v2 = vadd.f32 %v1153_v52, %v831_v42  ;;  %v874_v13 = vadd.f32 %v1345_v56, %v1790_v46  ;;  %v834_v14 = vadd.f32 %v833_v59, %v1728_v61  ;;  %1015 = vst.msk [vmem:[%s1895_s4 + $0x24] sm:$0xf] %vm1005_vm1, %v1136_v49  ;;  %v931_v63 = vmax.f32 %v915_v51, 0.0 }
 0x144   :  { %v921_v43 = vadd.f32 %v1169_v53, %v863_v55  ;;  %v916_v44 = vadd.f32 %v1158_v54, %v842_v35  ;;  %v866_v0 = vadd.f32 %v865_v58, %v1750_v4  ;;  %v939_v52 = vmax.f32 %v923_v57, 0.0 }
 0x145   :  { %v929_v1 = vmax.f32 %v913_v2, 0.0  ;;  %v924_v61 = vadd.f32 %v1174_v60, %v874_v13  ;;  %v914_v46 = vadd.f32 %v1154_v62, %v834_v14  ;;  %v1133_v3 = vpack.c.bf16 %v931_v63, %v931_v63 }
 0x146   :  { %v937_v6 = vmax.f32 %v921_v43, 0.0  ;;  %v932_v7 = vmax.f32 %v916_v44, 0.0  ;;  %v922_v48 = vadd.f32 %v1170_v5, %v866_v0  ;;  %v1141_v53 = vpack.c.bf16 %v939_v52, %v939_v52 }
 0x147   :  { %v1131_v27 = vpack.c.bf16 %v929_v1, %v929_v1  ;;  %v940_v26 = vmax.f32 %v924_v61, 0.0  ;;  %v930_v54 = vmax.f32 %v914_v46, 0.0  ;;  %1012 = vst.msk [vmem:[%s1895_s4 + $0x18] sm:$0xf] %vm1005_vm1, %v1133_v3 }
 0x148   :  { %v1139_v4 = vpack.c.bf16 %v937_v6, %v937_v6  ;;  %v1134_v28 = vpack.c.bf16 %v932_v7, %v932_v7  ;;  %v938_v60 = vmax.f32 %v922_v48, 0.0  ;;  %1020 = vst.msk [vmem:[%s1895_s4 + $0x38] sm:$0xf] %vm1005_vm1, %v1141_v53 }
 0x149   :  { %1010 = vst.msk [vmem:[%s1895_s4 + $0x10] sm:$0xf] %vm1005_vm1, %v1131_v27  ;;  %v1142_v36 = vpack.c.bf16 %v940_v26, %v940_v26  ;;  %v1132_v37 = vpack.c.bf16 %v930_v54, %v930_v54 }
 0x14a   :  { %1018 = vst.msk [vmem:[%s1895_s4 + $0x30] sm:$0xf] %vm1005_vm1, %v1139_v4  ;;  %1013 = vst.msk [vmem:[%s1895_s4 + $0x1c] sm:$0xf] %vm1005_vm1, %v1134_v28  ;;  %v1140_v62 = vpack.c.bf16 %v938_v60, %v938_v60 }
 0x14b   :  { %1021 = vst.msk [vmem:[%s1895_s4 + $0x3c] sm:$0xf] %vm1005_vm1, %v1142_v36  ;;  %1011 = vst.msk [vmem:[%s1895_s4 + $0x14] sm:$0xf] %vm1005_vm1, %v1132_v37 }
 0x14c   :  { %1019 = vst.msk [vmem:[%s1895_s4 + $0x34] sm:$0xf] %vm1005_vm1, %v1140_v62 }

// kernel: res_model_forward.29
= control target key start
LH: loop header
LB: loop body
LE: loop exit
PB: predicated region body
PF: predicated region fallthrough
CT: control target
= control target key end

     0   :  { %vm372_vm0 = vcmask 523264   ;;  %s913_s1 = inlined_call_operand.vmem [shape: bf16[576,128], index: 1, kind: input, shape index: {}]   ;;  %s914_s0 = inlined_call_operand.vmem [shape: bf16[32,576], index: 0, kind: input, shape index: {}]   ;;  %s915_s2 = inlined_call_operand.vmem [shape: f32[1,128], index: 2, kind: input, shape index: {}]   ;;  %s916_s3 = inlined_call_operand.vmem [shape: bf16[32,128], index: 3, kind: output, shape index: {}]  }
   0x1   :  { %v696_v0 = vld [vmem:[%s913_s1 + $0x40] sm:$0xff]   ;;  %v700_v4 = vld [vmem:[%s913_s1 + $0x48] sm:$0xff]   ;;  %v704_v8 = vld [vmem:[%s913_s1 + $0x50] sm:$0xff]  }
   0x2   :  { %v697_v1 = vld [vmem:[%s913_s1] sm:$0xff]   ;;  %622 = vmatprep.subr.bf16.mxu0 %v696_v0  ;;  %v701_v5 = vld [vmem:[%s913_s1 + $0x8] sm:$0xff]   ;;  %v705_v9 = vld [vmem:[%s913_s1 + $0x10] sm:$0xff]  }
   0x3   :  { %v698_v2 = vld [vmem:[%s913_s1 + $0xc0] sm:$0xff]   ;;  %623 = vmatpush3.bf16.msra.mxu0 %v697_v1  ;;  %v702_v6 = vld [vmem:[%s913_s1 + $0xc8] sm:$0xff]   ;;  %v706_v10 = vld [vmem:[%s913_s1 + $0xd0] sm:$0xff]  }
   0x4   :  { %v699_v3 = vld [vmem:[%s913_s1 + $0x80] sm:$0xff]   ;;  %650 = vmatprep.subr.bf16.mxu1 %v698_v2  ;;  %624 = vmatprep.subr.bf16.mxu0 %v700_v4  ;;  %v703_v7 = vld [vmem:[%s913_s1 + $0x88] sm:$0xff]   ;;  %v707_v11 = vld [vmem:[%s913_s1 + $0x90] sm:$0xff]  }
   0x5   :  { %651 = vmatpush3.bf16.msra.mxu1 %v699_v3  ;;  %v708_v12 = vld [vmem:[%s913_s1 + $0x58] sm:$0xff]   ;;  %v712_v16 = vld [vmem:[%s913_s1 + $0x60] sm:$0xff]   ;;  %v716_v20 = vld [vmem:[%s913_s1 + $0x68] sm:$0xff]  }
   0x6   :  { %652 = vmatprep.subr.bf16.mxu1 %v702_v6  ;;  %v709_v13 = vld [vmem:[%s913_s1 + $0x18] sm:$0xff]   ;;  %v713_v17 = vld [vmem:[%s913_s1 + $0x20] sm:$0xff]   ;;  %v717_v21 = vld [vmem:[%s913_s1 + $0x28] sm:$0xff]  }
   0x7   :  { %625 = vmatpush3.bf16.msra.mxu0 %v701_v5  ;;  %v710_v14 = vld [vmem:[%s913_s1 + $0xd8] sm:$0xff]   ;;  %v714_v18 = vld [vmem:[%s913_s1 + $0xe0] sm:$0xff]   ;;  %v718_v22 = vld [vmem:[%s913_s1 + $0xe8] sm:$0xff]  }
   0x8   :  { %626 = vmatprep.subr.bf16.mxu0 %v704_v8  ;;  %v711_v15 = vld [vmem:[%s913_s1 + $0x98] sm:$0xff]   ;;  %v715_v19 = vld [vmem:[%s913_s1 + $0xa0] sm:$0xff]   ;;  %v719_v23 = vld [vmem:[%s913_s1 + $0xa8] sm:$0xff]  }
   0x9   :  { %653 = vmatpush3.bf16.msra.mxu1 %v703_v7  ;;  %v720_v24 = vld [vmem:[%s913_s1 + $0x70] sm:$0xff]   ;;  %v724_v28 = vld [vmem:[%s913_s1 + $0x78] sm:$0xff]   ;;  %v731_v34 = vld [vmem:[%s913_s1 + $0x100] sm:$0xff]  }
   0xa   :  { %654 = vmatprep.subr.bf16.mxu1 %v706_v10  ;;  %v721_v25 = vld [vmem:[%s913_s1 + $0x30] sm:$0xff]   ;;  %v725_v29 = vld [vmem:[%s913_s1 + $0x38] sm:$0xff]   ;;  %v734_v36 = vld [vmem:[%s914_s0 + $0xc] ss:$20 sps:$4 sm:$0xff]  }
   0xb   :  { %627 = vmatpush3.bf16.msra.mxu0 %v705_v9  ;;  %v722_v26 = vld [vmem:[%s913_s1 + $0xf0] sm:$0xff]   ;;  %v726_v30 = vld [vmem:[%s913_s1 + $0xf8] sm:$0xff]   ;;  %v735_v37 = vld [vmem:[%s913_s1 + $0x108] sm:$0xff]   ;;  %460 = vmatprep.mubr.bf16.mxu1 %v734_v36 }
   0xc   :  { %628 = vmatprep.subr.bf16.mxu0 %v708_v12  ;;  %v723_v27 = vld [vmem:[%s913_s1 + $0xb0] sm:$0xff]   ;;  %v729_v32 = vld [vmem:[%s914_s0 + $0x4] ss:$20 sps:$4 sm:$0xff]   ;;  %v732_v35 = vld [vmem:[%s914_s0 + $0x8] ss:$20 sps:$4 sm:$0xff]  }
   0xd   :  { %655 = vmatpush3.bf16.msra.mxu1 %v707_v11  ;;  %v727_v31 = vld [vmem:[%s914_s0] ss:$20 sps:$4 sm:$0xff]   ;;  %v730_v33 = vld [vmem:[%s913_s1 + $0xb8] sm:$0xff]   ;;  %411 = vmatprep.mubr.bf16.mxu0 %v729_v32  ;;  %v742_v42 = vld [vmem:[%s914_s0 + $0x30] ss:$20 sps:$4 sm:$0xff]  }
   0xe   :  { %656 = vmatprep.subr.bf16.mxu1 %v710_v14  ;;  %v736_v38 = vld [vmem:[%s914_s0 + $0x2c] ss:$20 sps:$4 sm:$0xff]   ;;  %v738_v39 = vld [vmem:[%s914_s0 + $0x28] ss:$20 sps:$4 sm:$0xff]   ;;  %v739_v40 = vld [vmem:[%s913_s1 + $0x110] sm:$0xff]  }
   0xf   :  { %629 = vmatpush3.bf16.msra.mxu0 %v709_v13  ;;  %v740_v41 = vld [vmem:[%s914_s0 + $0x34] ss:$20 sps:$4 sm:$0xff]   ;;  %v743_v43 = vld [vmem:[%s913_s1 + $0x118] sm:$0xff]   ;;  %v744_v44 = vld [vmem:[%s914_s0 + $0x10] ss:$20 sps:$4 sm:$0xff]  }
  0x10   :  { %630 = vmatprep.subr.bf16.mxu0 %v712_v16  ;;  %v745_v45 = vld [vmem:[%s914_s0 + $0x38] ss:$20 sps:$4 sm:$0xff]   ;;  %v554_v47 = vld [vmem:[%s915_s2] ss:$0 sm:$0xff] }
  0x11   :  { %657 = vmatpush3.bf16.msra.mxu1 %v711_v15 }
  0x12   :  { %658 = vmatprep.subr.bf16.mxu1 %v714_v18 }
  0x13   :  { %631 = vmatpush3.bf16.msra.mxu0 %v713_v17 }
  0x14   :  { %632 = vmatprep.subr.bf16.mxu0 %v716_v20 }
  0x15   :  { %659 = vmatpush3.bf16.msra.mxu1 %v715_v19 }
  0x16   :  { %660 = vmatprep.subr.bf16.mxu1 %v718_v22 }
  0x17   :  { %633 = vmatpush3.bf16.msra.mxu0 %v717_v21 }
  0x18   :  { %634 = vmatprep.subr.bf16.mxu0 %v720_v24 }
  0x19   :  { %661 = vmatpush3.bf16.msra.mxu1 %v719_v23 }
  0x1a   :  { %662 = vmatprep.subr.bf16.mxu1 %v722_v26 }
  0x1b   :  { %635 = vmatpush3.bf16.msra.mxu0 %v721_v25 }
  0x1c   :  { %636 = vmatprep.subr.bf16.mxu0 %v724_v28 }
  0x1d   :  { %663 = vmatpush3.bf16.msra.mxu1 %v723_v27 }
  0x1e   :  { %664 = vmatprep.subr.bf16.mxu1 %v726_v30 }
  0x1f   :  { %637 = vmatpush3.bf16.msra.mxu0 %v725_v29 }
  0x20   :  { %684 = vmatprep.subr.bf16.mxu0 %v731_v34 }
  0x21   :  { %665 = vmatpush3.bf16.msra.mxu1 %v730_v33 }
  0x22   :  { %412 = vmatmul.mubr.bf16.vlgmr.msra.gmra.mrb[0].mxu0 %v727_v31 }
  0x23   :  { %685 = vmatpush3.bf16.msra.mxu0 %v731_v34  ;;  %419 = vmatprep.mubr.bf16.mxu0 %v736_v38 }
  0x24   :  { %461 = vmatmul.mubr.bf16.vlgmr.msra.gmra.mrb[0].mxu1 %v732_v35  ;;  %686 = vmatprep.subr.bf16.mxu0 %v735_v37 }
  0x25   :  { %468 = vmatprep.mubr.bf16.mxu1 %v740_v41 }
  0x27   :  { %687 = vmatpush3.bf16.msra.mxu0 %v735_v37 }
  0x28   :  { %688 = vmatprep.subr.bf16.mxu0 %v739_v40 }
  0x2a   :  { %420 = vmatmul.mubr.bf16.gmra.mrb[4].mxu0 %v738_v39 }
  0x2b   :  { %692 = vmatprep.mubr.msk.bf16.mxu0 %vm372_vm0, %v744_v44  ;;  %689 = vmatpush3.bf16.msra.mxu0 %v739_v40 }
  0x2c   :  { %469 = vmatmul.mubr.bf16.gmra.mrb[4].mxu1 %v742_v42  ;;  %690 = vmatprep.subr.bf16.mxu0 %v743_v43 }
  0x2f   :  { %691 = vmatpush3.bf16.msra.mxu0 %v743_v43 }
  0x32   :  { %693 = vmatmul.mubr.msk.bf16.vlgmr.msra.gmra.mrb[8].mxu0 %vm372_vm0, %v745_v45 }
  0xf5   :  { %v638_v46 = vpop.f32.mrb[0].mxu0 }
  0xf6   :  { %v639_v48 = vpop.f32.mrb[1].mxu0 }
  0xf7   :  { %v640_v49 = vadd.f32 %v639_v48, %v638_v46  ;;  %v641_v50 = vpop.f32.mrb[2].mxu0  ;;  %v666_v51 = vpop.f32.mrb[0].mxu1 }
  0xf8   :  { %v642_v52 = vpop.f32.mrb[3].mxu0  ;;  %v667_v55 = vpop.f32.mrb[1].mxu1 }
  0xf9   :  { %v414_v53 = vadd.f32 %v640_v49, %v554_v47  ;;  %v643_v54 = vadd.f32 %v642_v52, %v641_v50  ;;  %v668_v56 = vadd.f32 %v667_v55, %v666_v51  ;;  %v669_v57 = vpop.f32.mrb[2].mxu1 }
  0xfa   :  { %v670_v59 = vpop.f32.mrb[3].mxu1 }
  0xfb   :  { %v417_v58 = vadd.f32 %v643_v54, %v554_v47  ;;  %v671_v60 = vadd.f32 %v670_v59, %v669_v57  ;;  %v463_v61 = vadd.f32 %v668_v56, %v414_v53 }
  0xfd   :  { %v644_v62 = vpop.f32.mrb[4].mxu0  ;;  %v466_v0 = vadd.f32 %v671_v60, %v417_v58 }
  0xfe   :  { %v645_v63 = vpop.f32.mrb[5].mxu0 }
  0xff   :  { %v646_v1 = vadd.f32 %v645_v63, %v644_v62  ;;  %v647_v2 = vpop.f32.mrb[6].mxu0  ;;  %v672_v3 = vpop.f32.mrb[4].mxu1 }
 0x100   :  { %v648_v4 = vpop.f32.mrb[7].mxu0  ;;  %v673_v7 = vpop.f32.mrb[5].mxu1 }
 0x101   :  { %v422_v5 = vadd.f32 %v646_v1, %v554_v47  ;;  %v649_v6 = vadd.f32 %v648_v4, %v647_v2  ;;  %v674_v8 = vadd.f32 %v673_v7, %v672_v3  ;;  %v675_v9 = vpop.f32.mrb[6].mxu1 }
 0x102   :  { %v676_v11 = vpop.f32.mrb[7].mxu1 }
 0x103   :  { %v425_v10 = vadd.f32 %v649_v6, %v554_v47  ;;  %v677_v12 = vadd.f32 %v676_v11, %v675_v9  ;;  %v471_v13 = vadd.f32 %v674_v8, %v422_v5 }
 0x105   :  { %v694_v14 = vpop.f32.mrb[8].mxu0  ;;  %v474_v15 = vadd.f32 %v677_v12, %v425_v10 }
 0x106   :  { %v520_v16 = vadd.f32 %v694_v14, %v471_v13  ;;  %v511_v17 = vpop.f32.mrb[9].mxu0 }
 0x107   :  { %v512_v18 = vadd.f32 %v511_v17, %v463_v61  ;;  %v695_v19 = vpop.f32.mrb[10].mxu0 }
 0x108   :  { %v523_v20 = vadd.f32 %v695_v19, %v474_v15  ;;  %v514_v21 = vpop.f32.mrb[11].mxu0  ;;  %v528_v23 = vmax.f32 %v520_v16, 0.0 }
 0x109   :  { %v515_v22 = vadd.f32 %v514_v21, %v466_v0  ;;  %v526_v25 = vmax.f32 %v512_v18, 0.0 }
 0x10a   :  { %v529_v24 = vmax.f32 %v523_v20, 0.0 }
 0x10b   :  { %v527_v26 = vmax.f32 %v515_v22, 0.0 }
 0x10c   :  { %v619_v27 = vpack.c.bf16 %v529_v24, %v528_v23 }
 0x10d   :  { %v614_v28 = vpack.c.bf16 %v527_v26, %v526_v25 }
 0x10e   :  { %621 = vst [vmem:[%s916_s3 + $0x8] sm:$0xff] %v619_v27  }
 0x10f   :  { %615 = vst [vmem:[%s916_s3] sm:$0xff] %v614_v28  }

// kernel: res_model_forward.28
= control target key start
LH: loop header
LB: loop body
LE: loop exit
PB: predicated region body
PF: predicated region fallthrough
CT: control target
= control target key end

     0   :  { %vm68_vm0 = vcmask 523264   ;;  %s247_s1 = inlined_call_operand.vmem [shape: bf16[64,128], index: 1, kind: input, shape index: {}]   ;;  %s248_s0 = inlined_call_operand.vmem [shape: bf16[32,64], index: 0, kind: input, shape index: {}]   ;;  %s249_s2 = inlined_call_operand.vmem [shape: f32[1,128], index: 2, kind: input, shape index: {}]   ;;  %s250_s3 = inlined_call_operand.vmem [shape: bf16[32,128], index: 3, kind: output, shape index: {}]  }
   0x1   :  { %v194_v0 = vld [vmem:[%s247_s1] sm:$0xff]   ;;  %v195_v1 = vld [vmem:[%s247_s1 + $0x8] sm:$0xff]   ;;  %v196_v2 = vld [vmem:[%s247_s1 + $0x10] sm:$0xff]  }
   0x2   :  { %182 = vmatprep.subr.bf16.mxu0 %v194_v0  ;;  %v198_v3 = vld [vmem:[%s248_s0] sm:$0xff]   ;;  %v197_v4 = vld [vmem:[%s247_s1 + $0x18] sm:$0xff]   ;;  %v199_v5 = vld [vmem:[%s248_s0 + $0x8] sm:$0xff]  }
   0x3   :  { %183 = vmatpush3.bf16.msra.mxu0 %v194_v0  ;;  %190 = vmatprep.mubr.msk.bf16.mxu0 %vm68_vm0, %v198_v3  ;;  %v148_v7 = vld [vmem:[%s249_s2] ss:$0 sm:$0xff] }
   0x4   :  { %184 = vmatprep.subr.bf16.mxu0 %v195_v1 }
   0x7   :  { %185 = vmatpush3.bf16.msra.mxu0 %v195_v1 }
   0x8   :  { %186 = vmatprep.subr.bf16.mxu0 %v196_v2 }
   0xb   :  { %187 = vmatpush3.bf16.msra.mxu0 %v196_v2 }
   0xc   :  { %188 = vmatprep.subr.bf16.mxu0 %v197_v4 }
   0xf   :  { %189 = vmatpush3.bf16.msra.mxu0 %v197_v4 }
  0x12   :  { %191 = vmatmul.mubr.msk.bf16.vlgmr.msra.gmra.mrb[0].mxu0 %vm68_vm0, %v199_v5 }
  0xe5   :  { %v192_v6 = vpop.f32.mrb[0].mxu0 }
  0xe6   :  { %v109_v8 = vpop.f32.mrb[1].mxu0  ;;  %v118_v10 = vadd.f32 %v192_v6, %v148_v7 }
  0xe7   :  { %v193_v9 = vpop.f32.mrb[2].mxu0  ;;  %v110_v13 = vadd.f32 %v148_v7, %v109_v8 }
  0xe8   :  { %v121_v11 = vadd.f32 %v193_v9, %v148_v7  ;;  %v112_v12 = vpop.f32.mrb[3].mxu0 }
  0xe9   :  { %v113_v14 = vadd.f32 %v148_v7, %v112_v12 }
  0xea   :  { %v173_v15 = vpack.c.bf16 %v121_v11, %v118_v10 }
  0xeb   :  { %v168_v16 = vpack.c.bf16 %v113_v14, %v110_v13 }
  0xec   :  { %175 = vst [vmem:[%s250_s3 + $0x8] sm:$0xff] %v173_v15  }
  0xed   :  { %169 = vst [vmem:[%s250_s3] sm:$0xff] %v168_v16  }

// kernel: res_model_forward.30
= control target key start
LH: loop header
LB: loop body
LE: loop exit
PB: predicated region body
PF: predicated region fallthrough
CT: control target
= control target key end

     0   :  { %s1093_s15 = smov 0   ;;  %s1095_s16 = smov 0   ;;  %s1209_s0 = inlined_call_operand.vmem [shape: bf16[32,1152], index: 0, kind: input, shape index: {}]   ;;  %s1210_s1 = inlined_call_operand.vmem [shape: bf16[1152,128], index: 1, kind: input, shape index: {}]   ;;  %s1211_s2 = inlined_call_operand.vmem [shape: f32[1,128], index: 2, kind: input, shape index: {}]   ;;  %s1212_s3 = inlined_call_operand.vmem [shape: bf16[32,128], index: 3, kind: input, shape index: {}]   ;;  %s1213_s4 = inlined_call_operand.vmem [shape: bf16[32,128], index: 4, kind: output, shape index: {}]  }
   0x1   :  { %s1097_s17 = smov 0   ;;  %s1099_s18 = smov 0  }
   0x2   :  { %s1101_s19 = smov 0  }
   0x3 LB: > { %s23_s20 = sadd.s32 1, %s1061_s18  ;;  %p42_p1 = scmp.ne.s32.totalorder %s1053_s16, %s1049_s15  ;;  %s1065_s19 = sphi %s1101_s19, %s14_s19   ;;  %s1061_s18 = sphi %s1099_s18, %s1217_s18   ;;  %s1057_s17 = sphi %s1097_s17, %s1216_s17   ;;  %s1053_s16 = sphi %s1095_s16, %s1215_s16   ;;  %s1049_s15 = sphi %s1093_s15, %s1214_s15  }
   0x4   : > { %p24_p0 = scmp.ge.s32.totalorder %s23_s20, 3  ;;  %p43_p2 = scmp.eq.s32.totalorder %s1065_s19, 0 }
   0x5   : > { %s35_s22 = sadd.s32 1, %s1053_s16  ;;  %p816_p5 = scmp.ge.s32.totalorder %s1065_s19, 3 }
   0x6   : > { %s1219_s20 = smov (%p24_p0, %s23_s20), 0  ;;  %p44_p3 = por %p43_p2, %p42_p1 }
   0x7   : > { %s31_s21 = ssub.s32 %s1061_s18, %s1219_s20  ;;  %179 = sbr.rel (%p816_p5) target bundleno = 23 (0x17), region = 24 }
   0x8   : > { %p33_p4 = scmp.eq.s32.totalorder %s31_s21, 0 }
   0xa   : > { %s1128_s23 = scalar_select %p33_p4, %s1053_s16, %s35_s22  }
   0xe   : > { %182 = sbr.rel (!%p44_p3) target bundleno = 23 (0x17), region = 28  ;;  %s184_s24 = sand.u32 (%p44_p3), 1, %s1053_s16  }
   0xf   : > { %s869_s25 = smul.u32 (%p44_p3), 12, %s1061_s18 }
  0x10   : > { %s952_s26 = smul.u32 (%p44_p3), 48, %s184_s24 }
  0x11   : > { %s192_s29 = scalar_lea.vmem (%p44_p3), %s1209_s0, %s869_s25 }
  0x12   : > { %v207_v0 = vld [vmem:[%s192_s29] sm:$0xff] (%p44_p3)  ;;  %v211_v2 = vld [vmem:[%s192_s29 + $0x48] sm:$0xff] (%p44_p3)  ;;  %s186_s30 = scalar_lea.vmem (%p44_p3), [#allocation3], %s952_s26  ;;  %v822_v6 = vld [vmem:[%s192_s29 + $0x50] sm:$0xf] (%p44_p3) }
  0x13   : > { %v209_v1 = vld [vmem:[%s192_s29 + $0x24] sm:$0xff] (%p44_p3)  ;;  %208 = vst [vmem:[%s186_s30] sm:$0xff] (%p44_p3), %v207_v0  ;;  %212 = vst [vmem:[%s186_s30 + $0x18] sm:$0xff] (%p44_p3), %v211_v2  ;;  %v213_v3 = vld [vmem:[%s192_s29 + $0x6c] sm:$0xff] (%p44_p3) }
  0x14   : > { %210 = vst [vmem:[%s186_s30 + $0xc] sm:$0xff] (%p44_p3), %v209_v1  ;;  %v818_v4 = vld [vmem:[%s192_s29 + $0x8] sm:$0xf] (%p44_p3)  ;;  %v820_v5 = vld [vmem:[%s192_s29 + $0x2c] sm:$0xf] (%p44_p3)  ;;  %214 = vst [vmem:[%s186_s30 + $0x24] sm:$0xff] (%p44_p3), %v213_v3 }
  0x15   : > { %819 = vst [vmem:[%s186_s30 + $0x8] sm:$0xf] %v818_v4  ;;  %821 = vst [vmem:[%s186_s30 + $0x14] sm:$0xf] %v820_v5  ;;  %v824_v7 = vld [vmem:[%s192_s29 + $0x74] sm:$0xf] }
  0x16   : > { %823 = vst [vmem:[%s186_s30 + $0x20] sm:$0xf] %v822_v6  ;;  %825 = vst [vmem:[%s186_s30 + $0x2c] sm:$0xf] %v824_v7 }
  0x17 PF: > { %p826_p6 = scmp.ge.s32.totalorder %s1065_s19, 1  ;;  %p243_p7 = scmp.lt.s32.totalorder %s1065_s19, 4 }
  0x19   : > { %p244_p8 = pnand %p826_p6, %p243_p7 }
  0x1a   : > { %s250_s5 = sand.u32 (!%p244_p8), 1, %s1049_s15   ;;  %s287_s6 = smul.u32 (!%p244_p8), 48, %s1057_s17 }
  0x1b   : > { %247 = sbr.rel (%p244_p8) target bundleno = 320 (0x140), region = 58  ;;  %p828_p10 = scmp.ne.s32.totalorder (!%p244_p8), %s1057_s17, 0 }
  0x1c   : > { %s953_s7 = smul.u32 (!%p244_p8), 48, %s250_s5  ;;  %p288_p9 = scmp.lt.s32.totalorder (!%p244_p8), %s287_s6, 143 }
  0x1e   : > { %s1145_s12 = scalar_lea.vmem (!%p244_p8), [#allocation3], %s953_s7 }
  0x22   : > { %s1221_s6 = smov (!%p288_p9, %s287_s6), 143  ;;  %309 = sbr.rel (%p828_p10) target bundleno = 41 (0x29), region = 66 }
  0x23   : > { %s827_s8 = sshll.u32 %s1221_s6, 2  ;;  %v1067_v8 = vmov (!%p828_p10), 0.0  }
  0x24   : > { %s1143_s11 = scalar_lea.vmem %s1210_s1, %s827_s8  ;;  %310 = vst [vmem:[#allocation2] sm:$0xff] (!%p828_p10), %v1067_v8  ;;  %311 = vst [vmem:[#allocation2 + $0x8] sm:$0xff] (!%p828_p10), %v1067_v8 }
  0x25   : > { %312 = vst [vmem:[#allocation2 + $0x10] sm:$0xff] (!%p828_p10), %v1067_v8  ;;  %313 = vst [vmem:[#allocation2 + $0x18] sm:$0xff] (!%p828_p10), %v1067_v8 }
  0x29 PF: > { %v995_v9 = vld [vmem:[%s1143_s11 + $0x40] sm:$0xff]   ;;  %v998_v12 = vld [vmem:[%s1143_s11 + $0x48] sm:$0xff]   ;;  %v1001_v15 = vld [vmem:[%s1143_s11 + $0x50] sm:$0xff]   ;;  %p859_p11 = scmp.ne.s32.totalorder %s1057_s17, 2 }
  0x2a   : > { %v996_v10 = vld [vmem:[%s1143_s11] sm:$0xff]   ;;  %894 = vmatprep.subr.bf16.mxu0 %v995_v9  ;;  %v999_v13 = vld [vmem:[%s1143_s11 + $0x8] sm:$0xff]   ;;  %v1002_v16 = vld [vmem:[%s1143_s11 + $0x10] sm:$0xff]  }
  0x2b   : > { %v997_v11 = vld [vmem:[%s1143_s11 + $0x80] sm:$0xff]   ;;  %895 = vmatpush3.bf16.msra.mxu0 %v996_v10  ;;  %v1000_v14 = vld [vmem:[%s1143_s11 + $0x88] sm:$0xff]   ;;  %v1003_v17 = vld [vmem:[%s1143_s11 + $0x90] sm:$0xff]  }
  0x2c   : > { %932 = vmatprep.subr.bf16.mxu1 %v997_v11  ;;  %896 = vmatprep.subr.bf16.mxu0 %v998_v12  ;;  %v1004_v18 = vld [vmem:[%s1143_s11 + $0x58] sm:$0xff]   ;;  %v1007_v21 = vld [vmem:[%s1143_s11 + $0x60] sm:$0xff]   ;;  %v1010_v24 = vld [vmem:[%s1143_s11 + $0x68] sm:$0xff]  }
  0x2d   : > { %933 = vmatpush3.bf16.msra.mxu1 %v997_v11  ;;  %v1005_v19 = vld [vmem:[%s1143_s11 + $0x18] sm:$0xff]   ;;  %v1009_v22 = vld [vmem:[%s1143_s11 + $0xa0] sm:$0xff]   ;;  %v1012_v25 = vld [vmem:[%s1143_s11 + $0xa8] sm:$0xff]  }
  0x2e   : > { %934 = vmatprep.subr.bf16.mxu1 %v1000_v14  ;;  %v1006_v20 = vld [vmem:[%s1143_s11 + $0x98] sm:$0xff]   ;;  %v1008_v23 = vld [vmem:[%s1143_s11 + $0x20] sm:$0xff]   ;;  %v1011_v26 = vld [vmem:[%s1143_s11 + $0x28] sm:$0xff]  }
  0x2f   : > { %897 = vmatpush3.bf16.msra.mxu0 %v999_v13  ;;  %v1013_v27 = vld [vmem:[%s1143_s11 + $0x70] sm:$0xff]   ;;  %v1016_v30 = vld [vmem:[%s1143_s11 + $0x78] sm:$0xff]   ;;  %v314_v45 = vld [vmem:[#allocation2] sm:$0xff] }
  0x30   : > { %898 = vmatprep.subr.bf16.mxu0 %v1001_v15  ;;  %v1014_v28 = vld [vmem:[%s1143_s11 + $0x30] sm:$0xff]   ;;  %v1018_v31 = vld [vmem:[%s1143_s11 + $0xb8] sm:$0xff]   ;;  %v315_v50 = vld [vmem:[#allocation2 + $0x8] sm:$0xff] }
  0x31   : > { %935 = vmatpush3.bf16.msra.mxu1 %v1000_v14  ;;  %v1015_v29 = vld [vmem:[%s1143_s11 + $0xb0] sm:$0xff]   ;;  %v1017_v34 = vld [vmem:[%s1143_s11 + $0x38] sm:$0xff]   ;;  %v860_v5 = vld [vmem:[%s1211_s2] ss:$0 sm:$0xff] (!%p859_p11) }
  0x32   : > { %936 = vmatprep.subr.bf16.mxu1 %v1003_v17  ;;  %v1021_v32 = vld [vmem:[%s1145_s12 + $0x4] ss:$12 sps:$4 sm:$0xff]   ;;  %v1022_v33 = vld [vmem:[%s1145_s12 + $0x8] ss:$12 sps:$4 sm:$0xff]   ;;  %v1019_v35 = vld [vmem:[%s1145_s12] ss:$12 sps:$4 sm:$0xff]  }
  0x33   : > { %899 = vmatpush3.bf16.msra.mxu0 %v1002_v16  ;;  %582 = vmatprep.mubr.bf16.mxu0 %v1021_v32  ;;  %v1024_v36 = vld [vmem:[%s1145_s12 + $0x1c] ss:$12 sps:$4 sm:$0xff]   ;;  %v1023_v37 = vld [vmem:[%s1145_s12 + $0x20] ss:$12 sps:$4 sm:$0xff]   ;;  %v1026_v38 = vld [vmem:[%s1145_s12 + $0x18] ss:$12 sps:$4 sm:$0xff]  }
  0x34   : > { %900 = vmatprep.subr.bf16.mxu0 %v1004_v18  ;;  %948 = vmatprep.mubr.bf16.mxu1 %v1022_v33  ;;  %v316_v59 = vld [vmem:[#allocation2 + $0x10] sm:$0xff]  ;;  %v317_v63 = vld [vmem:[#allocation2 + $0x18] sm:$0xff]  ;;  %v875_v8 = vld [vmem:[%s1212_s3] sm:$0xff] (!%p859_p11)  }
  0x35   : > { %937 = vmatpush3.bf16.msra.mxu1 %v1003_v17  ;;  %v876_v11 = vunpack.c.l.bf16 (!%p859_p11), %v875_v8  ;;  %v877_v12 = vunpack.c.h.bf16 (!%p859_p11), %v875_v8  ;;  %v892_v15 = vld [vmem:[%s1212_s3 + $0x8] sm:$0xff] (!%p859_p11)  }
  0x36   : > { %938 = vmatprep.subr.bf16.mxu1 %v1006_v20  ;;  %v880_v16 = vunpack.c.l.bf16 (!%p859_p11), %v892_v15  ;;  %v881_v17 = vunpack.c.h.bf16 (!%p859_p11), %v892_v15 }
  0x37   : > { %901 = vmatpush3.bf16.msra.mxu0 %v1005_v19 }
  0x38   : > { %902 = vmatprep.subr.bf16.mxu0 %v1007_v21 }
  0x39   : > { %939 = vmatpush3.bf16.msra.mxu1 %v1006_v20 }
  0x3a   : > { %940 = vmatprep.subr.bf16.mxu1 %v1009_v22 }
  0x3b   : > { %903 = vmatpush3.bf16.msra.mxu0 %v1008_v23 }
  0x3c   : > { %904 = vmatprep.subr.bf16.mxu0 %v1010_v24 }
  0x3d   : > { %941 = vmatpush3.bf16.msra.mxu1 %v1009_v22 }
  0x3e   : > { %942 = vmatprep.subr.bf16.mxu1 %v1012_v25 }
  0x3f   : > { %905 = vmatpush3.bf16.msra.mxu0 %v1011_v26 }
  0x40   : > { %906 = vmatprep.subr.bf16.mxu0 %v1013_v27 }
  0x41   : > { %943 = vmatpush3.bf16.msra.mxu1 %v1012_v25 }
  0x42   : > { %944 = vmatprep.subr.bf16.mxu1 %v1015_v29 }
  0x43   : > { %907 = vmatpush3.bf16.msra.mxu0 %v1014_v28 }
  0x44   : > { %908 = vmatprep.subr.bf16.mxu0 %v1016_v30 }
  0x45   : > { %945 = vmatpush3.bf16.msra.mxu1 %v1015_v29 }
  0x46   : > { %946 = vmatprep.subr.bf16.mxu1 %v1018_v31 }
  0x47   : > { %909 = vmatpush3.bf16.msra.mxu0 %v1017_v34 }
  0x49   : > { %947 = vmatpush3.bf16.msra.mxu1 %v1018_v31 }
  0x4a   : > { %583 = vmatmul.mubr.bf16.vlgmr.msra.gmra.mrb[0].mxu0 %v1019_v35 }
  0x4b   : > { %590 = vmatprep.mubr.bf16.mxu0 %v1024_v36 }
  0x4c   : > { %949 = vmatmul.mubr.bf16.vlgmr.msra.gmra.mrb[0].mxu1 %v1023_v37 }
  0x52   : > { %591 = vmatmul.mubr.bf16.gmra.mrb[4].mxu0 %v1026_v38 }
 0x11d   : > { %v910_v39 = vpop.f32.mrb[0].mxu0 }
 0x11e   : > { %v911_v40 = vpop.f32.mrb[1].mxu0 }
 0x11f   : > { %v912_v41 = vadd.f32 %v911_v40, %v910_v39  ;;  %v913_v42 = vpop.f32.mrb[2].mxu0  ;;  %v950_v43 = vpop.f32.mrb[0].mxu1 }
 0x120   : > { %v914_v44 = vpop.f32.mrb[3].mxu0  ;;  %v633_v46 = vpop.f32.mrb[1].mxu1 }
 0x121   : > { %v915_v47 = vadd.f32 %v914_v44, %v913_v42  ;;  %v634_v48 = vadd.f32 %v912_v41, %v633_v46  ;;  %v951_v49 = vpop.f32.mrb[2].mxu1 }
 0x122   : > { %v636_v51 = vpop.f32.mrb[3].mxu1 }
 0x123   : > { %v648_v52 = vadd.f32 %v634_v48, %v314_v45  ;;  %v637_v53 = vadd.f32 %v915_v47, %v636_v51 }
 0x125   : > { %652 = vst [vmem:[#allocation2] sm:$0xff] %v648_v52  ;;  %v649_v54 = vadd.f32 %v637_v53, %v315_v50  ;;  %v916_v55 = vpop.f32.mrb[4].mxu0 }
 0x126   : > { %v917_v56 = vpop.f32.mrb[5].mxu0 }
 0x127   : > { %653 = vst [vmem:[#allocation2 + $0x8] sm:$0xff] %v649_v54  ;;  %v918_v57 = vadd.f32 %v917_v56, %v916_v55  ;;  %v919_v58 = vpop.f32.mrb[6].mxu0 }
 0x128   : > { %v920_v60 = vpop.f32.mrb[7].mxu0 }
 0x129   : > { %v642_v61 = vadd.f32 %v950_v43, %v918_v57  ;;  %v921_v62 = vadd.f32 %v920_v60, %v919_v58  ;;  %659 = sbr.rel (%p859_p11) target bundleno = 320 (0x140), region = 70 }
 0x12b   : > { %v650_v0 = vadd.f32 %v642_v61, %v316_v59  ;;  %v645_v1 = vadd.f32 %v951_v49, %v921_v62 }
 0x12c   : > { %v660_v3 = vld [vmem:[#allocation2] sm:$0xff] (!%p859_p11) }
 0x12d   : > { %654 = vst [vmem:[#allocation2 + $0x10] sm:$0xff] %v650_v0  ;;  %v651_v2 = vadd.f32 %v645_v1, %v317_v63  ;;  %v671_v6 = vadd.f32 (!%p859_p11), %v860_v5, %v660_v3 }
 0x12e   : > { %v661_v4 = vld [vmem:[#allocation2 + $0x8] sm:$0xff] (!%p859_p11) }
 0x12f   : > { %655 = vst [vmem:[#allocation2 + $0x18] sm:$0xff] %v651_v2  ;;  %v672_v7 = vadd.f32 (!%p859_p11), %v860_v5, %v661_v4  ;;  %v683_v18 = vadd.f32 (!%p859_p11), %v876_v11, %v671_v6 }
 0x131   : > { %v684_v19 = vadd.f32 %v877_v12, %v672_v7  ;;  %v687_v22 = vmax.f32 %v683_v18, 0.0 }
 0x133   : > { %v688_v23 = vmax.f32 %v684_v19, 0.0 }
 0x134   : > { %v662_v9 = vld [vmem:[#allocation2 + $0x10] sm:$0xff] }
 0x135   : > { %v673_v13 = vadd.f32 %v860_v5, %v662_v9  ;;  %v885_v26 = vpack.c.bf16 %v688_v23, %v687_v22 }
 0x136   : > { %v663_v10 = vld [vmem:[#allocation2 + $0x18] sm:$0xff] }
 0x137   : > { %v674_v14 = vadd.f32 %v860_v5, %v663_v10  ;;  %v685_v20 = vadd.f32 %v880_v16, %v673_v13  ;;  %886 = vst [vmem:[%s1213_s4] sm:$0xff] %v885_v26  }
 0x139   : > { %v686_v21 = vadd.f32 %v881_v17, %v674_v14  ;;  %v689_v24 = vmax.f32 %v685_v20, 0.0 }
 0x13b   : > { %v690_v25 = vmax.f32 %v686_v21, 0.0 }
 0x13d   : > { %v890_v27 = vpack.c.bf16 %v690_v25, %v689_v24 }
 0x13f   : > { %893 = vst [vmem:[%s1213_s4 + $0x8] sm:$0xff] %v890_v27  }
 0x140 PF: > { %s14_s19 = sadd.s32 1, %s1065_s19   ;;  %s1214_s15 = smov %s1053_s16 }
 0x141   : > { %p11_p12 = scmp.ge.s32.totalorder %s14_s19, 5   ;;  %s1215_s16 = smov %s1128_s23 }
 0x142   : > { %s1216_s17 = smov %s1061_s18  ;;  %s1217_s18 = smov %s1219_s20 }
 0x143   :  { %13 = sbr.rel (!%p11_p12) target bundleno = 3 (0x3), region = 117 }

// kernel: res_model_forward.31
= control target key start
LH: loop header
LB: loop body
LE: loop exit
PB: predicated region body
PF: predicated region fallthrough
CT: control target
= control target key end

     0   :  { %s1002_s12 = smov 0   ;;  %s1004_s13 = smov 0   ;;  %s1112_s0 = inlined_call_operand.vmem [shape: bf16[32,1152], index: 0, kind: input, shape index: {}]   ;;  %s1113_s1 = inlined_call_operand.vmem [shape: bf16[1152,128], index: 1, kind: input, shape index: {}]   ;;  %s1114_s2 = inlined_call_operand.vmem [shape: f32[1,128], index: 2, kind: input, shape index: {}]   ;;  %s1115_s3 = inlined_call_operand.vmem [shape: bf16[32,128], index: 3, kind: output, shape index: {}]  }
   0x1   :  { %s1006_s14 = smov 0   ;;  %s1008_s15 = smov 0  }
   0x2   :  { %s1010_s16 = smov 0  }
   0x3 LB: > { %s22_s17 = sadd.s32 1, %s975_s15  ;;  %p41_p1 = scmp.ne.s32.totalorder %s967_s13, %s963_s12  ;;  %s979_s16 = sphi %s1010_s16, %s13_s16   ;;  %s975_s15 = sphi %s1008_s15, %s1119_s15   ;;  %s971_s14 = sphi %s1006_s14, %s1118_s14   ;;  %s967_s13 = sphi %s1004_s13, %s1117_s13   ;;  %s963_s12 = sphi %s1002_s12, %s1116_s12  }
   0x4   : > { %p23_p0 = scmp.ge.s32.totalorder %s22_s17, 3  ;;  %p42_p2 = scmp.eq.s32.totalorder %s979_s16, 0 }
   0x5   : > { %s34_s19 = sadd.s32 1, %s967_s13  ;;  %p739_p5 = scmp.ge.s32.totalorder %s979_s16, 3 }
   0x6   : > { %s1121_s17 = smov (%p23_p0, %s22_s17), 0  ;;  %p43_p3 = por %p42_p2, %p41_p1 }
   0x7   : > { %s30_s18 = ssub.s32 %s975_s15, %s1121_s17  ;;  %143 = sbr.rel (%p739_p5) target bundleno = 23 (0x17), region = 20 }
   0x8   : > { %p32_p4 = scmp.eq.s32.totalorder %s30_s18, 0 }
   0xa   : > { %s1037_s20 = scalar_select %p32_p4, %s967_s13, %s34_s19  }
   0xe   : > { %146 = sbr.rel (!%p43_p3) target bundleno = 23 (0x17), region = 24  ;;  %s148_s21 = sand.u32 (%p43_p3), 1, %s967_s13  }
   0xf   : > { %s792_s22 = smul.u32 (%p43_p3), 12, %s975_s15 }
  0x10   : > { %s866_s23 = smul.u32 (%p43_p3), 48, %s148_s21 }
  0x11   : > { %s156_s26 = scalar_lea.vmem (%p43_p3), %s1112_s0, %s792_s22 }
  0x12   : > { %v171_v0 = vld [vmem:[%s156_s26] sm:$0xff] (%p43_p3)  ;;  %v175_v2 = vld [vmem:[%s156_s26 + $0x48] sm:$0xff] (%p43_p3)  ;;  %s150_s27 = scalar_lea.vmem (%p43_p3), [#allocation3], %s866_s23  ;;  %v745_v6 = vld [vmem:[%s156_s26 + $0x50] sm:$0xf] (%p43_p3) }
  0x13   : > { %v173_v1 = vld [vmem:[%s156_s26 + $0x24] sm:$0xff] (%p43_p3)  ;;  %172 = vst [vmem:[%s150_s27] sm:$0xff] (%p43_p3), %v171_v0  ;;  %176 = vst [vmem:[%s150_s27 + $0x18] sm:$0xff] (%p43_p3), %v175_v2  ;;  %v177_v3 = vld [vmem:[%s156_s26 + $0x6c] sm:$0xff] (%p43_p3) }
  0x14   : > { %174 = vst [vmem:[%s150_s27 + $0xc] sm:$0xff] (%p43_p3), %v173_v1  ;;  %v741_v4 = vld [vmem:[%s156_s26 + $0x8] sm:$0xf] (%p43_p3)  ;;  %v743_v5 = vld [vmem:[%s156_s26 + $0x2c] sm:$0xf] (%p43_p3)  ;;  %178 = vst [vmem:[%s150_s27 + $0x24] sm:$0xff] (%p43_p3), %v177_v3 }
  0x15   : > { %742 = vst [vmem:[%s150_s27 + $0x8] sm:$0xf] %v741_v4  ;;  %744 = vst [vmem:[%s150_s27 + $0x14] sm:$0xf] %v743_v5  ;;  %v747_v7 = vld [vmem:[%s156_s26 + $0x74] sm:$0xf] }
  0x16   : > { %746 = vst [vmem:[%s150_s27 + $0x20] sm:$0xf] %v745_v6  ;;  %748 = vst [vmem:[%s150_s27 + $0x2c] sm:$0xf] %v747_v7 }
  0x17 PF: > { %p749_p6 = scmp.ge.s32.totalorder %s979_s16, 1  ;;  %p207_p7 = scmp.lt.s32.totalorder %s979_s16, 4 }
  0x19   : > { %p208_p8 = pnand %p749_p6, %p207_p7 }
  0x1a   : > { %s214_s28 = sand.u32 (!%p208_p8), 1, %s963_s12   ;;  %s244_s29 = smul.u32 (!%p208_p8), 48, %s971_s14 }
  0x1b   : > { %211 = sbr.rel (%p208_p8) target bundleno = 318 (0x13e), region = 54  ;;  %p751_p10 = scmp.ne.s32.totalorder (!%p208_p8), %s971_s14, 0 }
  0x1c   : > { %s867_s30 = smul.u32 (!%p208_p8), 48, %s214_s28  ;;  %p245_p9 = scmp.lt.s32.totalorder (!%p208_p8), %s244_s29, 143 }
  0x1e   : > { %s1054_s8 = scalar_lea.vmem (!%p208_p8), [#allocation3], %s867_s30 }
  0x22   : > { %s1123_s29 = smov (!%p245_p9, %s244_s29), 143  ;;  %260 = sbr.rel (%p751_p10) target bundleno = 41 (0x29), region = 62 }
  0x23   : > { %s750_s4 = sshll.u32 %s1123_s29, 2  ;;  %v981_v8 = vmov (!%p751_p10), 0.0  }
  0x24   : > { %s1052_s7 = scalar_lea.vmem %s1113_s1, %s750_s4  ;;  %261 = vst [vmem:[#allocation2] sm:$0xff] (!%p751_p10), %v981_v8  ;;  %262 = vst [vmem:[#allocation2 + $0x8] sm:$0xff] (!%p751_p10), %v981_v8 }
  0x25   : > { %263 = vst [vmem:[#allocation2 + $0x10] sm:$0xff] (!%p751_p10), %v981_v8  ;;  %264 = vst [vmem:[#allocation2 + $0x18] sm:$0xff] (!%p751_p10), %v981_v8 }
  0x29 PF: > { %v909_v9 = vld [vmem:[%s1052_s7 + $0x40] sm:$0xff]   ;;  %v912_v12 = vld [vmem:[%s1052_s7 + $0x48] sm:$0xff]   ;;  %v915_v15 = vld [vmem:[%s1052_s7 + $0x50] sm:$0xff]   ;;  %p782_p11 = scmp.ne.s32.totalorder %s971_s14, 2 }
  0x2a   : > { %v910_v10 = vld [vmem:[%s1052_s7] sm:$0xff]   ;;  %808 = vmatprep.subr.bf16.mxu0 %v909_v9  ;;  %v913_v13 = vld [vmem:[%s1052_s7 + $0x8] sm:$0xff]   ;;  %v916_v16 = vld [vmem:[%s1052_s7 + $0x10] sm:$0xff]  }
  0x2b   : > { %v911_v11 = vld [vmem:[%s1052_s7 + $0x80] sm:$0xff]   ;;  %809 = vmatpush3.bf16.msra.mxu0 %v910_v10  ;;  %v914_v14 = vld [vmem:[%s1052_s7 + $0x88] sm:$0xff]   ;;  %v917_v17 = vld [vmem:[%s1052_s7 + $0x90] sm:$0xff]  }
  0x2c   : > { %846 = vmatprep.subr.bf16.mxu1 %v911_v11  ;;  %810 = vmatprep.subr.bf16.mxu0 %v912_v12  ;;  %v918_v18 = vld [vmem:[%s1052_s7 + $0x58] sm:$0xff]   ;;  %v921_v21 = vld [vmem:[%s1052_s7 + $0x60] sm:$0xff]   ;;  %v924_v24 = vld [vmem:[%s1052_s7 + $0x68] sm:$0xff]  }
  0x2d   : > { %847 = vmatpush3.bf16.msra.mxu1 %v911_v11  ;;  %v919_v19 = vld [vmem:[%s1052_s7 + $0x18] sm:$0xff]   ;;  %v923_v22 = vld [vmem:[%s1052_s7 + $0xa0] sm:$0xff]   ;;  %v926_v25 = vld [vmem:[%s1052_s7 + $0xa8] sm:$0xff]  }
  0x2e   : > { %848 = vmatprep.subr.bf16.mxu1 %v914_v14  ;;  %v920_v20 = vld [vmem:[%s1052_s7 + $0x98] sm:$0xff]   ;;  %v922_v23 = vld [vmem:[%s1052_s7 + $0x20] sm:$0xff]   ;;  %v925_v26 = vld [vmem:[%s1052_s7 + $0x28] sm:$0xff]  }
  0x2f   : > { %811 = vmatpush3.bf16.msra.mxu0 %v913_v13  ;;  %v927_v27 = vld [vmem:[%s1052_s7 + $0x70] sm:$0xff]   ;;  %v930_v30 = vld [vmem:[%s1052_s7 + $0x78] sm:$0xff]   ;;  %v265_v45 = vld [vmem:[#allocation2] sm:$0xff] }
  0x30   : > { %812 = vmatprep.subr.bf16.mxu0 %v915_v15  ;;  %v928_v28 = vld [vmem:[%s1052_s7 + $0x30] sm:$0xff]   ;;  %v932_v31 = vld [vmem:[%s1052_s7 + $0xb8] sm:$0xff]   ;;  %v266_v50 = vld [vmem:[#allocation2 + $0x8] sm:$0xff] }
  0x31   : > { %849 = vmatpush3.bf16.msra.mxu1 %v914_v14  ;;  %v929_v29 = vld [vmem:[%s1052_s7 + $0xb0] sm:$0xff]   ;;  %v931_v34 = vld [vmem:[%s1052_s7 + $0x38] sm:$0xff]   ;;  %v783_v5 = vld [vmem:[%s1114_s2] ss:$0 sm:$0xff] (!%p782_p11) }
  0x32   : > { %850 = vmatprep.subr.bf16.mxu1 %v917_v17  ;;  %v935_v32 = vld [vmem:[%s1054_s8 + $0x4] ss:$12 sps:$4 sm:$0xff]   ;;  %v936_v33 = vld [vmem:[%s1054_s8 + $0x8] ss:$12 sps:$4 sm:$0xff]   ;;  %v933_v35 = vld [vmem:[%s1054_s8] ss:$12 sps:$4 sm:$0xff]  }
  0x33   : > { %813 = vmatpush3.bf16.msra.mxu0 %v916_v16  ;;  %533 = vmatprep.mubr.bf16.mxu0 %v935_v32  ;;  %v938_v36 = vld [vmem:[%s1054_s8 + $0x1c] ss:$12 sps:$4 sm:$0xff]   ;;  %v937_v37 = vld [vmem:[%s1054_s8 + $0x20] ss:$12 sps:$4 sm:$0xff]   ;;  %v940_v38 = vld [vmem:[%s1054_s8 + $0x18] ss:$12 sps:$4 sm:$0xff]  }
  0x34   : > { %814 = vmatprep.subr.bf16.mxu0 %v918_v18  ;;  %862 = vmatprep.mubr.bf16.mxu1 %v936_v33  ;;  %v267_v59 = vld [vmem:[#allocation2 + $0x10] sm:$0xff]  ;;  %v268_v63 = vld [vmem:[#allocation2 + $0x18] sm:$0xff] }
  0x35   : > { %851 = vmatpush3.bf16.msra.mxu1 %v917_v17 }
  0x36   : > { %852 = vmatprep.subr.bf16.mxu1 %v920_v20 }
  0x37   : > { %815 = vmatpush3.bf16.msra.mxu0 %v919_v19 }
  0x38   : > { %816 = vmatprep.subr.bf16.mxu0 %v921_v21 }
  0x39   : > { %853 = vmatpush3.bf16.msra.mxu1 %v920_v20 }
  0x3a   : > { %854 = vmatprep.subr.bf16.mxu1 %v923_v22 }
  0x3b   : > { %817 = vmatpush3.bf16.msra.mxu0 %v922_v23 }
  0x3c   : > { %818 = vmatprep.subr.bf16.mxu0 %v924_v24 }
  0x3d   : > { %855 = vmatpush3.bf16.msra.mxu1 %v923_v22 }
  0x3e   : > { %856 = vmatprep.subr.bf16.mxu1 %v926_v25 }
  0x3f   : > { %819 = vmatpush3.bf16.msra.mxu0 %v925_v26 }
  0x40   : > { %820 = vmatprep.subr.bf16.mxu0 %v927_v27 }
  0x41   : > { %857 = vmatpush3.bf16.msra.mxu1 %v926_v25 }
  0x42   : > { %858 = vmatprep.subr.bf16.mxu1 %v929_v29 }
  0x43   : > { %821 = vmatpush3.bf16.msra.mxu0 %v928_v28 }
  0x44   : > { %822 = vmatprep.subr.bf16.mxu0 %v930_v30 }
  0x45   : > { %859 = vmatpush3.bf16.msra.mxu1 %v929_v29 }
  0x46   : > { %860 = vmatprep.subr.bf16.mxu1 %v932_v31 }
  0x47   : > { %823 = vmatpush3.bf16.msra.mxu0 %v931_v34 }
  0x49   : > { %861 = vmatpush3.bf16.msra.mxu1 %v932_v31 }
  0x4a   : > { %534 = vmatmul.mubr.bf16.vlgmr.msra.gmra.mrb[0].mxu0 %v933_v35 }
  0x4b   : > { %541 = vmatprep.mubr.bf16.mxu0 %v938_v36 }
  0x4c   : > { %863 = vmatmul.mubr.bf16.vlgmr.msra.gmra.mrb[0].mxu1 %v937_v37 }
  0x52   : > { %542 = vmatmul.mubr.bf16.gmra.mrb[4].mxu0 %v940_v38 }
 0x11d   : > { %v824_v39 = vpop.f32.mrb[0].mxu0 }
 0x11e   : > { %v825_v40 = vpop.f32.mrb[1].mxu0 }
 0x11f   : > { %v826_v41 = vadd.f32 %v825_v40, %v824_v39  ;;  %v827_v42 = vpop.f32.mrb[2].mxu0  ;;  %v864_v43 = vpop.f32.mrb[0].mxu1 }
 0x120   : > { %v828_v44 = vpop.f32.mrb[3].mxu0  ;;  %v584_v46 = vpop.f32.mrb[1].mxu1 }
 0x121   : > { %v829_v47 = vadd.f32 %v828_v44, %v827_v42  ;;  %v585_v48 = vadd.f32 %v826_v41, %v584_v46  ;;  %v865_v49 = vpop.f32.mrb[2].mxu1 }
 0x122   : > { %v587_v51 = vpop.f32.mrb[3].mxu1 }
 0x123   : > { %v599_v52 = vadd.f32 %v585_v48, %v265_v45  ;;  %v588_v53 = vadd.f32 %v829_v47, %v587_v51 }
 0x125   : > { %603 = vst [vmem:[#allocation2] sm:$0xff] %v599_v52  ;;  %v600_v54 = vadd.f32 %v588_v53, %v266_v50  ;;  %v830_v55 = vpop.f32.mrb[4].mxu0 }
 0x126   : > { %v831_v56 = vpop.f32.mrb[5].mxu0 }
 0x127   : > { %604 = vst [vmem:[#allocation2 + $0x8] sm:$0xff] %v600_v54  ;;  %v832_v57 = vadd.f32 %v831_v56, %v830_v55  ;;  %v833_v58 = vpop.f32.mrb[6].mxu0 }
 0x128   : > { %v834_v60 = vpop.f32.mrb[7].mxu0 }
 0x129   : > { %v593_v61 = vadd.f32 %v864_v43, %v832_v57  ;;  %v835_v62 = vadd.f32 %v834_v60, %v833_v58  ;;  %610 = sbr.rel (%p782_p11) target bundleno = 318 (0x13e), region = 66 }
 0x12b   : > { %v601_v0 = vadd.f32 %v593_v61, %v267_v59  ;;  %v596_v1 = vadd.f32 %v865_v49, %v835_v62 }
 0x12c   : > { %v611_v3 = vld [vmem:[#allocation2] sm:$0xff] (!%p782_p11) }
 0x12d   : > { %605 = vst [vmem:[#allocation2 + $0x10] sm:$0xff] %v601_v0  ;;  %v602_v2 = vadd.f32 %v596_v1, %v268_v63  ;;  %v622_v6 = vadd.f32 (!%p782_p11), %v783_v5, %v611_v3 }
 0x12e   : > { %v612_v4 = vld [vmem:[#allocation2 + $0x8] sm:$0xff] (!%p782_p11) }
 0x12f   : > { %606 = vst [vmem:[#allocation2 + $0x18] sm:$0xff] %v602_v2  ;;  %v623_v7 = vadd.f32 (!%p782_p11), %v783_v5, %v612_v4  ;;  %v626_v12 = vmax.f32 (!%p782_p11), %v622_v6, 0.0 }
 0x131   : > { %v627_v13 = vmax.f32 %v623_v7, 0.0 }
 0x133   : > { %v800_v16 = vpack.c.bf16 %v627_v13, %v626_v12 }
 0x134   : > { %v613_v8 = vld [vmem:[#allocation2 + $0x10] sm:$0xff] }
 0x135   : > { %v624_v10 = vadd.f32 %v783_v5, %v613_v8  ;;  %801 = vst [vmem:[%s1115_s3] sm:$0xff] %v800_v16  }
 0x136   : > { %v614_v9 = vld [vmem:[#allocation2 + $0x18] sm:$0xff] }
 0x137   : > { %v625_v11 = vadd.f32 %v783_v5, %v614_v9  ;;  %v628_v14 = vmax.f32 %v624_v10, 0.0 }
 0x139   : > { %v629_v15 = vmax.f32 %v625_v11, 0.0 }
 0x13b   : > { %v805_v17 = vpack.c.bf16 %v629_v15, %v628_v14 }
 0x13d   : > { %807 = vst [vmem:[%s1115_s3 + $0x8] sm:$0xff] %v805_v17  }
 0x13e PF: > { %s13_s16 = sadd.s32 1, %s979_s16   ;;  %s1116_s12 = smov %s967_s13 }
 0x13f   : > { %p10_p12 = scmp.ge.s32.totalorder %s13_s16, 5   ;;  %s1117_s13 = smov %s1037_s20 }
 0x140   : > { %s1118_s14 = smov %s975_s15  ;;  %s1119_s15 = smov %s1121_s17 }
 0x141   :  { %12 = sbr.rel (!%p10_p12) target bundleno = 3 (0x3), region = 110 }

// kernel: res_model_forward.34
= control target key start
LH: loop header
LB: loop body
LE: loop exit
PB: predicated region body
PF: predicated region fallthrough
CT: control target
= control target key end

     0   :  { %s943_s12 = smov 0   ;;  %s945_s13 = smov 0   ;;  %s1042_s0 = inlined_call_operand.vmem [shape: bf16[8,1152], index: 0, kind: input, shape index: {}]   ;;  %s1043_s1 = inlined_call_operand.vmem [shape: bf16[1152,256], index: 1, kind: input, shape index: {}]   ;;  %s1044_s2 = inlined_call_operand.vmem [shape: f32[1,256], index: 2, kind: input, shape index: {}]   ;;  %s1045_s3 = inlined_call_operand.vmem [shape: bf16[8,256], index: 3, kind: output, shape index: {}]  }
   0x1   :  { %s947_s14 = smov 0  }
   0x2 LB: > { %s22_s15 = sadd.s32 1, %s915_s13  ;;  %p733_p0 = scmp.ge.s32.totalorder %s919_s14, 1  ;;  %s919_s14 = sphi %s947_s14, %s13_s14   ;;  %s915_s13 = sphi %s945_s13, %s1047_s13   ;;  %s911_s12 = sphi %s943_s12, %s1046_s12  }
   0x3   : > { %p23_p1 = scmp.ge.s32.totalorder %s22_s15, 3  ;;  %p168_p2 = scmp.lt.s32.totalorder %s919_s14, 4 }
   0x5   : > { %s1049_s15 = smov (%p23_p1, %s22_s15), 0  ;;  %p169_p3 = pnand %p733_p0, %p168_p2 }
   0x6   : > { %s202_s16 = smul.u32 (!%p169_p3), 3, %s911_s12  ;;  %p737_p6 = scmp.ne.s32.totalorder (!%p169_p3), %s911_s12, 0 }
   0x7   : > { %172 = sbr.rel (%p169_p3) target bundleno = 321 (0x141), region = 32 }
   0x8   : > { %s212_s17 = smul.u32 (!%p169_p3), 48, %s911_s12  ;;  %p205_p4 = scmp.lt.s32.totalorder (!%p169_p3), %s202_s16, 8 }
   0xa   : > { %p213_p5 = scmp.lt.s32.totalorder (!%p169_p3), %s212_s17, 143 }
   0xe   : > { %s1051_s16 = smov (!%p205_p4, %s202_s16), 8  ;;  %s1053_s17 = smov (!%p213_p5, %s212_s17), 143 }
   0xf   : > { %s734_s18 = sshll.u32 %s1051_s16, 2  ;;  %s794_s22 = sshll.u32 %s1053_s17, 3  ;;  %v921_v0 = vmov (!%p737_p6), 0.0  }
  0x10   : > { %s968_s21 = scalar_lea.vmem %s1042_s0, %s734_s18  ;;  %s973_s25 = scalar_lea.vmem %s1043_s1, %s794_s22  ;;  %229 = vst [vmem:[#allocation2] sm:$0xff] (!%p737_p6), %v921_v0  ;;  %230 = vst [vmem:[#allocation2 + $0x8] sm:$0xff] (!%p737_p6), %v921_v0 }
  0x11   : > { %228 = sbr.rel (%p737_p6) target bundleno = 24 (0x18), region = 36 }
  0x18 PF: > { %v822_v1 = vld [vmem:[%s973_s25 + $0x4] ss:$8 sps:$4 sm:$0xff]   ;;  %v824_v2 = vld [vmem:[%s973_s25] ss:$8 sps:$4 sm:$0xff]   ;;  %v922_v3 = vmov 0   ;;  %p789_p7 = scmp.ne.s32.totalorder %s911_s12, 2 }
  0x19   : > { %607 = vmatprep.mubr.bf16.mxu1 %v922_v3  ;;  %534 = vmatprep.subr.bf16.mxu0 %v822_v1  ;;  %v825_v4 = vld [vmem:[%s973_s25 + $0x14] ss:$8 sps:$4 sm:$0xff]   ;;  %v827_v5 = vld [vmem:[%s973_s25 + $0x10] ss:$8 sps:$4 sm:$0xff]   ;;  %v828_v6 = vld [vmem:[%s973_s25 + $0x24] ss:$8 sps:$4 sm:$0xff]  }
  0x1a   : > { %535 = vmatpush1.bf16.msra.mxu0 %v824_v2  ;;  %v830_v7 = vld [vmem:[%s973_s25 + $0x20] ss:$8 sps:$4 sm:$0xff]   ;;  %v831_v8 = vld [vmem:[%s973_s25 + $0x34] ss:$8 sps:$4 sm:$0xff]   ;;  %v833_v9 = vld [vmem:[%s973_s25 + $0x30] ss:$8 sps:$4 sm:$0xff]  }
  0x1b   : > { %536 = vmatprep.subr.bf16.mxu0 %v825_v4  ;;  %v846_v10 = vld [vmem:[%s973_s25 + $0x104] ss:$8 sps:$4 sm:$0xff]   ;;  %v848_v11 = vld [vmem:[%s973_s25 + $0x100] ss:$8 sps:$4 sm:$0xff]   ;;  %v852_v13 = vld [vmem:[%s973_s25 + $0x114] ss:$8 sps:$4 sm:$0xff]   ;;  %v628_v4 = vlaneseq (!%p789_p7) }
  0x1c   : > { %v834_v12 = vld [vmem:[%s973_s25 + $0x44] ss:$8 sps:$4 sm:$0xff]   ;;  %575 = vmatprep.subr.bf16.mxu1 %v846_v10  ;;  %v854_v14 = vld [vmem:[%s973_s25 + $0x110] ss:$8 sps:$4 sm:$0xff]   ;;  %v836_v15 = vld [vmem:[%s973_s25 + $0x40] ss:$8 sps:$4 sm:$0xff]  }
  0x1d   : > { %576 = vmatpush1.bf16.msra.mxu1 %v848_v11  ;;  %v837_v16 = vld [vmem:[%s973_s25 + $0x54] ss:$8 sps:$4 sm:$0xff]   ;;  %v858_v17 = vld [vmem:[%s973_s25 + $0x124] ss:$8 sps:$4 sm:$0xff]   ;;  %v860_v18 = vld [vmem:[%s973_s25 + $0x120] ss:$8 sps:$4 sm:$0xff]  }
  0x1e   : > { %537 = vmatpush1.bf16.msra.mxu0 %v827_v5  ;;  %577 = vmatprep.subr.bf16.mxu1 %v852_v13  ;;  %v839_v19 = vld [vmem:[%s973_s25 + $0x50] ss:$8 sps:$4 sm:$0xff]   ;;  %v864_v20 = vld [vmem:[%s973_s25 + $0x134] ss:$8 sps:$4 sm:$0xff]   ;;  %v840_v21 = vld [vmem:[%s973_s25 + $0x64] ss:$8 sps:$4 sm:$0xff]  }
  0x1f   : > { %538 = vmatprep.subr.bf16.mxu0 %v828_v6  ;;  %v866_v22 = vld [vmem:[%s973_s25 + $0x130] ss:$8 sps:$4 sm:$0xff]   ;;  %v842_v23 = vld [vmem:[%s973_s25 + $0x60] ss:$8 sps:$4 sm:$0xff]   ;;  %v870_v24 = vld [vmem:[%s973_s25 + $0x144] ss:$8 sps:$4 sm:$0xff]  }
  0x20   : > { %v843_v25 = vld [vmem:[%s973_s25 + $0x74] ss:$8 sps:$4 sm:$0xff]   ;;  %v872_v26 = vld [vmem:[%s973_s25 + $0x140] ss:$8 sps:$4 sm:$0xff]   ;;  %v845_v27 = vld [vmem:[%s973_s25 + $0x70] ss:$8 sps:$4 sm:$0xff]  }
  0x21   : > { %578 = vmatpush1.bf16.msra.mxu1 %v854_v14  ;;  %v876_v28 = vld [vmem:[%s973_s25 + $0x154] ss:$8 sps:$4 sm:$0xff]   ;;  %v849_v29 = vld [vmem:[%s973_s25 + $0x84] ss:$8 sps:$4 sm:$0xff]   ;;  %v878_v30 = vld [vmem:[%s973_s25 + $0x150] ss:$8 sps:$4 sm:$0xff]  }
  0x22   : > { %539 = vmatpush1.bf16.msra.mxu0 %v830_v7  ;;  %579 = vmatprep.subr.bf16.mxu1 %v858_v17  ;;  %v851_v31 = vld [vmem:[%s973_s25 + $0x80] ss:$8 sps:$4 sm:$0xff]   ;;  %v882_v32 = vld [vmem:[%s973_s25 + $0x164] ss:$8 sps:$4 sm:$0xff]   ;;  %v855_v33 = vld [vmem:[%s973_s25 + $0x94] ss:$8 sps:$4 sm:$0xff]  }
  0x23   : > { %540 = vmatprep.subr.bf16.mxu0 %v831_v8  ;;  %v233_v34 = vld [vmem:[%s968_s21] sm:$0xff]  ;;  %v857_v37 = vld [vmem:[%s973_s25 + $0x90] ss:$8 sps:$4 sm:$0xff]   ;;  %v888_v38 = vld [vmem:[%s973_s25 + $0x174] ss:$8 sps:$4 sm:$0xff]   ;;  %v629_v5 = vshrl.u32 (!%p789_p7), %v628_v4, 7 }
  0x24   : > { %v739_v35 = vcombine.high %v233_v34, %v233_v34  ;;  %v884_v36 = vld [vmem:[%s973_s25 + $0x160] ss:$8 sps:$4 sm:$0xff]   ;;  %v861_v39 = vld [vmem:[%s973_s25 + $0xa4] ss:$8 sps:$4 sm:$0xff]   ;;  %v890_v40 = vld [vmem:[%s973_s25 + $0x170] ss:$8 sps:$4 sm:$0xff]   ;;  %v738_v53 = vcombine.low %v233_v34, %v233_v34 }
  0x25   : > { %580 = vmatpush1.bf16.msra.mxu1 %v860_v18  ;;  %v863_v41 = vld [vmem:[%s973_s25 + $0xa0] ss:$8 sps:$4 sm:$0xff]   ;;  %v867_v42 = vld [vmem:[%s973_s25 + $0xb4] ss:$8 sps:$4 sm:$0xff]   ;;  %v869_v44 = vld [vmem:[%s973_s25 + $0xb0] ss:$8 sps:$4 sm:$0xff]  }
  0x26   : > { %541 = vmatpush1.bf16.msra.mxu0 %v833_v9  ;;  %581 = vmatprep.subr.bf16.mxu1 %v864_v20  ;;  %v894_v43 = vld [vmem:[%s968_s21 + $0x8] ss:$0 sps:$4 sm:$0xff]   ;;  %v873_v45 = vld [vmem:[%s973_s25 + $0xc4] ss:$8 sps:$4 sm:$0xff]   ;;  %v879_v47 = vld [vmem:[%s973_s25 + $0xd4] ss:$8 sps:$4 sm:$0xff]  }
  0x27   : > { %542 = vmatprep.subr.bf16.mxu0 %v834_v12  ;;  %566 = vmatprep.mubr.bf16.mxu0 %v739_v35  ;;  %v875_v46 = vld [vmem:[%s973_s25 + $0xc0] ss:$8 sps:$4 sm:$0xff]   ;;  %v881_v48 = vld [vmem:[%s973_s25 + $0xd0] ss:$8 sps:$4 sm:$0xff]   ;;  %v885_v49 = vld [vmem:[%s973_s25 + $0xe4] ss:$8 sps:$4 sm:$0xff]  }
  0x28   : > { %v887_v50 = vld [vmem:[%s973_s25 + $0xe0] ss:$8 sps:$4 sm:$0xff]   ;;  %v891_v51 = vld [vmem:[%s973_s25 + $0xf4] ss:$8 sps:$4 sm:$0xff]   ;;  %v893_v52 = vld [vmem:[%s973_s25 + $0xf0] ss:$8 sps:$4 sm:$0xff]  }
  0x29   : > { %582 = vmatpush1.bf16.msra.mxu1 %v866_v22  ;;  %v231_v58 = vld [vmem:[#allocation2] sm:$0xff]  ;;  %v232_v61 = vld [vmem:[#allocation2 + $0x8] sm:$0xff]  ;;  %v630_v7 = vsub.s32 (!%p789_p7), 0, %v629_v5  ;;  %v634_v8 = vsub.s32 (!%p789_p7), 1, %v629_v5 }
  0x2a   : > { %543 = vmatpush1.bf16.msra.mxu0 %v836_v15  ;;  %583 = vmatprep.subr.bf16.mxu1 %v870_v24  ;;  %v626_v6 = vld [vmem:[%s1044_s2] sm:$0x3] (!%p789_p7) }
  0x2b   : > { %544 = vmatprep.subr.bf16.mxu0 %v837_v16  ;;  %v631_v11 = vrot.slane (!%p789_p7), %v626_v6, %v630_v7  ;;  %v635_v12 = vrot.slane (!%p789_p7), %v626_v6, %v634_v8 }
  0x2d   : > { %584 = vmatpush1.bf16.msra.mxu1 %v872_v26 }
  0x2e   : > { %545 = vmatpush1.bf16.msra.mxu0 %v839_v19  ;;  %585 = vmatprep.subr.bf16.mxu1 %v876_v28 }
  0x2f   : > { %546 = vmatprep.subr.bf16.mxu0 %v840_v21 }
  0x31   : > { %586 = vmatpush1.bf16.msra.mxu1 %v878_v30 }
  0x32   : > { %547 = vmatpush1.bf16.msra.mxu0 %v842_v23  ;;  %587 = vmatprep.subr.bf16.mxu1 %v882_v32 }
  0x33   : > { %548 = vmatprep.subr.bf16.mxu0 %v843_v25 }
  0x35   : > { %588 = vmatpush1.bf16.msra.mxu1 %v884_v36 }
  0x36   : > { %549 = vmatpush1.bf16.msra.mxu0 %v845_v27  ;;  %589 = vmatprep.subr.bf16.mxu1 %v888_v38 }
  0x37   : > { %550 = vmatprep.subr.bf16.mxu0 %v849_v29 }
  0x39   : > { %590 = vmatpush1.bf16.msra.mxu1 %v890_v40 }
  0x3a   : > { %551 = vmatpush1.bf16.msra.mxu0 %v851_v31 }
  0x3b   : > { %552 = vmatprep.subr.bf16.mxu0 %v855_v33 }
  0x3c   : > { %608 = vmatmul.mubr.bf16.vlgmr.msra.gmra.mrb[0].mxu1 %v894_v43 }
  0x3e   : > { %553 = vmatpush1.bf16.msra.mxu0 %v857_v37 }
  0x3f   : > { %554 = vmatprep.subr.bf16.mxu0 %v861_v39 }
  0x42   : > { %555 = vmatpush1.bf16.msra.mxu0 %v863_v41 }
  0x43   : > { %556 = vmatprep.subr.bf16.mxu0 %v867_v42 }
  0x46   : > { %557 = vmatpush1.bf16.msra.mxu0 %v869_v44 }
  0x47   : > { %558 = vmatprep.subr.bf16.mxu0 %v873_v45 }
  0x4a   : > { %559 = vmatpush1.bf16.msra.mxu0 %v875_v46 }
  0x4b   : > { %560 = vmatprep.subr.bf16.mxu0 %v879_v47 }
  0x4e   : > { %561 = vmatpush1.bf16.msra.mxu0 %v881_v48 }
  0x4f   : > { %562 = vmatprep.subr.bf16.mxu0 %v885_v49 }
  0x52   : > { %563 = vmatpush1.bf16.msra.mxu0 %v887_v50 }
  0x53   : > { %564 = vmatprep.subr.bf16.mxu0 %v891_v51 }
  0x56   : > { %565 = vmatpush1.bf16.msra.mxu0 %v893_v52 }
  0x59   : > { %567 = vmatmul.mubr.bf16.vlgmr.msra.gmra.mrb[0].mxu0 %v738_v53 }
 0x10f   : > { %v609_v54 = vpop.f32.mrb[0].mxu1 }
 0x110   : > { %v611_v55 = vpop.f32.mrb[1].mxu1 }
 0x111   : > { %v613_v56 = vpop.f32.mrb[2].mxu1 }
 0x112   : > { %v614_v57 = vpop.f32.mrb[3].mxu1 }
 0x12c   : > { %v568_v59 = vpop.f32.mrb[0].mxu0  ;;  %623 = sbr.rel (%p789_p7) target bundleno = 321 (0x141), region = 40 }
 0x12d   : > { %v610_v60 = vadd.f32 %v609_v54, %v568_v59  ;;  %v570_v62 = vpop.f32.mrb[1].mxu0 }
 0x12e   : > { %v612_v63 = vadd.f32 %v611_v55, %v570_v62  ;;  %v572_v0 = vpop.f32.mrb[2].mxu0 }
 0x12f   : > { %v616_v1 = vadd.f32 %v610_v60, %v231_v58  ;;  %v573_v2 = vpop.f32.mrb[3].mxu0 }
 0x130   : > { %v617_v3 = vadd.f32 %v612_v63, %v232_v61 }
 0x131   : > { %618 = vst [vmem:[#allocation2] sm:$0xff] %v616_v1 }
 0x132   : > { %619 = vst [vmem:[#allocation2 + $0x8] sm:$0xff] %v617_v3 }
 0x138   : > { %v624_v9 = vld [vmem:[#allocation2] sm:$0xff] }
 0x139   : > { %v625_v10 = vld [vmem:[#allocation2 + $0x8] sm:$0xff]  ;;  %v638_v13 = vadd.f32 %v631_v11, %v624_v9 }
 0x13a   : > { %v639_v14 = vadd.f32 %v635_v12, %v625_v10 }
 0x13b   : > { %v640_v15 = vmax.f32 %v638_v13, 0.0 }
 0x13c   : > { %v641_v16 = vmax.f32 %v639_v14, 0.0 }
 0x13e   : > { %v795_v17 = vpack.c.bf16 %v641_v16, %v640_v15 }
 0x140   : > { %650 = vst [vmem:[%s1045_s3] sm:$0xff] %v795_v17 }
 0x141 PF: > { %s13_s14 = sadd.s32 1, %s919_s14   ;;  %s1046_s12 = smov %s915_s13 }
 0x142   : > { %p10_p8 = scmp.ge.s32.totalorder %s13_s14, 5   ;;  %s1047_s13 = smov %s1049_s15 }
 0x144   :  { %12 = sbr.rel (!%p10_p8) target bundleno = 2 (0x2), region = 73 }

// kernel: res_model_forward.33
= control target key start
LH: loop header
LB: loop body
LE: loop exit
PB: predicated region body
PF: predicated region fallthrough
CT: control target
= control target key end

     0   :  { %v221_v1 = vmov 0   ;;  %v34_v18 = vlaneseq  ;;  %s299_s1 = inlined_call_operand.vmem [shape: bf16[128,256], index: 1, kind: input, shape index: {}]   ;;  %s300_s0 = inlined_call_operand.vmem [shape: bf16[8,128], index: 0, kind: input, shape index: {}]   ;;  %s301_s2 = inlined_call_operand.vmem [shape: f32[1,256], index: 2, kind: input, shape index: {}]   ;;  %s302_s3 = inlined_call_operand.vmem [shape: bf16[8,256], index: 3, kind: output, shape index: {}]  }
   0x1   :  { %v197_v0 = vld [vmem:[%s299_s1 + $0x4] ss:$8 sps:$4 sm:$0xff]   ;;  %156 = vmatprep.mubr.bf16.mxu0 %v221_v1  ;;  %v199_v2 = vld [vmem:[%s299_s1] ss:$8 sps:$4 sm:$0xff]   ;;  %v200_v3 = vld [vmem:[%s299_s1 + $0x14] ss:$8 sps:$4 sm:$0xff]  }
   0x2   :  { %124 = vmatprep.subr.bf16.mxu0 %v197_v0  ;;  %v202_v4 = vld [vmem:[%s299_s1 + $0x10] ss:$8 sps:$4 sm:$0xff]   ;;  %v203_v5 = vld [vmem:[%s299_s1 + $0x24] ss:$8 sps:$4 sm:$0xff]   ;;  %v205_v6 = vld [vmem:[%s299_s1 + $0x20] ss:$8 sps:$4 sm:$0xff]  }
   0x3   :  { %125 = vmatpush1.bf16.msra.mxu0 %v199_v2  ;;  %v206_v7 = vld [vmem:[%s299_s1 + $0x34] ss:$8 sps:$4 sm:$0xff]   ;;  %v208_v8 = vld [vmem:[%s299_s1 + $0x30] ss:$8 sps:$4 sm:$0xff]   ;;  %v209_v9 = vld [vmem:[%s299_s1 + $0x44] ss:$8 sps:$4 sm:$0xff]  }
   0x4   :  { %126 = vmatprep.subr.bf16.mxu0 %v200_v3  ;;  %v211_v10 = vld [vmem:[%s299_s1 + $0x40] ss:$8 sps:$4 sm:$0xff]   ;;  %v212_v11 = vld [vmem:[%s299_s1 + $0x54] ss:$8 sps:$4 sm:$0xff]   ;;  %v214_v12 = vld [vmem:[%s299_s1 + $0x50] ss:$8 sps:$4 sm:$0xff]  }
   0x5   :  { %v215_v13 = vld [vmem:[%s299_s1 + $0x64] ss:$8 sps:$4 sm:$0xff]   ;;  %v217_v14 = vld [vmem:[%s299_s1 + $0x60] ss:$8 sps:$4 sm:$0xff]   ;;  %v218_v15 = vld [vmem:[%s299_s1 + $0x74] ss:$8 sps:$4 sm:$0xff]  }
   0x6   :  { %v220_v16 = vld [vmem:[%s299_s1 + $0x70] ss:$8 sps:$4 sm:$0xff]   ;;  %v15_v17 = vld [vmem:[%s300_s0] sm:$0xf]  ;;  %v35_v19 = vshrl.u32 %v34_v18, 7 }
   0x7   :  { %127 = vmatpush1.bf16.msra.mxu0 %v202_v4  ;;  %v32_v21 = vld [vmem:[%s301_s2] sm:$0x3] }
   0x8   :  { %128 = vmatprep.subr.bf16.mxu0 %v203_v5  ;;  %v36_v20 = vsub.s32 0, %v35_v19  ;;  %v40_v22 = vsub.s32 1, %v35_v19 }
   0xa   :  { %v37_v23 = vrot.slane %v32_v21, %v36_v20  ;;  %v41_v24 = vrot.slane %v32_v21, %v40_v22 }
   0xb   :  { %129 = vmatpush1.bf16.msra.mxu0 %v205_v6 }
   0xc   :  { %130 = vmatprep.subr.bf16.mxu0 %v206_v7 }
   0xf   :  { %131 = vmatpush1.bf16.msra.mxu0 %v208_v8 }
  0x10   :  { %132 = vmatprep.subr.bf16.mxu0 %v209_v9 }
  0x13   :  { %133 = vmatpush1.bf16.msra.mxu0 %v211_v10 }
  0x14   :  { %134 = vmatprep.subr.bf16.mxu0 %v212_v11 }
  0x17   :  { %135 = vmatpush1.bf16.msra.mxu0 %v214_v12 }
  0x18   :  { %136 = vmatprep.subr.bf16.mxu0 %v215_v13 }
  0x1b   :  { %137 = vmatpush1.bf16.msra.mxu0 %v217_v14 }
  0x1c   :  { %138 = vmatprep.subr.bf16.mxu0 %v218_v15 }
  0x1f   :  { %139 = vmatpush1.bf16.msra.mxu0 %v220_v16 }
  0x22   :  { %157 = vmatmul.mubr.bf16.vlgmr.msra.gmra.mrb[0].mxu0 %v15_v17 }
  0xf5   :  { %v158_v25 = vpop.f32.mrb[0].mxu0 }
  0xf6   :  { %v159_v26 = vadd.f32 %v158_v25, %v37_v23  ;;  %v160_v27 = vpop.f32.mrb[1].mxu0 }
  0xf7   :  { %v161_v28 = vadd.f32 %v160_v27, %v41_v24  ;;  %v162_v29 = vpop.f32.mrb[2].mxu0 }
  0xf8   :  { %v163_v30 = vpop.f32.mrb[3].mxu0 }
  0xf9   :  { %v195_v31 = vpack.c.bf16 %v161_v28, %v159_v26 }
  0xfb   :  { %173 = vst [vmem:[%s302_s3] sm:$0xff] %v195_v31 }

// kernel: res_model_forward.35
= control target key start
LH: loop header
LB: loop body
LE: loop exit
PB: predicated region body
PF: predicated region fallthrough
CT: control target
= control target key end

     0   :  { %s1479_s15 = smov 0   ;;  %s1481_s16 = smov 0   ;;  %s1636_s0 = inlined_call_operand.vmem [shape: bf16[8,2304], index: 0, kind: input, shape index: {}]   ;;  %s1637_s1 = inlined_call_operand.vmem [shape: bf16[2304,256], index: 1, kind: input, shape index: {}]   ;;  %s1638_s2 = inlined_call_operand.vmem [shape: f32[1,256], index: 2, kind: input, shape index: {}]   ;;  %s1639_s3 = inlined_call_operand.vmem [shape: bf16[8,256], index: 3, kind: input, shape index: {}]   ;;  %s1640_s4 = inlined_call_operand.vmem [shape: bf16[8,256], index: 4, kind: output, shape index: {}]  }
   0x1   :  { %s1483_s17 = smov 0  }
   0x2 LB: > { %s23_s18 = sadd.s32 1, %s1447_s16  ;;  %p1140_p0 = scmp.ge.s32.totalorder %s1451_s17, 1  ;;  %s1451_s17 = sphi %s1483_s17, %s14_s17   ;;  %s1447_s16 = sphi %s1481_s16, %s1642_s16   ;;  %s1443_s15 = sphi %s1479_s15, %s1641_s15  }
   0x3   : > { %p24_p1 = scmp.ge.s32.totalorder %s23_s18, 3  ;;  %p203_p2 = scmp.lt.s32.totalorder %s1451_s17, 4 }
   0x5   : > { %s1644_s18 = smov (%p24_p1, %s23_s18), 0  ;;  %p204_p3 = pnand %p1140_p0, %p203_p2 }
   0x6   : > { %s244_s19 = smul.u32 (!%p204_p3), 6, %s1443_s15  ;;  %p1144_p6 = scmp.ne.s32.totalorder (!%p204_p3), %s1443_s15, 0 }
   0x7   : > { %207 = sbr.rel (%p204_p3) target bundleno = 387 (0x183), region = 36 }
   0x8   : > { %s254_s20 = smul.u32 (!%p204_p3), 96, %s1443_s15  ;;  %p247_p4 = scmp.lt.s32.totalorder (!%p204_p3), %s244_s19, 17 }
   0xa   : > { %p255_p5 = scmp.lt.s32.totalorder (!%p204_p3), %s254_s20, 287 }
   0xe   : > { %s1646_s19 = smov (!%p247_p4, %s244_s19), 17  ;;  %s1648_s20 = smov (!%p255_p5, %s254_s20), 287 }
   0xf   : > { %s1141_s21 = sshll.u32 %s1646_s19, 2  ;;  %s1252_s25 = sshll.u32 %s1648_s20, 3  ;;  %v1453_v0 = vmov (!%p1144_p6), 0.0  }
  0x10   : > { %s1504_s24 = scalar_lea.vmem %s1636_s0, %s1141_s21  ;;  %s1509_s28 = scalar_lea.vmem %s1637_s1, %s1252_s25  ;;  %275 = vst [vmem:[#allocation2] sm:$0xff] (!%p1144_p6), %v1453_v0  ;;  %276 = vst [vmem:[#allocation2 + $0x8] sm:$0xff] (!%p1144_p6), %v1453_v0 }
  0x11   : > { %274 = sbr.rel (%p1144_p6) target bundleno = 24 (0x18), region = 40 }
  0x18 PF: > { %v1279_v1 = vld [vmem:[%s1509_s28 + $0x4] ss:$8 sps:$4 sm:$0xff]   ;;  %v1283_v3 = vld [vmem:[%s1509_s28] ss:$8 sps:$4 sm:$0xff]   ;;  %v1285_v5 = vld [vmem:[%s1509_s28 + $0x14] ss:$8 sps:$4 sm:$0xff]  }
  0x19   : > { %v1281_v2 = vld [vmem:[%s1509_s28 + $0x104] ss:$8 sps:$4 sm:$0xff]   ;;  %879 = vmatprep.subr.bf16.mxu0 %v1279_v1  ;;  %v1284_v4 = vld [vmem:[%s1509_s28 + $0x100] ss:$8 sps:$4 sm:$0xff]   ;;  %v1287_v6 = vld [vmem:[%s1509_s28 + $0x114] ss:$8 sps:$4 sm:$0xff]  }
  0x1a   : > { %920 = vmatprep.subr.bf16.mxu1 %v1281_v2  ;;  %880 = vmatpush1.bf16.msra.mxu0 %v1283_v3  ;;  %v1289_v7 = vld [vmem:[%s1509_s28 + $0x10] ss:$8 sps:$4 sm:$0xff]   ;;  %v1291_v9 = vld [vmem:[%s1509_s28 + $0x24] ss:$8 sps:$4 sm:$0xff]   ;;  %v1295_v11 = vld [vmem:[%s1509_s28 + $0x20] ss:$8 sps:$4 sm:$0xff]  }
  0x1b   : > { %921 = vmatpush1.bf16.msra.mxu1 %v1284_v4  ;;  %881 = vmatprep.subr.bf16.mxu0 %v1285_v5  ;;  %v1290_v8 = vld [vmem:[%s1509_s28 + $0x110] ss:$8 sps:$4 sm:$0xff]   ;;  %v1293_v10 = vld [vmem:[%s1509_s28 + $0x124] ss:$8 sps:$4 sm:$0xff]   ;;  %v1296_v12 = vld [vmem:[%s1509_s28 + $0x120] ss:$8 sps:$4 sm:$0xff]  }
  0x1c   : > { %922 = vmatprep.subr.bf16.mxu1 %v1287_v6  ;;  %v1297_v13 = vld [vmem:[%s1509_s28 + $0x34] ss:$8 sps:$4 sm:$0xff]   ;;  %v1301_v15 = vld [vmem:[%s1509_s28 + $0x30] ss:$8 sps:$4 sm:$0xff]   ;;  %v1303_v17 = vld [vmem:[%s1509_s28 + $0x44] ss:$8 sps:$4 sm:$0xff]  }
  0x1d   : > { %v1299_v14 = vld [vmem:[%s1509_s28 + $0x134] ss:$8 sps:$4 sm:$0xff]   ;;  %v1302_v16 = vld [vmem:[%s1509_s28 + $0x130] ss:$8 sps:$4 sm:$0xff]   ;;  %v1305_v18 = vld [vmem:[%s1509_s28 + $0x144] ss:$8 sps:$4 sm:$0xff]  }
  0x1e   : > { %882 = vmatpush1.bf16.msra.mxu0 %v1289_v7  ;;  %v1307_v19 = vld [vmem:[%s1509_s28 + $0x40] ss:$8 sps:$4 sm:$0xff]   ;;  %v1309_v21 = vld [vmem:[%s1509_s28 + $0x54] ss:$8 sps:$4 sm:$0xff]   ;;  %v1313_v23 = vld [vmem:[%s1509_s28 + $0x50] ss:$8 sps:$4 sm:$0xff]  }
  0x1f   : > { %923 = vmatpush1.bf16.msra.mxu1 %v1290_v8  ;;  %883 = vmatprep.subr.bf16.mxu0 %v1291_v9  ;;  %v1308_v20 = vld [vmem:[%s1509_s28 + $0x140] ss:$8 sps:$4 sm:$0xff]   ;;  %v1311_v22 = vld [vmem:[%s1509_s28 + $0x154] ss:$8 sps:$4 sm:$0xff]   ;;  %v1314_v24 = vld [vmem:[%s1509_s28 + $0x150] ss:$8 sps:$4 sm:$0xff]  }
  0x20   : > { %924 = vmatprep.subr.bf16.mxu1 %v1293_v10  ;;  %v1315_v25 = vld [vmem:[%s1509_s28 + $0x64] ss:$8 sps:$4 sm:$0xff]   ;;  %v1319_v27 = vld [vmem:[%s1509_s28 + $0x60] ss:$8 sps:$4 sm:$0xff]   ;;  %v1321_v29 = vld [vmem:[%s1509_s28 + $0x74] ss:$8 sps:$4 sm:$0xff]  }
  0x21   : > { %v1317_v26 = vld [vmem:[%s1509_s28 + $0x164] ss:$8 sps:$4 sm:$0xff]   ;;  %v1320_v28 = vld [vmem:[%s1509_s28 + $0x160] ss:$8 sps:$4 sm:$0xff]   ;;  %v1323_v30 = vld [vmem:[%s1509_s28 + $0x174] ss:$8 sps:$4 sm:$0xff]  }
  0x22   : > { %884 = vmatpush1.bf16.msra.mxu0 %v1295_v11  ;;  %v1325_v31 = vld [vmem:[%s1509_s28 + $0x70] ss:$8 sps:$4 sm:$0xff]   ;;  %v1327_v33 = vld [vmem:[%s1509_s28 + $0x84] ss:$8 sps:$4 sm:$0xff]   ;;  %v1331_v35 = vld [vmem:[%s1509_s28 + $0x80] ss:$8 sps:$4 sm:$0xff]  }
  0x23   : > { %925 = vmatpush1.bf16.msra.mxu1 %v1296_v12  ;;  %885 = vmatprep.subr.bf16.mxu0 %v1297_v13  ;;  %v1326_v32 = vld [vmem:[%s1509_s28 + $0x170] ss:$8 sps:$4 sm:$0xff]   ;;  %v1329_v34 = vld [vmem:[%s1509_s28 + $0x184] ss:$8 sps:$4 sm:$0xff]   ;;  %v1332_v36 = vld [vmem:[%s1509_s28 + $0x180] ss:$8 sps:$4 sm:$0xff]  }
  0x24   : > { %926 = vmatprep.subr.bf16.mxu1 %v1299_v14  ;;  %v1333_v37 = vld [vmem:[%s1509_s28 + $0x94] ss:$8 sps:$4 sm:$0xff]   ;;  %v1337_v39 = vld [vmem:[%s1509_s28 + $0x90] ss:$8 sps:$4 sm:$0xff]   ;;  %v1339_v41 = vld [vmem:[%s1509_s28 + $0xa4] ss:$8 sps:$4 sm:$0xff]  }
  0x25   : > { %v1335_v38 = vld [vmem:[%s1509_s28 + $0x194] ss:$8 sps:$4 sm:$0xff]   ;;  %v1338_v40 = vld [vmem:[%s1509_s28 + $0x190] ss:$8 sps:$4 sm:$0xff]   ;;  %v1341_v42 = vld [vmem:[%s1509_s28 + $0x1a4] ss:$8 sps:$4 sm:$0xff]  }
  0x26   : > { %886 = vmatpush1.bf16.msra.mxu0 %v1301_v15  ;;  %v1343_v43 = vld [vmem:[%s1509_s28 + $0xa0] ss:$8 sps:$4 sm:$0xff]   ;;  %v1345_v45 = vld [vmem:[%s1509_s28 + $0xb4] ss:$8 sps:$4 sm:$0xff]   ;;  %v1349_v50 = vld [vmem:[%s1509_s28 + $0xb0] ss:$8 sps:$4 sm:$0xff]  }
  0x27   : > { %927 = vmatpush1.bf16.msra.mxu1 %v1302_v16  ;;  %887 = vmatprep.subr.bf16.mxu0 %v1303_v17  ;;  %v1344_v44 = vld [vmem:[%s1509_s28 + $0x1a0] ss:$8 sps:$4 sm:$0xff]   ;;  %v1347_v46 = vld [vmem:[%s1509_s28 + $0x1b4] ss:$8 sps:$4 sm:$0xff]   ;;  %v1350_v51 = vld [vmem:[%s1509_s28 + $0x1b0] ss:$8 sps:$4 sm:$0xff]  }
  0x28   : > { %928 = vmatprep.subr.bf16.mxu1 %v1305_v18  ;;  %v279_v47 = vld [vmem:[%s1504_s24] sm:$0xff]  ;;  %v280_v49 = vld [vmem:[%s1504_s24 + $0x8] sm:$0xff]  ;;  %v1357_v57 = vld [vmem:[%s1509_s28 + $0xd4] ss:$8 sps:$4 sm:$0xff]   ;;  %p1247_p7 = scmp.ne.s32.totalorder %s1443_s15, 2 }
  0x29   : > { %v1146_v48 = vcombine.high %v279_v47, %v279_v47  ;;  %v1148_v52 = vcombine.high %v280_v49, %v280_v49  ;;  %v1351_v53 = vld [vmem:[%s1509_s28 + $0xc4] ss:$8 sps:$4 sm:$0xff]   ;;  %v1355_v55 = vld [vmem:[%s1509_s28 + $0xc0] ss:$8 sps:$4 sm:$0xff]   ;;  %v1359_v58 = vld [vmem:[%s1509_s28 + $0x1d4] ss:$8 sps:$4 sm:$0xff]   ;;  %v1145_v6 = vcombine.low %v279_v47, %v279_v47  ;;  %v1147_v7 = vcombine.low %v280_v49, %v280_v49 }
  0x2a   : > { %888 = vmatpush1.bf16.msra.mxu0 %v1307_v19  ;;  %v1353_v54 = vld [vmem:[%s1509_s28 + $0x1c4] ss:$8 sps:$4 sm:$0xff]   ;;  %v1356_v56 = vld [vmem:[%s1509_s28 + $0x1c0] ss:$8 sps:$4 sm:$0xff]   ;;  %v1361_v59 = vld [vmem:[%s1509_s28 + $0xd0] ss:$8 sps:$4 sm:$0xff]  }
  0x2b   : > { %929 = vmatpush1.bf16.msra.mxu1 %v1308_v20  ;;  %889 = vmatprep.subr.bf16.mxu0 %v1309_v21  ;;  %v1362_v60 = vld [vmem:[%s1509_s28 + $0x1d0] ss:$8 sps:$4 sm:$0xff]   ;;  %v1363_v61 = vld [vmem:[%s1509_s28 + $0xe4] ss:$8 sps:$4 sm:$0xff]   ;;  %v1367_v63 = vld [vmem:[%s1509_s28 + $0xe0] ss:$8 sps:$4 sm:$0xff]  }
  0x2c   : > { %930 = vmatprep.subr.bf16.mxu1 %v1311_v22  ;;  %911 = vmatprep.mubr.bf16.mxu0 %v1146_v48  ;;  %v1365_v62 = vld [vmem:[%s1509_s28 + $0x1e4] ss:$8 sps:$4 sm:$0xff]   ;;  %v1368_v0 = vld [vmem:[%s1509_s28 + $0x1e0] ss:$8 sps:$4 sm:$0xff]   ;;  %v1369_v1 = vld [vmem:[%s1509_s28 + $0xf4] ss:$8 sps:$4 sm:$0xff]  }
  0x2d   : > { %952 = vmatprep.mubr.bf16.mxu1 %v1148_v52  ;;  %v1371_v2 = vld [vmem:[%s1509_s28 + $0x1f4] ss:$8 sps:$4 sm:$0xff]   ;;  %v1373_v3 = vld [vmem:[%s1509_s28 + $0xf0] ss:$8 sps:$4 sm:$0xff]   ;;  %v1381_v5 = vld [vmem:[%s1509_s28 + $0x204] ss:$8 sps:$4 sm:$0xff]  }
  0x2e   : > { %890 = vmatpush1.bf16.msra.mxu0 %v1313_v23  ;;  %v1374_v4 = vld [vmem:[%s1509_s28 + $0x1f0] ss:$8 sps:$4 sm:$0xff]   ;;  %v1379_v8 = vld [vmem:[%s1509_s28 + $0x200] ss:$8 sps:$4 sm:$0xff]   ;;  %v1384_v10 = vld [vmem:[%s1509_s28 + $0x214] ss:$8 sps:$4 sm:$0xff]  }
  0x2f   : > { %931 = vmatpush1.bf16.msra.mxu1 %v1314_v24  ;;  %891 = vmatprep.subr.bf16.mxu0 %v1315_v25  ;;  %v1581_v9 = vld [vmem:[%s1504_s24 + $0x10] sm:$0xff]  ;;  %v1387_v13 = vld [vmem:[%s1509_s28 + $0x224] ss:$8 sps:$4 sm:$0xff]   ;;  %v1385_v14 = vld [vmem:[%s1509_s28 + $0x220] ss:$8 sps:$4 sm:$0xff]  }
  0x30   : > { %932 = vmatprep.subr.bf16.mxu1 %v1317_v26  ;;  %v1150_v11 = vcombine.high %v1581_v9, %v1581_v9  ;;  %v1382_v12 = vld [vmem:[%s1509_s28 + $0x210] ss:$8 sps:$4 sm:$0xff]   ;;  %v1390_v15 = vld [vmem:[%s1509_s28 + $0x234] ss:$8 sps:$4 sm:$0xff]   ;;  %v1393_v17 = vld [vmem:[%s1509_s28 + $0x244] ss:$8 sps:$4 sm:$0xff]  }
  0x31   : > { %v1388_v16 = vld [vmem:[%s1509_s28 + $0x230] ss:$8 sps:$4 sm:$0xff]   ;;  %v1391_v18 = vld [vmem:[%s1509_s28 + $0x240] ss:$8 sps:$4 sm:$0xff]   ;;  %v1396_v19 = vld [vmem:[%s1509_s28 + $0x254] ss:$8 sps:$4 sm:$0xff]  }
  0x32   : > { %892 = vmatpush1.bf16.msra.mxu0 %v1319_v27  ;;  %v1394_v20 = vld [vmem:[%s1509_s28 + $0x250] ss:$8 sps:$4 sm:$0xff]   ;;  %v1399_v21 = vld [vmem:[%s1509_s28 + $0x264] ss:$8 sps:$4 sm:$0xff]   ;;  %v1397_v22 = vld [vmem:[%s1509_s28 + $0x260] ss:$8 sps:$4 sm:$0xff]  }
  0x33   : > { %933 = vmatpush1.bf16.msra.mxu1 %v1320_v28  ;;  %893 = vmatprep.subr.bf16.mxu0 %v1321_v29  ;;  %v1402_v23 = vld [vmem:[%s1509_s28 + $0x274] ss:$8 sps:$4 sm:$0xff]   ;;  %v1400_v24 = vld [vmem:[%s1509_s28 + $0x270] ss:$8 sps:$4 sm:$0xff]   ;;  %v1405_v25 = vld [vmem:[%s1509_s28 + $0x284] ss:$8 sps:$4 sm:$0xff]  }
  0x34   : > { %934 = vmatprep.subr.bf16.mxu1 %v1323_v30  ;;  %v1403_v26 = vld [vmem:[%s1509_s28 + $0x280] ss:$8 sps:$4 sm:$0xff]   ;;  %v1408_v27 = vld [vmem:[%s1509_s28 + $0x294] ss:$8 sps:$4 sm:$0xff]   ;;  %v1406_v28 = vld [vmem:[%s1509_s28 + $0x290] ss:$8 sps:$4 sm:$0xff]  }
  0x35   : > { %v1411_v29 = vld [vmem:[%s1509_s28 + $0x2a4] ss:$8 sps:$4 sm:$0xff]   ;;  %v1409_v30 = vld [vmem:[%s1509_s28 + $0x2a0] ss:$8 sps:$4 sm:$0xff]  }
  0x36   : > { %894 = vmatpush1.bf16.msra.mxu0 %v1325_v31  ;;  %v1414_v31 = vld [vmem:[%s1509_s28 + $0x2b4] ss:$8 sps:$4 sm:$0xff]   ;;  %v277_v52 = vld [vmem:[#allocation2] sm:$0xff] }
  0x37   : > { %935 = vmatpush1.bf16.msra.mxu1 %v1326_v32  ;;  %895 = vmatprep.subr.bf16.mxu0 %v1327_v33  ;;  %v1412_v32 = vld [vmem:[%s1509_s28 + $0x2b0] ss:$8 sps:$4 sm:$0xff]   ;;  %v1417_v33 = vld [vmem:[%s1509_s28 + $0x2c4] ss:$8 sps:$4 sm:$0xff]  }
  0x38   : > { %936 = vmatprep.subr.bf16.mxu1 %v1329_v34  ;;  %v1415_v34 = vld [vmem:[%s1509_s28 + $0x2c0] ss:$8 sps:$4 sm:$0xff]  }
  0x3a   : > { %896 = vmatpush1.bf16.msra.mxu0 %v1331_v35  ;;  %v1420_v35 = vld [vmem:[%s1509_s28 + $0x2d4] ss:$8 sps:$4 sm:$0xff]  }
  0x3b   : > { %937 = vmatpush1.bf16.msra.mxu1 %v1332_v36  ;;  %897 = vmatprep.subr.bf16.mxu0 %v1333_v37  ;;  %v1418_v36 = vld [vmem:[%s1509_s28 + $0x2d0] ss:$8 sps:$4 sm:$0xff]   ;;  %v1423_v37 = vld [vmem:[%s1509_s28 + $0x2e4] ss:$8 sps:$4 sm:$0xff]  }
  0x3c   : > { %938 = vmatprep.subr.bf16.mxu1 %v1335_v38  ;;  %v1421_v38 = vld [vmem:[%s1509_s28 + $0x2e0] ss:$8 sps:$4 sm:$0xff]  }
  0x3e   : > { %898 = vmatpush1.bf16.msra.mxu0 %v1337_v39  ;;  %v1426_v39 = vld [vmem:[%s1509_s28 + $0x2f4] ss:$8 sps:$4 sm:$0xff]  }
  0x3f   : > { %939 = vmatpush1.bf16.msra.mxu1 %v1338_v40  ;;  %899 = vmatprep.subr.bf16.mxu0 %v1339_v41  ;;  %v1424_v40 = vld [vmem:[%s1509_s28 + $0x2f0] ss:$8 sps:$4 sm:$0xff]   ;;  %v1149_v41 = vcombine.low %v1581_v9, %v1581_v9 }
  0x40   : > { %940 = vmatprep.subr.bf16.mxu1 %v1341_v42 }
  0x42   : > { %900 = vmatpush1.bf16.msra.mxu0 %v1343_v43 }
  0x43   : > { %941 = vmatpush1.bf16.msra.mxu1 %v1344_v44  ;;  %901 = vmatprep.subr.bf16.mxu0 %v1345_v45 }
  0x44   : > { %942 = vmatprep.subr.bf16.mxu1 %v1347_v46 }
  0x46   : > { %902 = vmatpush1.bf16.msra.mxu0 %v1349_v50 }
  0x47   : > { %943 = vmatpush1.bf16.msra.mxu1 %v1350_v51  ;;  %903 = vmatprep.subr.bf16.mxu0 %v1351_v53 }
  0x48   : > { %944 = vmatprep.subr.bf16.mxu1 %v1353_v54 }
  0x4a   : > { %904 = vmatpush1.bf16.msra.mxu0 %v1355_v55  ;;  %v278_v55 = vld [vmem:[#allocation2 + $0x8] sm:$0xff] }
  0x4b   : > { %945 = vmatpush1.bf16.msra.mxu1 %v1356_v56  ;;  %905 = vmatprep.subr.bf16.mxu0 %v1357_v57 }
  0x4c   : > { %946 = vmatprep.subr.bf16.mxu1 %v1359_v58 }
  0x4e   : > { %906 = vmatpush1.bf16.msra.mxu0 %v1361_v59 }
  0x4f   : > { %947 = vmatpush1.bf16.msra.mxu1 %v1362_v60  ;;  %907 = vmatprep.subr.bf16.mxu0 %v1363_v61 }
  0x50   : > { %948 = vmatprep.subr.bf16.mxu1 %v1365_v62  ;;  %v1014_v62 = vlaneseq (!%p1247_p7) }
  0x52   : > { %908 = vmatpush1.bf16.msra.mxu0 %v1367_v63  ;;  %v1015_v63 = vshrl.u32 (!%p1247_p7), %v1014_v62, 7 }
  0x53   : > { %949 = vmatpush1.bf16.msra.mxu1 %v1368_v0  ;;  %909 = vmatprep.subr.bf16.mxu0 %v1369_v1  ;;  %v1012_v0 = vld [vmem:[%s1638_s2] sm:$0x3] (!%p1247_p7) }
  0x54   : > { %950 = vmatprep.subr.bf16.mxu1 %v1371_v2  ;;  %v1026_v1 = vld [vmem:[%s1639_s3] sm:$0xff] (!%p1247_p7)  ;;  %v1016_v2 = vsub.s32 (!%p1247_p7), 0, %v1015_v63 }
  0x55   : > { %v1028_v9 = vunpack.c.h.bf16 (!%p1247_p7), %v1026_v1 }
  0x56   : > { %910 = vmatpush1.bf16.msra.mxu0 %v1373_v3  ;;  %v1020_v3 = vsub.s32 (!%p1247_p7), 1, %v1015_v63 }
  0x57   : > { %951 = vmatpush1.bf16.msra.mxu1 %v1374_v4  ;;  %961 = vmatprep.subr.bf16.mxu0 %v1381_v5 }
  0x59   : > { %912 = vmatmul.mubr.bf16.vlgmr.msra.gmra.mrb[0].mxu0 %v1145_v6  ;;  %v1017_v6 = vrot.slane (!%p1247_p7), %v1012_v0, %v1016_v2 }
  0x5a   : > { %953 = vmatmul.mubr.bf16.vlgmr.msra.gmra.mrb[0].mxu1 %v1147_v7  ;;  %962 = vmatpush1.bf16.msra.mxu0 %v1379_v8  ;;  %v1021_v7 = vrot.slane (!%p1247_p7), %v1012_v0, %v1020_v3  ;;  %v1027_v8 = vunpack.c.l.bf16 (!%p1247_p7), %v1026_v1 }
  0x5b   : > { %993 = vmatprep.mubr.bf16.mxu0 %v1150_v11  ;;  %963 = vmatprep.subr.bf16.mxu0 %v1384_v10 }
  0x5e   : > { %964 = vmatpush1.bf16.msra.mxu0 %v1382_v12 }
  0x5f   : > { %965 = vmatprep.subr.bf16.mxu0 %v1387_v13 }
  0x62   : > { %966 = vmatpush1.bf16.msra.mxu0 %v1385_v14 }
  0x63   : > { %967 = vmatprep.subr.bf16.mxu0 %v1390_v15 }
  0x66   : > { %968 = vmatpush1.bf16.msra.mxu0 %v1388_v16 }
  0x67   : > { %969 = vmatprep.subr.bf16.mxu0 %v1393_v17 }
  0x6a   : > { %970 = vmatpush1.bf16.msra.mxu0 %v1391_v18 }
  0x6b   : > { %971 = vmatprep.subr.bf16.mxu0 %v1396_v19 }
  0x6e   : > { %972 = vmatpush1.bf16.msra.mxu0 %v1394_v20 }
  0x6f   : > { %973 = vmatprep.subr.bf16.mxu0 %v1399_v21 }
  0x72   : > { %974 = vmatpush1.bf16.msra.mxu0 %v1397_v22 }
  0x73   : > { %975 = vmatprep.subr.bf16.mxu0 %v1402_v23 }
  0x76   : > { %976 = vmatpush1.bf16.msra.mxu0 %v1400_v24 }
  0x77   : > { %977 = vmatprep.subr.bf16.mxu0 %v1405_v25 }
  0x7a   : > { %978 = vmatpush1.bf16.msra.mxu0 %v1403_v26 }
  0x7b   : > { %979 = vmatprep.subr.bf16.mxu0 %v1408_v27 }
  0x7e   : > { %980 = vmatpush1.bf16.msra.mxu0 %v1406_v28 }
  0x7f   : > { %981 = vmatprep.subr.bf16.mxu0 %v1411_v29 }
  0x82   : > { %982 = vmatpush1.bf16.msra.mxu0 %v1409_v30 }
  0x83   : > { %983 = vmatprep.subr.bf16.mxu0 %v1414_v31 }
  0x86   : > { %984 = vmatpush1.bf16.msra.mxu0 %v1412_v32 }
  0x87   : > { %985 = vmatprep.subr.bf16.mxu0 %v1417_v33 }
  0x8a   : > { %986 = vmatpush1.bf16.msra.mxu0 %v1415_v34 }
  0x8b   : > { %987 = vmatprep.subr.bf16.mxu0 %v1420_v35 }
  0x8e   : > { %988 = vmatpush1.bf16.msra.mxu0 %v1418_v36 }
  0x8f   : > { %989 = vmatprep.subr.bf16.mxu0 %v1423_v37 }
  0x92   : > { %990 = vmatpush1.bf16.msra.mxu0 %v1421_v38 }
  0x93   : > { %991 = vmatprep.subr.bf16.mxu0 %v1426_v39 }
  0x96   : > { %992 = vmatpush1.bf16.msra.mxu0 %v1424_v40 }
  0x99   : > { %994 = vmatmul.mubr.bf16.vlgmr.msra.gmra.mrb[4].mxu0 %v1149_v41 }
 0x12c   : > { %v913_v42 = vpop.f32.mrb[0].mxu0 }
 0x12d   : > { %v954_v43 = vpop.f32.mrb[0].mxu1  ;;  %v915_v45 = vpop.f32.mrb[1].mxu0 }
 0x12e   : > { %v955_v44 = vadd.f32 %v954_v43, %v913_v42  ;;  %v956_v46 = vpop.f32.mrb[1].mxu1  ;;  %v917_v48 = vpop.f32.mrb[2].mxu0 }
 0x12f   : > { %v957_v47 = vadd.f32 %v956_v46, %v915_v45  ;;  %v958_v49 = vpop.f32.mrb[2].mxu1  ;;  %v918_v50 = vpop.f32.mrb[3].mxu0 }
 0x130   : > { %v959_v51 = vpop.f32.mrb[3].mxu1 }
 0x16c   : > { %v995_v53 = vpop.f32.mrb[4].mxu0  ;;  %1009 = sbr.rel (%p1247_p7) target bundleno = 387 (0x183), region = 44 }
 0x16d   : > { %v996_v54 = vadd.f32 %v995_v53, %v955_v44  ;;  %v997_v56 = vpop.f32.mrb[5].mxu0 }
 0x16e   : > { %v998_v57 = vadd.f32 %v997_v56, %v957_v47  ;;  %v999_v58 = vpop.f32.mrb[6].mxu0 }
 0x16f   : > { %v1002_v59 = vadd.f32 %v996_v54, %v277_v52  ;;  %v1000_v60 = vpop.f32.mrb[7].mxu0 }
 0x170   : > { %v1003_v61 = vadd.f32 %v998_v57, %v278_v55 }
 0x171   : > { %1004 = vst [vmem:[#allocation2] sm:$0xff] %v1002_v59 }
 0x172   : > { %1005 = vst [vmem:[#allocation2 + $0x8] sm:$0xff] %v1003_v61 }
 0x178   : > { %v1010_v4 = vld [vmem:[#allocation2] sm:$0xff] }
 0x179   : > { %v1011_v5 = vld [vmem:[#allocation2 + $0x8] sm:$0xff]  ;;  %v1024_v10 = vadd.f32 %v1017_v6, %v1010_v4 }
 0x17a   : > { %v1025_v11 = vadd.f32 %v1021_v7, %v1011_v5 }
 0x17b   : > { %v1029_v12 = vadd.f32 %v1027_v8, %v1024_v10 }
 0x17c   : > { %v1030_v13 = vadd.f32 %v1028_v9, %v1025_v11 }
 0x17d   : > { %v1031_v14 = vmax.f32 %v1029_v12, 0.0 }
 0x17e   : > { %v1032_v15 = vmax.f32 %v1030_v13, 0.0 }
 0x180   : > { %v1253_v16 = vpack.c.bf16 %v1032_v15, %v1031_v14 }
 0x182   : > { %1041 = vst [vmem:[%s1640_s4] sm:$0xff] %v1253_v16 }
 0x183 PF: > { %s14_s17 = sadd.s32 1, %s1451_s17   ;;  %s1641_s15 = smov %s1447_s16 }
 0x184   : > { %p11_p8 = scmp.ge.s32.totalorder %s14_s17, 5   ;;  %s1642_s16 = smov %s1644_s18 }
 0x186   :  { %13 = sbr.rel (!%p11_p8) target bundleno = 2 (0x2), region = 80 }

// kernel: res_model_forward.36
= control target key start
LH: loop header
LB: loop body
LE: loop exit
PB: predicated region body
PF: predicated region fallthrough
CT: control target
= control target key end

     0   :  { %s1406_s12 = smov 0   ;;  %s1408_s13 = smov 0   ;;  %s1560_s0 = inlined_call_operand.vmem [shape: bf16[8,2304], index: 0, kind: input, shape index: {}]   ;;  %s1561_s1 = inlined_call_operand.vmem [shape: bf16[2304,256], index: 1, kind: input, shape index: {}]   ;;  %s1562_s2 = inlined_call_operand.vmem [shape: f32[1,256], index: 2, kind: input, shape index: {}]   ;;  %s1563_s3 = inlined_call_operand.vmem [shape: bf16[8,256], index: 3, kind: output, shape index: {}]  }
   0x1   :  { %s1410_s14 = smov 0  }
   0x2 LB: > { %s22_s15 = sadd.s32 1, %s1379_s13  ;;  %p1072_p0 = scmp.ge.s32.totalorder %s1383_s14, 1  ;;  %s1383_s14 = sphi %s1410_s14, %s13_s14   ;;  %s1379_s13 = sphi %s1408_s13, %s1565_s13   ;;  %s1375_s12 = sphi %s1406_s12, %s1564_s12  }
   0x3   : > { %p23_p1 = scmp.ge.s32.totalorder %s22_s15, 3  ;;  %p168_p2 = scmp.lt.s32.totalorder %s1383_s14, 4 }
   0x5   : > { %s1567_s15 = smov (%p23_p1, %s22_s15), 0  ;;  %p169_p3 = pnand %p1072_p0, %p168_p2 }
   0x6   : > { %s202_s16 = smul.u32 (!%p169_p3), 6, %s1375_s12  ;;  %p1076_p6 = scmp.ne.s32.totalorder (!%p169_p3), %s1375_s12, 0 }
   0x7   : > { %172 = sbr.rel (%p169_p3) target bundleno = 385 (0x181), region = 32 }
   0x8   : > { %s212_s17 = smul.u32 (!%p169_p3), 96, %s1375_s12  ;;  %p205_p4 = scmp.lt.s32.totalorder (!%p169_p3), %s202_s16, 17 }
   0xa   : > { %p213_p5 = scmp.lt.s32.totalorder (!%p169_p3), %s212_s17, 287 }
   0xe   : > { %s1569_s16 = smov (!%p205_p4, %s202_s16), 17  ;;  %s1571_s17 = smov (!%p213_p5, %s212_s17), 287 }
   0xf   : > { %s1073_s18 = sshll.u32 %s1569_s16, 2  ;;  %s1184_s22 = sshll.u32 %s1571_s17, 3  ;;  %v1385_v0 = vmov (!%p1076_p6), 0.0  }
  0x10   : > { %s1431_s21 = scalar_lea.vmem %s1560_s0, %s1073_s18  ;;  %s1436_s25 = scalar_lea.vmem %s1561_s1, %s1184_s22  ;;  %228 = vst [vmem:[#allocation2] sm:$0xff] (!%p1076_p6), %v1385_v0  ;;  %229 = vst [vmem:[#allocation2 + $0x8] sm:$0xff] (!%p1076_p6), %v1385_v0 }
  0x11   : > { %227 = sbr.rel (%p1076_p6) target bundleno = 24 (0x18), region = 36 }
  0x18 PF: > { %v1211_v1 = vld [vmem:[%s1436_s25 + $0x4] ss:$8 sps:$4 sm:$0xff]   ;;  %v1215_v3 = vld [vmem:[%s1436_s25] ss:$8 sps:$4 sm:$0xff]   ;;  %v1217_v5 = vld [vmem:[%s1436_s25 + $0x14] ss:$8 sps:$4 sm:$0xff]  }
  0x19   : > { %v1213_v2 = vld [vmem:[%s1436_s25 + $0x104] ss:$8 sps:$4 sm:$0xff]   ;;  %832 = vmatprep.subr.bf16.mxu0 %v1211_v1  ;;  %v1216_v4 = vld [vmem:[%s1436_s25 + $0x100] ss:$8 sps:$4 sm:$0xff]   ;;  %v1219_v6 = vld [vmem:[%s1436_s25 + $0x114] ss:$8 sps:$4 sm:$0xff]  }
  0x1a   : > { %873 = vmatprep.subr.bf16.mxu1 %v1213_v2  ;;  %833 = vmatpush1.bf16.msra.mxu0 %v1215_v3  ;;  %v1221_v7 = vld [vmem:[%s1436_s25 + $0x10] ss:$8 sps:$4 sm:$0xff]   ;;  %v1223_v9 = vld [vmem:[%s1436_s25 + $0x24] ss:$8 sps:$4 sm:$0xff]   ;;  %v1227_v11 = vld [vmem:[%s1436_s25 + $0x20] ss:$8 sps:$4 sm:$0xff]  }
  0x1b   : > { %874 = vmatpush1.bf16.msra.mxu1 %v1216_v4  ;;  %834 = vmatprep.subr.bf16.mxu0 %v1217_v5  ;;  %v1222_v8 = vld [vmem:[%s1436_s25 + $0x110] ss:$8 sps:$4 sm:$0xff]   ;;  %v1225_v10 = vld [vmem:[%s1436_s25 + $0x124] ss:$8 sps:$4 sm:$0xff]   ;;  %v1228_v12 = vld [vmem:[%s1436_s25 + $0x120] ss:$8 sps:$4 sm:$0xff]  }
  0x1c   : > { %875 = vmatprep.subr.bf16.mxu1 %v1219_v6  ;;  %v1229_v13 = vld [vmem:[%s1436_s25 + $0x34] ss:$8 sps:$4 sm:$0xff]   ;;  %v1233_v15 = vld [vmem:[%s1436_s25 + $0x30] ss:$8 sps:$4 sm:$0xff]   ;;  %v1235_v17 = vld [vmem:[%s1436_s25 + $0x44] ss:$8 sps:$4 sm:$0xff]  }
  0x1d   : > { %v1231_v14 = vld [vmem:[%s1436_s25 + $0x134] ss:$8 sps:$4 sm:$0xff]   ;;  %v1234_v16 = vld [vmem:[%s1436_s25 + $0x130] ss:$8 sps:$4 sm:$0xff]   ;;  %v1237_v18 = vld [vmem:[%s1436_s25 + $0x144] ss:$8 sps:$4 sm:$0xff]  }
  0x1e   : > { %835 = vmatpush1.bf16.msra.mxu0 %v1221_v7  ;;  %v1239_v19 = vld [vmem:[%s1436_s25 + $0x40] ss:$8 sps:$4 sm:$0xff]   ;;  %v1241_v21 = vld [vmem:[%s1436_s25 + $0x54] ss:$8 sps:$4 sm:$0xff]   ;;  %v1245_v23 = vld [vmem:[%s1436_s25 + $0x50] ss:$8 sps:$4 sm:$0xff]  }
  0x1f   : > { %876 = vmatpush1.bf16.msra.mxu1 %v1222_v8  ;;  %836 = vmatprep.subr.bf16.mxu0 %v1223_v9  ;;  %v1240_v20 = vld [vmem:[%s1436_s25 + $0x140] ss:$8 sps:$4 sm:$0xff]   ;;  %v1243_v22 = vld [vmem:[%s1436_s25 + $0x154] ss:$8 sps:$4 sm:$0xff]   ;;  %v1246_v24 = vld [vmem:[%s1436_s25 + $0x150] ss:$8 sps:$4 sm:$0xff]  }
  0x20   : > { %877 = vmatprep.subr.bf16.mxu1 %v1225_v10  ;;  %v1247_v25 = vld [vmem:[%s1436_s25 + $0x64] ss:$8 sps:$4 sm:$0xff]   ;;  %v1251_v27 = vld [vmem:[%s1436_s25 + $0x60] ss:$8 sps:$4 sm:$0xff]   ;;  %v1253_v29 = vld [vmem:[%s1436_s25 + $0x74] ss:$8 sps:$4 sm:$0xff]  }
  0x21   : > { %v1249_v26 = vld [vmem:[%s1436_s25 + $0x164] ss:$8 sps:$4 sm:$0xff]   ;;  %v1252_v28 = vld [vmem:[%s1436_s25 + $0x160] ss:$8 sps:$4 sm:$0xff]   ;;  %v1255_v30 = vld [vmem:[%s1436_s25 + $0x174] ss:$8 sps:$4 sm:$0xff]  }
  0x22   : > { %837 = vmatpush1.bf16.msra.mxu0 %v1227_v11  ;;  %v1257_v31 = vld [vmem:[%s1436_s25 + $0x70] ss:$8 sps:$4 sm:$0xff]   ;;  %v1259_v33 = vld [vmem:[%s1436_s25 + $0x84] ss:$8 sps:$4 sm:$0xff]   ;;  %v1263_v35 = vld [vmem:[%s1436_s25 + $0x80] ss:$8 sps:$4 sm:$0xff]  }
  0x23   : > { %878 = vmatpush1.bf16.msra.mxu1 %v1228_v12  ;;  %838 = vmatprep.subr.bf16.mxu0 %v1229_v13  ;;  %v1258_v32 = vld [vmem:[%s1436_s25 + $0x170] ss:$8 sps:$4 sm:$0xff]   ;;  %v1261_v34 = vld [vmem:[%s1436_s25 + $0x184] ss:$8 sps:$4 sm:$0xff]   ;;  %v1264_v36 = vld [vmem:[%s1436_s25 + $0x180] ss:$8 sps:$4 sm:$0xff]  }
  0x24   : > { %879 = vmatprep.subr.bf16.mxu1 %v1231_v14  ;;  %v1265_v37 = vld [vmem:[%s1436_s25 + $0x94] ss:$8 sps:$4 sm:$0xff]   ;;  %v1269_v39 = vld [vmem:[%s1436_s25 + $0x90] ss:$8 sps:$4 sm:$0xff]   ;;  %v1271_v41 = vld [vmem:[%s1436_s25 + $0xa4] ss:$8 sps:$4 sm:$0xff]  }
  0x25   : > { %v1267_v38 = vld [vmem:[%s1436_s25 + $0x194] ss:$8 sps:$4 sm:$0xff]   ;;  %v1270_v40 = vld [vmem:[%s1436_s25 + $0x190] ss:$8 sps:$4 sm:$0xff]   ;;  %v1273_v42 = vld [vmem:[%s1436_s25 + $0x1a4] ss:$8 sps:$4 sm:$0xff]  }
  0x26   : > { %839 = vmatpush1.bf16.msra.mxu0 %v1233_v15  ;;  %v1275_v43 = vld [vmem:[%s1436_s25 + $0xa0] ss:$8 sps:$4 sm:$0xff]   ;;  %v1277_v45 = vld [vmem:[%s1436_s25 + $0xb4] ss:$8 sps:$4 sm:$0xff]   ;;  %v1281_v50 = vld [vmem:[%s1436_s25 + $0xb0] ss:$8 sps:$4 sm:$0xff]  }
  0x27   : > { %880 = vmatpush1.bf16.msra.mxu1 %v1234_v16  ;;  %840 = vmatprep.subr.bf16.mxu0 %v1235_v17  ;;  %v1276_v44 = vld [vmem:[%s1436_s25 + $0x1a0] ss:$8 sps:$4 sm:$0xff]   ;;  %v1279_v46 = vld [vmem:[%s1436_s25 + $0x1b4] ss:$8 sps:$4 sm:$0xff]   ;;  %v1282_v51 = vld [vmem:[%s1436_s25 + $0x1b0] ss:$8 sps:$4 sm:$0xff]  }
  0x28   : > { %881 = vmatprep.subr.bf16.mxu1 %v1237_v18  ;;  %v232_v47 = vld [vmem:[%s1431_s21] sm:$0xff]  ;;  %v233_v49 = vld [vmem:[%s1431_s21 + $0x8] sm:$0xff]  ;;  %v1289_v57 = vld [vmem:[%s1436_s25 + $0xd4] ss:$8 sps:$4 sm:$0xff]   ;;  %p1179_p7 = scmp.ne.s32.totalorder %s1375_s12, 2 }
  0x29   : > { %v1078_v48 = vcombine.high %v232_v47, %v232_v47  ;;  %v1080_v52 = vcombine.high %v233_v49, %v233_v49  ;;  %v1283_v53 = vld [vmem:[%s1436_s25 + $0xc4] ss:$8 sps:$4 sm:$0xff]   ;;  %v1287_v55 = vld [vmem:[%s1436_s25 + $0xc0] ss:$8 sps:$4 sm:$0xff]   ;;  %v1291_v58 = vld [vmem:[%s1436_s25 + $0x1d4] ss:$8 sps:$4 sm:$0xff]   ;;  %v1077_v6 = vcombine.low %v232_v47, %v232_v47  ;;  %v1079_v7 = vcombine.low %v233_v49, %v233_v49 }
  0x2a   : > { %841 = vmatpush1.bf16.msra.mxu0 %v1239_v19  ;;  %v1285_v54 = vld [vmem:[%s1436_s25 + $0x1c4] ss:$8 sps:$4 sm:$0xff]   ;;  %v1288_v56 = vld [vmem:[%s1436_s25 + $0x1c0] ss:$8 sps:$4 sm:$0xff]   ;;  %v1293_v59 = vld [vmem:[%s1436_s25 + $0xd0] ss:$8 sps:$4 sm:$0xff]  }
  0x2b   : > { %882 = vmatpush1.bf16.msra.mxu1 %v1240_v20  ;;  %842 = vmatprep.subr.bf16.mxu0 %v1241_v21  ;;  %v1294_v60 = vld [vmem:[%s1436_s25 + $0x1d0] ss:$8 sps:$4 sm:$0xff]   ;;  %v1295_v61 = vld [vmem:[%s1436_s25 + $0xe4] ss:$8 sps:$4 sm:$0xff]   ;;  %v1299_v63 = vld [vmem:[%s1436_s25 + $0xe0] ss:$8 sps:$4 sm:$0xff]  }
  0x2c   : > { %883 = vmatprep.subr.bf16.mxu1 %v1243_v22  ;;  %864 = vmatprep.mubr.bf16.mxu0 %v1078_v48  ;;  %v1297_v62 = vld [vmem:[%s1436_s25 + $0x1e4] ss:$8 sps:$4 sm:$0xff]   ;;  %v1300_v0 = vld [vmem:[%s1436_s25 + $0x1e0] ss:$8 sps:$4 sm:$0xff]   ;;  %v1301_v1 = vld [vmem:[%s1436_s25 + $0xf4] ss:$8 sps:$4 sm:$0xff]  }
  0x2d   : > { %905 = vmatprep.mubr.bf16.mxu1 %v1080_v52  ;;  %v1303_v2 = vld [vmem:[%s1436_s25 + $0x1f4] ss:$8 sps:$4 sm:$0xff]   ;;  %v1305_v3 = vld [vmem:[%s1436_s25 + $0xf0] ss:$8 sps:$4 sm:$0xff]   ;;  %v1313_v5 = vld [vmem:[%s1436_s25 + $0x204] ss:$8 sps:$4 sm:$0xff]  }
  0x2e   : > { %843 = vmatpush1.bf16.msra.mxu0 %v1245_v23  ;;  %v1306_v4 = vld [vmem:[%s1436_s25 + $0x1f0] ss:$8 sps:$4 sm:$0xff]   ;;  %v1311_v8 = vld [vmem:[%s1436_s25 + $0x200] ss:$8 sps:$4 sm:$0xff]   ;;  %v1316_v10 = vld [vmem:[%s1436_s25 + $0x214] ss:$8 sps:$4 sm:$0xff]  }
  0x2f   : > { %884 = vmatpush1.bf16.msra.mxu1 %v1246_v24  ;;  %844 = vmatprep.subr.bf16.mxu0 %v1247_v25  ;;  %v1508_v9 = vld [vmem:[%s1431_s21 + $0x10] sm:$0xff]  ;;  %v1319_v13 = vld [vmem:[%s1436_s25 + $0x224] ss:$8 sps:$4 sm:$0xff]   ;;  %v1317_v14 = vld [vmem:[%s1436_s25 + $0x220] ss:$8 sps:$4 sm:$0xff]  }
  0x30   : > { %885 = vmatprep.subr.bf16.mxu1 %v1249_v26  ;;  %v1082_v11 = vcombine.high %v1508_v9, %v1508_v9  ;;  %v1314_v12 = vld [vmem:[%s1436_s25 + $0x210] ss:$8 sps:$4 sm:$0xff]   ;;  %v1322_v15 = vld [vmem:[%s1436_s25 + $0x234] ss:$8 sps:$4 sm:$0xff]   ;;  %v1325_v17 = vld [vmem:[%s1436_s25 + $0x244] ss:$8 sps:$4 sm:$0xff]  }
  0x31   : > { %v1320_v16 = vld [vmem:[%s1436_s25 + $0x230] ss:$8 sps:$4 sm:$0xff]   ;;  %v1323_v18 = vld [vmem:[%s1436_s25 + $0x240] ss:$8 sps:$4 sm:$0xff]   ;;  %v1328_v19 = vld [vmem:[%s1436_s25 + $0x254] ss:$8 sps:$4 sm:$0xff]  }
  0x32   : > { %845 = vmatpush1.bf16.msra.mxu0 %v1251_v27  ;;  %v1326_v20 = vld [vmem:[%s1436_s25 + $0x250] ss:$8 sps:$4 sm:$0xff]   ;;  %v1331_v21 = vld [vmem:[%s1436_s25 + $0x264] ss:$8 sps:$4 sm:$0xff]   ;;  %v1329_v22 = vld [vmem:[%s1436_s25 + $0x260] ss:$8 sps:$4 sm:$0xff]  }
  0x33   : > { %886 = vmatpush1.bf16.msra.mxu1 %v1252_v28  ;;  %846 = vmatprep.subr.bf16.mxu0 %v1253_v29  ;;  %v1334_v23 = vld [vmem:[%s1436_s25 + $0x274] ss:$8 sps:$4 sm:$0xff]   ;;  %v1332_v24 = vld [vmem:[%s1436_s25 + $0x270] ss:$8 sps:$4 sm:$0xff]   ;;  %v1337_v25 = vld [vmem:[%s1436_s25 + $0x284] ss:$8 sps:$4 sm:$0xff]  }
  0x34   : > { %887 = vmatprep.subr.bf16.mxu1 %v1255_v30  ;;  %v1335_v26 = vld [vmem:[%s1436_s25 + $0x280] ss:$8 sps:$4 sm:$0xff]   ;;  %v1340_v27 = vld [vmem:[%s1436_s25 + $0x294] ss:$8 sps:$4 sm:$0xff]   ;;  %v1338_v28 = vld [vmem:[%s1436_s25 + $0x290] ss:$8 sps:$4 sm:$0xff]  }
  0x35   : > { %v1343_v29 = vld [vmem:[%s1436_s25 + $0x2a4] ss:$8 sps:$4 sm:$0xff]   ;;  %v1341_v30 = vld [vmem:[%s1436_s25 + $0x2a0] ss:$8 sps:$4 sm:$0xff]  }
  0x36   : > { %847 = vmatpush1.bf16.msra.mxu0 %v1257_v31  ;;  %v1346_v31 = vld [vmem:[%s1436_s25 + $0x2b4] ss:$8 sps:$4 sm:$0xff]   ;;  %v230_v52 = vld [vmem:[#allocation2] sm:$0xff] }
  0x37   : > { %888 = vmatpush1.bf16.msra.mxu1 %v1258_v32  ;;  %848 = vmatprep.subr.bf16.mxu0 %v1259_v33  ;;  %v1344_v32 = vld [vmem:[%s1436_s25 + $0x2b0] ss:$8 sps:$4 sm:$0xff]   ;;  %v1349_v33 = vld [vmem:[%s1436_s25 + $0x2c4] ss:$8 sps:$4 sm:$0xff]  }
  0x38   : > { %889 = vmatprep.subr.bf16.mxu1 %v1261_v34  ;;  %v1347_v34 = vld [vmem:[%s1436_s25 + $0x2c0] ss:$8 sps:$4 sm:$0xff]  }
  0x3a   : > { %849 = vmatpush1.bf16.msra.mxu0 %v1263_v35  ;;  %v1352_v35 = vld [vmem:[%s1436_s25 + $0x2d4] ss:$8 sps:$4 sm:$0xff]  }
  0x3b   : > { %890 = vmatpush1.bf16.msra.mxu1 %v1264_v36  ;;  %850 = vmatprep.subr.bf16.mxu0 %v1265_v37  ;;  %v1350_v36 = vld [vmem:[%s1436_s25 + $0x2d0] ss:$8 sps:$4 sm:$0xff]   ;;  %v1355_v37 = vld [vmem:[%s1436_s25 + $0x2e4] ss:$8 sps:$4 sm:$0xff]  }
  0x3c   : > { %891 = vmatprep.subr.bf16.mxu1 %v1267_v38  ;;  %v1353_v38 = vld [vmem:[%s1436_s25 + $0x2e0] ss:$8 sps:$4 sm:$0xff]  }
  0x3e   : > { %851 = vmatpush1.bf16.msra.mxu0 %v1269_v39  ;;  %v1358_v39 = vld [vmem:[%s1436_s25 + $0x2f4] ss:$8 sps:$4 sm:$0xff]  }
  0x3f   : > { %892 = vmatpush1.bf16.msra.mxu1 %v1270_v40  ;;  %852 = vmatprep.subr.bf16.mxu0 %v1271_v41  ;;  %v1356_v40 = vld [vmem:[%s1436_s25 + $0x2f0] ss:$8 sps:$4 sm:$0xff]   ;;  %v1081_v41 = vcombine.low %v1508_v9, %v1508_v9 }
  0x40   : > { %893 = vmatprep.subr.bf16.mxu1 %v1273_v42 }
  0x42   : > { %853 = vmatpush1.bf16.msra.mxu0 %v1275_v43 }
  0x43   : > { %894 = vmatpush1.bf16.msra.mxu1 %v1276_v44  ;;  %854 = vmatprep.subr.bf16.mxu0 %v1277_v45 }
  0x44   : > { %895 = vmatprep.subr.bf16.mxu1 %v1279_v46 }
  0x46   : > { %855 = vmatpush1.bf16.msra.mxu0 %v1281_v50 }
  0x47   : > { %896 = vmatpush1.bf16.msra.mxu1 %v1282_v51  ;;  %856 = vmatprep.subr.bf16.mxu0 %v1283_v53 }
  0x48   : > { %897 = vmatprep.subr.bf16.mxu1 %v1285_v54 }
  0x4a   : > { %857 = vmatpush1.bf16.msra.mxu0 %v1287_v55  ;;  %v231_v55 = vld [vmem:[#allocation2 + $0x8] sm:$0xff] }
  0x4b   : > { %898 = vmatpush1.bf16.msra.mxu1 %v1288_v56  ;;  %858 = vmatprep.subr.bf16.mxu0 %v1289_v57 }
  0x4c   : > { %899 = vmatprep.subr.bf16.mxu1 %v1291_v58 }
  0x4e   : > { %859 = vmatpush1.bf16.msra.mxu0 %v1293_v59 }
  0x4f   : > { %900 = vmatpush1.bf16.msra.mxu1 %v1294_v60  ;;  %860 = vmatprep.subr.bf16.mxu0 %v1295_v61 }
  0x50   : > { %901 = vmatprep.subr.bf16.mxu1 %v1297_v62  ;;  %v967_v62 = vlaneseq (!%p1179_p7) }
  0x52   : > { %861 = vmatpush1.bf16.msra.mxu0 %v1299_v63  ;;  %v968_v63 = vshrl.u32 (!%p1179_p7), %v967_v62, 7 }
  0x53   : > { %902 = vmatpush1.bf16.msra.mxu1 %v1300_v0  ;;  %862 = vmatprep.subr.bf16.mxu0 %v1301_v1  ;;  %v965_v0 = vld [vmem:[%s1562_s2] sm:$0x3] (!%p1179_p7) }
  0x54   : > { %903 = vmatprep.subr.bf16.mxu1 %v1303_v2  ;;  %v969_v1 = vsub.s32 (!%p1179_p7), 0, %v968_v63  ;;  %v973_v2 = vsub.s32 (!%p1179_p7), 1, %v968_v63 }
  0x56   : > { %863 = vmatpush1.bf16.msra.mxu0 %v1305_v3 }
  0x57   : > { %904 = vmatpush1.bf16.msra.mxu1 %v1306_v4  ;;  %914 = vmatprep.subr.bf16.mxu0 %v1313_v5  ;;  %v970_v5 = vrot.slane (!%p1179_p7), %v965_v0, %v969_v1 }
  0x59   : > { %865 = vmatmul.mubr.bf16.vlgmr.msra.gmra.mrb[0].mxu0 %v1077_v6  ;;  %v974_v6 = vrot.slane (!%p1179_p7), %v965_v0, %v973_v2 }
  0x5a   : > { %906 = vmatmul.mubr.bf16.vlgmr.msra.gmra.mrb[0].mxu1 %v1079_v7  ;;  %915 = vmatpush1.bf16.msra.mxu0 %v1311_v8 }
  0x5b   : > { %946 = vmatprep.mubr.bf16.mxu0 %v1082_v11  ;;  %916 = vmatprep.subr.bf16.mxu0 %v1316_v10 }
  0x5e   : > { %917 = vmatpush1.bf16.msra.mxu0 %v1314_v12 }
  0x5f   : > { %918 = vmatprep.subr.bf16.mxu0 %v1319_v13 }
  0x62   : > { %919 = vmatpush1.bf16.msra.mxu0 %v1317_v14 }
  0x63   : > { %920 = vmatprep.subr.bf16.mxu0 %v1322_v15 }
  0x66   : > { %921 = vmatpush1.bf16.msra.mxu0 %v1320_v16 }
  0x67   : > { %922 = vmatprep.subr.bf16.mxu0 %v1325_v17 }
  0x6a   : > { %923 = vmatpush1.bf16.msra.mxu0 %v1323_v18 }
  0x6b   : > { %924 = vmatprep.subr.bf16.mxu0 %v1328_v19 }
  0x6e   : > { %925 = vmatpush1.bf16.msra.mxu0 %v1326_v20 }
  0x6f   : > { %926 = vmatprep.subr.bf16.mxu0 %v1331_v21 }
  0x72   : > { %927 = vmatpush1.bf16.msra.mxu0 %v1329_v22 }
  0x73   : > { %928 = vmatprep.subr.bf16.mxu0 %v1334_v23 }
  0x76   : > { %929 = vmatpush1.bf16.msra.mxu0 %v1332_v24 }
  0x77   : > { %930 = vmatprep.subr.bf16.mxu0 %v1337_v25 }
  0x7a   : > { %931 = vmatpush1.bf16.msra.mxu0 %v1335_v26 }
  0x7b   : > { %932 = vmatprep.subr.bf16.mxu0 %v1340_v27 }
  0x7e   : > { %933 = vmatpush1.bf16.msra.mxu0 %v1338_v28 }
  0x7f   : > { %934 = vmatprep.subr.bf16.mxu0 %v1343_v29 }
  0x82   : > { %935 = vmatpush1.bf16.msra.mxu0 %v1341_v30 }
  0x83   : > { %936 = vmatprep.subr.bf16.mxu0 %v1346_v31 }
  0x86   : > { %937 = vmatpush1.bf16.msra.mxu0 %v1344_v32 }
  0x87   : > { %938 = vmatprep.subr.bf16.mxu0 %v1349_v33 }
  0x8a   : > { %939 = vmatpush1.bf16.msra.mxu0 %v1347_v34 }
  0x8b   : > { %940 = vmatprep.subr.bf16.mxu0 %v1352_v35 }
  0x8e   : > { %941 = vmatpush1.bf16.msra.mxu0 %v1350_v36 }
  0x8f   : > { %942 = vmatprep.subr.bf16.mxu0 %v1355_v37 }
  0x92   : > { %943 = vmatpush1.bf16.msra.mxu0 %v1353_v38 }
  0x93   : > { %944 = vmatprep.subr.bf16.mxu0 %v1358_v39 }
  0x96   : > { %945 = vmatpush1.bf16.msra.mxu0 %v1356_v40 }
  0x99   : > { %947 = vmatmul.mubr.bf16.vlgmr.msra.gmra.mrb[4].mxu0 %v1081_v41 }
 0x12c   : > { %v866_v42 = vpop.f32.mrb[0].mxu0 }
 0x12d   : > { %v907_v43 = vpop.f32.mrb[0].mxu1  ;;  %v868_v45 = vpop.f32.mrb[1].mxu0 }
 0x12e   : > { %v908_v44 = vadd.f32 %v907_v43, %v866_v42  ;;  %v909_v46 = vpop.f32.mrb[1].mxu1  ;;  %v870_v48 = vpop.f32.mrb[2].mxu0 }
 0x12f   : > { %v910_v47 = vadd.f32 %v909_v46, %v868_v45  ;;  %v911_v49 = vpop.f32.mrb[2].mxu1  ;;  %v871_v50 = vpop.f32.mrb[3].mxu0 }
 0x130   : > { %v912_v51 = vpop.f32.mrb[3].mxu1 }
 0x16c   : > { %v948_v53 = vpop.f32.mrb[4].mxu0  ;;  %962 = sbr.rel (%p1179_p7) target bundleno = 385 (0x181), region = 40 }
 0x16d   : > { %v949_v54 = vadd.f32 %v948_v53, %v908_v44  ;;  %v950_v56 = vpop.f32.mrb[5].mxu0 }
 0x16e   : > { %v951_v57 = vadd.f32 %v950_v56, %v910_v47  ;;  %v952_v58 = vpop.f32.mrb[6].mxu0 }
 0x16f   : > { %v955_v59 = vadd.f32 %v949_v54, %v230_v52  ;;  %v953_v60 = vpop.f32.mrb[7].mxu0 }
 0x170   : > { %v956_v61 = vadd.f32 %v951_v57, %v231_v55 }
 0x171   : > { %957 = vst [vmem:[#allocation2] sm:$0xff] %v955_v59 }
 0x172   : > { %958 = vst [vmem:[#allocation2 + $0x8] sm:$0xff] %v956_v61 }
 0x178   : > { %v963_v3 = vld [vmem:[#allocation2] sm:$0xff] }
 0x179   : > { %v964_v4 = vld [vmem:[#allocation2 + $0x8] sm:$0xff]  ;;  %v977_v7 = vadd.f32 %v970_v5, %v963_v3 }
 0x17a   : > { %v978_v8 = vadd.f32 %v974_v6, %v964_v4 }
 0x17b   : > { %v979_v9 = vmax.f32 %v977_v7, 0.0 }
 0x17c   : > { %v980_v10 = vmax.f32 %v978_v8, 0.0 }
 0x17e   : > { %v1185_v11 = vpack.c.bf16 %v980_v10, %v979_v9 }
 0x180   : > { %989 = vst [vmem:[%s1563_s3] sm:$0xff] %v1185_v11 }
 0x181 PF: > { %s13_s14 = sadd.s32 1, %s1383_s14   ;;  %s1564_s12 = smov %s1379_s13 }
 0x182   : > { %p10_p8 = scmp.ge.s32.totalorder %s13_s14, 5   ;;  %s1565_s13 = smov %s1567_s15 }
 0x184   :  { %12 = sbr.rel (!%p10_p8) target bundleno = 2 (0x2), region = 73 }

// kernel: res_model_forward.38
= control target key start
LH: loop header
LB: loop body
LE: loop exit
PB: predicated region body
PF: predicated region fallthrough
CT: control target
= control target key end

     0   :  { %s864_s12 = smov 0   ;;  %s866_s13 = smov 0   ;;  %s952_s0 = inlined_call_operand.vmem [shape: bf16[2,256], index: 0, kind: input, shape index: {}]   ;;  %s953_s1 = inlined_call_operand.vmem [shape: bf16[256,512], index: 1, kind: input, shape index: {}]   ;;  %s954_s2 = inlined_call_operand.vmem [shape: f32[1,512], index: 2, kind: input, shape index: {}]   ;;  %s955_s3 = inlined_call_operand.vmem [shape: bf16[2,512], index: 3, kind: output, shape index: {}]  }
   0x1   :  { %s868_s14 = smov 0  }
   0x2 LB: > { %s22_s15 = sadd.s32 1, %s834_s13  ;;  %p695_p0 = scmp.ge.s32.totalorder %s838_s14, 1  ;;  %s838_s14 = sphi %s868_s14, %s13_s14   ;;  %s834_s13 = sphi %s866_s13, %s957_s13   ;;  %s830_s12 = sphi %s864_s12, %s956_s12  }
   0x3   : > { %p23_p1 = scmp.ge.s32.totalorder %s22_s15, 2  ;;  %p165_p2 = scmp.lt.s32.totalorder %s838_s14, 3 }
   0x5   : > { %s959_s15 = smov (%p23_p1, %s22_s15), 0  ;;  %p166_p3 = pnand %p695_p0, %p165_p2 }
   0x6   : > { %p198_p4 = scmp.lt.s32.totalorder (!%p166_p3), %s830_s12, 1  ;;  %s696_s16 = sshll.u32 (!%p166_p3), %s830_s12, 4 }
   0x7   : > { %169 = sbr.rel (%p166_p3) target bundleno = 300 (0x12c), region = 32  ;;  %p204_p5 = scmp.lt.s32.totalorder (!%p166_p3), %s696_s16, 31 }
   0x8   : > { %p699_p6 = scmp.ne.s32.totalorder (!%p166_p3), %s830_s12, 0 }
   0xe   : > { %s887_s17 = scalar_select %p198_p4, %s830_s12, 1 }
   0xf   : > { %s961_s16 = smov (!%p204_p5, %s696_s16), 31  ;;  %218 = sbr.rel (%p699_p6) target bundleno = 22 (0x16), region = 36 }
  0x10   : > { %s202_s20 = scalar_lea.vmem %s952_s0, %s887_s17  ;;  %s739_s21 = sshll.u32 %s961_s16, 4  ;;  %v840_v0 = vmov (!%p699_p6), 0.0  }
  0x11   : > { %s896_s24 = scalar_lea.vmem %s953_s1, %s739_s21  ;;  %219 = vst [vmem:[#allocation2] sm:$0xff] (!%p699_p6), %v840_v0 }
  0x16 PF: > { %v768_v1 = vld [vmem:[%s896_s24 + $0x4] ss:$16 sps:$4 sm:$0xff]   ;;  %v770_v2 = vld [vmem:[%s896_s24 + $0xc] ss:$16 sps:$4 sm:$0xff]   ;;  %v841_v3 = vmov 0   ;;  %v505_v37 = vlaneseq  ;;  %p732_p7 = scmp.ne.s32.totalorder %s830_s12, 1 }
  0x17   : > { %446 = vmatprep.mubr.bf16.mxu0 %v841_v3  ;;  %487 = vmatprep.mubr.bf16.mxu1 %v841_v3  ;;  %v772_v4 = vld [vmem:[%s896_s24] ss:$16 sps:$4 sm:$0xff]   ;;  %v773_v5 = vld [vmem:[%s896_s24 + $0x8] ss:$16 sps:$4 sm:$0xff]   ;;  %v774_v6 = vld [vmem:[%s896_s24 + $0x24] ss:$16 sps:$4 sm:$0xff]  }
  0x18   : > { %414 = vmatprep.subr.bf16.mxu0 %v768_v1  ;;  %455 = vmatprep.subr.bf16.mxu1 %v770_v2  ;;  %v776_v7 = vld [vmem:[%s896_s24 + $0x2c] ss:$16 sps:$4 sm:$0xff]   ;;  %v778_v8 = vld [vmem:[%s896_s24 + $0x20] ss:$16 sps:$4 sm:$0xff]   ;;  %v779_v9 = vld [vmem:[%s896_s24 + $0x28] ss:$16 sps:$4 sm:$0xff]  }
  0x19   : > { %415 = vmatpush1.bf16.msra.mxu0 %v772_v4  ;;  %456 = vmatpush1.bf16.msra.mxu1 %v773_v5  ;;  %v780_v10 = vld [vmem:[%s896_s24 + $0x44] ss:$16 sps:$4 sm:$0xff]   ;;  %v782_v11 = vld [vmem:[%s896_s24 + $0x4c] ss:$16 sps:$4 sm:$0xff]   ;;  %v784_v12 = vld [vmem:[%s896_s24 + $0x40] ss:$16 sps:$4 sm:$0xff]  }
  0x1a   : > { %416 = vmatprep.subr.bf16.mxu0 %v774_v6  ;;  %457 = vmatprep.subr.bf16.mxu1 %v776_v7  ;;  %v785_v13 = vld [vmem:[%s896_s24 + $0x48] ss:$16 sps:$4 sm:$0xff]   ;;  %v786_v14 = vld [vmem:[%s896_s24 + $0x64] ss:$16 sps:$4 sm:$0xff]   ;;  %v788_v15 = vld [vmem:[%s896_s24 + $0x6c] ss:$16 sps:$4 sm:$0xff]  }
  0x1b   : > { %v790_v16 = vld [vmem:[%s896_s24 + $0x60] ss:$16 sps:$4 sm:$0xff]   ;;  %v791_v17 = vld [vmem:[%s896_s24 + $0x68] ss:$16 sps:$4 sm:$0xff]   ;;  %v792_v18 = vld [vmem:[%s896_s24 + $0x84] ss:$16 sps:$4 sm:$0xff]  }
  0x1c   : > { %v794_v19 = vld [vmem:[%s896_s24 + $0x8c] ss:$16 sps:$4 sm:$0xff]   ;;  %v796_v20 = vld [vmem:[%s896_s24 + $0x80] ss:$16 sps:$4 sm:$0xff]   ;;  %v797_v21 = vld [vmem:[%s896_s24 + $0x88] ss:$16 sps:$4 sm:$0xff]  }
  0x1d   : > { %417 = vmatpush1.bf16.msra.mxu0 %v778_v8  ;;  %458 = vmatpush1.bf16.msra.mxu1 %v779_v9  ;;  %v798_v22 = vld [vmem:[%s896_s24 + $0xa4] ss:$16 sps:$4 sm:$0xff]   ;;  %v800_v23 = vld [vmem:[%s896_s24 + $0xac] ss:$16 sps:$4 sm:$0xff]   ;;  %v802_v24 = vld [vmem:[%s896_s24 + $0xa0] ss:$16 sps:$4 sm:$0xff]  }
  0x1e   : > { %418 = vmatprep.subr.bf16.mxu0 %v780_v10  ;;  %459 = vmatprep.subr.bf16.mxu1 %v782_v11  ;;  %v803_v25 = vld [vmem:[%s896_s24 + $0xa8] ss:$16 sps:$4 sm:$0xff]   ;;  %v804_v26 = vld [vmem:[%s896_s24 + $0xc4] ss:$16 sps:$4 sm:$0xff]   ;;  %v806_v27 = vld [vmem:[%s896_s24 + $0xcc] ss:$16 sps:$4 sm:$0xff]  }
  0x1f   : > { %v808_v28 = vld [vmem:[%s896_s24 + $0xc0] ss:$16 sps:$4 sm:$0xff]   ;;  %v809_v29 = vld [vmem:[%s896_s24 + $0xc8] ss:$16 sps:$4 sm:$0xff]   ;;  %v810_v30 = vld [vmem:[%s896_s24 + $0xe4] ss:$16 sps:$4 sm:$0xff]  }
  0x20   : > { %v812_v31 = vld [vmem:[%s896_s24 + $0xec] ss:$16 sps:$4 sm:$0xff]   ;;  %v814_v32 = vld [vmem:[%s896_s24 + $0xe0] ss:$16 sps:$4 sm:$0xff]   ;;  %v815_v33 = vld [vmem:[%s896_s24 + $0xe8] ss:$16 sps:$4 sm:$0xff]  }
  0x21   : > { %419 = vmatpush1.bf16.msra.mxu0 %v784_v12  ;;  %460 = vmatpush1.bf16.msra.mxu1 %v785_v13  ;;  %v221_v34 = vld [vmem:[%s202_s20] sm:$0x1]  ;;  %v842_v35 = vmov 1983009808   ;;  %v506_v39 = vshrl.u32 %v505_v37, 7 }
  0x22   : > { %420 = vmatprep.subr.bf16.mxu0 %v786_v14  ;;  %461 = vmatprep.subr.bf16.mxu1 %v788_v15  ;;  %v503_v36 = vunpack.c.l.s4 %v842_v35  ;;  %v220_v53 = vld [vmem:[#allocation2] sm:$0xff]  ;;  %v843_v5 = vmov (!%p732_p7), 1966171168  }
  0x23   : > { %v525_v56 = vld [vmem:[%s954_s2] sm:$0xf] (!%p732_p7)  ;;  %v529_v57 = vsub.s32 (!%p732_p7), 0, %v506_v39  ;;  %v533_v58 = vsub.s32 (!%p732_p7), 1, %v506_v39  ;;  %v537_v59 = vsub.s32 (!%p732_p7), 2, %v506_v39  ;;  %v541_v60 = vsub.s32 (!%p732_p7), 3, %v506_v39 }
  0x24   : > { %v504_v38 = vunpack.c.0.s8 %v503_v36  ;;  %v595_v6 = vunpack.c.l.s4 (!%p732_p7), %v843_v5 }
  0x25   : > { %421 = vmatpush1.bf16.msra.mxu0 %v790_v16  ;;  %462 = vmatpush1.bf16.msra.mxu1 %v791_v17  ;;  %v530_v61 = vrot.slane (!%p732_p7), %v525_v56, %v529_v57  ;;  %v534_v62 = vrot.slane (!%p732_p7), %v525_v56, %v533_v58  ;;  %v538_v63 = vrot.slane (!%p732_p7), %v525_v56, %v537_v59 }
  0x26   : > { %422 = vmatprep.subr.bf16.mxu0 %v792_v18  ;;  %463 = vmatprep.subr.bf16.mxu1 %v794_v19  ;;  %v507_v42 = vsub.s32 %v504_v38, %v506_v39  ;;  %v542_v0 = vrot.slane (!%p732_p7), %v525_v56, %v541_v60  ;;  %v596_v10 = vunpack.c.0.s8 (!%p732_p7), %v595_v6 }
  0x27   : > { %v543_v1 = vcombine.low (!%p732_p7), %v530_v61, %v534_v62 }
  0x28   : > { %v544_v2 = vcombine.low (!%p732_p7), %v538_v63, %v542_v0  ;;  %v599_v15 = vsub.s32 (!%p732_p7), %v596_v10, %v506_v39 }
  0x29   : > { %423 = vmatpush1.bf16.msra.mxu0 %v796_v20  ;;  %464 = vmatpush1.bf16.msra.mxu1 %v797_v21  ;;  %v551_v3 = vrot.slane (!%p732_p7), %v543_v1, %v507_v42 }
  0x2a   : > { %424 = vmatprep.subr.bf16.mxu0 %v798_v22  ;;  %465 = vmatprep.subr.bf16.mxu1 %v800_v23  ;;  %v558_v4 = vrot.slane (!%p732_p7), %v544_v2, %v507_v42 }
  0x2c   : > { %v559_v8 = vcombine.low (!%p732_p7), %v551_v3, %v558_v4 }
  0x2d   : > { %425 = vmatpush1.bf16.msra.mxu0 %v802_v24  ;;  %466 = vmatpush1.bf16.msra.mxu1 %v803_v25 }
  0x2e   : > { %426 = vmatprep.subr.bf16.mxu0 %v804_v26  ;;  %467 = vmatprep.subr.bf16.mxu1 %v806_v27 }
  0x31   : > { %427 = vmatpush1.bf16.msra.mxu0 %v808_v28  ;;  %468 = vmatpush1.bf16.msra.mxu1 %v809_v29 }
  0x32   : > { %428 = vmatprep.subr.bf16.mxu0 %v810_v30  ;;  %469 = vmatprep.subr.bf16.mxu1 %v812_v31 }
  0x35   : > { %429 = vmatpush1.bf16.msra.mxu0 %v814_v32  ;;  %470 = vmatpush1.bf16.msra.mxu1 %v815_v33 }
  0x38   : > { %447 = vmatmul.mubr.bf16.vlgmr.msra.gmra.mrb[0].mxu0 %v221_v34  ;;  %488 = vmatmul.mubr.bf16.vlgmr.msra.gmra.mrb[0].mxu1 %v221_v34 }
 0x10b   : > { %v448_v40 = vpop.f32.mrb[0].mxu0  ;;  %v489_v41 = vpop.f32.mrb[0].mxu1 }
 0x10c   : > { %v450_v43 = vpop.f32.mrb[1].mxu0  ;;  %v491_v44 = vpop.f32.mrb[1].mxu1 }
 0x10d   : > { %v500_v45 = vcombine.low %v448_v40, %v450_v43  ;;  %v501_v46 = vcombine.low %v489_v41, %v491_v44  ;;  %v452_v47 = vpop.f32.mrb[2].mxu0  ;;  %v493_v48 = vpop.f32.mrb[2].mxu1 }
 0x10e   : > { %v453_v49 = vpop.f32.mrb[3].mxu0  ;;  %v494_v50 = vpop.f32.mrb[3].mxu1 }
 0x10f   : > { %v508_v51 = vrot.slane %v500_v45, %v507_v42  ;;  %v515_v52 = vrot.slane %v501_v46, %v507_v42  ;;  %523 = sbr.rel (%p732_p7) target bundleno = 300 (0x12c), region = 40 }
 0x111   : > { %v516_v54 = vcombine.low %v508_v51, %v515_v52 }
 0x113   : > { %v518_v55 = vadd.f32 %v516_v54, %v220_v53 }
 0x115   : > { %519 = vst [vmem:[#allocation2] sm:$0xff] %v518_v55 }
 0x11c   : > { %v524_v7 = vld [vmem:[#allocation2] sm:$0xff] }
 0x11d   : > { %v561_v9 = vadd.f32 %v559_v8, %v524_v7 }
 0x11f   : > { %v563_v11 = vcombine.high %v561_v9, %v561_v9  ;;  %v570_v12 = vrot.slane %v561_v9, %v507_v42 }
 0x121   : > { %v577_v13 = vrot.slane %v563_v11, %v507_v42  ;;  %v578_v14 = vcombine.high %v570_v12, %v570_v12 }
 0x123   : > { %v579_v16 = vcombine.high %v577_v13, %v577_v13  ;;  %v733_v17 = vpack.c.bf16 %v578_v14, %v570_v12 }
 0x125   : > { %v734_v18 = vpack.c.bf16 %v579_v16, %v577_v13  ;;  %v600_v19 = vrot.slane %v733_v17, %v599_v15 }
 0x127   : > { %v607_v20 = vrot.slane %v734_v18, %v599_v15 }
 0x129   : > { %v608_v21 = vcombine.low %v600_v19, %v607_v20 }
 0x12b   : > { %735 = vst.sshfl [vmem:[%s955_s3] sm:$0x55 pattern:$0x73625140] %v608_v21 }
 0x12c PF: > { %s13_s14 = sadd.s32 1, %s838_s14   ;;  %s956_s12 = smov %s834_s13 }
 0x12d   : > { %p10_p8 = scmp.ge.s32.totalorder %s13_s14, 4   ;;  %s957_s13 = smov %s959_s15 }
 0x12f   :  { %12 = sbr.rel (!%p10_p8) target bundleno = 2 (0x2), region = 73 }

// kernel: res_model_forward.42
= control target key start
LH: loop header
LB: loop body
LE: loop exit
PB: predicated region body
PF: predicated region fallthrough
CT: control target
= control target key end

     0   :  { %s2485_s15 = smov 0   ;;  %s2487_s16 = smov 0   ;;  %s2767_s0 = inlined_call_operand.vmem [shape: bf16[2,1,1,9,512], index: 0, kind: input, shape index: {}, may-alias: {0,4}]   ;;  %s2768_s1 = inlined_call_operand.vmem [shape: bf16[2,2304], index: 1, kind: input, shape index: {}]   ;;  %s2769_s2 = inlined_call_operand.vmem [shape: bf16[2304,512], index: 2, kind: input, shape index: {}]   ;;  %s2770_s3 = inlined_call_operand.vmem [shape: f32[1,512], index: 3, kind: input, shape index: {}]   ;;  %s2771_s4 = inlined_call_operand.vmem [shape: bf16[2,1,1,9,512], index: 4, kind: output, shape index: {}, may-alias: {0,4}]  }
   0x1   :  { %s2489_s17 = smov 0  }
   0x2 LB: > { %s1893_s0 = sadd.s32 4294967295, %s2455_s17   ;;  %s24_s18 = sadd.s32 1, %s2451_s16  ;;  %s2455_s17 = sphi %s2489_s17, %s15_s17   ;;  %s2451_s16 = sphi %s2487_s16, %s2773_s16   ;;  %s2447_s15 = sphi %s2485_s15, %s2772_s15  }
   0x3   : > { %p25_p0 = scmp.ge.s32.totalorder %s24_s18, 3  ;;  %p1896_p1 = scmp.ge.s32.totalorder %s2455_s17, 1 }
   0x4   : > { %p169_p2 = scmp.lt.s32.totalorder %s2455_s17, 4 }
   0x5   : > { %s2775_s18 = smov (%p25_p0, %s24_s18), 0 }
   0x6   : > { %p170_p3 = pnand %p1896_p1, %p169_p2 }
   0x7   : > { %s197_s19 = smul.u32 (!%p170_p3), 6, %s2447_s15  ;;  %p1899_p6 = scmp.ne.s32.totalorder (!%p170_p3), %s2447_s15, 0 }
   0x8   : > { %173 = sbr.rel (%p170_p3) target bundleno = 472 (0x1d8), region = 32 }
   0x9   : > { %s206_s20 = smul.u32 (!%p170_p3), 96, %s2447_s15  ;;  %p200_p4 = scmp.lt.s32.totalorder (!%p170_p3), %s197_s19, 17 }
   0xb   : > { %p207_p5 = scmp.lt.s32.totalorder (!%p170_p3), %s206_s20, 287 }
   0xf   : > { %s2777_s19 = smov (!%p200_p4, %s197_s19), 17  ;;  %s2779_s20 = smov (!%p207_p5, %s206_s20), 287 }
  0x10   : > { %s204_s23 = scalar_lea.vmem %s2768_s1, %s2777_s19  ;;  %s2100_s24 = sshll.u32 %s2779_s20, 4  ;;  %v2457_v0 = vmov (!%p1899_p6), 0.0  }
  0x11   : > { %s2517_s27 = scalar_lea.vmem %s2769_s2, %s2100_s24  ;;  %216 = sbr.rel (%p1899_p6) target bundleno = 24 (0x18), region = 36  ;;  %217 = vst [vmem:[#allocation2] sm:$0xff] (!%p1899_p6), %v2457_v0 }
  0x18 PF: > { %v2144_v1 = vld [vmem:[%s2517_s27 + $0x4] ss:$16 sps:$4 sm:$0xff]   ;;  %v2146_v2 = vld [vmem:[%s2517_s27 + $0xc] ss:$16 sps:$4 sm:$0xff]   ;;  %v2148_v3 = vld [vmem:[%s2517_s27] ss:$16 sps:$4 sm:$0xff]   ;;  %v417_v39 = vlaneseq }
  0x19   : > { %1426 = vmatprep.subr.bf16.mxu0 %v2144_v1  ;;  %v2149_v4 = vld [vmem:[%s2517_s27 + $0x8] ss:$16 sps:$4 sm:$0xff]   ;;  %1549 = vmatprep.subr.bf16.mxu1 %v2146_v2  ;;  %v2150_v5 = vld [vmem:[%s2517_s27 + $0x24] ss:$16 sps:$4 sm:$0xff]   ;;  %v2152_v6 = vld [vmem:[%s2517_s27 + $0x2c] ss:$16 sps:$4 sm:$0xff]  }
  0x1a   : > { %1427 = vmatpush1.bf16.msra.mxu0 %v2148_v3  ;;  %1550 = vmatpush1.bf16.msra.mxu1 %v2149_v4  ;;  %v2154_v7 = vld [vmem:[%s2517_s27 + $0x20] ss:$16 sps:$4 sm:$0xff]   ;;  %v2155_v8 = vld [vmem:[%s2517_s27 + $0x28] ss:$16 sps:$4 sm:$0xff]   ;;  %v2156_v9 = vld [vmem:[%s2517_s27 + $0x44] ss:$16 sps:$4 sm:$0xff]  }
  0x1b   : > { %1428 = vmatprep.subr.bf16.mxu0 %v2150_v5  ;;  %1551 = vmatprep.subr.bf16.mxu1 %v2152_v6  ;;  %v2158_v10 = vld [vmem:[%s2517_s27 + $0x4c] ss:$16 sps:$4 sm:$0xff]   ;;  %v2160_v11 = vld [vmem:[%s2517_s27 + $0x40] ss:$16 sps:$4 sm:$0xff]   ;;  %v2161_v12 = vld [vmem:[%s2517_s27 + $0x48] ss:$16 sps:$4 sm:$0xff]  }
  0x1c   : > { %v2162_v13 = vld [vmem:[%s2517_s27 + $0x64] ss:$16 sps:$4 sm:$0xff]   ;;  %v2164_v14 = vld [vmem:[%s2517_s27 + $0x6c] ss:$16 sps:$4 sm:$0xff]   ;;  %v2166_v15 = vld [vmem:[%s2517_s27 + $0x60] ss:$16 sps:$4 sm:$0xff]  }
  0x1d   : > { %v2167_v16 = vld [vmem:[%s2517_s27 + $0x68] ss:$16 sps:$4 sm:$0xff]   ;;  %v2168_v17 = vld [vmem:[%s2517_s27 + $0x84] ss:$16 sps:$4 sm:$0xff]   ;;  %v2170_v18 = vld [vmem:[%s2517_s27 + $0x8c] ss:$16 sps:$4 sm:$0xff]  }
  0x1e   : > { %1429 = vmatpush1.bf16.msra.mxu0 %v2154_v7  ;;  %1552 = vmatpush1.bf16.msra.mxu1 %v2155_v8  ;;  %v2172_v19 = vld [vmem:[%s2517_s27 + $0x80] ss:$16 sps:$4 sm:$0xff]   ;;  %v2173_v20 = vld [vmem:[%s2517_s27 + $0x88] ss:$16 sps:$4 sm:$0xff]   ;;  %v2174_v21 = vld [vmem:[%s2517_s27 + $0xa4] ss:$16 sps:$4 sm:$0xff]  }
  0x1f   : > { %1430 = vmatprep.subr.bf16.mxu0 %v2156_v9  ;;  %1553 = vmatprep.subr.bf16.mxu1 %v2158_v10  ;;  %v2176_v22 = vld [vmem:[%s2517_s27 + $0xac] ss:$16 sps:$4 sm:$0xff]   ;;  %v2178_v23 = vld [vmem:[%s2517_s27 + $0xa0] ss:$16 sps:$4 sm:$0xff]   ;;  %v2179_v24 = vld [vmem:[%s2517_s27 + $0xa8] ss:$16 sps:$4 sm:$0xff]  }
  0x20   : > { %v2180_v25 = vld [vmem:[%s2517_s27 + $0xc4] ss:$16 sps:$4 sm:$0xff]   ;;  %v2182_v26 = vld [vmem:[%s2517_s27 + $0xcc] ss:$16 sps:$4 sm:$0xff]   ;;  %v2184_v27 = vld [vmem:[%s2517_s27 + $0xc0] ss:$16 sps:$4 sm:$0xff]  }
  0x21   : > { %v2185_v28 = vld [vmem:[%s2517_s27 + $0xc8] ss:$16 sps:$4 sm:$0xff]   ;;  %v2186_v29 = vld [vmem:[%s2517_s27 + $0xe4] ss:$16 sps:$4 sm:$0xff]   ;;  %v2188_v30 = vld [vmem:[%s2517_s27 + $0xec] ss:$16 sps:$4 sm:$0xff]  }
  0x22   : > { %1431 = vmatpush1.bf16.msra.mxu0 %v2160_v11  ;;  %1554 = vmatpush1.bf16.msra.mxu1 %v2161_v12  ;;  %v2190_v31 = vld [vmem:[%s2517_s27 + $0xe0] ss:$16 sps:$4 sm:$0xff]   ;;  %v2191_v32 = vld [vmem:[%s2517_s27 + $0xe8] ss:$16 sps:$4 sm:$0xff]   ;;  %v2192_v33 = vld [vmem:[%s2517_s27 + $0x104] ss:$16 sps:$4 sm:$0xff]  }
  0x23   : > { %1432 = vmatprep.subr.bf16.mxu0 %v2162_v13  ;;  %1555 = vmatprep.subr.bf16.mxu1 %v2164_v14  ;;  %v2194_v34 = vld [vmem:[%s2517_s27 + $0x10c] ss:$16 sps:$4 sm:$0xff]   ;;  %v2196_v35 = vld [vmem:[%s2517_s27 + $0x100] ss:$16 sps:$4 sm:$0xff]   ;;  %v2197_v36 = vld [vmem:[%s2517_s27 + $0x108] ss:$16 sps:$4 sm:$0xff]  }
  0x24   : > { %v2458_v37 = vmov 1966171168   ;;  %v2198_v40 = vld [vmem:[%s2517_s27 + $0x124] ss:$16 sps:$4 sm:$0xff]   ;;  %v2200_v41 = vld [vmem:[%s2517_s27 + $0x12c] ss:$16 sps:$4 sm:$0xff]  }
  0x25   : > { %v415_v38 = vunpack.c.l.s4 %v2458_v37  ;;  %v2202_v42 = vld [vmem:[%s2517_s27 + $0x120] ss:$16 sps:$4 sm:$0xff]   ;;  %v2559_v44 = vshrl.u32 %v417_v39, 7  ;;  %v2203_v45 = vld [vmem:[%s2517_s27 + $0x128] ss:$16 sps:$4 sm:$0xff]   ;;  %p2092_p7 = scmp.ne.s32.totalorder %s2447_s15, 2 }
  0x26   : > { %1433 = vmatpush1.bf16.msra.mxu0 %v2166_v15  ;;  %1556 = vmatpush1.bf16.msra.mxu1 %v2167_v16  ;;  %v2204_v46 = vld [vmem:[%s2517_s27 + $0x144] ss:$16 sps:$4 sm:$0xff]   ;;  %v2206_v47 = vld [vmem:[%s2517_s27 + $0x14c] ss:$16 sps:$4 sm:$0xff]   ;;  %v2208_v48 = vld [vmem:[%s2517_s27 + $0x140] ss:$16 sps:$4 sm:$0xff]  }
  0x27   : > { %1434 = vmatprep.subr.bf16.mxu0 %v2168_v17  ;;  %1557 = vmatprep.subr.bf16.mxu1 %v2170_v18  ;;  %v416_v43 = vunpack.c.0.s8 %v415_v38  ;;  %v2209_v49 = vld [vmem:[%s2517_s27 + $0x148] ss:$16 sps:$4 sm:$0xff]   ;;  %v2210_v51 = vld [vmem:[%s2517_s27 + $0x164] ss:$16 sps:$4 sm:$0xff]   ;;  %v2212_v52 = vld [vmem:[%s2517_s27 + $0x16c] ss:$16 sps:$4 sm:$0xff]  }
  0x28   : > { %v219_v53 = vld [vmem:[%s204_s23] sm:$0x3f]  ;;  %v2215_v56 = vld [vmem:[%s2517_s27 + $0x168] ss:$16 sps:$4 sm:$0xff]   ;;  %v2218_v58 = vld [vmem:[%s2517_s27 + $0x18c] ss:$16 sps:$4 sm:$0xff]  }
  0x29   : > { %v2567_v50 = vsub.s32 %v416_v43, %v2559_v44  ;;  %v2214_v54 = vld [vmem:[%s2517_s27 + $0x160] ss:$16 sps:$4 sm:$0xff]   ;;  %v2216_v57 = vld [vmem:[%s2517_s27 + $0x184] ss:$16 sps:$4 sm:$0xff]   ;;  %v2221_v62 = vld [vmem:[%s2517_s27 + $0x188] ss:$16 sps:$4 sm:$0xff]   ;;  %v413_v9 = vcombine.high %v219_v53, %v219_v53 }
  0x2a   : > { %1435 = vmatpush1.bf16.msra.mxu0 %v2172_v19  ;;  %1558 = vmatpush1.bf16.msra.mxu1 %v2173_v20  ;;  %v2220_v60 = vld [vmem:[%s2517_s27 + $0x180] ss:$16 sps:$4 sm:$0xff]   ;;  %v2222_v63 = vld [vmem:[%s2517_s27 + $0x1a4] ss:$16 sps:$4 sm:$0xff]   ;;  %v2224_v0 = vld [vmem:[%s2517_s27 + $0x1ac] ss:$16 sps:$4 sm:$0xff]  }
  0x2b   : > { %1436 = vmatprep.subr.bf16.mxu0 %v2174_v21  ;;  %1559 = vmatprep.subr.bf16.mxu1 %v2176_v22  ;;  %v420_v55 = vrot.slane %v219_v53, %v2567_v50  ;;  %v2226_v1 = vld [vmem:[%s2517_s27 + $0x1a0] ss:$16 sps:$4 sm:$0xff]   ;;  %v2227_v2 = vld [vmem:[%s2517_s27 + $0x1a8] ss:$16 sps:$4 sm:$0xff]   ;;  %v2228_v3 = vld [vmem:[%s2517_s27 + $0x1c4] ss:$16 sps:$4 sm:$0xff]   ;;  %v427_v12 = vrot.slane %v413_v9, %v2567_v50 }
  0x2c   : > { %v2230_v4 = vld [vmem:[%s2517_s27 + $0x1cc] ss:$16 sps:$4 sm:$0xff]   ;;  %v2232_v5 = vld [vmem:[%s2517_s27 + $0x1c0] ss:$16 sps:$4 sm:$0xff]   ;;  %v2233_v6 = vld [vmem:[%s2517_s27 + $0x1c8] ss:$16 sps:$4 sm:$0xff]  }
  0x2d   : > { %v428_v59 = vcombine.high %v420_v55, %v420_v55  ;;  %v2234_v7 = vld [vmem:[%s2517_s27 + $0x1e4] ss:$16 sps:$4 sm:$0xff]   ;;  %v2236_v8 = vld [vmem:[%s2517_s27 + $0x1ec] ss:$16 sps:$4 sm:$0xff]   ;;  %v2238_v10 = vld [vmem:[%s2517_s27 + $0x1e0] ss:$16 sps:$4 sm:$0xff]   ;;  %v429_v15 = vcombine.high %v427_v12, %v427_v12  ;;  %v2601_v17 = vrot.slane %v420_v55, %v2567_v50  ;;  %v2608_v20 = vrot.slane %v427_v12, %v2567_v50 }
  0x2e   : > { %1437 = vmatpush1.bf16.msra.mxu0 %v2178_v23  ;;  %1560 = vmatpush1.bf16.msra.mxu1 %v2179_v24  ;;  %v2239_v11 = vld [vmem:[%s2517_s27 + $0x1e8] ss:$16 sps:$4 sm:$0xff]   ;;  %v2242_v13 = vld [vmem:[%s2517_s27 + $0x204] ss:$16 sps:$4 sm:$0xff]   ;;  %v2245_v14 = vld [vmem:[%s2517_s27 + $0x20c] ss:$16 sps:$4 sm:$0xff]  }
  0x2f   : > { %1438 = vmatprep.subr.bf16.mxu0 %v2180_v25  ;;  %1561 = vmatprep.subr.bf16.mxu1 %v2182_v26  ;;  %v450_v61 = vrot.slane %v428_v59, %v2567_v50  ;;  %v2240_v16 = vld [vmem:[%s2517_s27 + $0x200] ss:$16 sps:$4 sm:$0xff]   ;;  %v2243_v18 = vld [vmem:[%s2517_s27 + $0x208] ss:$16 sps:$4 sm:$0xff]   ;;  %v2605_v19 = vrot.slane %v429_v15, %v2567_v50  ;;  %v2248_v21 = vld [vmem:[%s2517_s27 + $0x224] ss:$16 sps:$4 sm:$0xff]  }
  0x30   : > { %v2251_v22 = vld [vmem:[%s2517_s27 + $0x22c] ss:$16 sps:$4 sm:$0xff]   ;;  %v2246_v24 = vld [vmem:[%s2517_s27 + $0x220] ss:$16 sps:$4 sm:$0xff]   ;;  %v2249_v25 = vld [vmem:[%s2517_s27 + $0x228] ss:$16 sps:$4 sm:$0xff]  }
  0x31   : > { %1458 = vmatprep.mubr.bf16.mxu0 %v450_v61  ;;  %1581 = vmatprep.mubr.bf16.mxu1 %v450_v61  ;;  %v459_v23 = vcombine.high %v450_v61, %v450_v61  ;;  %v2254_v26 = vld [vmem:[%s2517_s27 + $0x244] ss:$16 sps:$4 sm:$0xff]   ;;  %v2267_v37 = vld [vmem:[%s2517_s27 + $0x288] ss:$16 sps:$4 sm:$0xff]   ;;  %v2275_v39 = vld [vmem:[%s2517_s27 + $0x2ac] ss:$16 sps:$4 sm:$0xff]  }
  0x32   : > { %1439 = vmatpush1.bf16.msra.mxu0 %v2184_v27  ;;  %1562 = vmatpush1.bf16.msra.mxu1 %v2185_v28  ;;  %v2257_v27 = vld [vmem:[%s2517_s27 + $0x24c] ss:$16 sps:$4 sm:$0xff]   ;;  %v2252_v28 = vld [vmem:[%s2517_s27 + $0x240] ss:$16 sps:$4 sm:$0xff]   ;;  %v2272_v38 = vld [vmem:[%s2517_s27 + $0x2a4] ss:$16 sps:$4 sm:$0xff]  }
  0x33   : > { %1440 = vmatprep.subr.bf16.mxu0 %v2186_v29  ;;  %1563 = vmatprep.subr.bf16.mxu1 %v2188_v30  ;;  %v2255_v29 = vld [vmem:[%s2517_s27 + $0x248] ss:$16 sps:$4 sm:$0xff]   ;;  %v2260_v30 = vld [vmem:[%s2517_s27 + $0x264] ss:$16 sps:$4 sm:$0xff]   ;;  %v2281_v43 = vld [vmem:[%s2517_s27 + $0x2cc] ss:$16 sps:$4 sm:$0xff]  }
  0x34   : > { %v2293_v53 = vld [vmem:[%s2517_s27 + $0x30c] ss:$16 sps:$4 sm:$0xff]   ;;  %v2291_v55 = vld [vmem:[%s2517_s27 + $0x308] ss:$16 sps:$4 sm:$0xff]   ;;  %v2326_v12 = vld [vmem:[%s2517_s27 + $0x3c4] ss:$16 sps:$4 sm:$0xff]  }
  0x35   : > { %v2297_v59 = vld [vmem:[%s2517_s27 + $0x328] ss:$16 sps:$4 sm:$0xff]   ;;  %v2305_v61 = vld [vmem:[%s2517_s27 + $0x34c] ss:$16 sps:$4 sm:$0xff]  }
  0x36   : > { %1441 = vmatpush1.bf16.msra.mxu0 %v2190_v31  ;;  %1564 = vmatpush1.bf16.msra.mxu1 %v2191_v32  ;;  %v2263_v31 = vld [vmem:[%s2517_s27 + $0x26c] ss:$16 sps:$4 sm:$0xff]   ;;  %v2258_v32 = vld [vmem:[%s2517_s27 + $0x260] ss:$16 sps:$4 sm:$0xff]   ;;  %v2327_v15 = vld [vmem:[%s2517_s27 + $0x3c8] ss:$16 sps:$4 sm:$0xff]  }
  0x37   : > { %1442 = vmatprep.subr.bf16.mxu0 %v2192_v33  ;;  %1565 = vmatprep.subr.bf16.mxu1 %v2194_v34  ;;  %v2261_v33 = vld [vmem:[%s2517_s27 + $0x268] ss:$16 sps:$4 sm:$0xff]   ;;  %v2266_v34 = vld [vmem:[%s2517_s27 + $0x284] ss:$16 sps:$4 sm:$0xff]   ;;  %v2323_v9 = vld [vmem:[%s2517_s27 + $0x3ac] ss:$16 sps:$4 sm:$0xff]  }
  0x3a   : > { %1443 = vmatpush1.bf16.msra.mxu0 %v2196_v35  ;;  %1566 = vmatpush1.bf16.msra.mxu1 %v2197_v36  ;;  %v2269_v35 = vld [vmem:[%s2517_s27 + $0x28c] ss:$16 sps:$4 sm:$0xff]   ;;  %v2264_v36 = vld [vmem:[%s2517_s27 + $0x280] ss:$16 sps:$4 sm:$0xff]  }
  0x3b   : > { %1444 = vmatprep.subr.bf16.mxu0 %v2198_v40  ;;  %1567 = vmatprep.subr.bf16.mxu1 %v2200_v41  ;;  %v2270_v40 = vld [vmem:[%s2517_s27 + $0x2a0] ss:$16 sps:$4 sm:$0xff]   ;;  %v2273_v41 = vld [vmem:[%s2517_s27 + $0x2a8] ss:$16 sps:$4 sm:$0xff]  }
  0x3e   : > { %1445 = vmatpush1.bf16.msra.mxu0 %v2202_v42  ;;  %1568 = vmatpush1.bf16.msra.mxu1 %v2203_v45  ;;  %v2278_v42 = vld [vmem:[%s2517_s27 + $0x2c4] ss:$16 sps:$4 sm:$0xff]   ;;  %v2276_v45 = vld [vmem:[%s2517_s27 + $0x2c0] ss:$16 sps:$4 sm:$0xff]  }
  0x3f   : > { %1446 = vmatprep.subr.bf16.mxu0 %v2204_v46  ;;  %1569 = vmatprep.subr.bf16.mxu1 %v2206_v47  ;;  %v2279_v46 = vld [vmem:[%s2517_s27 + $0x2c8] ss:$16 sps:$4 sm:$0xff]   ;;  %v2284_v47 = vld [vmem:[%s2517_s27 + $0x2e4] ss:$16 sps:$4 sm:$0xff]  }
  0x42   : > { %1447 = vmatpush1.bf16.msra.mxu0 %v2208_v48  ;;  %1570 = vmatpush1.bf16.msra.mxu1 %v2209_v49  ;;  %v2287_v48 = vld [vmem:[%s2517_s27 + $0x2ec] ss:$16 sps:$4 sm:$0xff]   ;;  %v2282_v49 = vld [vmem:[%s2517_s27 + $0x2e0] ss:$16 sps:$4 sm:$0xff]  }
  0x43   : > { %1448 = vmatprep.subr.bf16.mxu0 %v2210_v51  ;;  %1571 = vmatprep.subr.bf16.mxu1 %v2212_v52  ;;  %v2285_v51 = vld [vmem:[%s2517_s27 + $0x2e8] ss:$16 sps:$4 sm:$0xff]   ;;  %v2290_v52 = vld [vmem:[%s2517_s27 + $0x304] ss:$16 sps:$4 sm:$0xff]  }
  0x46   : > { %1449 = vmatpush1.bf16.msra.mxu0 %v2214_v54  ;;  %1572 = vmatpush1.bf16.msra.mxu1 %v2215_v56  ;;  %v2288_v54 = vld [vmem:[%s2517_s27 + $0x300] ss:$16 sps:$4 sm:$0xff]   ;;  %v2296_v56 = vld [vmem:[%s2517_s27 + $0x324] ss:$16 sps:$4 sm:$0xff]  }
  0x47   : > { %1450 = vmatprep.subr.bf16.mxu0 %v2216_v57  ;;  %1573 = vmatprep.subr.bf16.mxu1 %v2218_v58  ;;  %v2299_v57 = vld [vmem:[%s2517_s27 + $0x32c] ss:$16 sps:$4 sm:$0xff]   ;;  %v2294_v58 = vld [vmem:[%s2517_s27 + $0x320] ss:$16 sps:$4 sm:$0xff]  }
  0x4a   : > { %1451 = vmatpush1.bf16.msra.mxu0 %v2220_v60  ;;  %1574 = vmatpush1.bf16.msra.mxu1 %v2221_v62  ;;  %v2302_v60 = vld [vmem:[%s2517_s27 + $0x344] ss:$16 sps:$4 sm:$0xff]   ;;  %v2300_v62 = vld [vmem:[%s2517_s27 + $0x340] ss:$16 sps:$4 sm:$0xff]  }
  0x4b   : > { %1452 = vmatprep.subr.bf16.mxu0 %v2222_v63  ;;  %1575 = vmatprep.subr.bf16.mxu1 %v2224_v0  ;;  %v2303_v63 = vld [vmem:[%s2517_s27 + $0x348] ss:$16 sps:$4 sm:$0xff]   ;;  %v2308_v0 = vld [vmem:[%s2517_s27 + $0x364] ss:$16 sps:$4 sm:$0xff]  }
  0x4e   : > { %1453 = vmatpush1.bf16.msra.mxu0 %v2226_v1  ;;  %1576 = vmatpush1.bf16.msra.mxu1 %v2227_v2  ;;  %v2311_v1 = vld [vmem:[%s2517_s27 + $0x36c] ss:$16 sps:$4 sm:$0xff]   ;;  %v2306_v2 = vld [vmem:[%s2517_s27 + $0x360] ss:$16 sps:$4 sm:$0xff]  }
  0x4f   : > { %1454 = vmatprep.subr.bf16.mxu0 %v2228_v3  ;;  %1577 = vmatprep.subr.bf16.mxu1 %v2230_v4  ;;  %v2309_v3 = vld [vmem:[%s2517_s27 + $0x368] ss:$16 sps:$4 sm:$0xff]   ;;  %v2314_v4 = vld [vmem:[%s2517_s27 + $0x384] ss:$16 sps:$4 sm:$0xff]  }
  0x52   : > { %1455 = vmatpush1.bf16.msra.mxu0 %v2232_v5  ;;  %1578 = vmatpush1.bf16.msra.mxu1 %v2233_v6  ;;  %v2317_v5 = vld [vmem:[%s2517_s27 + $0x38c] ss:$16 sps:$4 sm:$0xff]   ;;  %v2312_v6 = vld [vmem:[%s2517_s27 + $0x380] ss:$16 sps:$4 sm:$0xff]  }
  0x53   : > { %1456 = vmatprep.subr.bf16.mxu0 %v2234_v7  ;;  %1579 = vmatprep.subr.bf16.mxu1 %v2236_v8  ;;  %v2315_v7 = vld [vmem:[%s2517_s27 + $0x388] ss:$16 sps:$4 sm:$0xff]   ;;  %v2320_v8 = vld [vmem:[%s2517_s27 + $0x3a4] ss:$16 sps:$4 sm:$0xff]  }
  0x56   : > { %1457 = vmatpush1.bf16.msra.mxu0 %v2238_v10  ;;  %1580 = vmatpush1.bf16.msra.mxu1 %v2239_v11  ;;  %v2318_v10 = vld [vmem:[%s2517_s27 + $0x3a0] ss:$16 sps:$4 sm:$0xff]   ;;  %v2321_v11 = vld [vmem:[%s2517_s27 + $0x3a8] ss:$16 sps:$4 sm:$0xff]  }
  0x57   : > { %1467 = vmatprep.subr.bf16.mxu0 %v2242_v13  ;;  %1590 = vmatprep.subr.bf16.mxu1 %v2245_v14  ;;  %v2329_v13 = vld [vmem:[%s2517_s27 + $0x3cc] ss:$16 sps:$4 sm:$0xff]   ;;  %v2324_v14 = vld [vmem:[%s2517_s27 + $0x3c0] ss:$16 sps:$4 sm:$0xff]  }
  0x59   : > { %1459 = vmatmul.mubr.bf16.vlgmr.msra.gmra.mrb[0].mxu0 %v2601_v17  ;;  %1582 = vmatmul.mubr.bf16.vlgmr.msra.gmra.mrb[0].mxu1 %v2601_v17 }
  0x5a   : > { %1468 = vmatpush1.bf16.msra.mxu0 %v2240_v16  ;;  %1591 = vmatpush1.bf16.msra.mxu1 %v2243_v18  ;;  %v2332_v16 = vld [vmem:[%s2517_s27 + $0x3e4] ss:$16 sps:$4 sm:$0xff]   ;;  %v2335_v18 = vld [vmem:[%s2517_s27 + $0x3ec] ss:$16 sps:$4 sm:$0xff]  }
  0x5b   : > { %1469 = vmatprep.subr.bf16.mxu0 %v2248_v21  ;;  %1592 = vmatprep.subr.bf16.mxu1 %v2251_v22  ;;  %v2330_v21 = vld [vmem:[%s2517_s27 + $0x3e0] ss:$16 sps:$4 sm:$0xff]   ;;  %v2333_v22 = vld [vmem:[%s2517_s27 + $0x3e8] ss:$16 sps:$4 sm:$0xff]  }
  0x5c   : > { %1499 = vmatprep.mubr.bf16.mxu0 %v459_v23  ;;  %1622 = vmatprep.mubr.bf16.mxu1 %v459_v23  ;;  %v2338_v23 = vld [vmem:[%s2517_s27 + $0x404] ss:$16 sps:$4 sm:$0xff]  }
  0x5e   : > { %1470 = vmatpush1.bf16.msra.mxu0 %v2246_v24  ;;  %1593 = vmatpush1.bf16.msra.mxu1 %v2249_v25  ;;  %v2341_v24 = vld [vmem:[%s2517_s27 + $0x40c] ss:$16 sps:$4 sm:$0xff]   ;;  %v458_v25 = vcombine.high %v2601_v17, %v2601_v17  ;;  %v2345_v17 = vld [vmem:[%s2517_s27 + $0x428] ss:$16 sps:$4 sm:$0xff]  }
  0x5f   : > { %1471 = vmatprep.subr.bf16.mxu0 %v2254_v26  ;;  %1594 = vmatprep.subr.bf16.mxu1 %v2257_v27  ;;  %v2336_v26 = vld [vmem:[%s2517_s27 + $0x400] ss:$16 sps:$4 sm:$0xff]   ;;  %v2339_v27 = vld [vmem:[%s2517_s27 + $0x408] ss:$16 sps:$4 sm:$0xff]  }
  0x62   : > { %1472 = vmatpush1.bf16.msra.mxu0 %v2252_v28  ;;  %1595 = vmatpush1.bf16.msra.mxu1 %v2255_v29  ;;  %v2344_v28 = vld [vmem:[%s2517_s27 + $0x424] ss:$16 sps:$4 sm:$0xff]   ;;  %v2347_v29 = vld [vmem:[%s2517_s27 + $0x42c] ss:$16 sps:$4 sm:$0xff]  }
  0x63   : > { %1473 = vmatprep.subr.bf16.mxu0 %v2260_v30  ;;  %1596 = vmatprep.subr.bf16.mxu1 %v2263_v31  ;;  %v2342_v30 = vld [vmem:[%s2517_s27 + $0x420] ss:$16 sps:$4 sm:$0xff]   ;;  %v2350_v31 = vld [vmem:[%s2517_s27 + $0x444] ss:$16 sps:$4 sm:$0xff]  }
  0x66   : > { %1474 = vmatpush1.bf16.msra.mxu0 %v2258_v32  ;;  %1597 = vmatpush1.bf16.msra.mxu1 %v2261_v33  ;;  %v2353_v32 = vld [vmem:[%s2517_s27 + $0x44c] ss:$16 sps:$4 sm:$0xff]   ;;  %v2348_v33 = vld [vmem:[%s2517_s27 + $0x440] ss:$16 sps:$4 sm:$0xff]  }
  0x67   : > { %1475 = vmatprep.subr.bf16.mxu0 %v2266_v34  ;;  %1598 = vmatprep.subr.bf16.mxu1 %v2269_v35  ;;  %v2351_v34 = vld [vmem:[%s2517_s27 + $0x448] ss:$16 sps:$4 sm:$0xff]   ;;  %v2356_v35 = vld [vmem:[%s2517_s27 + $0x464] ss:$16 sps:$4 sm:$0xff]  }
  0x6a   : > { %1476 = vmatpush1.bf16.msra.mxu0 %v2264_v36  ;;  %1599 = vmatpush1.bf16.msra.mxu1 %v2267_v37  ;;  %v2359_v36 = vld [vmem:[%s2517_s27 + $0x46c] ss:$16 sps:$4 sm:$0xff]   ;;  %v2354_v37 = vld [vmem:[%s2517_s27 + $0x460] ss:$16 sps:$4 sm:$0xff]  }
  0x6b   : > { %1477 = vmatprep.subr.bf16.mxu0 %v2272_v38  ;;  %1600 = vmatprep.subr.bf16.mxu1 %v2275_v39  ;;  %v2357_v38 = vld [vmem:[%s2517_s27 + $0x468] ss:$16 sps:$4 sm:$0xff]   ;;  %v2365_v39 = vld [vmem:[%s2517_s27 + $0x48c] ss:$16 sps:$4 sm:$0xff]  }
  0x6e   : > { %1478 = vmatpush1.bf16.msra.mxu0 %v2270_v40  ;;  %1601 = vmatpush1.bf16.msra.mxu1 %v2273_v41  ;;  %v2360_v40 = vld [vmem:[%s2517_s27 + $0x480] ss:$16 sps:$4 sm:$0xff]   ;;  %v2363_v41 = vld [vmem:[%s2517_s27 + $0x488] ss:$16 sps:$4 sm:$0xff]  }
  0x6f   : > { %1479 = vmatprep.subr.bf16.mxu0 %v2278_v42  ;;  %1602 = vmatprep.subr.bf16.mxu1 %v2281_v43  ;;  %v2368_v42 = vld [vmem:[%s2517_s27 + $0x4a4] ss:$16 sps:$4 sm:$0xff]   ;;  %v2371_v43 = vld [vmem:[%s2517_s27 + $0x4ac] ss:$16 sps:$4 sm:$0xff]  }
  0x72   : > { %1480 = vmatpush1.bf16.msra.mxu0 %v2276_v45  ;;  %1603 = vmatpush1.bf16.msra.mxu1 %v2279_v46  ;;  %v2366_v45 = vld [vmem:[%s2517_s27 + $0x4a0] ss:$16 sps:$4 sm:$0xff]   ;;  %v2369_v46 = vld [vmem:[%s2517_s27 + $0x4a8] ss:$16 sps:$4 sm:$0xff]  }
  0x73   : > { %1481 = vmatprep.subr.bf16.mxu0 %v2284_v47  ;;  %1604 = vmatprep.subr.bf16.mxu1 %v2287_v48  ;;  %v2374_v47 = vld [vmem:[%s2517_s27 + $0x4c4] ss:$16 sps:$4 sm:$0xff]   ;;  %v2377_v48 = vld [vmem:[%s2517_s27 + $0x4cc] ss:$16 sps:$4 sm:$0xff]  }
  0x76   : > { %1482 = vmatpush1.bf16.msra.mxu0 %v2282_v49  ;;  %1605 = vmatpush1.bf16.msra.mxu1 %v2285_v51  ;;  %v2372_v49 = vld [vmem:[%s2517_s27 + $0x4c0] ss:$16 sps:$4 sm:$0xff]   ;;  %v2375_v51 = vld [vmem:[%s2517_s27 + $0x4c8] ss:$16 sps:$4 sm:$0xff]  }
  0x77   : > { %1483 = vmatprep.subr.bf16.mxu0 %v2290_v52  ;;  %1606 = vmatprep.subr.bf16.mxu1 %v2293_v53  ;;  %v2380_v52 = vld [vmem:[%s2517_s27 + $0x4e4] ss:$16 sps:$4 sm:$0xff]   ;;  %v2383_v53 = vld [vmem:[%s2517_s27 + $0x4ec] ss:$16 sps:$4 sm:$0xff]  }
  0x7a   : > { %1484 = vmatpush1.bf16.msra.mxu0 %v2288_v54  ;;  %1607 = vmatpush1.bf16.msra.mxu1 %v2291_v55  ;;  %v2378_v54 = vld [vmem:[%s2517_s27 + $0x4e0] ss:$16 sps:$4 sm:$0xff]   ;;  %v2381_v55 = vld [vmem:[%s2517_s27 + $0x4e8] ss:$16 sps:$4 sm:$0xff]  }
  0x7b   : > { %1485 = vmatprep.subr.bf16.mxu0 %v2296_v56  ;;  %1608 = vmatprep.subr.bf16.mxu1 %v2299_v57  ;;  %v2386_v56 = vld [vmem:[%s2517_s27 + $0x504] ss:$16 sps:$4 sm:$0xff]   ;;  %v2389_v57 = vld [vmem:[%s2517_s27 + $0x50c] ss:$16 sps:$4 sm:$0xff]  }
  0x7e   : > { %1486 = vmatpush1.bf16.msra.mxu0 %v2294_v58  ;;  %1609 = vmatpush1.bf16.msra.mxu1 %v2297_v59  ;;  %v2384_v58 = vld [vmem:[%s2517_s27 + $0x500] ss:$16 sps:$4 sm:$0xff]   ;;  %v2387_v59 = vld [vmem:[%s2517_s27 + $0x508] ss:$16 sps:$4 sm:$0xff]  }
  0x7f   : > { %1487 = vmatprep.subr.bf16.mxu0 %v2302_v60  ;;  %1610 = vmatprep.subr.bf16.mxu1 %v2305_v61  ;;  %v2392_v60 = vld [vmem:[%s2517_s27 + $0x524] ss:$16 sps:$4 sm:$0xff]   ;;  %v2395_v61 = vld [vmem:[%s2517_s27 + $0x52c] ss:$16 sps:$4 sm:$0xff]  }
  0x82   : > { %1488 = vmatpush1.bf16.msra.mxu0 %v2300_v62  ;;  %1611 = vmatpush1.bf16.msra.mxu1 %v2303_v63  ;;  %v2390_v62 = vld [vmem:[%s2517_s27 + $0x520] ss:$16 sps:$4 sm:$0xff]   ;;  %v2393_v63 = vld [vmem:[%s2517_s27 + $0x528] ss:$16 sps:$4 sm:$0xff]  }
  0x83   : > { %1489 = vmatprep.subr.bf16.mxu0 %v2308_v0  ;;  %1612 = vmatprep.subr.bf16.mxu1 %v2311_v1  ;;  %v2398_v0 = vld [vmem:[%s2517_s27 + $0x544] ss:$16 sps:$4 sm:$0xff]   ;;  %v2401_v1 = vld [vmem:[%s2517_s27 + $0x54c] ss:$16 sps:$4 sm:$0xff]  }
  0x86   : > { %1490 = vmatpush1.bf16.msra.mxu0 %v2306_v2  ;;  %1613 = vmatpush1.bf16.msra.mxu1 %v2309_v3  ;;  %v2396_v2 = vld [vmem:[%s2517_s27 + $0x540] ss:$16 sps:$4 sm:$0xff]   ;;  %v2399_v3 = vld [vmem:[%s2517_s27 + $0x548] ss:$16 sps:$4 sm:$0xff]  }
  0x87   : > { %1491 = vmatprep.subr.bf16.mxu0 %v2314_v4  ;;  %1614 = vmatprep.subr.bf16.mxu1 %v2317_v5  ;;  %v2404_v4 = vld [vmem:[%s2517_s27 + $0x564] ss:$16 sps:$4 sm:$0xff]   ;;  %v2407_v5 = vld [vmem:[%s2517_s27 + $0x56c] ss:$16 sps:$4 sm:$0xff]  }
  0x8a   : > { %1492 = vmatpush1.bf16.msra.mxu0 %v2312_v6  ;;  %1615 = vmatpush1.bf16.msra.mxu1 %v2315_v7  ;;  %v2402_v6 = vld [vmem:[%s2517_s27 + $0x560] ss:$16 sps:$4 sm:$0xff]   ;;  %v2405_v7 = vld [vmem:[%s2517_s27 + $0x568] ss:$16 sps:$4 sm:$0xff]  }
  0x8b   : > { %1493 = vmatprep.subr.bf16.mxu0 %v2320_v8  ;;  %1616 = vmatprep.subr.bf16.mxu1 %v2323_v9  ;;  %v2410_v8 = vld [vmem:[%s2517_s27 + $0x584] ss:$16 sps:$4 sm:$0xff]   ;;  %v2413_v9 = vld [vmem:[%s2517_s27 + $0x58c] ss:$16 sps:$4 sm:$0xff]  }
  0x8e   : > { %1494 = vmatpush1.bf16.msra.mxu0 %v2318_v10  ;;  %1617 = vmatpush1.bf16.msra.mxu1 %v2321_v11  ;;  %v2408_v10 = vld [vmem:[%s2517_s27 + $0x580] ss:$16 sps:$4 sm:$0xff]   ;;  %v2411_v11 = vld [vmem:[%s2517_s27 + $0x588] ss:$16 sps:$4 sm:$0xff]  }
  0x8f   : > { %1495 = vmatprep.subr.bf16.mxu0 %v2326_v12  ;;  %1618 = vmatprep.subr.bf16.mxu1 %v2329_v13  ;;  %v2416_v12 = vld [vmem:[%s2517_s27 + $0x5a4] ss:$16 sps:$4 sm:$0xff]   ;;  %v2419_v13 = vld [vmem:[%s2517_s27 + $0x5ac] ss:$16 sps:$4 sm:$0xff]  }
  0x92   : > { %1496 = vmatpush1.bf16.msra.mxu0 %v2324_v14  ;;  %1619 = vmatpush1.bf16.msra.mxu1 %v2327_v15  ;;  %v2414_v14 = vld [vmem:[%s2517_s27 + $0x5a0] ss:$16 sps:$4 sm:$0xff]   ;;  %v2417_v15 = vld [vmem:[%s2517_s27 + $0x5a8] ss:$16 sps:$4 sm:$0xff]  }
  0x93   : > { %1497 = vmatprep.subr.bf16.mxu0 %v2332_v16  ;;  %1620 = vmatprep.subr.bf16.mxu1 %v2335_v18  ;;  %v2422_v16 = vld [vmem:[%s2517_s27 + $0x5c4] ss:$16 sps:$4 sm:$0xff]   ;;  %v2425_v18 = vld [vmem:[%s2517_s27 + $0x5cc] ss:$16 sps:$4 sm:$0xff]  }
  0x96   : > { %1498 = vmatpush1.bf16.msra.mxu0 %v2330_v21  ;;  %1621 = vmatpush1.bf16.msra.mxu1 %v2333_v22  ;;  %v2420_v21 = vld [vmem:[%s2517_s27 + $0x5c0] ss:$16 sps:$4 sm:$0xff]   ;;  %v2423_v22 = vld [vmem:[%s2517_s27 + $0x5c8] ss:$16 sps:$4 sm:$0xff]  }
  0x97   : > { %1508 = vmatprep.subr.bf16.mxu0 %v2338_v23  ;;  %1631 = vmatprep.subr.bf16.mxu1 %v2341_v24  ;;  %v2428_v23 = vld [vmem:[%s2517_s27 + $0x5e4] ss:$16 sps:$4 sm:$0xff]   ;;  %v2431_v24 = vld [vmem:[%s2517_s27 + $0x5ec] ss:$16 sps:$4 sm:$0xff]  }
  0x99   : > { %1500 = vmatmul.mubr.bf16.vlgmr.msra.gmra.mrb[0].mxu0 %v458_v25  ;;  %1623 = vmatmul.mubr.bf16.vlgmr.msra.gmra.mrb[0].mxu1 %v458_v25  ;;  %v2426_v25 = vld [vmem:[%s2517_s27 + $0x5e0] ss:$16 sps:$4 sm:$0xff]  }
  0x9a   : > { %1509 = vmatpush1.bf16.msra.mxu0 %v2336_v26  ;;  %1632 = vmatpush1.bf16.msra.mxu1 %v2339_v27  ;;  %v2429_v26 = vld [vmem:[%s2517_s27 + $0x5e8] ss:$16 sps:$4 sm:$0xff]   ;;  %v2459_v27 = vmov 1983009808  }
  0x9b   : > { %1510 = vmatprep.subr.bf16.mxu0 %v2344_v28  ;;  %1633 = vmatprep.subr.bf16.mxu1 %v2347_v29  ;;  %v1679_v28 = vunpack.c.l.s4 %v2459_v27 }
  0x9c   : > { %1540 = vmatprep.mubr.bf16.mxu0 %v2605_v19  ;;  %1663 = vmatprep.mubr.bf16.mxu1 %v2605_v19  ;;  %v2362_v19 = vld [vmem:[%s2517_s27 + $0x484] ss:$16 sps:$4 sm:$0xff]  }
  0x9d   : > { %v1680_v29 = vunpack.c.0.s8 %v1679_v28 }
  0x9e   : > { %1511 = vmatpush1.bf16.msra.mxu0 %v2342_v30  ;;  %1634 = vmatpush1.bf16.msra.mxu1 %v2345_v17 }
  0x9f   : > { %1512 = vmatprep.subr.bf16.mxu0 %v2350_v31  ;;  %1635 = vmatprep.subr.bf16.mxu1 %v2353_v32  ;;  %v1683_v31 = vsub.s32 %v1680_v29, %v2559_v44 }
  0xa2   : > { %1513 = vmatpush1.bf16.msra.mxu0 %v2348_v33  ;;  %1636 = vmatpush1.bf16.msra.mxu1 %v2351_v34 }
  0xa3   : > { %1514 = vmatprep.subr.bf16.mxu0 %v2356_v35  ;;  %1637 = vmatprep.subr.bf16.mxu1 %v2359_v36 }
  0xa6   : > { %1515 = vmatpush1.bf16.msra.mxu0 %v2354_v37  ;;  %1638 = vmatpush1.bf16.msra.mxu1 %v2357_v38 }
  0xa7   : > { %1516 = vmatprep.subr.bf16.mxu0 %v2362_v19  ;;  %1639 = vmatprep.subr.bf16.mxu1 %v2365_v39 }
  0xaa   : > { %1517 = vmatpush1.bf16.msra.mxu0 %v2360_v40  ;;  %1640 = vmatpush1.bf16.msra.mxu1 %v2363_v41  ;;  %v218_v41 = vld [vmem:[#allocation2] sm:$0xff] }
  0xab   : > { %1518 = vmatprep.subr.bf16.mxu0 %v2368_v42  ;;  %1641 = vmatprep.subr.bf16.mxu1 %v2371_v43  ;;  %v1701_v43 = vld [vmem:[%s2770_s3] sm:$0xf] (!%p2092_p7) }
  0xae   : > { %1519 = vmatpush1.bf16.msra.mxu0 %v2366_v45  ;;  %1642 = vmatpush1.bf16.msra.mxu1 %v2369_v46  ;;  %v1705_v45 = vsub.s32 (!%p2092_p7), 0, %v2559_v44  ;;  %v1709_v46 = vsub.s32 (!%p2092_p7), 1, %v2559_v44 }
  0xaf   : > { %1520 = vmatprep.subr.bf16.mxu0 %v2374_v47  ;;  %1643 = vmatprep.subr.bf16.mxu1 %v2377_v48  ;;  %v1713_v47 = vsub.s32 (!%p2092_p7), 2, %v2559_v44  ;;  %v1717_v48 = vsub.s32 (!%p2092_p7), 3, %v2559_v44 }
  0xb2   : > { %1521 = vmatpush1.bf16.msra.mxu0 %v2372_v49  ;;  %1644 = vmatpush1.bf16.msra.mxu1 %v2375_v51  ;;  %v1706_v49 = vrot.slane (!%p2092_p7), %v1701_v43, %v1705_v45  ;;  %v1710_v51 = vrot.slane (!%p2092_p7), %v1701_v43, %v1709_v46 }
  0xb3   : > { %1522 = vmatprep.subr.bf16.mxu0 %v2380_v52  ;;  %1645 = vmatprep.subr.bf16.mxu1 %v2383_v53  ;;  %v1714_v52 = vrot.slane (!%p2092_p7), %v1701_v43, %v1713_v47  ;;  %v1718_v53 = vrot.slane (!%p2092_p7), %v1701_v43, %v1717_v48 }
  0xb6   : > { %1523 = vmatpush1.bf16.msra.mxu0 %v2378_v54  ;;  %1646 = vmatpush1.bf16.msra.mxu1 %v2381_v55  ;;  %v1719_v54 = vcombine.low (!%p2092_p7), %v1706_v49, %v1710_v51  ;;  %v1720_v55 = vcombine.low (!%p2092_p7), %v1714_v52, %v1718_v53 }
  0xb7   : > { %1524 = vmatprep.subr.bf16.mxu0 %v2386_v56  ;;  %1647 = vmatprep.subr.bf16.mxu1 %v2389_v57 }
  0xb8   : > { %v1727_v56 = vrot.slane (!%p2092_p7), %v1719_v54, %v1683_v31  ;;  %v1734_v57 = vrot.slane (!%p2092_p7), %v1720_v55, %v1683_v31 }
  0xba   : > { %1525 = vmatpush1.bf16.msra.mxu0 %v2384_v58  ;;  %1648 = vmatpush1.bf16.msra.mxu1 %v2387_v59  ;;  %v1735_v59 = vcombine.low (!%p2092_p7), %v1727_v56, %v1734_v57 }
  0xbb   : > { %1526 = vmatprep.subr.bf16.mxu0 %v2392_v60  ;;  %1649 = vmatprep.subr.bf16.mxu1 %v2395_v61 }
  0xbe   : > { %1527 = vmatpush1.bf16.msra.mxu0 %v2390_v62  ;;  %1650 = vmatpush1.bf16.msra.mxu1 %v2393_v63 }
  0xbf   : > { %1528 = vmatprep.subr.bf16.mxu0 %v2398_v0  ;;  %1651 = vmatprep.subr.bf16.mxu1 %v2401_v1 }
  0xc2   : > { %1529 = vmatpush1.bf16.msra.mxu0 %v2396_v2  ;;  %1652 = vmatpush1.bf16.msra.mxu1 %v2399_v3 }
  0xc3   : > { %1530 = vmatprep.subr.bf16.mxu0 %v2404_v4  ;;  %1653 = vmatprep.subr.bf16.mxu1 %v2407_v5 }
  0xc6   : > { %1531 = vmatpush1.bf16.msra.mxu0 %v2402_v6  ;;  %1654 = vmatpush1.bf16.msra.mxu1 %v2405_v7 }
  0xc7   : > { %1532 = vmatprep.subr.bf16.mxu0 %v2410_v8  ;;  %1655 = vmatprep.subr.bf16.mxu1 %v2413_v9 }
  0xca   : > { %1533 = vmatpush1.bf16.msra.mxu0 %v2408_v10  ;;  %1656 = vmatpush1.bf16.msra.mxu1 %v2411_v11 }
  0xcb   : > { %1534 = vmatprep.subr.bf16.mxu0 %v2416_v12  ;;  %1657 = vmatprep.subr.bf16.mxu1 %v2419_v13 }
  0xce   : > { %1535 = vmatpush1.bf16.msra.mxu0 %v2414_v14  ;;  %1658 = vmatpush1.bf16.msra.mxu1 %v2417_v15 }
  0xcf   : > { %1536 = vmatprep.subr.bf16.mxu0 %v2422_v16  ;;  %1659 = vmatprep.subr.bf16.mxu1 %v2425_v18 }
  0xd2   : > { %1537 = vmatpush1.bf16.msra.mxu0 %v2420_v21  ;;  %1660 = vmatpush1.bf16.msra.mxu1 %v2423_v22 }
  0xd3   : > { %1538 = vmatprep.subr.bf16.mxu0 %v2428_v23  ;;  %1661 = vmatprep.subr.bf16.mxu1 %v2431_v24 }
  0xd6   : > { %1539 = vmatpush1.bf16.msra.mxu0 %v2426_v25  ;;  %1662 = vmatpush1.bf16.msra.mxu1 %v2429_v26 }
  0xd9   : > { %1541 = vmatmul.mubr.bf16.vlgmr.msra.gmra.mrb[0].mxu0 %v2608_v20  ;;  %1664 = vmatmul.mubr.bf16.vlgmr.msra.gmra.mrb[0].mxu1 %v2608_v20 }
 0x1ac   : > { %v1542_v30 = vpop.f32.mrb[0].mxu0  ;;  %v1665_v17 = vpop.f32.mrb[0].mxu1 }
 0x1ad   : > { %v1544_v32 = vpop.f32.mrb[1].mxu0  ;;  %v1667_v33 = vpop.f32.mrb[1].mxu1 }
 0x1ae   : > { %v1676_v34 = vcombine.low %v1542_v30, %v1544_v32  ;;  %v1677_v35 = vcombine.low %v1665_v17, %v1667_v33  ;;  %v1546_v36 = vpop.f32.mrb[2].mxu0  ;;  %v1669_v37 = vpop.f32.mrb[2].mxu1 }
 0x1af   : > { %v1547_v38 = vpop.f32.mrb[3].mxu0  ;;  %v1670_v19 = vpop.f32.mrb[3].mxu1 }
 0x1b0   : > { %v1684_v39 = vrot.slane %v1676_v34, %v1683_v31  ;;  %v1691_v40 = vrot.slane %v1677_v35, %v1683_v31  ;;  %1699 = sbr.rel (%p2092_p7) target bundleno = 463 (0x1cf), region = 40 }
 0x1b2   : > { %v1692_v42 = vcombine.low %v1684_v39, %v1691_v40 }
 0x1b4   : > { %v1694_v20 = vadd.f32 %v1692_v42, %v218_v41 }
 0x1b6   : > { %1695 = vst [vmem:[#allocation2] sm:$0xff] %v1694_v20 }
 0x1bd   : > { %v1700_v58 = vld [vmem:[#allocation2] sm:$0xff] }
 0x1be   : > { %v1737_v60 = vadd.f32 %v1735_v59, %v1700_v58 }
 0x1c0   : > { %v1738_v61 = vmax.f32 %v1737_v60, 0.0 }
 0x1c2   : > { %v1740_v62 = vcombine.high %v1738_v61, %v1738_v61  ;;  %v1747_v63 = vrot.slane %v1738_v61, %v1683_v31 }
 0x1c4   : > { %v1754_v0 = vrot.slane %v1740_v62, %v1683_v31  ;;  %v1755_v1 = vcombine.high %v1747_v63, %v1747_v63 }
 0x1c6   : > { %v1756_v2 = vcombine.high %v1754_v0, %v1754_v0  ;;  %v2093_v3 = vpack.c.bf16 %v1755_v1, %v1747_v63 }
 0x1c8   : > { %v2094_v4 = vpack.c.bf16 %v1756_v2, %v1754_v0  ;;  %v1777_v44 = vrot.slane %v2093_v3, %v2567_v50 }
 0x1ca   : > { %v1784_v5 = vrot.slane %v2094_v4, %v2567_v50 }
 0x1cc   : > { %v1785_v6 = vcombine.low %v1777_v44, %v1784_v5 }
 0x1ce   : > { %2095 = vst.sshfl [vmem:[#allocation3] sm:$0x55 pattern:$0x73625140] %v1785_v6 }
 0x1cf PF: > { %p2096_p8 = scmp.ne.s32.totalorder %s1893_s0, 2 }
 0x1d1   : > { %1797 = sbr.rel (%p2096_p8) target bundleno = 472 (0x1d8), region = 44 }
 0x1d5   : > { %v1815_v7 = vld [vmem:[#allocation3] sm:$0xf] (!%p2096_p8) }
 0x1d6   : > { %2097 = vst [vmem:[%s2771_s4 + $0x10] sm:$0xf] (!%p2096_p8), %v1815_v7 }
 0x1d8 PF: > { %s15_s17 = sadd.s32 1, %s2455_s17   ;;  %s2772_s15 = smov %s2451_s16 }
 0x1d9   : > { %p12_p9 = scmp.ge.s32.totalorder %s15_s17, 5   ;;  %s2773_s16 = smov %s2775_s18 }
 0x1db   :  { %14 = sbr.rel (!%p12_p9) target bundleno = 2 (0x2), region = 105 }

// kernel: res_model_forward.39
= control target key start
LH: loop header
LB: loop body
LE: loop exit
PB: predicated region body
PF: predicated region fallthrough
CT: control target
= control target key end

     0   :  { %s2529_s15 = smov 0   ;;  %s2531_s16 = smov 0   ;;  %s2811_s0 = inlined_call_operand.vmem [shape: bf16[2,4608], index: 0, kind: input, shape index: {}]   ;;  %s2812_s1 = inlined_call_operand.vmem [shape: bf16[4608,512], index: 1, kind: input, shape index: {}]   ;;  %s2813_s2 = inlined_call_operand.vmem [shape: f32[1,512], index: 2, kind: input, shape index: {}]   ;;  %s2814_s3 = inlined_call_operand.vmem [shape: bf16[2,512], index: 3, kind: input, shape index: {}]   ;;  %s2815_s4 = inlined_call_operand.vmem [shape: bf16[2,512], index: 4, kind: output, shape index: {}]  }
   0x1   :  { %s2533_s17 = smov 0  }
   0x2 LB: > { %s23_s18 = sadd.s32 1, %s2495_s16  ;;  %p1941_p0 = scmp.ge.s32.totalorder %s2499_s17, 1  ;;  %s2499_s17 = sphi %s2533_s17, %s14_s17   ;;  %s2495_s16 = sphi %s2531_s16, %s2817_s16   ;;  %s2491_s15 = sphi %s2529_s15, %s2816_s15  }
   0x3   : > { %p24_p1 = scmp.ge.s32.totalorder %s23_s18, 6  ;;  %p201_p2 = scmp.lt.s32.totalorder %s2499_s17, 7 }
   0x5   : > { %s2819_s18 = smov (%p24_p1, %s23_s18), 0  ;;  %p202_p3 = pnand %p1941_p0, %p201_p2 }
   0x6   : > { %s239_s19 = smul.u32 (!%p202_p3), 6, %s2491_s15  ;;  %p1944_p6 = scmp.ne.s32.totalorder (!%p202_p3), %s2491_s15, 0 }
   0x7   : > { %205 = sbr.rel (%p202_p3) target bundleno = 464 (0x1d0), region = 36 }
   0x8   : > { %s248_s20 = smul.u32 (!%p202_p3), 96, %s2491_s15  ;;  %p242_p4 = scmp.lt.s32.totalorder (!%p202_p3), %s239_s19, 35 }
   0xa   : > { %p249_p5 = scmp.lt.s32.totalorder (!%p202_p3), %s248_s20, 575 }
   0xe   : > { %s2821_s19 = smov (!%p242_p4, %s239_s19), 35  ;;  %s2823_s20 = smov (!%p249_p5, %s248_s20), 575 }
   0xf   : > { %s246_s23 = scalar_lea.vmem %s2811_s0, %s2821_s19  ;;  %s2144_s24 = sshll.u32 %s2823_s20, 4  ;;  %v2501_v0 = vmov (!%p1944_p6), 0.0  }
  0x10   : > { %s2560_s27 = scalar_lea.vmem %s2812_s1, %s2144_s24  ;;  %266 = sbr.rel (%p1944_p6) target bundleno = 23 (0x17), region = 40  ;;  %267 = vst [vmem:[#allocation2] sm:$0xff] (!%p1944_p6), %v2501_v0 }
  0x17 PF: > { %v2188_v1 = vld [vmem:[%s2560_s27 + $0x4] ss:$16 sps:$4 sm:$0xff]   ;;  %v2190_v2 = vld [vmem:[%s2560_s27 + $0xc] ss:$16 sps:$4 sm:$0xff]   ;;  %v2192_v3 = vld [vmem:[%s2560_s27] ss:$16 sps:$4 sm:$0xff]   ;;  %v467_v39 = vlaneseq }
  0x18   : > { %1476 = vmatprep.subr.bf16.mxu0 %v2188_v1  ;;  %v2193_v4 = vld [vmem:[%s2560_s27 + $0x8] ss:$16 sps:$4 sm:$0xff]   ;;  %1599 = vmatprep.subr.bf16.mxu1 %v2190_v2  ;;  %v2194_v5 = vld [vmem:[%s2560_s27 + $0x24] ss:$16 sps:$4 sm:$0xff]   ;;  %v2196_v6 = vld [vmem:[%s2560_s27 + $0x2c] ss:$16 sps:$4 sm:$0xff]  }
  0x19   : > { %1477 = vmatpush1.bf16.msra.mxu0 %v2192_v3  ;;  %1600 = vmatpush1.bf16.msra.mxu1 %v2193_v4  ;;  %v2198_v7 = vld [vmem:[%s2560_s27 + $0x20] ss:$16 sps:$4 sm:$0xff]   ;;  %v2199_v8 = vld [vmem:[%s2560_s27 + $0x28] ss:$16 sps:$4 sm:$0xff]   ;;  %v2200_v9 = vld [vmem:[%s2560_s27 + $0x44] ss:$16 sps:$4 sm:$0xff]  }
  0x1a   : > { %1478 = vmatprep.subr.bf16.mxu0 %v2194_v5  ;;  %1601 = vmatprep.subr.bf16.mxu1 %v2196_v6  ;;  %v2202_v10 = vld [vmem:[%s2560_s27 + $0x4c] ss:$16 sps:$4 sm:$0xff]   ;;  %v2204_v11 = vld [vmem:[%s2560_s27 + $0x40] ss:$16 sps:$4 sm:$0xff]   ;;  %v2205_v12 = vld [vmem:[%s2560_s27 + $0x48] ss:$16 sps:$4 sm:$0xff]  }
  0x1b   : > { %v2206_v13 = vld [vmem:[%s2560_s27 + $0x64] ss:$16 sps:$4 sm:$0xff]   ;;  %v2208_v14 = vld [vmem:[%s2560_s27 + $0x6c] ss:$16 sps:$4 sm:$0xff]   ;;  %v2210_v15 = vld [vmem:[%s2560_s27 + $0x60] ss:$16 sps:$4 sm:$0xff]  }
  0x1c   : > { %v2211_v16 = vld [vmem:[%s2560_s27 + $0x68] ss:$16 sps:$4 sm:$0xff]   ;;  %v2212_v17 = vld [vmem:[%s2560_s27 + $0x84] ss:$16 sps:$4 sm:$0xff]   ;;  %v2214_v18 = vld [vmem:[%s2560_s27 + $0x8c] ss:$16 sps:$4 sm:$0xff]  }
  0x1d   : > { %1479 = vmatpush1.bf16.msra.mxu0 %v2198_v7  ;;  %1602 = vmatpush1.bf16.msra.mxu1 %v2199_v8  ;;  %v2216_v19 = vld [vmem:[%s2560_s27 + $0x80] ss:$16 sps:$4 sm:$0xff]   ;;  %v2217_v20 = vld [vmem:[%s2560_s27 + $0x88] ss:$16 sps:$4 sm:$0xff]   ;;  %v2218_v21 = vld [vmem:[%s2560_s27 + $0xa4] ss:$16 sps:$4 sm:$0xff]  }
  0x1e   : > { %1480 = vmatprep.subr.bf16.mxu0 %v2200_v9  ;;  %1603 = vmatprep.subr.bf16.mxu1 %v2202_v10  ;;  %v2220_v22 = vld [vmem:[%s2560_s27 + $0xac] ss:$16 sps:$4 sm:$0xff]   ;;  %v2222_v23 = vld [vmem:[%s2560_s27 + $0xa0] ss:$16 sps:$4 sm:$0xff]   ;;  %v2223_v24 = vld [vmem:[%s2560_s27 + $0xa8] ss:$16 sps:$4 sm:$0xff]  }
  0x1f   : > { %v2224_v25 = vld [vmem:[%s2560_s27 + $0xc4] ss:$16 sps:$4 sm:$0xff]   ;;  %v2226_v26 = vld [vmem:[%s2560_s27 + $0xcc] ss:$16 sps:$4 sm:$0xff]   ;;  %v2228_v27 = vld [vmem:[%s2560_s27 + $0xc0] ss:$16 sps:$4 sm:$0xff]  }
  0x20   : > { %v2229_v28 = vld [vmem:[%s2560_s27 + $0xc8] ss:$16 sps:$4 sm:$0xff]   ;;  %v2230_v29 = vld [vmem:[%s2560_s27 + $0xe4] ss:$16 sps:$4 sm:$0xff]   ;;  %v2232_v30 = vld [vmem:[%s2560_s27 + $0xec] ss:$16 sps:$4 sm:$0xff]  }
  0x21   : > { %1481 = vmatpush1.bf16.msra.mxu0 %v2204_v11  ;;  %1604 = vmatpush1.bf16.msra.mxu1 %v2205_v12  ;;  %v2234_v31 = vld [vmem:[%s2560_s27 + $0xe0] ss:$16 sps:$4 sm:$0xff]   ;;  %v2235_v32 = vld [vmem:[%s2560_s27 + $0xe8] ss:$16 sps:$4 sm:$0xff]   ;;  %v2236_v33 = vld [vmem:[%s2560_s27 + $0x104] ss:$16 sps:$4 sm:$0xff]  }
  0x22   : > { %1482 = vmatprep.subr.bf16.mxu0 %v2206_v13  ;;  %1605 = vmatprep.subr.bf16.mxu1 %v2208_v14  ;;  %v2238_v34 = vld [vmem:[%s2560_s27 + $0x10c] ss:$16 sps:$4 sm:$0xff]   ;;  %v2240_v35 = vld [vmem:[%s2560_s27 + $0x100] ss:$16 sps:$4 sm:$0xff]   ;;  %v2241_v36 = vld [vmem:[%s2560_s27 + $0x108] ss:$16 sps:$4 sm:$0xff]  }
  0x23   : > { %v2502_v37 = vmov 1966171168   ;;  %v2242_v40 = vld [vmem:[%s2560_s27 + $0x124] ss:$16 sps:$4 sm:$0xff]   ;;  %v2244_v41 = vld [vmem:[%s2560_s27 + $0x12c] ss:$16 sps:$4 sm:$0xff]  }
  0x24   : > { %v465_v38 = vunpack.c.l.s4 %v2502_v37  ;;  %v2246_v42 = vld [vmem:[%s2560_s27 + $0x120] ss:$16 sps:$4 sm:$0xff]   ;;  %v2602_v44 = vshrl.u32 %v467_v39, 7  ;;  %v2247_v45 = vld [vmem:[%s2560_s27 + $0x128] ss:$16 sps:$4 sm:$0xff]   ;;  %p2137_p7 = scmp.ne.s32.totalorder %s2491_s15, 5 }
  0x25   : > { %1483 = vmatpush1.bf16.msra.mxu0 %v2210_v15  ;;  %1606 = vmatpush1.bf16.msra.mxu1 %v2211_v16  ;;  %v2248_v46 = vld [vmem:[%s2560_s27 + $0x144] ss:$16 sps:$4 sm:$0xff]   ;;  %v2250_v47 = vld [vmem:[%s2560_s27 + $0x14c] ss:$16 sps:$4 sm:$0xff]   ;;  %v2252_v48 = vld [vmem:[%s2560_s27 + $0x140] ss:$16 sps:$4 sm:$0xff]  }
  0x26   : > { %1484 = vmatprep.subr.bf16.mxu0 %v2212_v17  ;;  %1607 = vmatprep.subr.bf16.mxu1 %v2214_v18  ;;  %v466_v43 = vunpack.c.0.s8 %v465_v38  ;;  %v2253_v49 = vld [vmem:[%s2560_s27 + $0x148] ss:$16 sps:$4 sm:$0xff]   ;;  %v2254_v51 = vld [vmem:[%s2560_s27 + $0x164] ss:$16 sps:$4 sm:$0xff]   ;;  %v2256_v52 = vld [vmem:[%s2560_s27 + $0x16c] ss:$16 sps:$4 sm:$0xff]  }
  0x27   : > { %v269_v53 = vld [vmem:[%s246_s23] sm:$0x3f]  ;;  %v2259_v56 = vld [vmem:[%s2560_s27 + $0x168] ss:$16 sps:$4 sm:$0xff]   ;;  %v2262_v58 = vld [vmem:[%s2560_s27 + $0x18c] ss:$16 sps:$4 sm:$0xff]  }
  0x28   : > { %v2610_v50 = vsub.s32 %v466_v43, %v2602_v44  ;;  %v2258_v54 = vld [vmem:[%s2560_s27 + $0x160] ss:$16 sps:$4 sm:$0xff]   ;;  %v2260_v57 = vld [vmem:[%s2560_s27 + $0x184] ss:$16 sps:$4 sm:$0xff]   ;;  %v2265_v62 = vld [vmem:[%s2560_s27 + $0x188] ss:$16 sps:$4 sm:$0xff]   ;;  %v463_v9 = vcombine.high %v269_v53, %v269_v53 }
  0x29   : > { %1485 = vmatpush1.bf16.msra.mxu0 %v2216_v19  ;;  %1608 = vmatpush1.bf16.msra.mxu1 %v2217_v20  ;;  %v2264_v60 = vld [vmem:[%s2560_s27 + $0x180] ss:$16 sps:$4 sm:$0xff]   ;;  %v2266_v63 = vld [vmem:[%s2560_s27 + $0x1a4] ss:$16 sps:$4 sm:$0xff]   ;;  %v2268_v0 = vld [vmem:[%s2560_s27 + $0x1ac] ss:$16 sps:$4 sm:$0xff]  }
  0x2a   : > { %1486 = vmatprep.subr.bf16.mxu0 %v2218_v21  ;;  %1609 = vmatprep.subr.bf16.mxu1 %v2220_v22  ;;  %v470_v55 = vrot.slane %v269_v53, %v2610_v50  ;;  %v2270_v1 = vld [vmem:[%s2560_s27 + $0x1a0] ss:$16 sps:$4 sm:$0xff]   ;;  %v2271_v2 = vld [vmem:[%s2560_s27 + $0x1a8] ss:$16 sps:$4 sm:$0xff]   ;;  %v2272_v3 = vld [vmem:[%s2560_s27 + $0x1c4] ss:$16 sps:$4 sm:$0xff]   ;;  %v477_v12 = vrot.slane %v463_v9, %v2610_v50 }
  0x2b   : > { %v2274_v4 = vld [vmem:[%s2560_s27 + $0x1cc] ss:$16 sps:$4 sm:$0xff]   ;;  %v2276_v5 = vld [vmem:[%s2560_s27 + $0x1c0] ss:$16 sps:$4 sm:$0xff]   ;;  %v2277_v6 = vld [vmem:[%s2560_s27 + $0x1c8] ss:$16 sps:$4 sm:$0xff]  }
  0x2c   : > { %v478_v59 = vcombine.high %v470_v55, %v470_v55  ;;  %v2278_v7 = vld [vmem:[%s2560_s27 + $0x1e4] ss:$16 sps:$4 sm:$0xff]   ;;  %v2280_v8 = vld [vmem:[%s2560_s27 + $0x1ec] ss:$16 sps:$4 sm:$0xff]   ;;  %v2282_v10 = vld [vmem:[%s2560_s27 + $0x1e0] ss:$16 sps:$4 sm:$0xff]   ;;  %v479_v15 = vcombine.high %v477_v12, %v477_v12  ;;  %v2644_v17 = vrot.slane %v470_v55, %v2610_v50  ;;  %v2651_v20 = vrot.slane %v477_v12, %v2610_v50 }
  0x2d   : > { %1487 = vmatpush1.bf16.msra.mxu0 %v2222_v23  ;;  %1610 = vmatpush1.bf16.msra.mxu1 %v2223_v24  ;;  %v2283_v11 = vld [vmem:[%s2560_s27 + $0x1e8] ss:$16 sps:$4 sm:$0xff]   ;;  %v2286_v13 = vld [vmem:[%s2560_s27 + $0x204] ss:$16 sps:$4 sm:$0xff]   ;;  %v2289_v14 = vld [vmem:[%s2560_s27 + $0x20c] ss:$16 sps:$4 sm:$0xff]  }
  0x2e   : > { %1488 = vmatprep.subr.bf16.mxu0 %v2224_v25  ;;  %1611 = vmatprep.subr.bf16.mxu1 %v2226_v26  ;;  %v500_v61 = vrot.slane %v478_v59, %v2610_v50  ;;  %v2284_v16 = vld [vmem:[%s2560_s27 + $0x200] ss:$16 sps:$4 sm:$0xff]   ;;  %v2287_v18 = vld [vmem:[%s2560_s27 + $0x208] ss:$16 sps:$4 sm:$0xff]   ;;  %v2648_v19 = vrot.slane %v479_v15, %v2610_v50  ;;  %v2292_v21 = vld [vmem:[%s2560_s27 + $0x224] ss:$16 sps:$4 sm:$0xff]  }
  0x2f   : > { %v2295_v22 = vld [vmem:[%s2560_s27 + $0x22c] ss:$16 sps:$4 sm:$0xff]   ;;  %v2290_v24 = vld [vmem:[%s2560_s27 + $0x220] ss:$16 sps:$4 sm:$0xff]   ;;  %v2293_v25 = vld [vmem:[%s2560_s27 + $0x228] ss:$16 sps:$4 sm:$0xff]  }
  0x30   : > { %1508 = vmatprep.mubr.bf16.mxu0 %v500_v61  ;;  %1631 = vmatprep.mubr.bf16.mxu1 %v500_v61  ;;  %v509_v23 = vcombine.high %v500_v61, %v500_v61  ;;  %v2298_v26 = vld [vmem:[%s2560_s27 + $0x244] ss:$16 sps:$4 sm:$0xff]   ;;  %v2311_v37 = vld [vmem:[%s2560_s27 + $0x288] ss:$16 sps:$4 sm:$0xff]   ;;  %v2319_v39 = vld [vmem:[%s2560_s27 + $0x2ac] ss:$16 sps:$4 sm:$0xff]  }
  0x31   : > { %1489 = vmatpush1.bf16.msra.mxu0 %v2228_v27  ;;  %1612 = vmatpush1.bf16.msra.mxu1 %v2229_v28  ;;  %v2301_v27 = vld [vmem:[%s2560_s27 + $0x24c] ss:$16 sps:$4 sm:$0xff]   ;;  %v2296_v28 = vld [vmem:[%s2560_s27 + $0x240] ss:$16 sps:$4 sm:$0xff]   ;;  %v2316_v38 = vld [vmem:[%s2560_s27 + $0x2a4] ss:$16 sps:$4 sm:$0xff]  }
  0x32   : > { %1490 = vmatprep.subr.bf16.mxu0 %v2230_v29  ;;  %1613 = vmatprep.subr.bf16.mxu1 %v2232_v30  ;;  %v2299_v29 = vld [vmem:[%s2560_s27 + $0x248] ss:$16 sps:$4 sm:$0xff]   ;;  %v2304_v30 = vld [vmem:[%s2560_s27 + $0x264] ss:$16 sps:$4 sm:$0xff]   ;;  %v2325_v43 = vld [vmem:[%s2560_s27 + $0x2cc] ss:$16 sps:$4 sm:$0xff]  }
  0x33   : > { %v2337_v53 = vld [vmem:[%s2560_s27 + $0x30c] ss:$16 sps:$4 sm:$0xff]   ;;  %v2335_v55 = vld [vmem:[%s2560_s27 + $0x308] ss:$16 sps:$4 sm:$0xff]   ;;  %v2370_v12 = vld [vmem:[%s2560_s27 + $0x3c4] ss:$16 sps:$4 sm:$0xff]  }
  0x34   : > { %v2341_v59 = vld [vmem:[%s2560_s27 + $0x328] ss:$16 sps:$4 sm:$0xff]   ;;  %v2349_v61 = vld [vmem:[%s2560_s27 + $0x34c] ss:$16 sps:$4 sm:$0xff]  }
  0x35   : > { %1491 = vmatpush1.bf16.msra.mxu0 %v2234_v31  ;;  %1614 = vmatpush1.bf16.msra.mxu1 %v2235_v32  ;;  %v2307_v31 = vld [vmem:[%s2560_s27 + $0x26c] ss:$16 sps:$4 sm:$0xff]   ;;  %v2302_v32 = vld [vmem:[%s2560_s27 + $0x260] ss:$16 sps:$4 sm:$0xff]   ;;  %v2371_v15 = vld [vmem:[%s2560_s27 + $0x3c8] ss:$16 sps:$4 sm:$0xff]  }
  0x36   : > { %1492 = vmatprep.subr.bf16.mxu0 %v2236_v33  ;;  %1615 = vmatprep.subr.bf16.mxu1 %v2238_v34  ;;  %v2305_v33 = vld [vmem:[%s2560_s27 + $0x268] ss:$16 sps:$4 sm:$0xff]   ;;  %v2310_v34 = vld [vmem:[%s2560_s27 + $0x284] ss:$16 sps:$4 sm:$0xff]   ;;  %v2367_v9 = vld [vmem:[%s2560_s27 + $0x3ac] ss:$16 sps:$4 sm:$0xff]  }
  0x39   : > { %1493 = vmatpush1.bf16.msra.mxu0 %v2240_v35  ;;  %1616 = vmatpush1.bf16.msra.mxu1 %v2241_v36  ;;  %v2313_v35 = vld [vmem:[%s2560_s27 + $0x28c] ss:$16 sps:$4 sm:$0xff]   ;;  %v2308_v36 = vld [vmem:[%s2560_s27 + $0x280] ss:$16 sps:$4 sm:$0xff]  }
  0x3a   : > { %1494 = vmatprep.subr.bf16.mxu0 %v2242_v40  ;;  %1617 = vmatprep.subr.bf16.mxu1 %v2244_v41  ;;  %v2314_v40 = vld [vmem:[%s2560_s27 + $0x2a0] ss:$16 sps:$4 sm:$0xff]   ;;  %v2317_v41 = vld [vmem:[%s2560_s27 + $0x2a8] ss:$16 sps:$4 sm:$0xff]  }
  0x3d   : > { %1495 = vmatpush1.bf16.msra.mxu0 %v2246_v42  ;;  %1618 = vmatpush1.bf16.msra.mxu1 %v2247_v45  ;;  %v2322_v42 = vld [vmem:[%s2560_s27 + $0x2c4] ss:$16 sps:$4 sm:$0xff]   ;;  %v2320_v45 = vld [vmem:[%s2560_s27 + $0x2c0] ss:$16 sps:$4 sm:$0xff]  }
  0x3e   : > { %1496 = vmatprep.subr.bf16.mxu0 %v2248_v46  ;;  %1619 = vmatprep.subr.bf16.mxu1 %v2250_v47  ;;  %v2323_v46 = vld [vmem:[%s2560_s27 + $0x2c8] ss:$16 sps:$4 sm:$0xff]   ;;  %v2328_v47 = vld [vmem:[%s2560_s27 + $0x2e4] ss:$16 sps:$4 sm:$0xff]  }
  0x41   : > { %1497 = vmatpush1.bf16.msra.mxu0 %v2252_v48  ;;  %1620 = vmatpush1.bf16.msra.mxu1 %v2253_v49  ;;  %v2331_v48 = vld [vmem:[%s2560_s27 + $0x2ec] ss:$16 sps:$4 sm:$0xff]   ;;  %v2326_v49 = vld [vmem:[%s2560_s27 + $0x2e0] ss:$16 sps:$4 sm:$0xff]  }
  0x42   : > { %1498 = vmatprep.subr.bf16.mxu0 %v2254_v51  ;;  %1621 = vmatprep.subr.bf16.mxu1 %v2256_v52  ;;  %v2329_v51 = vld [vmem:[%s2560_s27 + $0x2e8] ss:$16 sps:$4 sm:$0xff]   ;;  %v2334_v52 = vld [vmem:[%s2560_s27 + $0x304] ss:$16 sps:$4 sm:$0xff]  }
  0x45   : > { %1499 = vmatpush1.bf16.msra.mxu0 %v2258_v54  ;;  %1622 = vmatpush1.bf16.msra.mxu1 %v2259_v56  ;;  %v2332_v54 = vld [vmem:[%s2560_s27 + $0x300] ss:$16 sps:$4 sm:$0xff]   ;;  %v2340_v56 = vld [vmem:[%s2560_s27 + $0x324] ss:$16 sps:$4 sm:$0xff]  }
  0x46   : > { %1500 = vmatprep.subr.bf16.mxu0 %v2260_v57  ;;  %1623 = vmatprep.subr.bf16.mxu1 %v2262_v58  ;;  %v2343_v57 = vld [vmem:[%s2560_s27 + $0x32c] ss:$16 sps:$4 sm:$0xff]   ;;  %v2338_v58 = vld [vmem:[%s2560_s27 + $0x320] ss:$16 sps:$4 sm:$0xff]  }
  0x49   : > { %1501 = vmatpush1.bf16.msra.mxu0 %v2264_v60  ;;  %1624 = vmatpush1.bf16.msra.mxu1 %v2265_v62  ;;  %v2346_v60 = vld [vmem:[%s2560_s27 + $0x344] ss:$16 sps:$4 sm:$0xff]   ;;  %v2344_v62 = vld [vmem:[%s2560_s27 + $0x340] ss:$16 sps:$4 sm:$0xff]  }
  0x4a   : > { %1502 = vmatprep.subr.bf16.mxu0 %v2266_v63  ;;  %1625 = vmatprep.subr.bf16.mxu1 %v2268_v0  ;;  %v2347_v63 = vld [vmem:[%s2560_s27 + $0x348] ss:$16 sps:$4 sm:$0xff]   ;;  %v2352_v0 = vld [vmem:[%s2560_s27 + $0x364] ss:$16 sps:$4 sm:$0xff]  }
  0x4d   : > { %1503 = vmatpush1.bf16.msra.mxu0 %v2270_v1  ;;  %1626 = vmatpush1.bf16.msra.mxu1 %v2271_v2  ;;  %v2355_v1 = vld [vmem:[%s2560_s27 + $0x36c] ss:$16 sps:$4 sm:$0xff]   ;;  %v2350_v2 = vld [vmem:[%s2560_s27 + $0x360] ss:$16 sps:$4 sm:$0xff]  }
  0x4e   : > { %1504 = vmatprep.subr.bf16.mxu0 %v2272_v3  ;;  %1627 = vmatprep.subr.bf16.mxu1 %v2274_v4  ;;  %v2353_v3 = vld [vmem:[%s2560_s27 + $0x368] ss:$16 sps:$4 sm:$0xff]   ;;  %v2358_v4 = vld [vmem:[%s2560_s27 + $0x384] ss:$16 sps:$4 sm:$0xff]  }
  0x51   : > { %1505 = vmatpush1.bf16.msra.mxu0 %v2276_v5  ;;  %1628 = vmatpush1.bf16.msra.mxu1 %v2277_v6  ;;  %v2361_v5 = vld [vmem:[%s2560_s27 + $0x38c] ss:$16 sps:$4 sm:$0xff]   ;;  %v2356_v6 = vld [vmem:[%s2560_s27 + $0x380] ss:$16 sps:$4 sm:$0xff]  }
  0x52   : > { %1506 = vmatprep.subr.bf16.mxu0 %v2278_v7  ;;  %1629 = vmatprep.subr.bf16.mxu1 %v2280_v8  ;;  %v2359_v7 = vld [vmem:[%s2560_s27 + $0x388] ss:$16 sps:$4 sm:$0xff]   ;;  %v2364_v8 = vld [vmem:[%s2560_s27 + $0x3a4] ss:$16 sps:$4 sm:$0xff]  }
  0x55   : > { %1507 = vmatpush1.bf16.msra.mxu0 %v2282_v10  ;;  %1630 = vmatpush1.bf16.msra.mxu1 %v2283_v11  ;;  %v2362_v10 = vld [vmem:[%s2560_s27 + $0x3a0] ss:$16 sps:$4 sm:$0xff]   ;;  %v2365_v11 = vld [vmem:[%s2560_s27 + $0x3a8] ss:$16 sps:$4 sm:$0xff]  }
  0x56   : > { %1517 = vmatprep.subr.bf16.mxu0 %v2286_v13  ;;  %1640 = vmatprep.subr.bf16.mxu1 %v2289_v14  ;;  %v2373_v13 = vld [vmem:[%s2560_s27 + $0x3cc] ss:$16 sps:$4 sm:$0xff]   ;;  %v2368_v14 = vld [vmem:[%s2560_s27 + $0x3c0] ss:$16 sps:$4 sm:$0xff]  }
  0x58   : > { %1509 = vmatmul.mubr.bf16.vlgmr.msra.gmra.mrb[0].mxu0 %v2644_v17  ;;  %1632 = vmatmul.mubr.bf16.vlgmr.msra.gmra.mrb[0].mxu1 %v2644_v17 }
  0x59   : > { %1518 = vmatpush1.bf16.msra.mxu0 %v2284_v16  ;;  %1641 = vmatpush1.bf16.msra.mxu1 %v2287_v18  ;;  %v2376_v16 = vld [vmem:[%s2560_s27 + $0x3e4] ss:$16 sps:$4 sm:$0xff]   ;;  %v2379_v18 = vld [vmem:[%s2560_s27 + $0x3ec] ss:$16 sps:$4 sm:$0xff]  }
  0x5a   : > { %1519 = vmatprep.subr.bf16.mxu0 %v2292_v21  ;;  %1642 = vmatprep.subr.bf16.mxu1 %v2295_v22  ;;  %v2374_v21 = vld [vmem:[%s2560_s27 + $0x3e0] ss:$16 sps:$4 sm:$0xff]   ;;  %v2377_v22 = vld [vmem:[%s2560_s27 + $0x3e8] ss:$16 sps:$4 sm:$0xff]  }
  0x5b   : > { %1549 = vmatprep.mubr.bf16.mxu0 %v509_v23  ;;  %1672 = vmatprep.mubr.bf16.mxu1 %v509_v23  ;;  %v2382_v23 = vld [vmem:[%s2560_s27 + $0x404] ss:$16 sps:$4 sm:$0xff]  }
  0x5d   : > { %1520 = vmatpush1.bf16.msra.mxu0 %v2290_v24  ;;  %1643 = vmatpush1.bf16.msra.mxu1 %v2293_v25  ;;  %v2385_v24 = vld [vmem:[%s2560_s27 + $0x40c] ss:$16 sps:$4 sm:$0xff]   ;;  %v508_v25 = vcombine.high %v2644_v17, %v2644_v17  ;;  %v2389_v17 = vld [vmem:[%s2560_s27 + $0x428] ss:$16 sps:$4 sm:$0xff]  }
  0x5e   : > { %1521 = vmatprep.subr.bf16.mxu0 %v2298_v26  ;;  %1644 = vmatprep.subr.bf16.mxu1 %v2301_v27  ;;  %v2380_v26 = vld [vmem:[%s2560_s27 + $0x400] ss:$16 sps:$4 sm:$0xff]   ;;  %v2383_v27 = vld [vmem:[%s2560_s27 + $0x408] ss:$16 sps:$4 sm:$0xff]  }
  0x61   : > { %1522 = vmatpush1.bf16.msra.mxu0 %v2296_v28  ;;  %1645 = vmatpush1.bf16.msra.mxu1 %v2299_v29  ;;  %v2388_v28 = vld [vmem:[%s2560_s27 + $0x424] ss:$16 sps:$4 sm:$0xff]   ;;  %v2391_v29 = vld [vmem:[%s2560_s27 + $0x42c] ss:$16 sps:$4 sm:$0xff]  }
  0x62   : > { %1523 = vmatprep.subr.bf16.mxu0 %v2304_v30  ;;  %1646 = vmatprep.subr.bf16.mxu1 %v2307_v31  ;;  %v2386_v30 = vld [vmem:[%s2560_s27 + $0x420] ss:$16 sps:$4 sm:$0xff]   ;;  %v2394_v31 = vld [vmem:[%s2560_s27 + $0x444] ss:$16 sps:$4 sm:$0xff]  }
  0x65   : > { %1524 = vmatpush1.bf16.msra.mxu0 %v2302_v32  ;;  %1647 = vmatpush1.bf16.msra.mxu1 %v2305_v33  ;;  %v2397_v32 = vld [vmem:[%s2560_s27 + $0x44c] ss:$16 sps:$4 sm:$0xff]   ;;  %v2392_v33 = vld [vmem:[%s2560_s27 + $0x440] ss:$16 sps:$4 sm:$0xff]  }
  0x66   : > { %1525 = vmatprep.subr.bf16.mxu0 %v2310_v34  ;;  %1648 = vmatprep.subr.bf16.mxu1 %v2313_v35  ;;  %v2395_v34 = vld [vmem:[%s2560_s27 + $0x448] ss:$16 sps:$4 sm:$0xff]   ;;  %v2400_v35 = vld [vmem:[%s2560_s27 + $0x464] ss:$16 sps:$4 sm:$0xff]  }
  0x69   : > { %1526 = vmatpush1.bf16.msra.mxu0 %v2308_v36  ;;  %1649 = vmatpush1.bf16.msra.mxu1 %v2311_v37  ;;  %v2403_v36 = vld [vmem:[%s2560_s27 + $0x46c] ss:$16 sps:$4 sm:$0xff]   ;;  %v2398_v37 = vld [vmem:[%s2560_s27 + $0x460] ss:$16 sps:$4 sm:$0xff]  }
  0x6a   : > { %1527 = vmatprep.subr.bf16.mxu0 %v2316_v38  ;;  %1650 = vmatprep.subr.bf16.mxu1 %v2319_v39  ;;  %v2401_v38 = vld [vmem:[%s2560_s27 + $0x468] ss:$16 sps:$4 sm:$0xff]   ;;  %v2409_v39 = vld [vmem:[%s2560_s27 + $0x48c] ss:$16 sps:$4 sm:$0xff]  }
  0x6d   : > { %1528 = vmatpush1.bf16.msra.mxu0 %v2314_v40  ;;  %1651 = vmatpush1.bf16.msra.mxu1 %v2317_v41  ;;  %v2404_v40 = vld [vmem:[%s2560_s27 + $0x480] ss:$16 sps:$4 sm:$0xff]   ;;  %v2407_v41 = vld [vmem:[%s2560_s27 + $0x488] ss:$16 sps:$4 sm:$0xff]  }
  0x6e   : > { %1529 = vmatprep.subr.bf16.mxu0 %v2322_v42  ;;  %1652 = vmatprep.subr.bf16.mxu1 %v2325_v43  ;;  %v2412_v42 = vld [vmem:[%s2560_s27 + $0x4a4] ss:$16 sps:$4 sm:$0xff]   ;;  %v2415_v43 = vld [vmem:[%s2560_s27 + $0x4ac] ss:$16 sps:$4 sm:$0xff]  }
  0x71   : > { %1530 = vmatpush1.bf16.msra.mxu0 %v2320_v45  ;;  %1653 = vmatpush1.bf16.msra.mxu1 %v2323_v46  ;;  %v2410_v45 = vld [vmem:[%s2560_s27 + $0x4a0] ss:$16 sps:$4 sm:$0xff]   ;;  %v2413_v46 = vld [vmem:[%s2560_s27 + $0x4a8] ss:$16 sps:$4 sm:$0xff]  }
  0x72   : > { %1531 = vmatprep.subr.bf16.mxu0 %v2328_v47  ;;  %1654 = vmatprep.subr.bf16.mxu1 %v2331_v48  ;;  %v2418_v47 = vld [vmem:[%s2560_s27 + $0x4c4] ss:$16 sps:$4 sm:$0xff]   ;;  %v2421_v48 = vld [vmem:[%s2560_s27 + $0x4cc] ss:$16 sps:$4 sm:$0xff]  }
  0x75   : > { %1532 = vmatpush1.bf16.msra.mxu0 %v2326_v49  ;;  %1655 = vmatpush1.bf16.msra.mxu1 %v2329_v51  ;;  %v2416_v49 = vld [vmem:[%s2560_s27 + $0x4c0] ss:$16 sps:$4 sm:$0xff]   ;;  %v2419_v51 = vld [vmem:[%s2560_s27 + $0x4c8] ss:$16 sps:$4 sm:$0xff]  }
  0x76   : > { %1533 = vmatprep.subr.bf16.mxu0 %v2334_v52  ;;  %1656 = vmatprep.subr.bf16.mxu1 %v2337_v53  ;;  %v2424_v52 = vld [vmem:[%s2560_s27 + $0x4e4] ss:$16 sps:$4 sm:$0xff]   ;;  %v2427_v53 = vld [vmem:[%s2560_s27 + $0x4ec] ss:$16 sps:$4 sm:$0xff]  }
  0x79   : > { %1534 = vmatpush1.bf16.msra.mxu0 %v2332_v54  ;;  %1657 = vmatpush1.bf16.msra.mxu1 %v2335_v55  ;;  %v2422_v54 = vld [vmem:[%s2560_s27 + $0x4e0] ss:$16 sps:$4 sm:$0xff]   ;;  %v2425_v55 = vld [vmem:[%s2560_s27 + $0x4e8] ss:$16 sps:$4 sm:$0xff]  }
  0x7a   : > { %1535 = vmatprep.subr.bf16.mxu0 %v2340_v56  ;;  %1658 = vmatprep.subr.bf16.mxu1 %v2343_v57  ;;  %v2430_v56 = vld [vmem:[%s2560_s27 + $0x504] ss:$16 sps:$4 sm:$0xff]   ;;  %v2433_v57 = vld [vmem:[%s2560_s27 + $0x50c] ss:$16 sps:$4 sm:$0xff]  }
  0x7d   : > { %1536 = vmatpush1.bf16.msra.mxu0 %v2338_v58  ;;  %1659 = vmatpush1.bf16.msra.mxu1 %v2341_v59  ;;  %v2428_v58 = vld [vmem:[%s2560_s27 + $0x500] ss:$16 sps:$4 sm:$0xff]   ;;  %v2431_v59 = vld [vmem:[%s2560_s27 + $0x508] ss:$16 sps:$4 sm:$0xff]  }
  0x7e   : > { %1537 = vmatprep.subr.bf16.mxu0 %v2346_v60  ;;  %1660 = vmatprep.subr.bf16.mxu1 %v2349_v61  ;;  %v2436_v60 = vld [vmem:[%s2560_s27 + $0x524] ss:$16 sps:$4 sm:$0xff]   ;;  %v2439_v61 = vld [vmem:[%s2560_s27 + $0x52c] ss:$16 sps:$4 sm:$0xff]  }
  0x81   : > { %1538 = vmatpush1.bf16.msra.mxu0 %v2344_v62  ;;  %1661 = vmatpush1.bf16.msra.mxu1 %v2347_v63  ;;  %v2434_v62 = vld [vmem:[%s2560_s27 + $0x520] ss:$16 sps:$4 sm:$0xff]   ;;  %v2437_v63 = vld [vmem:[%s2560_s27 + $0x528] ss:$16 sps:$4 sm:$0xff]  }
  0x82   : > { %1539 = vmatprep.subr.bf16.mxu0 %v2352_v0  ;;  %1662 = vmatprep.subr.bf16.mxu1 %v2355_v1  ;;  %v2442_v0 = vld [vmem:[%s2560_s27 + $0x544] ss:$16 sps:$4 sm:$0xff]   ;;  %v2445_v1 = vld [vmem:[%s2560_s27 + $0x54c] ss:$16 sps:$4 sm:$0xff]  }
  0x85   : > { %1540 = vmatpush1.bf16.msra.mxu0 %v2350_v2  ;;  %1663 = vmatpush1.bf16.msra.mxu1 %v2353_v3  ;;  %v2440_v2 = vld [vmem:[%s2560_s27 + $0x540] ss:$16 sps:$4 sm:$0xff]   ;;  %v2443_v3 = vld [vmem:[%s2560_s27 + $0x548] ss:$16 sps:$4 sm:$0xff]  }
  0x86   : > { %1541 = vmatprep.subr.bf16.mxu0 %v2358_v4  ;;  %1664 = vmatprep.subr.bf16.mxu1 %v2361_v5  ;;  %v2448_v4 = vld [vmem:[%s2560_s27 + $0x564] ss:$16 sps:$4 sm:$0xff]   ;;  %v2451_v5 = vld [vmem:[%s2560_s27 + $0x56c] ss:$16 sps:$4 sm:$0xff]  }
  0x89   : > { %1542 = vmatpush1.bf16.msra.mxu0 %v2356_v6  ;;  %1665 = vmatpush1.bf16.msra.mxu1 %v2359_v7  ;;  %v2446_v6 = vld [vmem:[%s2560_s27 + $0x560] ss:$16 sps:$4 sm:$0xff]   ;;  %v2449_v7 = vld [vmem:[%s2560_s27 + $0x568] ss:$16 sps:$4 sm:$0xff]  }
  0x8a   : > { %1543 = vmatprep.subr.bf16.mxu0 %v2364_v8  ;;  %1666 = vmatprep.subr.bf16.mxu1 %v2367_v9  ;;  %v2454_v8 = vld [vmem:[%s2560_s27 + $0x584] ss:$16 sps:$4 sm:$0xff]   ;;  %v2457_v9 = vld [vmem:[%s2560_s27 + $0x58c] ss:$16 sps:$4 sm:$0xff]  }
  0x8d   : > { %1544 = vmatpush1.bf16.msra.mxu0 %v2362_v10  ;;  %1667 = vmatpush1.bf16.msra.mxu1 %v2365_v11  ;;  %v2452_v10 = vld [vmem:[%s2560_s27 + $0x580] ss:$16 sps:$4 sm:$0xff]   ;;  %v2455_v11 = vld [vmem:[%s2560_s27 + $0x588] ss:$16 sps:$4 sm:$0xff]  }
  0x8e   : > { %1545 = vmatprep.subr.bf16.mxu0 %v2370_v12  ;;  %1668 = vmatprep.subr.bf16.mxu1 %v2373_v13  ;;  %v2460_v12 = vld [vmem:[%s2560_s27 + $0x5a4] ss:$16 sps:$4 sm:$0xff]   ;;  %v2463_v13 = vld [vmem:[%s2560_s27 + $0x5ac] ss:$16 sps:$4 sm:$0xff]  }
  0x91   : > { %1546 = vmatpush1.bf16.msra.mxu0 %v2368_v14  ;;  %1669 = vmatpush1.bf16.msra.mxu1 %v2371_v15  ;;  %v2458_v14 = vld [vmem:[%s2560_s27 + $0x5a0] ss:$16 sps:$4 sm:$0xff]   ;;  %v2461_v15 = vld [vmem:[%s2560_s27 + $0x5a8] ss:$16 sps:$4 sm:$0xff]  }
  0x92   : > { %1547 = vmatprep.subr.bf16.mxu0 %v2376_v16  ;;  %1670 = vmatprep.subr.bf16.mxu1 %v2379_v18  ;;  %v2466_v16 = vld [vmem:[%s2560_s27 + $0x5c4] ss:$16 sps:$4 sm:$0xff]   ;;  %v2469_v18 = vld [vmem:[%s2560_s27 + $0x5cc] ss:$16 sps:$4 sm:$0xff]  }
  0x95   : > { %1548 = vmatpush1.bf16.msra.mxu0 %v2374_v21  ;;  %1671 = vmatpush1.bf16.msra.mxu1 %v2377_v22  ;;  %v2464_v21 = vld [vmem:[%s2560_s27 + $0x5c0] ss:$16 sps:$4 sm:$0xff]   ;;  %v2467_v22 = vld [vmem:[%s2560_s27 + $0x5c8] ss:$16 sps:$4 sm:$0xff]  }
  0x96   : > { %1558 = vmatprep.subr.bf16.mxu0 %v2382_v23  ;;  %1681 = vmatprep.subr.bf16.mxu1 %v2385_v24  ;;  %v2472_v23 = vld [vmem:[%s2560_s27 + $0x5e4] ss:$16 sps:$4 sm:$0xff]   ;;  %v2475_v24 = vld [vmem:[%s2560_s27 + $0x5ec] ss:$16 sps:$4 sm:$0xff]  }
  0x98   : > { %1550 = vmatmul.mubr.bf16.vlgmr.msra.gmra.mrb[0].mxu0 %v508_v25  ;;  %1673 = vmatmul.mubr.bf16.vlgmr.msra.gmra.mrb[0].mxu1 %v508_v25  ;;  %v2470_v25 = vld [vmem:[%s2560_s27 + $0x5e0] ss:$16 sps:$4 sm:$0xff]  }
  0x99   : > { %1559 = vmatpush1.bf16.msra.mxu0 %v2380_v26  ;;  %1682 = vmatpush1.bf16.msra.mxu1 %v2383_v27  ;;  %v2473_v26 = vld [vmem:[%s2560_s27 + $0x5e8] ss:$16 sps:$4 sm:$0xff]   ;;  %v2503_v27 = vmov 1983009808  }
  0x9a   : > { %1560 = vmatprep.subr.bf16.mxu0 %v2388_v28  ;;  %1683 = vmatprep.subr.bf16.mxu1 %v2391_v29  ;;  %v1729_v28 = vunpack.c.l.s4 %v2503_v27 }
  0x9b   : > { %1590 = vmatprep.mubr.bf16.mxu0 %v2648_v19  ;;  %1713 = vmatprep.mubr.bf16.mxu1 %v2648_v19  ;;  %v2406_v19 = vld [vmem:[%s2560_s27 + $0x484] ss:$16 sps:$4 sm:$0xff]  }
  0x9c   : > { %v1730_v29 = vunpack.c.0.s8 %v1729_v28 }
  0x9d   : > { %1561 = vmatpush1.bf16.msra.mxu0 %v2386_v30  ;;  %1684 = vmatpush1.bf16.msra.mxu1 %v2389_v17 }
  0x9e   : > { %1562 = vmatprep.subr.bf16.mxu0 %v2394_v31  ;;  %1685 = vmatprep.subr.bf16.mxu1 %v2397_v32  ;;  %v1733_v31 = vsub.s32 %v1730_v29, %v2602_v44 }
  0xa1   : > { %1563 = vmatpush1.bf16.msra.mxu0 %v2392_v33  ;;  %1686 = vmatpush1.bf16.msra.mxu1 %v2395_v34 }
  0xa2   : > { %1564 = vmatprep.subr.bf16.mxu0 %v2400_v35  ;;  %1687 = vmatprep.subr.bf16.mxu1 %v2403_v36 }
  0xa5   : > { %1565 = vmatpush1.bf16.msra.mxu0 %v2398_v37  ;;  %1688 = vmatpush1.bf16.msra.mxu1 %v2401_v38 }
  0xa6   : > { %1566 = vmatprep.subr.bf16.mxu0 %v2406_v19  ;;  %1689 = vmatprep.subr.bf16.mxu1 %v2409_v39 }
  0xa9   : > { %1567 = vmatpush1.bf16.msra.mxu0 %v2404_v40  ;;  %1690 = vmatpush1.bf16.msra.mxu1 %v2407_v41  ;;  %v268_v41 = vld [vmem:[#allocation2] sm:$0xff] }
  0xaa   : > { %1568 = vmatprep.subr.bf16.mxu0 %v2412_v42  ;;  %1691 = vmatprep.subr.bf16.mxu1 %v2415_v43  ;;  %v1751_v43 = vld [vmem:[%s2813_s2] sm:$0xf] (!%p2137_p7) }
  0xad   : > { %1569 = vmatpush1.bf16.msra.mxu0 %v2410_v45  ;;  %1692 = vmatpush1.bf16.msra.mxu1 %v2413_v46  ;;  %v1755_v45 = vsub.s32 (!%p2137_p7), 0, %v2602_v44  ;;  %v1759_v46 = vsub.s32 (!%p2137_p7), 1, %v2602_v44 }
  0xae   : > { %1570 = vmatprep.subr.bf16.mxu0 %v2418_v47  ;;  %1693 = vmatprep.subr.bf16.mxu1 %v2421_v48  ;;  %v1763_v47 = vsub.s32 (!%p2137_p7), 2, %v2602_v44  ;;  %v1767_v48 = vsub.s32 (!%p2137_p7), 3, %v2602_v44 }
  0xb1   : > { %1571 = vmatpush1.bf16.msra.mxu0 %v2416_v49  ;;  %1694 = vmatpush1.bf16.msra.mxu1 %v2419_v51  ;;  %v1756_v49 = vrot.slane (!%p2137_p7), %v1751_v43, %v1755_v45  ;;  %v1760_v51 = vrot.slane (!%p2137_p7), %v1751_v43, %v1759_v46 }
  0xb2   : > { %1572 = vmatprep.subr.bf16.mxu0 %v2424_v52  ;;  %1695 = vmatprep.subr.bf16.mxu1 %v2427_v53  ;;  %v1764_v52 = vrot.slane (!%p2137_p7), %v1751_v43, %v1763_v47  ;;  %v1768_v53 = vrot.slane (!%p2137_p7), %v1751_v43, %v1767_v48 }
  0xb5   : > { %1573 = vmatpush1.bf16.msra.mxu0 %v2422_v54  ;;  %1696 = vmatpush1.bf16.msra.mxu1 %v2425_v55  ;;  %v1769_v54 = vcombine.low (!%p2137_p7), %v1756_v49, %v1760_v51  ;;  %v1770_v55 = vcombine.low (!%p2137_p7), %v1764_v52, %v1768_v53 }
  0xb6   : > { %1574 = vmatprep.subr.bf16.mxu0 %v2430_v56  ;;  %1697 = vmatprep.subr.bf16.mxu1 %v2433_v57  ;;  %v1788_v57 = vld [vmem:[%s2814_s3] sm:$0xf] (!%p2137_p7) }
  0xb7   : > { %v1777_v56 = vrot.slane (!%p2137_p7), %v1769_v54, %v1733_v31 }
  0xb9   : > { %1575 = vmatpush1.bf16.msra.mxu0 %v2428_v58  ;;  %1698 = vmatpush1.bf16.msra.mxu1 %v2431_v59  ;;  %v1784_v58 = vrot.slane (!%p2137_p7), %v1770_v55, %v1733_v31 }
  0xba   : > { %1576 = vmatprep.subr.bf16.mxu0 %v2436_v60  ;;  %1699 = vmatprep.subr.bf16.mxu1 %v2439_v61  ;;  %v1789_v61 = vunpack.c.l.bf16 (!%p2137_p7), %v1788_v57 }
  0xbb   : > { %v1785_v60 = vcombine.low (!%p2137_p7), %v1777_v56, %v1784_v58 }
  0xbd   : > { %1577 = vmatpush1.bf16.msra.mxu0 %v2434_v62  ;;  %1700 = vmatpush1.bf16.msra.mxu1 %v2437_v63 }
  0xbe   : > { %1578 = vmatprep.subr.bf16.mxu0 %v2442_v0  ;;  %1701 = vmatprep.subr.bf16.mxu1 %v2445_v1 }
  0xc1   : > { %1579 = vmatpush1.bf16.msra.mxu0 %v2440_v2  ;;  %1702 = vmatpush1.bf16.msra.mxu1 %v2443_v3 }
  0xc2   : > { %1580 = vmatprep.subr.bf16.mxu0 %v2448_v4  ;;  %1703 = vmatprep.subr.bf16.mxu1 %v2451_v5 }
  0xc5   : > { %1581 = vmatpush1.bf16.msra.mxu0 %v2446_v6  ;;  %1704 = vmatpush1.bf16.msra.mxu1 %v2449_v7 }
  0xc6   : > { %1582 = vmatprep.subr.bf16.mxu0 %v2454_v8  ;;  %1705 = vmatprep.subr.bf16.mxu1 %v2457_v9 }
  0xc9   : > { %1583 = vmatpush1.bf16.msra.mxu0 %v2452_v10  ;;  %1706 = vmatpush1.bf16.msra.mxu1 %v2455_v11 }
  0xca   : > { %1584 = vmatprep.subr.bf16.mxu0 %v2460_v12  ;;  %1707 = vmatprep.subr.bf16.mxu1 %v2463_v13 }
  0xcd   : > { %1585 = vmatpush1.bf16.msra.mxu0 %v2458_v14  ;;  %1708 = vmatpush1.bf16.msra.mxu1 %v2461_v15 }
  0xce   : > { %1586 = vmatprep.subr.bf16.mxu0 %v2466_v16  ;;  %1709 = vmatprep.subr.bf16.mxu1 %v2469_v18 }
  0xd1   : > { %1587 = vmatpush1.bf16.msra.mxu0 %v2464_v21  ;;  %1710 = vmatpush1.bf16.msra.mxu1 %v2467_v22 }
  0xd2   : > { %1588 = vmatprep.subr.bf16.mxu0 %v2472_v23  ;;  %1711 = vmatprep.subr.bf16.mxu1 %v2475_v24 }
  0xd5   : > { %1589 = vmatpush1.bf16.msra.mxu0 %v2470_v25  ;;  %1712 = vmatpush1.bf16.msra.mxu1 %v2473_v26 }
  0xd8   : > { %1591 = vmatmul.mubr.bf16.vlgmr.msra.gmra.mrb[0].mxu0 %v2651_v20  ;;  %1714 = vmatmul.mubr.bf16.vlgmr.msra.gmra.mrb[0].mxu1 %v2651_v20 }
 0x1ab   : > { %v1592_v30 = vpop.f32.mrb[0].mxu0  ;;  %v1715_v17 = vpop.f32.mrb[0].mxu1 }
 0x1ac   : > { %v1594_v32 = vpop.f32.mrb[1].mxu0  ;;  %v1717_v33 = vpop.f32.mrb[1].mxu1 }
 0x1ad   : > { %v1726_v34 = vcombine.low %v1592_v30, %v1594_v32  ;;  %v1727_v35 = vcombine.low %v1715_v17, %v1717_v33  ;;  %v1596_v36 = vpop.f32.mrb[2].mxu0  ;;  %v1719_v37 = vpop.f32.mrb[2].mxu1 }
 0x1ae   : > { %v1597_v38 = vpop.f32.mrb[3].mxu0  ;;  %v1720_v19 = vpop.f32.mrb[3].mxu1 }
 0x1af   : > { %v1734_v39 = vrot.slane %v1726_v34, %v1733_v31  ;;  %v1741_v40 = vrot.slane %v1727_v35, %v1733_v31  ;;  %1749 = sbr.rel (%p2137_p7) target bundleno = 464 (0x1d0), region = 44 }
 0x1b1   : > { %v1742_v42 = vcombine.low %v1734_v39, %v1741_v40 }
 0x1b3   : > { %v1744_v20 = vadd.f32 %v1742_v42, %v268_v41 }
 0x1b5   : > { %1745 = vst [vmem:[#allocation2] sm:$0xff] %v1744_v20 }
 0x1bc   : > { %v1750_v59 = vld [vmem:[#allocation2] sm:$0xff] }
 0x1bd   : > { %v1787_v62 = vadd.f32 %v1785_v60, %v1750_v59 }
 0x1bf   : > { %v1790_v63 = vadd.f32 %v1789_v61, %v1787_v62 }
 0x1c1   : > { %v1791_v0 = vmax.f32 %v1790_v63, 0.0 }
 0x1c3   : > { %v1793_v1 = vcombine.high %v1791_v0, %v1791_v0  ;;  %v1800_v44 = vrot.slane %v1791_v0, %v1733_v31 }
 0x1c5   : > { %v1807_v2 = vrot.slane %v1793_v1, %v1733_v31  ;;  %v1808_v3 = vcombine.high %v1800_v44, %v1800_v44 }
 0x1c7   : > { %v1809_v4 = vcombine.high %v1807_v2, %v1807_v2  ;;  %v2138_v5 = vpack.c.bf16 %v1808_v3, %v1800_v44 }
 0x1c9   : > { %v2139_v6 = vpack.c.bf16 %v1809_v4, %v1807_v2  ;;  %v1830_v7 = vrot.slane %v2138_v5, %v2610_v50 }
 0x1cb   : > { %v1837_v8 = vrot.slane %v2139_v6, %v2610_v50 }
 0x1cd   : > { %v1838_v9 = vcombine.low %v1830_v7, %v1837_v8 }
 0x1cf   : > { %2140 = vst.sshfl [vmem:[%s2815_s4] sm:$0x55 pattern:$0x73625140] %v1838_v9 }
 0x1d0 PF: > { %s14_s17 = sadd.s32 1, %s2499_s17   ;;  %s2816_s15 = smov %s2495_s16 }
 0x1d1   : > { %p11_p8 = scmp.ge.s32.totalorder %s14_s17, 8   ;;  %s2817_s16 = smov %s2819_s18 }
 0x1d3   :  { %13 = sbr.rel (!%p11_p8) target bundleno = 2 (0x2), region = 80 }

// kernel: res_model_forward.41
= control target key start
LH: loop header
LB: loop body
LE: loop exit
PB: predicated region body
PF: predicated region fallthrough
CT: control target
= control target key end

     0   :  { %v94_v51 = vlaneseq  ;;  %s696_s0 = inlined_call_operand.vmem [shape: bf16[2,1,512], index: 0, kind: input, shape index: {}]   ;;  %s697_s1 = inlined_call_operand.vmem [shape: f32[512,12], index: 1, kind: input, shape index: {}]   ;;  %s698_s2 = inlined_call_operand.vmem [shape: f32[1,12], index: 2, kind: input, shape index: {}]   ;;  %s699_s3 = inlined_call_operand.hbm [shape: f32[2,12], index: 3, kind: output, shape index: {}]  }
   0x1   :  { %v37_v0 = vld [vmem:[%s697_s1 + $0x80] sm:$0xff]  ;;  %v38_v1 = vld [vmem:[%s697_s1 + $0x88] sm:$0xff]  ;;  %v39_v11 = vld [vmem:[%s697_s1 + $0x90] sm:$0xff] }
   0x2   :  { %v21_v2 = vld [vmem:[%s697_s1] sm:$0xff]  ;;  %v366_v3 = vpack.c.bf16 %v38_v1, %v37_v0  ;;  %v22_v4 = vld [vmem:[%s697_s1 + $0x8] sm:$0xff]  ;;  %v40_v13 = vld [vmem:[%s697_s1 + $0x98] sm:$0xff]  ;;  %v608_v0 = vshrl.u32 %v94_v51, 7 }
   0x3   :  { %v69_v5 = vld [vmem:[%s697_s1 + $0x180] sm:$0xff]  ;;  %v70_v6 = vld [vmem:[%s697_s1 + $0x188] sm:$0xff]  ;;  %v368_v7 = vpack.c.bf16 %v22_v4, %v21_v2  ;;  %v23_v14 = vld [vmem:[%s697_s1 + $0x10] sm:$0xff]  ;;  %v370_v16 = vpack.c.bf16 %v40_v13, %v39_v11 }
   0x4   :  { %v398_v8 = vpack.c.bf16 %v70_v6, %v69_v5  ;;  %v53_v9 = vld [vmem:[%s697_s1 + $0x100] sm:$0xff]  ;;  %v54_v10 = vld [vmem:[%s697_s1 + $0x108] sm:$0xff]  ;;  %367 = vmatprep.subr.bf16.mxu0 %v366_v3  ;;  %v24_v15 = vld [vmem:[%s697_s1 + $0x18] sm:$0xff] }
   0x5   :  { %v400_v12 = vpack.c.bf16 %v54_v10, %v53_v9  ;;  %369 = vmatpush3.bf16.msra.mxu0 %v368_v7  ;;  %v372_v17 = vpack.c.bf16 %v24_v15, %v23_v14  ;;  %v71_v18 = vld [vmem:[%s697_s1 + $0x190] sm:$0xff]  ;;  %v72_v19 = vld [vmem:[%s697_s1 + $0x198] sm:$0xff]  ;;  %v41_v23 = vld [vmem:[%s697_s1 + $0xa0] sm:$0xff] }
   0x6   :  { %399 = vmatprep.subr.bf16.mxu1 %v398_v8  ;;  %v55_v20 = vld [vmem:[%s697_s1 + $0x110] sm:$0xff]  ;;  %v402_v21 = vpack.c.bf16 %v72_v19, %v71_v18  ;;  %v56_v22 = vld [vmem:[%s697_s1 + $0x118] sm:$0xff]  ;;  %v42_v24 = vld [vmem:[%s697_s1 + $0xa8] sm:$0xff]  ;;  %371 = vmatprep.subr.bf16.mxu0 %v370_v16  ;;  %v100_v16 = vsub.s32 2, %v608_v0 }
   0x7   :  { %401 = vmatpush3.bf16.msra.mxu1 %v400_v12  ;;  %v404_v25 = vpack.c.bf16 %v56_v22, %v55_v20  ;;  %v374_v26 = vpack.c.bf16 %v42_v24, %v41_v23  ;;  %v25_v27 = vld [vmem:[%s697_s1 + $0x20] sm:$0xff]  ;;  %v26_v28 = vld [vmem:[%s697_s1 + $0x28] sm:$0xff]  ;;  %v43_v35 = vld [vmem:[%s697_s1 + $0xb0] sm:$0xff] }
   0x8   :  { %v73_v29 = vld [vmem:[%s697_s1 + $0x1a0] sm:$0xff]  ;;  %403 = vmatprep.subr.bf16.mxu1 %v402_v21  ;;  %v74_v30 = vld [vmem:[%s697_s1 + $0x1a8] sm:$0xff]  ;;  %v376_v33 = vpack.c.bf16 %v26_v28, %v25_v27  ;;  %v44_v36 = vld [vmem:[%s697_s1 + $0xb8] sm:$0xff]  ;;  %v108_v21 = vsub.s32 6, %v608_v0 }
   0x9   :  { %v57_v31 = vld [vmem:[%s697_s1 + $0x120] sm:$0xff]  ;;  %v58_v32 = vld [vmem:[%s697_s1 + $0x128] sm:$0xff]  ;;  %373 = vmatpush3.bf16.msra.mxu0 %v372_v17  ;;  %v406_v34 = vpack.c.bf16 %v74_v30, %v73_v29  ;;  %v27_v37 = vld [vmem:[%s697_s1 + $0x30] sm:$0xff]  ;;  %v378_v39 = vpack.c.bf16 %v44_v36, %v43_v35 }
   0xa   :  { %375 = vmatprep.subr.bf16.mxu0 %v374_v26  ;;  %v408_v38 = vpack.c.bf16 %v58_v32, %v57_v31  ;;  %v28_v40 = vld [vmem:[%s697_s1 + $0x38] sm:$0xff]  ;;  %v75_v41 = vld [vmem:[%s697_s1 + $0x1b0] sm:$0xff]  ;;  %v45_v46 = vld [vmem:[%s697_s1 + $0xc0] sm:$0xff] }
   0xb   :  { %405 = vmatpush3.bf16.msra.mxu1 %v404_v25  ;;  %v76_v42 = vld [vmem:[%s697_s1 + $0x1b8] sm:$0xff]  ;;  %v59_v44 = vld [vmem:[%s697_s1 + $0x130] sm:$0xff]  ;;  %v46_v47 = vld [vmem:[%s697_s1 + $0xc8] sm:$0xff]  ;;  %v380_v48 = vpack.c.bf16 %v28_v40, %v27_v37 }
   0xc   :  { %407 = vmatprep.subr.bf16.mxu1 %v406_v34  ;;  %v410_v43 = vpack.c.bf16 %v76_v42, %v75_v41  ;;  %v60_v45 = vld [vmem:[%s697_s1 + $0x138] sm:$0xff]  ;;  %v77_v49 = vld [vmem:[%s697_s1 + $0x1c0] sm:$0xff]  ;;  %v78_v50 = vld [vmem:[%s697_s1 + $0x1c8] sm:$0xff]  ;;  %v382_v53 = vpack.c.bf16 %v46_v47, %v45_v46 }
   0xd   :  { %377 = vmatpush3.bf16.msra.mxu0 %v376_v33  ;;  %v412_v52 = vpack.c.bf16 %v60_v45, %v59_v44  ;;  %v29_v54 = vld [vmem:[%s697_s1 + $0x40] sm:$0xff]  ;;  %v30_v55 = vld [vmem:[%s697_s1 + $0x48] sm:$0xff]  ;;  %v414_v57 = vpack.c.bf16 %v78_v50, %v77_v49  ;;  %v47_v59 = vld [vmem:[%s697_s1 + $0xd0] sm:$0xff] }
   0xe   :  { %379 = vmatprep.subr.bf16.mxu0 %v378_v39  ;;  %v61_v56 = vld [vmem:[%s697_s1 + $0x140] sm:$0xff]  ;;  %v62_v58 = vld [vmem:[%s697_s1 + $0x148] sm:$0xff]  ;;  %v48_v60 = vld [vmem:[%s697_s1 + $0xd8] sm:$0xff]  ;;  %v384_v63 = vpack.c.bf16 %v30_v55, %v29_v54 }
   0xf   :  { %409 = vmatpush3.bf16.msra.mxu1 %v408_v38  ;;  %v79_v61 = vld [vmem:[%s697_s1 + $0x1d0] sm:$0xff]  ;;  %v80_v62 = vld [vmem:[%s697_s1 + $0x1d8] sm:$0xff]  ;;  %v416_v1 = vpack.c.bf16 %v62_v58, %v61_v56  ;;  %v386_v2 = vpack.c.bf16 %v48_v60, %v47_v59  ;;  %v49_v8 = vld [vmem:[%s697_s1 + $0xe0] sm:$0xff] }
  0x10   :  { %411 = vmatprep.subr.bf16.mxu1 %v410_v43  ;;  %v31_v3 = vld [vmem:[%s697_s1 + $0x50] sm:$0xff]  ;;  %v32_v4 = vld [vmem:[%s697_s1 + $0x58] sm:$0xff]  ;;  %v418_v6 = vpack.c.bf16 %v80_v62, %v79_v61  ;;  %v50_v9 = vld [vmem:[%s697_s1 + $0xe8] sm:$0xff] }
  0x11   :  { %381 = vmatpush3.bf16.msra.mxu0 %v380_v48  ;;  %v63_v5 = vld [vmem:[%s697_s1 + $0x150] sm:$0xff]  ;;  %v64_v7 = vld [vmem:[%s697_s1 + $0x158] sm:$0xff]  ;;  %v81_v10 = vld [vmem:[%s697_s1 + $0x1e0] sm:$0xff]  ;;  %v388_v12 = vpack.c.bf16 %v32_v4, %v31_v3  ;;  %v390_v18 = vpack.c.bf16 %v50_v9, %v49_v8 }
  0x12   :  { %383 = vmatprep.subr.bf16.mxu0 %v382_v53  ;;  %v82_v11 = vld [vmem:[%s697_s1 + $0x1e8] sm:$0xff]  ;;  %v33_v13 = vld [vmem:[%s697_s1 + $0x60] sm:$0xff]  ;;  %v420_v17 = vpack.c.bf16 %v64_v7, %v63_v5 }
  0x13   :  { %413 = vmatpush3.bf16.msra.mxu1 %v412_v52  ;;  %v34_v14 = vld [vmem:[%s697_s1 + $0x68] sm:$0xff]  ;;  %v65_v15 = vld [vmem:[%s697_s1 + $0x160] sm:$0xff] }
  0x14   :  { %415 = vmatprep.subr.bf16.mxu1 %v414_v57  ;;  %v66_v19 = vld [vmem:[%s697_s1 + $0x168] sm:$0xff]  ;;  %v293_v20 = vld [vmem:[%s696_s0] sm:$0xff]  }
  0x15   :  { %385 = vmatpush3.bf16.msra.mxu0 %v384_v63 }
  0x16   :  { %387 = vmatprep.subr.bf16.mxu0 %v386_v2 }
  0x17   :  { %417 = vmatpush3.bf16.msra.mxu1 %v416_v1 }
  0x18   :  { %8 = vsyncpa [#allocation3], 0  ;;  %419 = vmatprep.subr.bf16.mxu1 %v418_v6  ;;  %v422_v22 = vpack.c.bf16 %v82_v11, %v81_v10  ;;  %v51_v23 = vld [vmem:[%s697_s1 + $0xf0] sm:$0xff]  ;;  %v52_v24 = vld [vmem:[%s697_s1 + $0xf8] sm:$0xff]  ;;  %v294_v25 = vunpack.c.l.bf16 %v293_v20  ;;  %v295_v26 = vunpack.c.h.bf16 %v293_v20  ;;  %vm126_vm0 = vcmask 1041409   ;;  %s455_s7 = smov [#allocation2]  }
  0x19   :  { %v83_v27 = vld [vmem:[%s697_s1 + $0x1f0] sm:$0xff]  ;;  %v84_v28 = vld [vmem:[%s697_s1 + $0x1f8] sm:$0xff]  ;;  %v96_v29 = vsub.s32 0, %v608_v0  ;;  %389 = vmatpush3.bf16.msra.mxu0 %v388_v12  ;;  %v392_v30 = vpack.c.bf16 %v34_v14, %v33_v13  ;;  %v424_v31 = vpack.c.bf16 %v66_v19, %v65_v15  ;;  %v394_v34 = vpack.c.bf16 %v52_v24, %v51_v23  ;;  %v291_v54 = vld [vmem:[%s698_s2] ss:$0 sm:$0xff]  ;;  %s283_s8 = sshll.u32 %s455_s7, 4  ;;  %s284_s8 = int_to_ptr.vmem [resolvable:$true] %s283_s8 }
  0x1a   :  { %v101_v32 = vrot.slane %v294_v25, %v100_v16  ;;  %v117_v33 = vrot.slane %v295_v26, %v100_v16  ;;  %391 = vmatprep.subr.bf16.mxu0 %v390_v18  ;;  %v35_v35 = vld [vmem:[%s697_s1 + $0x70] sm:$0xff]  ;;  %v36_v36 = vld [vmem:[%s697_s1 + $0x78] sm:$0xff]  ;;  %v109_v37 = vrot.slane %v294_v25, %v108_v21  ;;  %v125_v38 = vrot.slane %v295_v26, %v108_v21  ;;  %s431_s9 = scalar_lea.vmem %s284_s8, 32  ;;  %p436_p1 = scmp.lt.s32.totalorder %s284_s8, %s284_s8 }
  0x1b   :  { %421 = vmatpush3.bf16.msra.mxu1 %v420_v17  ;;  %v104_v39 = vsub.s32 4, %v608_v0  ;;  %v426_v40 = vpack.c.bf16 %v84_v28, %v83_v27  ;;  %v67_v41 = vld [vmem:[%s697_s1 + $0x170] sm:$0xff]  ;;  %v68_v42 = vld [vmem:[%s697_s1 + $0x178] sm:$0xff]  ;;  %v396_v45 = vpack.c.bf16 %v36_v36, %v35_v35  ;;  %v97_v46 = vrot.slane %v294_v25, %v96_v29  ;;  %p432_p0 = scmp.ne.s32.totalorder %s284_s8, %s431_s9  ;;  %p437_p2 = scmp.lt.s32.totalorder %s431_s9, %s431_s9 }
  0x1c   :  { %423 = vmatprep.subr.bf16.mxu1 %v422_v22  ;;  %v128_v43 = vsel %vm126_vm0, %v117_v33, %v101_v32  ;;  %v130_v44 = vsel %vm126_vm0, %v125_v38, %v109_v37  ;;  %v113_v47 = vrot.slane %v295_v26, %v96_v29  ;;  %v428_v48 = vpack.c.bf16 %v68_v42, %v67_v41 }
  0x1d   :  { %199 = vmatprep.mubr.f32.mxu0 %v128_v43  ;;  %393 = vmatpush3.bf16.msra.mxu0 %v392_v30  ;;  %v105_v49 = vrot.slane %v294_v25, %v104_v39  ;;  %v121_v50 = vrot.slane %v295_v26, %v104_v39  ;;  %vm275_vm1 = vcmask 91136   ;;  %p438_p3 = por %p437_p2, %p436_p1 }
  0x1e   :  { %269 = vmatprep.mubr.f32.mxu1 %v130_v44  ;;  %395 = vmatprep.subr.bf16.mxu0 %v394_v34  ;;  %v127_v51 = vsel %vm126_vm0, %v113_v47, %v97_v46 }
  0x1f   :  { %425 = vmatpush3.bf16.msra.mxu1 %v424_v31  ;;  %v129_v52 = vsel %vm126_vm0, %v121_v50, %v105_v49  ;;  %p439_p4 = pnand %p438_p3, %p432_p0 }
  0x20   :  { %427 = vmatprep.subr.bf16.mxu1 %v426_v40 }
  0x21   :  { %397 = vmatpush3.bf16.msra.mxu0 %v396_v45 }
  0x23   :  { %429 = vmatpush3.bf16.msra.mxu1 %v428_v48 }
  0x24   :  { %200 = vmatmul.mubr.f32.vlgmr.msra.gmra.mrb[0].mxu0 %v127_v51 }
  0x26   :  { %270 = vmatmul.mubr.f32.vlgmr.msra.gmra.mrb[0].mxu1 %v129_v52 }
  0xf7   :  { %v328_v53 = vpop.f32.mrb[0].mxu0 }
  0xf8   :  { %v329_v55 = vpop.f32.mrb[1].mxu0 }
  0xf9   :  { %v363_v56 = vpop.f32.mrb[0].mxu1  ;;  %v330_v57 = vadd.f32 %v329_v55, %v328_v53 }
  0xfa   :  { %v364_v58 = vpop.f32.mrb[1].mxu1 }
  0xfb   :  { %v365_v59 = vadd.f32 %v364_v58, %v363_v56  ;;  %v202_v60 = vadd.f32 %v330_v57, %v291_v54 }
  0xfd   :  { %v272_v61 = vadd.f32 %v365_v59, %v202_v60 }
  0xff   :  { %276 = vst.msk [vmem:[#allocation2] sm:$0x3] %vm275_vm1, %v272_v61 }
 0x100   :  { %442 = shalt.err (!%p439_p4)
}
 0x101   :  { %s443_s11 = scalar_lea.hbm %s699_s3, 32 }
 0x102   :  { %p444_p5 = scmp.ne.s32.totalorder %s699_s3, %s443_s11  ;;  %p447_p6 = scmp.lt.u32.totalorder %s443_s11, %s699_s3 }
 0x104   :  { %p449_p7 = pnand %p447_p6, %p444_p5 }
 0x106   :  { %452 = shalt.err (!%p449_p7)
}
 0x107   :  { %286 = dma.vmem_to_hbm [thread:$0]  %s284_s8, 32, %s699_s3, [#allocation3]  }
 0x108   :  { %453 = dma.done.wait [#allocation3], 32  }
 0x109   :  { %454 = vsyncadd [#allocation3], 4294967264 }
 0x10a   :  { %290 = vsyncpa [#allocation3], 1 }

// kernel: res_model_forward.43
= control target key start
LH: loop header
LB: loop body
LE: loop exit
PB: predicated region body
PF: predicated region fallthrough
CT: control target
= control target key end

     0   :  { %s2485_s15 = smov 0   ;;  %s2487_s16 = smov 0   ;;  %s2767_s0 = inlined_call_operand.vmem [shape: bf16[2,1,1,9,512], index: 0, kind: input, shape index: {}, may-alias: {0,4}]   ;;  %s2768_s1 = inlined_call_operand.vmem [shape: bf16[2,4608], index: 1, kind: input, shape index: {}]   ;;  %s2769_s2 = inlined_call_operand.vmem [shape: bf16[4608,512], index: 2, kind: input, shape index: {}]   ;;  %s2770_s3 = inlined_call_operand.vmem [shape: f32[1,512], index: 3, kind: input, shape index: {}]   ;;  %s2771_s4 = inlined_call_operand.vmem [shape: bf16[2,1,1,9,512], index: 4, kind: output, shape index: {}, may-alias: {0,4}]  }
   0x1   :  { %s2489_s17 = smov 0  }
   0x2 LB: > { %s1893_s0 = sadd.s32 4294967295, %s2455_s17   ;;  %s24_s18 = sadd.s32 1, %s2451_s16  ;;  %s2455_s17 = sphi %s2489_s17, %s15_s17   ;;  %s2451_s16 = sphi %s2487_s16, %s2773_s16   ;;  %s2447_s15 = sphi %s2485_s15, %s2772_s15  }
   0x3   : > { %p25_p0 = scmp.ge.s32.totalorder %s24_s18, 6  ;;  %p1896_p1 = scmp.ge.s32.totalorder %s2455_s17, 1 }
   0x4   : > { %p169_p2 = scmp.lt.s32.totalorder %s2455_s17, 7 }
   0x5   : > { %s2775_s18 = smov (%p25_p0, %s24_s18), 0 }
   0x6   : > { %p170_p3 = pnand %p1896_p1, %p169_p2 }
   0x7   : > { %s197_s19 = smul.u32 (!%p170_p3), 6, %s2447_s15  ;;  %p1899_p6 = scmp.ne.s32.totalorder (!%p170_p3), %s2447_s15, 0 }
   0x8   : > { %173 = sbr.rel (%p170_p3) target bundleno = 472 (0x1d8), region = 32 }
   0x9   : > { %s206_s20 = smul.u32 (!%p170_p3), 96, %s2447_s15  ;;  %p200_p4 = scmp.lt.s32.totalorder (!%p170_p3), %s197_s19, 35 }
   0xb   : > { %p207_p5 = scmp.lt.s32.totalorder (!%p170_p3), %s206_s20, 575 }
   0xf   : > { %s2777_s19 = smov (!%p200_p4, %s197_s19), 35  ;;  %s2779_s20 = smov (!%p207_p5, %s206_s20), 575 }
  0x10   : > { %s204_s23 = scalar_lea.vmem %s2768_s1, %s2777_s19  ;;  %s2100_s24 = sshll.u32 %s2779_s20, 4  ;;  %v2457_v0 = vmov (!%p1899_p6), 0.0  }
  0x11   : > { %s2517_s27 = scalar_lea.vmem %s2769_s2, %s2100_s24  ;;  %216 = sbr.rel (%p1899_p6) target bundleno = 24 (0x18), region = 36  ;;  %217 = vst [vmem:[#allocation2] sm:$0xff] (!%p1899_p6), %v2457_v0 }
  0x18 PF: > { %v2144_v1 = vld [vmem:[%s2517_s27 + $0x4] ss:$16 sps:$4 sm:$0xff]   ;;  %v2146_v2 = vld [vmem:[%s2517_s27 + $0xc] ss:$16 sps:$4 sm:$0xff]   ;;  %v2148_v3 = vld [vmem:[%s2517_s27] ss:$16 sps:$4 sm:$0xff]   ;;  %v417_v39 = vlaneseq }
  0x19   : > { %1426 = vmatprep.subr.bf16.mxu0 %v2144_v1  ;;  %v2149_v4 = vld [vmem:[%s2517_s27 + $0x8] ss:$16 sps:$4 sm:$0xff]   ;;  %1549 = vmatprep.subr.bf16.mxu1 %v2146_v2  ;;  %v2150_v5 = vld [vmem:[%s2517_s27 + $0x24] ss:$16 sps:$4 sm:$0xff]   ;;  %v2152_v6 = vld [vmem:[%s2517_s27 + $0x2c] ss:$16 sps:$4 sm:$0xff]  }
  0x1a   : > { %1427 = vmatpush1.bf16.msra.mxu0 %v2148_v3  ;;  %1550 = vmatpush1.bf16.msra.mxu1 %v2149_v4  ;;  %v2154_v7 = vld [vmem:[%s2517_s27 + $0x20] ss:$16 sps:$4 sm:$0xff]   ;;  %v2155_v8 = vld [vmem:[%s2517_s27 + $0x28] ss:$16 sps:$4 sm:$0xff]   ;;  %v2156_v9 = vld [vmem:[%s2517_s27 + $0x44] ss:$16 sps:$4 sm:$0xff]  }
  0x1b   : > { %1428 = vmatprep.subr.bf16.mxu0 %v2150_v5  ;;  %1551 = vmatprep.subr.bf16.mxu1 %v2152_v6  ;;  %v2158_v10 = vld [vmem:[%s2517_s27 + $0x4c] ss:$16 sps:$4 sm:$0xff]   ;;  %v2160_v11 = vld [vmem:[%s2517_s27 + $0x40] ss:$16 sps:$4 sm:$0xff]   ;;  %v2161_v12 = vld [vmem:[%s2517_s27 + $0x48] ss:$16 sps:$4 sm:$0xff]  }
  0x1c   : > { %v2162_v13 = vld [vmem:[%s2517_s27 + $0x64] ss:$16 sps:$4 sm:$0xff]   ;;  %v2164_v14 = vld [vmem:[%s2517_s27 + $0x6c] ss:$16 sps:$4 sm:$0xff]   ;;  %v2166_v15 = vld [vmem:[%s2517_s27 + $0x60] ss:$16 sps:$4 sm:$0xff]  }
  0x1d   : > { %v2167_v16 = vld [vmem:[%s2517_s27 + $0x68] ss:$16 sps:$4 sm:$0xff]   ;;  %v2168_v17 = vld [vmem:[%s2517_s27 + $0x84] ss:$16 sps:$4 sm:$0xff]   ;;  %v2170_v18 = vld [vmem:[%s2517_s27 + $0x8c] ss:$16 sps:$4 sm:$0xff]  }
  0x1e   : > { %1429 = vmatpush1.bf16.msra.mxu0 %v2154_v7  ;;  %1552 = vmatpush1.bf16.msra.mxu1 %v2155_v8  ;;  %v2172_v19 = vld [vmem:[%s2517_s27 + $0x80] ss:$16 sps:$4 sm:$0xff]   ;;  %v2173_v20 = vld [vmem:[%s2517_s27 + $0x88] ss:$16 sps:$4 sm:$0xff]   ;;  %v2174_v21 = vld [vmem:[%s2517_s27 + $0xa4] ss:$16 sps:$4 sm:$0xff]  }
  0x1f   : > { %1430 = vmatprep.subr.bf16.mxu0 %v2156_v9  ;;  %1553 = vmatprep.subr.bf16.mxu1 %v2158_v10  ;;  %v2176_v22 = vld [vmem:[%s2517_s27 + $0xac] ss:$16 sps:$4 sm:$0xff]   ;;  %v2178_v23 = vld [vmem:[%s2517_s27 + $0xa0] ss:$16 sps:$4 sm:$0xff]   ;;  %v2179_v24 = vld [vmem:[%s2517_s27 + $0xa8] ss:$16 sps:$4 sm:$0xff]  }
  0x20   : > { %v2180_v25 = vld [vmem:[%s2517_s27 + $0xc4] ss:$16 sps:$4 sm:$0xff]   ;;  %v2182_v26 = vld [vmem:[%s2517_s27 + $0xcc] ss:$16 sps:$4 sm:$0xff]   ;;  %v2184_v27 = vld [vmem:[%s2517_s27 + $0xc0] ss:$16 sps:$4 sm:$0xff]  }
  0x21   : > { %v2185_v28 = vld [vmem:[%s2517_s27 + $0xc8] ss:$16 sps:$4 sm:$0xff]   ;;  %v2186_v29 = vld [vmem:[%s2517_s27 + $0xe4] ss:$16 sps:$4 sm:$0xff]   ;;  %v2188_v30 = vld [vmem:[%s2517_s27 + $0xec] ss:$16 sps:$4 sm:$0xff]  }
  0x22   : > { %1431 = vmatpush1.bf16.msra.mxu0 %v2160_v11  ;;  %1554 = vmatpush1.bf16.msra.mxu1 %v2161_v12  ;;  %v2190_v31 = vld [vmem:[%s2517_s27 + $0xe0] ss:$16 sps:$4 sm:$0xff]   ;;  %v2191_v32 = vld [vmem:[%s2517_s27 + $0xe8] ss:$16 sps:$4 sm:$0xff]   ;;  %v2192_v33 = vld [vmem:[%s2517_s27 + $0x104] ss:$16 sps:$4 sm:$0xff]  }
  0x23   : > { %1432 = vmatprep.subr.bf16.mxu0 %v2162_v13  ;;  %1555 = vmatprep.subr.bf16.mxu1 %v2164_v14  ;;  %v2194_v34 = vld [vmem:[%s2517_s27 + $0x10c] ss:$16 sps:$4 sm:$0xff]   ;;  %v2196_v35 = vld [vmem:[%s2517_s27 + $0x100] ss:$16 sps:$4 sm:$0xff]   ;;  %v2197_v36 = vld [vmem:[%s2517_s27 + $0x108] ss:$16 sps:$4 sm:$0xff]  }
  0x24   : > { %v2458_v37 = vmov 1966171168   ;;  %v2198_v40 = vld [vmem:[%s2517_s27 + $0x124] ss:$16 sps:$4 sm:$0xff]   ;;  %v2200_v41 = vld [vmem:[%s2517_s27 + $0x12c] ss:$16 sps:$4 sm:$0xff]  }
  0x25   : > { %v415_v38 = vunpack.c.l.s4 %v2458_v37  ;;  %v2202_v42 = vld [vmem:[%s2517_s27 + $0x120] ss:$16 sps:$4 sm:$0xff]   ;;  %v2559_v44 = vshrl.u32 %v417_v39, 7  ;;  %v2203_v45 = vld [vmem:[%s2517_s27 + $0x128] ss:$16 sps:$4 sm:$0xff]   ;;  %p2092_p7 = scmp.ne.s32.totalorder %s2447_s15, 5 }
  0x26   : > { %1433 = vmatpush1.bf16.msra.mxu0 %v2166_v15  ;;  %1556 = vmatpush1.bf16.msra.mxu1 %v2167_v16  ;;  %v2204_v46 = vld [vmem:[%s2517_s27 + $0x144] ss:$16 sps:$4 sm:$0xff]   ;;  %v2206_v47 = vld [vmem:[%s2517_s27 + $0x14c] ss:$16 sps:$4 sm:$0xff]   ;;  %v2208_v48 = vld [vmem:[%s2517_s27 + $0x140] ss:$16 sps:$4 sm:$0xff]  }
  0x27   : > { %1434 = vmatprep.subr.bf16.mxu0 %v2168_v17  ;;  %1557 = vmatprep.subr.bf16.mxu1 %v2170_v18  ;;  %v416_v43 = vunpack.c.0.s8 %v415_v38  ;;  %v2209_v49 = vld [vmem:[%s2517_s27 + $0x148] ss:$16 sps:$4 sm:$0xff]   ;;  %v2210_v51 = vld [vmem:[%s2517_s27 + $0x164] ss:$16 sps:$4 sm:$0xff]   ;;  %v2212_v52 = vld [vmem:[%s2517_s27 + $0x16c] ss:$16 sps:$4 sm:$0xff]  }
  0x28   : > { %v219_v53 = vld [vmem:[%s204_s23] sm:$0x3f]  ;;  %v2215_v56 = vld [vmem:[%s2517_s27 + $0x168] ss:$16 sps:$4 sm:$0xff]   ;;  %v2218_v58 = vld [vmem:[%s2517_s27 + $0x18c] ss:$16 sps:$4 sm:$0xff]  }
  0x29   : > { %v2567_v50 = vsub.s32 %v416_v43, %v2559_v44  ;;  %v2214_v54 = vld [vmem:[%s2517_s27 + $0x160] ss:$16 sps:$4 sm:$0xff]   ;;  %v2216_v57 = vld [vmem:[%s2517_s27 + $0x184] ss:$16 sps:$4 sm:$0xff]   ;;  %v2221_v62 = vld [vmem:[%s2517_s27 + $0x188] ss:$16 sps:$4 sm:$0xff]   ;;  %v413_v9 = vcombine.high %v219_v53, %v219_v53 }
  0x2a   : > { %1435 = vmatpush1.bf16.msra.mxu0 %v2172_v19  ;;  %1558 = vmatpush1.bf16.msra.mxu1 %v2173_v20  ;;  %v2220_v60 = vld [vmem:[%s2517_s27 + $0x180] ss:$16 sps:$4 sm:$0xff]   ;;  %v2222_v63 = vld [vmem:[%s2517_s27 + $0x1a4] ss:$16 sps:$4 sm:$0xff]   ;;  %v2224_v0 = vld [vmem:[%s2517_s27 + $0x1ac] ss:$16 sps:$4 sm:$0xff]  }
  0x2b   : > { %1436 = vmatprep.subr.bf16.mxu0 %v2174_v21  ;;  %1559 = vmatprep.subr.bf16.mxu1 %v2176_v22  ;;  %v420_v55 = vrot.slane %v219_v53, %v2567_v50  ;;  %v2226_v1 = vld [vmem:[%s2517_s27 + $0x1a0] ss:$16 sps:$4 sm:$0xff]   ;;  %v2227_v2 = vld [vmem:[%s2517_s27 + $0x1a8] ss:$16 sps:$4 sm:$0xff]   ;;  %v2228_v3 = vld [vmem:[%s2517_s27 + $0x1c4] ss:$16 sps:$4 sm:$0xff]   ;;  %v427_v12 = vrot.slane %v413_v9, %v2567_v50 }
  0x2c   : > { %v2230_v4 = vld [vmem:[%s2517_s27 + $0x1cc] ss:$16 sps:$4 sm:$0xff]   ;;  %v2232_v5 = vld [vmem:[%s2517_s27 + $0x1c0] ss:$16 sps:$4 sm:$0xff]   ;;  %v2233_v6 = vld [vmem:[%s2517_s27 + $0x1c8] ss:$16 sps:$4 sm:$0xff]  }
  0x2d   : > { %v428_v59 = vcombine.high %v420_v55, %v420_v55  ;;  %v2234_v7 = vld [vmem:[%s2517_s27 + $0x1e4] ss:$16 sps:$4 sm:$0xff]   ;;  %v2236_v8 = vld [vmem:[%s2517_s27 + $0x1ec] ss:$16 sps:$4 sm:$0xff]   ;;  %v2238_v10 = vld [vmem:[%s2517_s27 + $0x1e0] ss:$16 sps:$4 sm:$0xff]   ;;  %v429_v15 = vcombine.high %v427_v12, %v427_v12  ;;  %v2601_v17 = vrot.slane %v420_v55, %v2567_v50  ;;  %v2608_v20 = vrot.slane %v427_v12, %v2567_v50 }
  0x2e   : > { %1437 = vmatpush1.bf16.msra.mxu0 %v2178_v23  ;;  %1560 = vmatpush1.bf16.msra.mxu1 %v2179_v24  ;;  %v2239_v11 = vld [vmem:[%s2517_s27 + $0x1e8] ss:$16 sps:$4 sm:$0xff]   ;;  %v2242_v13 = vld [vmem:[%s2517_s27 + $0x204] ss:$16 sps:$4 sm:$0xff]   ;;  %v2245_v14 = vld [vmem:[%s2517_s27 + $0x20c] ss:$16 sps:$4 sm:$0xff]  }
  0x2f   : > { %1438 = vmatprep.subr.bf16.mxu0 %v2180_v25  ;;  %1561 = vmatprep.subr.bf16.mxu1 %v2182_v26  ;;  %v450_v61 = vrot.slane %v428_v59, %v2567_v50  ;;  %v2240_v16 = vld [vmem:[%s2517_s27 + $0x200] ss:$16 sps:$4 sm:$0xff]   ;;  %v2243_v18 = vld [vmem:[%s2517_s27 + $0x208] ss:$16 sps:$4 sm:$0xff]   ;;  %v2605_v19 = vrot.slane %v429_v15, %v2567_v50  ;;  %v2248_v21 = vld [vmem:[%s2517_s27 + $0x224] ss:$16 sps:$4 sm:$0xff]  }
  0x30   : > { %v2251_v22 = vld [vmem:[%s2517_s27 + $0x22c] ss:$16 sps:$4 sm:$0xff]   ;;  %v2246_v24 = vld [vmem:[%s2517_s27 + $0x220] ss:$16 sps:$4 sm:$0xff]   ;;  %v2249_v25 = vld [vmem:[%s2517_s27 + $0x228] ss:$16 sps:$4 sm:$0xff]  }
  0x31   : > { %1458 = vmatprep.mubr.bf16.mxu0 %v450_v61  ;;  %1581 = vmatprep.mubr.bf16.mxu1 %v450_v61  ;;  %v459_v23 = vcombine.high %v450_v61, %v450_v61  ;;  %v2254_v26 = vld [vmem:[%s2517_s27 + $0x244] ss:$16 sps:$4 sm:$0xff]   ;;  %v2267_v37 = vld [vmem:[%s2517_s27 + $0x288] ss:$16 sps:$4 sm:$0xff]   ;;  %v2275_v39 = vld [vmem:[%s2517_s27 + $0x2ac] ss:$16 sps:$4 sm:$0xff]  }
  0x32   : > { %1439 = vmatpush1.bf16.msra.mxu0 %v2184_v27  ;;  %1562 = vmatpush1.bf16.msra.mxu1 %v2185_v28  ;;  %v2257_v27 = vld [vmem:[%s2517_s27 + $0x24c] ss:$16 sps:$4 sm:$0xff]   ;;  %v2252_v28 = vld [vmem:[%s2517_s27 + $0x240] ss:$16 sps:$4 sm:$0xff]   ;;  %v2272_v38 = vld [vmem:[%s2517_s27 + $0x2a4] ss:$16 sps:$4 sm:$0xff]  }
  0x33   : > { %1440 = vmatprep.subr.bf16.mxu0 %v2186_v29  ;;  %1563 = vmatprep.subr.bf16.mxu1 %v2188_v30  ;;  %v2255_v29 = vld [vmem:[%s2517_s27 + $0x248] ss:$16 sps:$4 sm:$0xff]   ;;  %v2260_v30 = vld [vmem:[%s2517_s27 + $0x264] ss:$16 sps:$4 sm:$0xff]   ;;  %v2281_v43 = vld [vmem:[%s2517_s27 + $0x2cc] ss:$16 sps:$4 sm:$0xff]  }
  0x34   : > { %v2293_v53 = vld [vmem:[%s2517_s27 + $0x30c] ss:$16 sps:$4 sm:$0xff]   ;;  %v2291_v55 = vld [vmem:[%s2517_s27 + $0x308] ss:$16 sps:$4 sm:$0xff]   ;;  %v2326_v12 = vld [vmem:[%s2517_s27 + $0x3c4] ss:$16 sps:$4 sm:$0xff]  }
  0x35   : > { %v2297_v59 = vld [vmem:[%s2517_s27 + $0x328] ss:$16 sps:$4 sm:$0xff]   ;;  %v2305_v61 = vld [vmem:[%s2517_s27 + $0x34c] ss:$16 sps:$4 sm:$0xff]  }
  0x36   : > { %1441 = vmatpush1.bf16.msra.mxu0 %v2190_v31  ;;  %1564 = vmatpush1.bf16.msra.mxu1 %v2191_v32  ;;  %v2263_v31 = vld [vmem:[%s2517_s27 + $0x26c] ss:$16 sps:$4 sm:$0xff]   ;;  %v2258_v32 = vld [vmem:[%s2517_s27 + $0x260] ss:$16 sps:$4 sm:$0xff]   ;;  %v2327_v15 = vld [vmem:[%s2517_s27 + $0x3c8] ss:$16 sps:$4 sm:$0xff]  }
  0x37   : > { %1442 = vmatprep.subr.bf16.mxu0 %v2192_v33  ;;  %1565 = vmatprep.subr.bf16.mxu1 %v2194_v34  ;;  %v2261_v33 = vld [vmem:[%s2517_s27 + $0x268] ss:$16 sps:$4 sm:$0xff]   ;;  %v2266_v34 = vld [vmem:[%s2517_s27 + $0x284] ss:$16 sps:$4 sm:$0xff]   ;;  %v2323_v9 = vld [vmem:[%s2517_s27 + $0x3ac] ss:$16 sps:$4 sm:$0xff]  }
  0x3a   : > { %1443 = vmatpush1.bf16.msra.mxu0 %v2196_v35  ;;  %1566 = vmatpush1.bf16.msra.mxu1 %v2197_v36  ;;  %v2269_v35 = vld [vmem:[%s2517_s27 + $0x28c] ss:$16 sps:$4 sm:$0xff]   ;;  %v2264_v36 = vld [vmem:[%s2517_s27 + $0x280] ss:$16 sps:$4 sm:$0xff]  }
  0x3b   : > { %1444 = vmatprep.subr.bf16.mxu0 %v2198_v40  ;;  %1567 = vmatprep.subr.bf16.mxu1 %v2200_v41  ;;  %v2270_v40 = vld [vmem:[%s2517_s27 + $0x2a0] ss:$16 sps:$4 sm:$0xff]   ;;  %v2273_v41 = vld [vmem:[%s2517_s27 + $0x2a8] ss:$16 sps:$4 sm:$0xff]  }
  0x3e   : > { %1445 = vmatpush1.bf16.msra.mxu0 %v2202_v42  ;;  %1568 = vmatpush1.bf16.msra.mxu1 %v2203_v45  ;;  %v2278_v42 = vld [vmem:[%s2517_s27 + $0x2c4] ss:$16 sps:$4 sm:$0xff]   ;;  %v2276_v45 = vld [vmem:[%s2517_s27 + $0x2c0] ss:$16 sps:$4 sm:$0xff]  }
  0x3f   : > { %1446 = vmatprep.subr.bf16.mxu0 %v2204_v46  ;;  %1569 = vmatprep.subr.bf16.mxu1 %v2206_v47  ;;  %v2279_v46 = vld [vmem:[%s2517_s27 + $0x2c8] ss:$16 sps:$4 sm:$0xff]   ;;  %v2284_v47 = vld [vmem:[%s2517_s27 + $0x2e4] ss:$16 sps:$4 sm:$0xff]  }
  0x42   : > { %1447 = vmatpush1.bf16.msra.mxu0 %v2208_v48  ;;  %1570 = vmatpush1.bf16.msra.mxu1 %v2209_v49  ;;  %v2287_v48 = vld [vmem:[%s2517_s27 + $0x2ec] ss:$16 sps:$4 sm:$0xff]   ;;  %v2282_v49 = vld [vmem:[%s2517_s27 + $0x2e0] ss:$16 sps:$4 sm:$0xff]  }
  0x43   : > { %1448 = vmatprep.subr.bf16.mxu0 %v2210_v51  ;;  %1571 = vmatprep.subr.bf16.mxu1 %v2212_v52  ;;  %v2285_v51 = vld [vmem:[%s2517_s27 + $0x2e8] ss:$16 sps:$4 sm:$0xff]   ;;  %v2290_v52 = vld [vmem:[%s2517_s27 + $0x304] ss:$16 sps:$4 sm:$0xff]  }
  0x46   : > { %1449 = vmatpush1.bf16.msra.mxu0 %v2214_v54  ;;  %1572 = vmatpush1.bf16.msra.mxu1 %v2215_v56  ;;  %v2288_v54 = vld [vmem:[%s2517_s27 + $0x300] ss:$16 sps:$4 sm:$0xff]   ;;  %v2296_v56 = vld [vmem:[%s2517_s27 + $0x324] ss:$16 sps:$4 sm:$0xff]  }
  0x47   : > { %1450 = vmatprep.subr.bf16.mxu0 %v2216_v57  ;;  %1573 = vmatprep.subr.bf16.mxu1 %v2218_v58  ;;  %v2299_v57 = vld [vmem:[%s2517_s27 + $0x32c] ss:$16 sps:$4 sm:$0xff]   ;;  %v2294_v58 = vld [vmem:[%s2517_s27 + $0x320] ss:$16 sps:$4 sm:$0xff]  }
  0x4a   : > { %1451 = vmatpush1.bf16.msra.mxu0 %v2220_v60  ;;  %1574 = vmatpush1.bf16.msra.mxu1 %v2221_v62  ;;  %v2302_v60 = vld [vmem:[%s2517_s27 + $0x344] ss:$16 sps:$4 sm:$0xff]   ;;  %v2300_v62 = vld [vmem:[%s2517_s27 + $0x340] ss:$16 sps:$4 sm:$0xff]  }
  0x4b   : > { %1452 = vmatprep.subr.bf16.mxu0 %v2222_v63  ;;  %1575 = vmatprep.subr.bf16.mxu1 %v2224_v0  ;;  %v2303_v63 = vld [vmem:[%s2517_s27 + $0x348] ss:$16 sps:$4 sm:$0xff]   ;;  %v2308_v0 = vld [vmem:[%s2517_s27 + $0x364] ss:$16 sps:$4 sm:$0xff]  }
  0x4e   : > { %1453 = vmatpush1.bf16.msra.mxu0 %v2226_v1  ;;  %1576 = vmatpush1.bf16.msra.mxu1 %v2227_v2  ;;  %v2311_v1 = vld [vmem:[%s2517_s27 + $0x36c] ss:$16 sps:$4 sm:$0xff]   ;;  %v2306_v2 = vld [vmem:[%s2517_s27 + $0x360] ss:$16 sps:$4 sm:$0xff]  }
  0x4f   : > { %1454 = vmatprep.subr.bf16.mxu0 %v2228_v3  ;;  %1577 = vmatprep.subr.bf16.mxu1 %v2230_v4  ;;  %v2309_v3 = vld [vmem:[%s2517_s27 + $0x368] ss:$16 sps:$4 sm:$0xff]   ;;  %v2314_v4 = vld [vmem:[%s2517_s27 + $0x384] ss:$16 sps:$4 sm:$0xff]  }
  0x52   : > { %1455 = vmatpush1.bf16.msra.mxu0 %v2232_v5  ;;  %1578 = vmatpush1.bf16.msra.mxu1 %v2233_v6  ;;  %v2317_v5 = vld [vmem:[%s2517_s27 + $0x38c] ss:$16 sps:$4 sm:$0xff]   ;;  %v2312_v6 = vld [vmem:[%s2517_s27 + $0x380] ss:$16 sps:$4 sm:$0xff]  }
  0x53   : > { %1456 = vmatprep.subr.bf16.mxu0 %v2234_v7  ;;  %1579 = vmatprep.subr.bf16.mxu1 %v2236_v8  ;;  %v2315_v7 = vld [vmem:[%s2517_s27 + $0x388] ss:$16 sps:$4 sm:$0xff]   ;;  %v2320_v8 = vld [vmem:[%s2517_s27 + $0x3a4] ss:$16 sps:$4 sm:$0xff]  }
  0x56   : > { %1457 = vmatpush1.bf16.msra.mxu0 %v2238_v10  ;;  %1580 = vmatpush1.bf16.msra.mxu1 %v2239_v11  ;;  %v2318_v10 = vld [vmem:[%s2517_s27 + $0x3a0] ss:$16 sps:$4 sm:$0xff]   ;;  %v2321_v11 = vld [vmem:[%s2517_s27 + $0x3a8] ss:$16 sps:$4 sm:$0xff]  }
  0x57   : > { %1467 = vmatprep.subr.bf16.mxu0 %v2242_v13  ;;  %1590 = vmatprep.subr.bf16.mxu1 %v2245_v14  ;;  %v2329_v13 = vld [vmem:[%s2517_s27 + $0x3cc] ss:$16 sps:$4 sm:$0xff]   ;;  %v2324_v14 = vld [vmem:[%s2517_s27 + $0x3c0] ss:$16 sps:$4 sm:$0xff]  }
  0x59   : > { %1459 = vmatmul.mubr.bf16.vlgmr.msra.gmra.mrb[0].mxu0 %v2601_v17  ;;  %1582 = vmatmul.mubr.bf16.vlgmr.msra.gmra.mrb[0].mxu1 %v2601_v17 }
  0x5a   : > { %1468 = vmatpush1.bf16.msra.mxu0 %v2240_v16  ;;  %1591 = vmatpush1.bf16.msra.mxu1 %v2243_v18  ;;  %v2332_v16 = vld [vmem:[%s2517_s27 + $0x3e4] ss:$16 sps:$4 sm:$0xff]   ;;  %v2335_v18 = vld [vmem:[%s2517_s27 + $0x3ec] ss:$16 sps:$4 sm:$0xff]  }
  0x5b   : > { %1469 = vmatprep.subr.bf16.mxu0 %v2248_v21  ;;  %1592 = vmatprep.subr.bf16.mxu1 %v2251_v22  ;;  %v2330_v21 = vld [vmem:[%s2517_s27 + $0x3e0] ss:$16 sps:$4 sm:$0xff]   ;;  %v2333_v22 = vld [vmem:[%s2517_s27 + $0x3e8] ss:$16 sps:$4 sm:$0xff]  }
  0x5c   : > { %1499 = vmatprep.mubr.bf16.mxu0 %v459_v23  ;;  %1622 = vmatprep.mubr.bf16.mxu1 %v459_v23  ;;  %v2338_v23 = vld [vmem:[%s2517_s27 + $0x404] ss:$16 sps:$4 sm:$0xff]  }
  0x5e   : > { %1470 = vmatpush1.bf16.msra.mxu0 %v2246_v24  ;;  %1593 = vmatpush1.bf16.msra.mxu1 %v2249_v25  ;;  %v2341_v24 = vld [vmem:[%s2517_s27 + $0x40c] ss:$16 sps:$4 sm:$0xff]   ;;  %v458_v25 = vcombine.high %v2601_v17, %v2601_v17  ;;  %v2345_v17 = vld [vmem:[%s2517_s27 + $0x428] ss:$16 sps:$4 sm:$0xff]  }
  0x5f   : > { %1471 = vmatprep.subr.bf16.mxu0 %v2254_v26  ;;  %1594 = vmatprep.subr.bf16.mxu1 %v2257_v27  ;;  %v2336_v26 = vld [vmem:[%s2517_s27 + $0x400] ss:$16 sps:$4 sm:$0xff]   ;;  %v2339_v27 = vld [vmem:[%s2517_s27 + $0x408] ss:$16 sps:$4 sm:$0xff]  }
  0x62   : > { %1472 = vmatpush1.bf16.msra.mxu0 %v2252_v28  ;;  %1595 = vmatpush1.bf16.msra.mxu1 %v2255_v29  ;;  %v2344_v28 = vld [vmem:[%s2517_s27 + $0x424] ss:$16 sps:$4 sm:$0xff]   ;;  %v2347_v29 = vld [vmem:[%s2517_s27 + $0x42c] ss:$16 sps:$4 sm:$0xff]  }
  0x63   : > { %1473 = vmatprep.subr.bf16.mxu0 %v2260_v30  ;;  %1596 = vmatprep.subr.bf16.mxu1 %v2263_v31  ;;  %v2342_v30 = vld [vmem:[%s2517_s27 + $0x420] ss:$16 sps:$4 sm:$0xff]   ;;  %v2350_v31 = vld [vmem:[%s2517_s27 + $0x444] ss:$16 sps:$4 sm:$0xff]  }
  0x66   : > { %1474 = vmatpush1.bf16.msra.mxu0 %v2258_v32  ;;  %1597 = vmatpush1.bf16.msra.mxu1 %v2261_v33  ;;  %v2353_v32 = vld [vmem:[%s2517_s27 + $0x44c] ss:$16 sps:$4 sm:$0xff]   ;;  %v2348_v33 = vld [vmem:[%s2517_s27 + $0x440] ss:$16 sps:$4 sm:$0xff]  }
  0x67   : > { %1475 = vmatprep.subr.bf16.mxu0 %v2266_v34  ;;  %1598 = vmatprep.subr.bf16.mxu1 %v2269_v35  ;;  %v2351_v34 = vld [vmem:[%s2517_s27 + $0x448] ss:$16 sps:$4 sm:$0xff]   ;;  %v2356_v35 = vld [vmem:[%s2517_s27 + $0x464] ss:$16 sps:$4 sm:$0xff]  }
  0x6a   : > { %1476 = vmatpush1.bf16.msra.mxu0 %v2264_v36  ;;  %1599 = vmatpush1.bf16.msra.mxu1 %v2267_v37  ;;  %v2359_v36 = vld [vmem:[%s2517_s27 + $0x46c] ss:$16 sps:$4 sm:$0xff]   ;;  %v2354_v37 = vld [vmem:[%s2517_s27 + $0x460] ss:$16 sps:$4 sm:$0xff]  }
  0x6b   : > { %1477 = vmatprep.subr.bf16.mxu0 %v2272_v38  ;;  %1600 = vmatprep.subr.bf16.mxu1 %v2275_v39  ;;  %v2357_v38 = vld [vmem:[%s2517_s27 + $0x468] ss:$16 sps:$4 sm:$0xff]   ;;  %v2365_v39 = vld [vmem:[%s2517_s27 + $0x48c] ss:$16 sps:$4 sm:$0xff]  }
  0x6e   : > { %1478 = vmatpush1.bf16.msra.mxu0 %v2270_v40  ;;  %1601 = vmatpush1.bf16.msra.mxu1 %v2273_v41  ;;  %v2360_v40 = vld [vmem:[%s2517_s27 + $0x480] ss:$16 sps:$4 sm:$0xff]   ;;  %v2363_v41 = vld [vmem:[%s2517_s27 + $0x488] ss:$16 sps:$4 sm:$0xff]  }
  0x6f   : > { %1479 = vmatprep.subr.bf16.mxu0 %v2278_v42  ;;  %1602 = vmatprep.subr.bf16.mxu1 %v2281_v43  ;;  %v2368_v42 = vld [vmem:[%s2517_s27 + $0x4a4] ss:$16 sps:$4 sm:$0xff]   ;;  %v2371_v43 = vld [vmem:[%s2517_s27 + $0x4ac] ss:$16 sps:$4 sm:$0xff]  }
  0x72   : > { %1480 = vmatpush1.bf16.msra.mxu0 %v2276_v45  ;;  %1603 = vmatpush1.bf16.msra.mxu1 %v2279_v46  ;;  %v2366_v45 = vld [vmem:[%s2517_s27 + $0x4a0] ss:$16 sps:$4 sm:$0xff]   ;;  %v2369_v46 = vld [vmem:[%s2517_s27 + $0x4a8] ss:$16 sps:$4 sm:$0xff]  }
  0x73   : > { %1481 = vmatprep.subr.bf16.mxu0 %v2284_v47  ;;  %1604 = vmatprep.subr.bf16.mxu1 %v2287_v48  ;;  %v2374_v47 = vld [vmem:[%s2517_s27 + $0x4c4] ss:$16 sps:$4 sm:$0xff]   ;;  %v2377_v48 = vld [vmem:[%s2517_s27 + $0x4cc] ss:$16 sps:$4 sm:$0xff]  }
  0x76   : > { %1482 = vmatpush1.bf16.msra.mxu0 %v2282_v49  ;;  %1605 = vmatpush1.bf16.msra.mxu1 %v2285_v51  ;;  %v2372_v49 = vld [vmem:[%s2517_s27 + $0x4c0] ss:$16 sps:$4 sm:$0xff]   ;;  %v2375_v51 = vld [vmem:[%s2517_s27 + $0x4c8] ss:$16 sps:$4 sm:$0xff]  }
  0x77   : > { %1483 = vmatprep.subr.bf16.mxu0 %v2290_v52  ;;  %1606 = vmatprep.subr.bf16.mxu1 %v2293_v53  ;;  %v2380_v52 = vld [vmem:[%s2517_s27 + $0x4e4] ss:$16 sps:$4 sm:$0xff]   ;;  %v2383_v53 = vld [vmem:[%s2517_s27 + $0x4ec] ss:$16 sps:$4 sm:$0xff]  }
  0x7a   : > { %1484 = vmatpush1.bf16.msra.mxu0 %v2288_v54  ;;  %1607 = vmatpush1.bf16.msra.mxu1 %v2291_v55  ;;  %v2378_v54 = vld [vmem:[%s2517_s27 + $0x4e0] ss:$16 sps:$4 sm:$0xff]   ;;  %v2381_v55 = vld [vmem:[%s2517_s27 + $0x4e8] ss:$16 sps:$4 sm:$0xff]  }
  0x7b   : > { %1485 = vmatprep.subr.bf16.mxu0 %v2296_v56  ;;  %1608 = vmatprep.subr.bf16.mxu1 %v2299_v57  ;;  %v2386_v56 = vld [vmem:[%s2517_s27 + $0x504] ss:$16 sps:$4 sm:$0xff]   ;;  %v2389_v57 = vld [vmem:[%s2517_s27 + $0x50c] ss:$16 sps:$4 sm:$0xff]  }
  0x7e   : > { %1486 = vmatpush1.bf16.msra.mxu0 %v2294_v58  ;;  %1609 = vmatpush1.bf16.msra.mxu1 %v2297_v59  ;;  %v2384_v58 = vld [vmem:[%s2517_s27 + $0x500] ss:$16 sps:$4 sm:$0xff]   ;;  %v2387_v59 = vld [vmem:[%s2517_s27 + $0x508] ss:$16 sps:$4 sm:$0xff]  }
  0x7f   : > { %1487 = vmatprep.subr.bf16.mxu0 %v2302_v60  ;;  %1610 = vmatprep.subr.bf16.mxu1 %v2305_v61  ;;  %v2392_v60 = vld [vmem:[%s2517_s27 + $0x524] ss:$16 sps:$4 sm:$0xff]   ;;  %v2395_v61 = vld [vmem:[%s2517_s27 + $0x52c] ss:$16 sps:$4 sm:$0xff]  }
  0x82   : > { %1488 = vmatpush1.bf16.msra.mxu0 %v2300_v62  ;;  %1611 = vmatpush1.bf16.msra.mxu1 %v2303_v63  ;;  %v2390_v62 = vld [vmem:[%s2517_s27 + $0x520] ss:$16 sps:$4 sm:$0xff]   ;;  %v2393_v63 = vld [vmem:[%s2517_s27 + $0x528] ss:$16 sps:$4 sm:$0xff]  }
  0x83   : > { %1489 = vmatprep.subr.bf16.mxu0 %v2308_v0  ;;  %1612 = vmatprep.subr.bf16.mxu1 %v2311_v1  ;;  %v2398_v0 = vld [vmem:[%s2517_s27 + $0x544] ss:$16 sps:$4 sm:$0xff]   ;;  %v2401_v1 = vld [vmem:[%s2517_s27 + $0x54c] ss:$16 sps:$4 sm:$0xff]  }
  0x86   : > { %1490 = vmatpush1.bf16.msra.mxu0 %v2306_v2  ;;  %1613 = vmatpush1.bf16.msra.mxu1 %v2309_v3  ;;  %v2396_v2 = vld [vmem:[%s2517_s27 + $0x540] ss:$16 sps:$4 sm:$0xff]   ;;  %v2399_v3 = vld [vmem:[%s2517_s27 + $0x548] ss:$16 sps:$4 sm:$0xff]  }
  0x87   : > { %1491 = vmatprep.subr.bf16.mxu0 %v2314_v4  ;;  %1614 = vmatprep.subr.bf16.mxu1 %v2317_v5  ;;  %v2404_v4 = vld [vmem:[%s2517_s27 + $0x564] ss:$16 sps:$4 sm:$0xff]   ;;  %v2407_v5 = vld [vmem:[%s2517_s27 + $0x56c] ss:$16 sps:$4 sm:$0xff]  }
  0x8a   : > { %1492 = vmatpush1.bf16.msra.mxu0 %v2312_v6  ;;  %1615 = vmatpush1.bf16.msra.mxu1 %v2315_v7  ;;  %v2402_v6 = vld [vmem:[%s2517_s27 + $0x560] ss:$16 sps:$4 sm:$0xff]   ;;  %v2405_v7 = vld [vmem:[%s2517_s27 + $0x568] ss:$16 sps:$4 sm:$0xff]  }
  0x8b   : > { %1493 = vmatprep.subr.bf16.mxu0 %v2320_v8  ;;  %1616 = vmatprep.subr.bf16.mxu1 %v2323_v9  ;;  %v2410_v8 = vld [vmem:[%s2517_s27 + $0x584] ss:$16 sps:$4 sm:$0xff]   ;;  %v2413_v9 = vld [vmem:[%s2517_s27 + $0x58c] ss:$16 sps:$4 sm:$0xff]  }
  0x8e   : > { %1494 = vmatpush1.bf16.msra.mxu0 %v2318_v10  ;;  %1617 = vmatpush1.bf16.msra.mxu1 %v2321_v11  ;;  %v2408_v10 = vld [vmem:[%s2517_s27 + $0x580] ss:$16 sps:$4 sm:$0xff]   ;;  %v2411_v11 = vld [vmem:[%s2517_s27 + $0x588] ss:$16 sps:$4 sm:$0xff]  }
  0x8f   : > { %1495 = vmatprep.subr.bf16.mxu0 %v2326_v12  ;;  %1618 = vmatprep.subr.bf16.mxu1 %v2329_v13  ;;  %v2416_v12 = vld [vmem:[%s2517_s27 + $0x5a4] ss:$16 sps:$4 sm:$0xff]   ;;  %v2419_v13 = vld [vmem:[%s2517_s27 + $0x5ac] ss:$16 sps:$4 sm:$0xff]  }
  0x92   : > { %1496 = vmatpush1.bf16.msra.mxu0 %v2324_v14  ;;  %1619 = vmatpush1.bf16.msra.mxu1 %v2327_v15  ;;  %v2414_v14 = vld [vmem:[%s2517_s27 + $0x5a0] ss:$16 sps:$4 sm:$0xff]   ;;  %v2417_v15 = vld [vmem:[%s2517_s27 + $0x5a8] ss:$16 sps:$4 sm:$0xff]  }
  0x93   : > { %1497 = vmatprep.subr.bf16.mxu0 %v2332_v16  ;;  %1620 = vmatprep.subr.bf16.mxu1 %v2335_v18  ;;  %v2422_v16 = vld [vmem:[%s2517_s27 + $0x5c4] ss:$16 sps:$4 sm:$0xff]   ;;  %v2425_v18 = vld [vmem:[%s2517_s27 + $0x5cc] ss:$16 sps:$4 sm:$0xff]  }
  0x96   : > { %1498 = vmatpush1.bf16.msra.mxu0 %v2330_v21  ;;  %1621 = vmatpush1.bf16.msra.mxu1 %v2333_v22  ;;  %v2420_v21 = vld [vmem:[%s2517_s27 + $0x5c0] ss:$16 sps:$4 sm:$0xff]   ;;  %v2423_v22 = vld [vmem:[%s2517_s27 + $0x5c8] ss:$16 sps:$4 sm:$0xff]  }
  0x97   : > { %1508 = vmatprep.subr.bf16.mxu0 %v2338_v23  ;;  %1631 = vmatprep.subr.bf16.mxu1 %v2341_v24  ;;  %v2428_v23 = vld [vmem:[%s2517_s27 + $0x5e4] ss:$16 sps:$4 sm:$0xff]   ;;  %v2431_v24 = vld [vmem:[%s2517_s27 + $0x5ec] ss:$16 sps:$4 sm:$0xff]  }
  0x99   : > { %1500 = vmatmul.mubr.bf16.vlgmr.msra.gmra.mrb[0].mxu0 %v458_v25  ;;  %1623 = vmatmul.mubr.bf16.vlgmr.msra.gmra.mrb[0].mxu1 %v458_v25  ;;  %v2426_v25 = vld [vmem:[%s2517_s27 + $0x5e0] ss:$16 sps:$4 sm:$0xff]  }
  0x9a   : > { %1509 = vmatpush1.bf16.msra.mxu0 %v2336_v26  ;;  %1632 = vmatpush1.bf16.msra.mxu1 %v2339_v27  ;;  %v2429_v26 = vld [vmem:[%s2517_s27 + $0x5e8] ss:$16 sps:$4 sm:$0xff]   ;;  %v2459_v27 = vmov 1983009808  }
  0x9b   : > { %1510 = vmatprep.subr.bf16.mxu0 %v2344_v28  ;;  %1633 = vmatprep.subr.bf16.mxu1 %v2347_v29  ;;  %v1679_v28 = vunpack.c.l.s4 %v2459_v27 }
  0x9c   : > { %1540 = vmatprep.mubr.bf16.mxu0 %v2605_v19  ;;  %1663 = vmatprep.mubr.bf16.mxu1 %v2605_v19  ;;  %v2362_v19 = vld [vmem:[%s2517_s27 + $0x484] ss:$16 sps:$4 sm:$0xff]  }
  0x9d   : > { %v1680_v29 = vunpack.c.0.s8 %v1679_v28 }
  0x9e   : > { %1511 = vmatpush1.bf16.msra.mxu0 %v2342_v30  ;;  %1634 = vmatpush1.bf16.msra.mxu1 %v2345_v17 }
  0x9f   : > { %1512 = vmatprep.subr.bf16.mxu0 %v2350_v31  ;;  %1635 = vmatprep.subr.bf16.mxu1 %v2353_v32  ;;  %v1683_v31 = vsub.s32 %v1680_v29, %v2559_v44 }
  0xa2   : > { %1513 = vmatpush1.bf16.msra.mxu0 %v2348_v33  ;;  %1636 = vmatpush1.bf16.msra.mxu1 %v2351_v34 }
  0xa3   : > { %1514 = vmatprep.subr.bf16.mxu0 %v2356_v35  ;;  %1637 = vmatprep.subr.bf16.mxu1 %v2359_v36 }
  0xa6   : > { %1515 = vmatpush1.bf16.msra.mxu0 %v2354_v37  ;;  %1638 = vmatpush1.bf16.msra.mxu1 %v2357_v38 }
  0xa7   : > { %1516 = vmatprep.subr.bf16.mxu0 %v2362_v19  ;;  %1639 = vmatprep.subr.bf16.mxu1 %v2365_v39 }
  0xaa   : > { %1517 = vmatpush1.bf16.msra.mxu0 %v2360_v40  ;;  %1640 = vmatpush1.bf16.msra.mxu1 %v2363_v41  ;;  %v218_v41 = vld [vmem:[#allocation2] sm:$0xff] }
  0xab   : > { %1518 = vmatprep.subr.bf16.mxu0 %v2368_v42  ;;  %1641 = vmatprep.subr.bf16.mxu1 %v2371_v43  ;;  %v1701_v43 = vld [vmem:[%s2770_s3] sm:$0xf] (!%p2092_p7) }
  0xae   : > { %1519 = vmatpush1.bf16.msra.mxu0 %v2366_v45  ;;  %1642 = vmatpush1.bf16.msra.mxu1 %v2369_v46  ;;  %v1705_v45 = vsub.s32 (!%p2092_p7), 0, %v2559_v44  ;;  %v1709_v46 = vsub.s32 (!%p2092_p7), 1, %v2559_v44 }
  0xaf   : > { %1520 = vmatprep.subr.bf16.mxu0 %v2374_v47  ;;  %1643 = vmatprep.subr.bf16.mxu1 %v2377_v48  ;;  %v1713_v47 = vsub.s32 (!%p2092_p7), 2, %v2559_v44  ;;  %v1717_v48 = vsub.s32 (!%p2092_p7), 3, %v2559_v44 }
  0xb2   : > { %1521 = vmatpush1.bf16.msra.mxu0 %v2372_v49  ;;  %1644 = vmatpush1.bf16.msra.mxu1 %v2375_v51  ;;  %v1706_v49 = vrot.slane (!%p2092_p7), %v1701_v43, %v1705_v45  ;;  %v1710_v51 = vrot.slane (!%p2092_p7), %v1701_v43, %v1709_v46 }
  0xb3   : > { %1522 = vmatprep.subr.bf16.mxu0 %v2380_v52  ;;  %1645 = vmatprep.subr.bf16.mxu1 %v2383_v53  ;;  %v1714_v52 = vrot.slane (!%p2092_p7), %v1701_v43, %v1713_v47  ;;  %v1718_v53 = vrot.slane (!%p2092_p7), %v1701_v43, %v1717_v48 }
  0xb6   : > { %1523 = vmatpush1.bf16.msra.mxu0 %v2378_v54  ;;  %1646 = vmatpush1.bf16.msra.mxu1 %v2381_v55  ;;  %v1719_v54 = vcombine.low (!%p2092_p7), %v1706_v49, %v1710_v51  ;;  %v1720_v55 = vcombine.low (!%p2092_p7), %v1714_v52, %v1718_v53 }
  0xb7   : > { %1524 = vmatprep.subr.bf16.mxu0 %v2386_v56  ;;  %1647 = vmatprep.subr.bf16.mxu1 %v2389_v57 }
  0xb8   : > { %v1727_v56 = vrot.slane (!%p2092_p7), %v1719_v54, %v1683_v31  ;;  %v1734_v57 = vrot.slane (!%p2092_p7), %v1720_v55, %v1683_v31 }
  0xba   : > { %1525 = vmatpush1.bf16.msra.mxu0 %v2384_v58  ;;  %1648 = vmatpush1.bf16.msra.mxu1 %v2387_v59  ;;  %v1735_v59 = vcombine.low (!%p2092_p7), %v1727_v56, %v1734_v57 }
  0xbb   : > { %1526 = vmatprep.subr.bf16.mxu0 %v2392_v60  ;;  %1649 = vmatprep.subr.bf16.mxu1 %v2395_v61 }
  0xbe   : > { %1527 = vmatpush1.bf16.msra.mxu0 %v2390_v62  ;;  %1650 = vmatpush1.bf16.msra.mxu1 %v2393_v63 }
  0xbf   : > { %1528 = vmatprep.subr.bf16.mxu0 %v2398_v0  ;;  %1651 = vmatprep.subr.bf16.mxu1 %v2401_v1 }
  0xc2   : > { %1529 = vmatpush1.bf16.msra.mxu0 %v2396_v2  ;;  %1652 = vmatpush1.bf16.msra.mxu1 %v2399_v3 }
  0xc3   : > { %1530 = vmatprep.subr.bf16.mxu0 %v2404_v4  ;;  %1653 = vmatprep.subr.bf16.mxu1 %v2407_v5 }
  0xc6   : > { %1531 = vmatpush1.bf16.msra.mxu0 %v2402_v6  ;;  %1654 = vmatpush1.bf16.msra.mxu1 %v2405_v7 }
  0xc7   : > { %1532 = vmatprep.subr.bf16.mxu0 %v2410_v8  ;;  %1655 = vmatprep.subr.bf16.mxu1 %v2413_v9 }
  0xca   : > { %1533 = vmatpush1.bf16.msra.mxu0 %v2408_v10  ;;  %1656 = vmatpush1.bf16.msra.mxu1 %v2411_v11 }
  0xcb   : > { %1534 = vmatprep.subr.bf16.mxu0 %v2416_v12  ;;  %1657 = vmatprep.subr.bf16.mxu1 %v2419_v13 }
  0xce   : > { %1535 = vmatpush1.bf16.msra.mxu0 %v2414_v14  ;;  %1658 = vmatpush1.bf16.msra.mxu1 %v2417_v15 }
  0xcf   : > { %1536 = vmatprep.subr.bf16.mxu0 %v2422_v16  ;;  %1659 = vmatprep.subr.bf16.mxu1 %v2425_v18 }
  0xd2   : > { %1537 = vmatpush1.bf16.msra.mxu0 %v2420_v21  ;;  %1660 = vmatpush1.bf16.msra.mxu1 %v2423_v22 }
  0xd3   : > { %1538 = vmatprep.subr.bf16.mxu0 %v2428_v23  ;;  %1661 = vmatprep.subr.bf16.mxu1 %v2431_v24 }
  0xd6   : > { %1539 = vmatpush1.bf16.msra.mxu0 %v2426_v25  ;;  %1662 = vmatpush1.bf16.msra.mxu1 %v2429_v26 }
  0xd9   : > { %1541 = vmatmul.mubr.bf16.vlgmr.msra.gmra.mrb[0].mxu0 %v2608_v20  ;;  %1664 = vmatmul.mubr.bf16.vlgmr.msra.gmra.mrb[0].mxu1 %v2608_v20 }
 0x1ac   : > { %v1542_v30 = vpop.f32.mrb[0].mxu0  ;;  %v1665_v17 = vpop.f32.mrb[0].mxu1 }
 0x1ad   : > { %v1544_v32 = vpop.f32.mrb[1].mxu0  ;;  %v1667_v33 = vpop.f32.mrb[1].mxu1 }
 0x1ae   : > { %v1676_v34 = vcombine.low %v1542_v30, %v1544_v32  ;;  %v1677_v35 = vcombine.low %v1665_v17, %v1667_v33  ;;  %v1546_v36 = vpop.f32.mrb[2].mxu0  ;;  %v1669_v37 = vpop.f32.mrb[2].mxu1 }
 0x1af   : > { %v1547_v38 = vpop.f32.mrb[3].mxu0  ;;  %v1670_v19 = vpop.f32.mrb[3].mxu1 }
 0x1b0   : > { %v1684_v39 = vrot.slane %v1676_v34, %v1683_v31  ;;  %v1691_v40 = vrot.slane %v1677_v35, %v1683_v31  ;;  %1699 = sbr.rel (%p2092_p7) target bundleno = 463 (0x1cf), region = 40 }
 0x1b2   : > { %v1692_v42 = vcombine.low %v1684_v39, %v1691_v40 }
 0x1b4   : > { %v1694_v20 = vadd.f32 %v1692_v42, %v218_v41 }
 0x1b6   : > { %1695 = vst [vmem:[#allocation2] sm:$0xff] %v1694_v20 }
 0x1bd   : > { %v1700_v58 = vld [vmem:[#allocation2] sm:$0xff] }
 0x1be   : > { %v1737_v60 = vadd.f32 %v1735_v59, %v1700_v58 }
 0x1c0   : > { %v1738_v61 = vmax.f32 %v1737_v60, 0.0 }
 0x1c2   : > { %v1740_v62 = vcombine.high %v1738_v61, %v1738_v61  ;;  %v1747_v63 = vrot.slane %v1738_v61, %v1683_v31 }
 0x1c4   : > { %v1754_v0 = vrot.slane %v1740_v62, %v1683_v31  ;;  %v1755_v1 = vcombine.high %v1747_v63, %v1747_v63 }
 0x1c6   : > { %v1756_v2 = vcombine.high %v1754_v0, %v1754_v0  ;;  %v2093_v3 = vpack.c.bf16 %v1755_v1, %v1747_v63 }
 0x1c8   : > { %v2094_v4 = vpack.c.bf16 %v1756_v2, %v1754_v0  ;;  %v1777_v44 = vrot.slane %v2093_v3, %v2567_v50 }
 0x1ca   : > { %v1784_v5 = vrot.slane %v2094_v4, %v2567_v50 }
 0x1cc   : > { %v1785_v6 = vcombine.low %v1777_v44, %v1784_v5 }
 0x1ce   : > { %2095 = vst.sshfl [vmem:[#allocation3] sm:$0x55 pattern:$0x73625140] %v1785_v6 }
 0x1cf PF: > { %p2096_p8 = scmp.ne.s32.totalorder %s1893_s0, 5 }
 0x1d1   : > { %1797 = sbr.rel (%p2096_p8) target bundleno = 472 (0x1d8), region = 44 }
 0x1d5   : > { %v1815_v7 = vld [vmem:[#allocation3] sm:$0xf] (!%p2096_p8) }
 0x1d6   : > { %2097 = vst [vmem:[%s2771_s4 + $0x10] sm:$0xf] (!%p2096_p8), %v1815_v7 }
 0x1d8 PF: > { %s15_s17 = sadd.s32 1, %s2455_s17   ;;  %s2772_s15 = smov %s2451_s16 }
 0x1d9   : > { %p12_p9 = scmp.ge.s32.totalorder %s15_s17, 8   ;;  %s2773_s16 = smov %s2775_s18 }
 0x1db   :  { %14 = sbr.rel (!%p12_p9) target bundleno = 2 (0x2), region = 105 }

</bundles_post_ra>
